<compile_context>
chip_gen: v7x
topology: tpu7x:2x2x1
jax: 0.10.0
libtpu: 0.0.40
codegen_flags: <defaults>
</compile_context>

<pallas_src>
import functools
import math

import jax
import jax.numpy as jnp
from jax.experimental import pallas as pl
from jax.experimental.pallas import tpu as pltpu


def _pad_to(n, m):
    return ((n + m - 1) // m) * m


def _cdiv(a, b):
    return (a + b - 1) // b


def _pick_images_per_step(n):
    """Images per conv grid step: amortize the ~0.35us per-step overhead while
    keeping >= 2 grid steps so both v7x TensorCores get work."""
    for nb in (8, 4, 2):
        if n % nb == 0 and n // nb >= 2:
            return nb
    return 1


# ------------------- tap-grouped conv + bias + ReLU (Pallas) ------------------

def _conv_taps_relu_kernel(x_ref, w_ref, b_ref, o_ref, *, offsets, row_tile):
    """x_ref : (Nb, R, K)     bf16  flattened (rows, folded-taps*Cin) input
       w_ref : (T, K, Cout)   bf16  per-height-tap weights (resident)
       b_ref : (1, Cout)      f32
       o_ref : (Nb, HW, Cout) bf16  flattened output rows

    For every output row tile the T tap matmuls accumulate into a register
    (jnp) value (MRB in-place accumulation on v7x); o_ref is written once per
    tile — no VMEM scratch read-modify-write and no per-tap dtype casts."""
    nb, out_rows, _ = o_ref.shape
    bias = b_ref[...]                                    # (1, Cout) f32, hoisted
    n_tiles = out_rows // row_tile
    for b in range(nb):
        for t in range(n_tiles):
            r0 = t * row_tile
            acc = None
            for ti, off in enumerate(offsets):
                lhs = x_ref[b, off + r0:off + r0 + row_tile, :]
                part = jnp.dot(lhs, w_ref[ti],
                               preferred_element_type=jnp.float32)
                acc = part if acc is None else acc + part
            o_ref[b, r0:r0 + row_tile, :] = jnp.maximum(
                acc + bias, 0.0).astype(o_ref.dtype)


def conv_taps_relu(xcols, w_prep, b_prep, *, out_rows, tap_stride):
    """xcols: (N, R, K) bf16; w_prep: (T, K, Cout) bf16; b_prep: (1, Cout) f32.
    Returns (N, out_rows, Cout) bf16 with bias + ReLU applied."""
    N, R, K = xcols.shape
    T, _, Cout = w_prep.shape
    nb = _pick_images_per_step(N)
    offsets = tuple(ti * tap_stride for ti in range(T))
    row_tile = 256 if out_rows % 256 == 0 else out_rows   # keep acc in the vreg file

    return pl.pallas_call(
        functools.partial(_conv_taps_relu_kernel, offsets=offsets,
                          row_tile=row_tile),
        out_shape=jax.ShapeDtypeStruct((N, out_rows, Cout), jnp.bfloat16),
        grid_spec=pltpu.PrefetchScalarGridSpec(
            num_scalar_prefetch=0,
            grid=(N // nb,),
            in_specs=[
                pl.BlockSpec((nb, R, K), lambda n: (n, 0, 0)),     # image block
                pl.BlockSpec((T, K, Cout), lambda n: (0, 0, 0)),   # resident weights
                pl.BlockSpec((1, Cout), lambda n: (0, 0)),         # resident bias
            ],
            out_specs=pl.BlockSpec((nb, out_rows, Cout), lambda n: (n, 0, 0)),
        ),
        compiler_params=pltpu.CompilerParams(
            dimension_semantics=("parallel",),
            vmem_limit_bytes=32 * 1024 * 1024),
    )(xcols, w_prep, b_prep)


# ------------------------------ im2col glue (XLA) -----------------------------

def _im2col_full_5x5(x, k_pad):
    """Full 25-tap im2col for the Cin=3 first conv (lane-density fix).
    x: (N, H, W, C) bf16 -> (N, H*W, k_pad) bf16, channel index (ki*5+kj)*C + c,
    zero-padded to k_pad so the contraction is lane-dense."""
    N, H, W, C = x.shape
    xp = jnp.pad(x, ((0, 0), (2, 2), (2, 2), (0, 0)))
    cols = [xp[:, i:i + H, j:j + W, :] for i in range(5) for j in range(5)]
    pat = jnp.concatenate(cols, axis=-1)                  # (N, H, W, 25*C)
    if k_pad > 25 * C:
        pat = jnp.pad(pat, ((0, 0), (0, 0), (0, 0), (0, k_pad - 25 * C)))
    return pat.reshape(N, H * W, k_pad)


def _im2col_width_5(x):
    """Width-direction im2col: fold the 5 kj taps into channels so the conv
    becomes 5 height taps with K = 5*C.  x: (N, H, W, C) bf16 ->
    ((N, (H+4)*Wr, 5*C) bf16, Wr) with Wr = W rounded up to a multiple of 8 so
    the height-tap row offsets (ki*Wr) stay sublane-aligned; the padded columns
    are zero and the downstream pool never reads them."""
    N, H, W, C = x.shape
    Wr = _pad_to(W, 8)
    xp = jnp.pad(x, ((0, 0), (2, 2), (2, 2), (0, 0)))     # (N, H+4, W+4, C)
    xw = jnp.concatenate([xp[:, :, j:j + W, :] for j in range(5)], axis=-1)
    if Wr > W:
        xw = jnp.pad(xw, ((0, 0), (0, 0), (0, Wr - W), (0, 0)))
    return xw.reshape(N, (H + 4) * Wr, 5 * C), Wr


# ------------------------------ max pool (JAX) --------------------------------

def maxpool2d_3x3_s2(x, valid_w=None):
    """PyTorch MaxPool2d(kernel_size=3, stride=2) on NHWC bf16.  Reads only the
    first `valid_w` columns, so padded-width conv outputs need no slice copy.
    # TODO(synk): fuse pool + next-layer im2col into the conv kernel epilogue to
    # remove the remaining inter-layer HBM round-trips."""
    N, H, Wr, C = x.shape
    W = Wr if valid_w is None else valid_w
    Ho = (H - 3) // 2 + 1
    Wo = (W - 3) // 2 + 1
    out = None
    for di in range(3):
        for dj in range(3):
            v = x[:, di:di + 2 * Ho - 1:2, dj:dj + 2 * Wo - 1:2, :]
            out = v if out is None else jnp.maximum(out, v)
    return out


# --------------------------- fused FC stack (Pallas) --------------------------

def _fc_fused_kernel(x_ref, w1_ref, b1_ref, w2_ref, b2_ref, w3_ref, b3_ref, o_ref):
    h = jnp.dot(x_ref[...], w1_ref[...], preferred_element_type=jnp.float32)
    h = jnp.maximum(h + b1_ref[...], 0.0).astype(jnp.bfloat16)
    h = jnp.dot(h, w2_ref[...], preferred_element_type=jnp.float32)
    h = jnp.maximum(h + b2_ref[...], 0.0).astype(jnp.bfloat16)
    o = jnp.dot(h, w3_ref[...], preferred_element_type=jnp.float32)
    o_ref[...] = (o + b3_ref[...]).astype(o_ref.dtype)


def fc_fused(x, prep):
    """fc1->ReLU->fc2->ReLU->fc3 in one pallas_call.  x: (B, 1152) bf16."""
    B, K1 = x.shape
    w1, b1 = prep["fc1_w"], prep["fc1_b"]      # (1152, 1024) bf16, (1, 1024) f32
    w2, b2 = prep["fc2_w"], prep["fc2_b"]      # (1024, 1024) bf16, (1, 1024) f32
    w3, b3 = prep["fc3_w"], prep["fc3_b"]      # (1024, 128)  bf16, (1, 128)  f32
    K1p, H1 = w1.shape
    H2 = w2.shape[1]
    NCp = w3.shape[1]
    assert K1 == K1p

    if B >= 512:
        tm = 256
    elif B >= 256:
        tm = 128
    else:
        tm = _pad_to(_cdiv(max(B, 2), 2), 16)              # bf16 sublane tile = 16
    Mp = max(_pad_to(B, tm), 2 * tm)                       # >= 2 grid steps (v7x)
    x_p = jnp.pad(x.astype(jnp.bfloat16), ((0, Mp - B), (0, 0)))

    out = pl.pallas_call(
        _fc_fused_kernel,
        out_shape=jax.ShapeDtypeStruct((Mp, NCp), jnp.float32),
        grid_spec=pltpu.PrefetchScalarGridSpec(
            num_scalar_prefetch=0,
            grid=(Mp // tm,),
            in_specs=[
                pl.BlockSpec((tm, K1p), lambda i: (i, 0)),   # batch tile
                pl.BlockSpec((K1p, H1), lambda i: (0, 0)),   # resident weights / biases
                pl.BlockSpec((1, H1), lambda i: (0, 0)),
                pl.BlockSpec((H1, H2), lambda i: (0, 0)),
                pl.BlockSpec((1, H2), lambda i: (0, 0)),
                pl.BlockSpec((H2, NCp), lambda i: (0, 0)),
                pl.BlockSpec((1, NCp), lambda i: (0, 0)),
            ],
            out_specs=pl.BlockSpec((tm, NCp), lambda i: (i, 0)),
        ),
        compiler_params=pltpu.CompilerParams(
            dimension_semantics=("parallel",),
            vmem_limit_bytes=32 * 1024 * 1024),
    )(x_p, w1, b1, w2, b2, w3, b3)
    return out[:B]


# --------------------------- forward pass -------------------------------------

@functools.partial(jax.jit, static_argnames=("num_classes",))
def convfc_forward(prep, x, *, num_classes):
    # x: (N, 3, H, W) NCHW like PyTorch -> NHWC + bf16 once, stay there.
    x = jnp.transpose(x, (0, 2, 3, 1)).astype(jnp.bfloat16)
    N, H, W, _ = x.shape                                            # 32 x 32 x 3

    # conv1 (3->32): full im2col, one K=128 contraction per row tile.
    x1 = _im2col_full_5x5(x, k_pad=prep["conv1_w"].shape[1])        # (N, 1024, 128)
    y1 = conv_taps_relu(x1, prep["conv1_w"], prep["conv1_b"],
                        out_rows=H * W, tap_stride=0)
    p1 = maxpool2d_3x3_s2(y1.reshape(N, H, W, -1))                  # (N, 15, 15, 32)

    # conv2 (32->64): width im2col (K = 160), 5 height taps.
    x2, Wr2 = _im2col_width_5(p1)
    H2, W2 = p1.shape[1], p1.shape[2]
    y2 = conv_taps_relu(x2, prep["conv2_w"], prep["conv2_b"],
                        out_rows=H2 * Wr2, tap_stride=Wr2)
    p2 = maxpool2d_3x3_s2(y2.reshape(N, H2, Wr2, -1), valid_w=W2)   # (N, 7, 7, 64)

    # conv3 (64->128): width im2col (K = 320), 5 height taps.
    x3, Wr3 = _im2col_width_5(p2)
    H3, W3 = p2.shape[1], p2.shape[2]
    y3 = conv_taps_relu(x3, prep["conv3_w"], prep["conv3_b"],
                        out_rows=H3 * Wr3, tap_stride=Wr3)
    p3 = maxpool2d_3x3_s2(y3.reshape(N, H3, Wr3, -1), valid_w=W3)   # (N, 3, 3, 128)

    feats = p3.reshape(N, -1)                    # (N, 1152) in (H, W, C) order;
    logits = fc_fused(feats, prep)               # fc1 columns were permuted to match
    return logits[:, :num_classes]


# --------------------------- parameter prep (one time) ------------------------

def prepare_params(p):
    """One-time, hoisted weight-side preprocessing: tap folding, layout
    transforms, zero-padding to TPU-friendly shapes, bf16 cast for MXU operands."""
    prep = {}

    # conv1: fold all 25 taps -> (1, 128, 32); row index (ki*5 + kj)*Cin + c,
    # zero-padded 75 -> 128 for a lane-dense contraction.
    w1 = p["conv1_w"]                                    # (32, 3, 5, 5) PyTorch layout
    cout1, cin1 = w1.shape[0], w1.shape[1]
    w1f = jnp.transpose(w1, (2, 3, 1, 0)).reshape(25 * cin1, cout1)
    k1p = _pad_to(25 * cin1, 128)
    prep["conv1_w"] = jnp.pad(w1f, ((0, k1p - 25 * cin1), (0, 0)))[None] \
                         .astype(jnp.bfloat16)           # (1, 128, 32)
    prep["conv1_b"] = p["conv1_b"].reshape(1, cout1).astype(jnp.float32)

    # conv2 / conv3: fold the 5 width taps -> (5, 5*Cin, Cout); row index kj*Cin + c.
    for name in ("conv2", "conv3"):
        w = p[name + "_w"]                               # (Cout, Cin, 5, 5)
        cout, cin = w.shape[0], w.shape[1]
        prep[name + "_w"] = jnp.transpose(w, (2, 3, 1, 0)) \
                               .reshape(5, 5 * cin, cout).astype(jnp.bfloat16)
        prep[name + "_b"] = p[name + "_b"].reshape(1, cout).astype(jnp.float32)

    def pad2(a, r, c):
        return jnp.pad(a, ((0, r - a.shape[0]), (0, c - a.shape[1])))

    # fc1: reorder columns from PyTorch's (C,H,W) flatten to our NHWC flatten.
    fc1 = p["fc1_w"]                                     # (1000, 1152), cols c*9 + h*3 + w
    fc1 = fc1.reshape(-1, 128, 3, 3).transpose(2, 3, 1, 0).reshape(3 * 3 * 128, -1)
    H1 = _pad_to(fc1.shape[1], 128)                      # 1000 -> 1024
    prep["fc1_w"] = pad2(fc1, 3 * 3 * 128, H1).astype(jnp.bfloat16)
    prep["fc1_b"] = pad2(p["fc1_b"].reshape(1, -1), 1, H1).astype(jnp.float32)

    fc2 = p["fc2_w"].T                                   # (1000, 1000)
    H2 = _pad_to(fc2.shape[1], 128)
    prep["fc2_w"] = pad2(fc2, H1, H2).astype(jnp.bfloat16)
    prep["fc2_b"] = pad2(p["fc2_b"].reshape(1, -1), 1, H2).astype(jnp.float32)

    fc3 = p["fc3_w"].T                                   # (1000, num_classes)
    NCp = _pad_to(fc3.shape[1], 128)
    prep["fc3_w"] = pad2(fc3, H2, NCp).astype(jnp.bfloat16)
    prep["fc3_b"] = pad2(p["fc3_b"].reshape(1, -1), 1, NCp).astype(jnp.float32)
    return prep


# --------------------------- deterministic init -------------------------------

def init_params(key, num_classes):
    ks = jax.random.split(key, 9)

    def conv_init(k, cout, cin, ksz):
        # matches module __init__: normal_(0, sqrt(2/n)), n = k*k*out_channels; bias zero
        n = ksz * ksz * cout
        w = jax.random.normal(k, (cout, cin, ksz, ksz), jnp.float32) * math.sqrt(2.0 / n)
        b = jnp.zeros((cout,), jnp.float32)
        return w, b

    def fc_init(kw, kb, fout, fin):
        # deterministic stand-in for PyTorch default Linear init (uniform +/- 1/sqrt(fan_in))
        bound = 1.0 / math.sqrt(fin)
        w = jax.random.uniform(kw, (fout, fin), jnp.float32, -bound, bound)
        b = jax.random.uniform(kb, (fout,), jnp.float32, -bound, bound)
        return w, b

    p = {}
    p["conv1_w"], p["conv1_b"] = conv_init(ks[0], 32, 3, 5)
    p["conv2_w"], p["conv2_b"] = conv_init(ks[1], 64, 32, 5)
    p["conv3_w"], p["conv3_b"] = conv_init(ks[2], 128, 64, 5)
    p["fc1_w"], p["fc1_b"] = fc_init(ks[3], ks[4], 1000, 1152)
    p["fc2_w"], p["fc2_b"] = fc_init(ks[5], ks[6], 1000, 1000)
    p["fc3_w"], p["fc3_b"] = fc_init(ks[7], ks[8], num_classes, 1000)
    return p


if __name__ == "__main__":
    num_classes = 10
    key = jax.random.PRNGKey(0)
    k_param, k_x = jax.random.split(key)
    params = init_params(k_param, num_classes)
    prep = prepare_params(params)        # weight prep hoisted out of the forward

    # fc_part's in_features (1152 = 128*3*3) pins the spatial input to 32x32.
    batch = 2
    x = jax.random.normal(k_x, (batch, 3, 32, 32), jnp.float32)   # NCHW like PyTorch

    out = convfc_forward(prep, x, num_classes=num_classes)
    out = jax.block_until_ready(out)
    assert out.shape == (batch, num_classes), out.shape
    assert out.dtype == jnp.float32
    assert bool(jnp.all(jnp.isfinite(out)))
    print("KERNEL_OK")
</pallas_src>

<mosaic_0001>
module attributes {stable_mosaic.version = 11 : i64} {
  func.func @_conv_taps_relu_kernel(%arg0: i32, %arg1: memref<1x1024x128xbf16, #tpu.memory_space<vmem>>, %arg2: memref<1x128x32xbf16, #tpu.memory_space<vmem>>, %arg3: memref<1x32xf32, #tpu.memory_space<vmem>>, %arg4: memref<1x1024x32xbf16, #tpu.memory_space<vmem>>) attributes {dimension_semantics = [#tpu.dimension_semantics<parallel>], iteration_bounds = array<i64: 2>, scalar_prefetch = 0 : i64, scratch_operands = 0 : i64, tpu.core_type = #tpu.core_type<tc>, window_params = [{transform_indices = @transform_0, window_bounds = array<i64: 1, 1024, 128>}, {pipeline_mode = #tpu.pipeline_mode<synchronous>, transform_indices = @transform_1, window_bounds = array<i64: 1, 128, 32>}, {pipeline_mode = #tpu.pipeline_mode<synchronous>, transform_indices = @transform_2, window_bounds = array<i64: 1, 32>}, {transform_indices = @transform_3, window_bounds = array<i64: 1, 1024, 32>}]} {
    %c0 = arith.constant 0 : index
    %c0_0 = arith.constant 0 : index
    %0 = vector.load %arg3[%c0, %c0_0] : memref<1x32xf32, #tpu.memory_space<vmem>>, vector<1x32xf32>
    %c0_1 = arith.constant 0 : index
    %c0_2 = arith.constant 0 : index
    %c0_3 = arith.constant 0 : index
    %1 = vector.load %arg1[%c0_1, %c0_2, %c0_3] : memref<1x1024x128xbf16, #tpu.memory_space<vmem>>, vector<1x256x128xbf16>
    %2 = vector.shape_cast %1 : vector<1x256x128xbf16> to vector<256x128xbf16>
    %c0_4 = arith.constant 0 : index
    %c0_5 = arith.constant 0 : index
    %c0_6 = arith.constant 0 : index
    %3 = vector.load %arg2[%c0_4, %c0_5, %c0_6] : memref<1x128x32xbf16, #tpu.memory_space<vmem>>, vector<1x128x32xbf16>
    %4 = vector.shape_cast %3 : vector<1x128x32xbf16> to vector<128x32xbf16>
    %cst = arith.constant dense<0.000000e+00> : vector<256x32xf32>
    %5 = tpu.matmul %2, %4, %cst {dimension_numbers = #tpu.dot_dimension_numbers<[1], [0], [0], [1], [0, 0, 1, 1], [], []>} : vector<256x128xbf16>, vector<128x32xbf16>, vector<256x32xf32> -> vector<256x32xf32>
    %6 = vector.broadcast %0 : vector<1x32xf32> to vector<256x32xf32>
    %7 = arith.addf %5, %6 : vector<256x32xf32>
    %cst_7 = arith.constant 0.000000e+00 : f32
    %8 = vector.broadcast %cst_7 : f32 to vector<256x32xf32>
    %9 = arith.maximumf %7, %8 : vector<256x32xf32>
    %10 = arith.truncf %9 : vector<256x32xf32> to vector<256x32xbf16>
    %c0_8 = arith.constant 0 : index
    %c0_9 = arith.constant 0 : index
    %c0_10 = arith.constant 0 : index
    %11 = vector.load %arg4[%c0_8, %c0_9, %c0_10] : memref<1x1024x32xbf16, #tpu.memory_space<vmem>>, vector<1x256x32xbf16>
    %12 = vector.shape_cast %11 : vector<1x256x32xbf16> to vector<256x32xbf16>
    %13 = vector.shape_cast %10 : vector<256x32xbf16> to vector<1x256x32xbf16>
    tpu.vector_store %arg4[%c0_8, %c0_9, %c0_10], %13 {strides = array<i32>} : memref<1x1024x32xbf16, #tpu.memory_space<vmem>>, vector<1x256x32xbf16>,
    %c0_11 = arith.constant 0 : index
    %c256 = arith.constant 256 : index
    %c0_12 = arith.constant 0 : index
    %14 = vector.load %arg1[%c0_11, %c256, %c0_12] : memref<1x1024x128xbf16, #tpu.memory_space<vmem>>, vector<1x256x128xbf16>
    %15 = vector.shape_cast %14 : vector<1x256x128xbf16> to vector<256x128xbf16>
    %c0_13 = arith.constant 0 : index
    %c0_14 = arith.constant 0 : index
    %c0_15 = arith.constant 0 : index
    %16 = vector.load %arg2[%c0_13, %c0_14, %c0_15] : memref<1x128x32xbf16, #tpu.memory_space<vmem>>, vector<1x128x32xbf16>
    %17 = vector.shape_cast %16 : vector<1x128x32xbf16> to vector<128x32xbf16>
    %cst_16 = arith.constant dense<0.000000e+00> : vector<256x32xf32>
    %18 = tpu.matmul %15, %17, %cst_16 {dimension_numbers = #tpu.dot_dimension_numbers<[1], [0], [0], [1], [0, 0, 1, 1], [], []>} : vector<256x128xbf16>, vector<128x32xbf16>, vector<256x32xf32> -> vector<256x32xf32>
    %19 = vector.broadcast %0 : vector<1x32xf32> to vector<256x32xf32>
    %20 = arith.addf %18, %19 : vector<256x32xf32>
    %cst_17 = arith.constant 0.000000e+00 : f32
    %21 = vector.broadcast %cst_17 : f32 to vector<256x32xf32>
    %22 = arith.maximumf %20, %21 : vector<256x32xf32>
    %23 = arith.truncf %22 : vector<256x32xf32> to vector<256x32xbf16>
    %c0_18 = arith.constant 0 : index
    %c256_19 = arith.constant 256 : index
    %c0_20 = arith.constant 0 : index
    %24 = vector.load %arg4[%c0_18, %c256_19, %c0_20] : memref<1x1024x32xbf16, #tpu.memory_space<vmem>>, vector<1x256x32xbf16>
    %25 = vector.shape_cast %24 : vector<1x256x32xbf16> to vector<256x32xbf16>
    %26 = vector.shape_cast %23 : vector<256x32xbf16> to vector<1x256x32xbf16>
    tpu.vector_store %arg4[%c0_18, %c256_19, %c0_20], %26 {strides = array<i32>} : memref<1x1024x32xbf16, #tpu.memory_space<vmem>>, vector<1x256x32xbf16>,
    %c0_21 = arith.constant 0 : index
    %c512 = arith.constant 512 : index
    %c0_22 = arith.constant 0 : index
    %27 = vector.load %arg1[%c0_21, %c512, %c0_22] : memref<1x1024x128xbf16, #tpu.memory_space<vmem>>, vector<1x256x128xbf16>
    %28 = vector.shape_cast %27 : vector<1x256x128xbf16> to vector<256x128xbf16>
    %c0_23 = arith.constant 0 : index
    %c0_24 = arith.constant 0 : index
    %c0_25 = arith.constant 0 : index
    %29 = vector.load %arg2[%c0_23, %c0_24, %c0_25] : memref<1x128x32xbf16, #tpu.memory_space<vmem>>, vector<1x128x32xbf16>
    %30 = vector.shape_cast %29 : vector<1x128x32xbf16> to vector<128x32xbf16>
    %cst_26 = arith.constant dense<0.000000e+00> : vector<256x32xf32>
    %31 = tpu.matmul %28, %30, %cst_26 {dimension_numbers = #tpu.dot_dimension_numbers<[1], [0], [0], [1], [0, 0, 1, 1], [], []>} : vector<256x128xbf16>, vector<128x32xbf16>, vector<256x32xf32> -> vector<256x32xf32>
    %32 = vector.broadcast %0 : vector<1x32xf32> to vector<256x32xf32>
    %33 = arith.addf %31, %32 : vector<256x32xf32>
    %cst_27 = arith.constant 0.000000e+00 : f32
    %34 = vector.broadcast %cst_27 : f32 to vector<256x32xf32>
    %35 = arith.maximumf %33, %34 : vector<256x32xf32>
    %36 = arith.truncf %35 : vector<256x32xf32> to vector<256x32xbf16>
    %c0_28 = arith.constant 0 : index
    %c512_29 = arith.constant 512 : index
    %c0_30 = arith.constant 0 : index
    %37 = vector.load %arg4[%c0_28, %c512_29, %c0_30] : memref<1x1024x32xbf16, #tpu.memory_space<vmem>>, vector<1x256x32xbf16>
    %38 = vector.shape_cast %37 : vector<1x256x32xbf16> to vector<256x32xbf16>
    %39 = vector.shape_cast %36 : vector<256x32xbf16> to vector<1x256x32xbf16>
    tpu.vector_store %arg4[%c0_28, %c512_29, %c0_30], %39 {strides = array<i32>} : memref<1x1024x32xbf16, #tpu.memory_space<vmem>>, vector<1x256x32xbf16>,
    %c0_31 = arith.constant 0 : index
    %c768 = arith.constant 768 : index
    %c0_32 = arith.constant 0 : index
    %40 = vector.load %arg1[%c0_31, %c768, %c0_32] : memref<1x1024x128xbf16, #tpu.memory_space<vmem>>, vector<1x256x128xbf16>
    %41 = vector.shape_cast %40 : vector<1x256x128xbf16> to vector<256x128xbf16>
    %c0_33 = arith.constant 0 : index
    %c0_34 = arith.constant 0 : index
    %c0_35 = arith.constant 0 : index
    %42 = vector.load %arg2[%c0_33, %c0_34, %c0_35] : memref<1x128x32xbf16, #tpu.memory_space<vmem>>, vector<1x128x32xbf16>
    %43 = vector.shape_cast %42 : vector<1x128x32xbf16> to vector<128x32xbf16>
    %cst_36 = arith.constant dense<0.000000e+00> : vector<256x32xf32>
    %44 = tpu.matmul %41, %43, %cst_36 {dimension_numbers = #tpu.dot_dimension_numbers<[1], [0], [0], [1], [0, 0, 1, 1], [], []>} : vector<256x128xbf16>, vector<128x32xbf16>, vector<256x32xf32> -> vector<256x32xf32>
    %45 = vector.broadcast %0 : vector<1x32xf32> to vector<256x32xf32>
    %46 = arith.addf %44, %45 : vector<256x32xf32>
    %cst_37 = arith.constant 0.000000e+00 : f32
    %47 = vector.broadcast %cst_37 : f32 to vector<256x32xf32>
    %48 = arith.maximumf %46, %47 : vector<256x32xf32>
    %49 = arith.truncf %48 : vector<256x32xf32> to vector<256x32xbf16>
    %c0_38 = arith.constant 0 : index
    %c768_39 = arith.constant 768 : index
    %c0_40 = arith.constant 0 : index
    %50 = vector.load %arg4[%c0_38, %c768_39, %c0_40] : memref<1x1024x32xbf16, #tpu.memory_space<vmem>>, vector<1x256x32xbf16>
    %51 = vector.shape_cast %50 : vector<1x256x32xbf16> to vector<256x32xbf16>
    %52 = vector.shape_cast %49 : vector<256x32xbf16> to vector<1x256x32xbf16>
    tpu.vector_store %arg4[%c0_38, %c768_39, %c0_40], %52 {strides = array<i32>} : memref<1x1024x32xbf16, #tpu.memory_space<vmem>>, vector<1x256x32xbf16>,
    return
  }
  func.func @transform_0(%arg0: i32) -> (i32, i32, i32) {
    %c0_i32 = arith.constant 0 : i32
    %c0_i32_0 = arith.constant 0 : i32
    %c0_i32_1 = arith.constant 0 : i32
    return %arg0, %c0_i32, %c0_i32_0 : i32, i32, i32
  }
  func.func @transform_1(%arg0: i32) -> (i32, i32, i32) {
    %c0_i32 = arith.constant 0 : i32
    %c0_i32_0 = arith.constant 0 : i32
    %c0_i32_1 = arith.constant 0 : i32
    %c0_i32_2 = arith.constant 0 : i32
    return %c0_i32, %c0_i32_0, %c0_i32_1 : i32, i32, i32
  }
  func.func @transform_2(%arg0: i32) -> (i32, i32) {
    %c0_i32 = arith.constant 0 : i32
    %c0_i32_0 = arith.constant 0 : i32
    %c0_i32_1 = arith.constant 0 : i32
    return %c0_i32, %c0_i32_0 : i32, i32
  }
  func.func @transform_3(%arg0: i32) -> (i32, i32, i32) {
    %c0_i32 = arith.constant 0 : i32
    %c0_i32_0 = arith.constant 0 : i32
    %c0_i32_1 = arith.constant 0 : i32
    return %arg0, %c0_i32, %c0_i32_0 : i32, i32, i32
  }
}

module attributes {stable_mosaic.version = 11 : i64} {
  func.func @_conv_taps_relu_kernel(%arg0: i32, %arg1: memref<1x304x160xbf16, #tpu.memory_space<vmem>>, %arg2: memref<5x160x64xbf16, #tpu.memory_space<vmem>>, %arg3: memref<1x64xf32, #tpu.memory_space<vmem>>, %arg4: memref<1x240x64xbf16, #tpu.memory_space<vmem>>) attributes {dimension_semantics = [#tpu.dimension_semantics<parallel>], iteration_bounds = array<i64: 2>, scalar_prefetch = 0 : i64, scratch_operands = 0 : i64, tpu.core_type = #tpu.core_type<tc>, window_params = [{transform_indices = @transform_0, window_bounds = array<i64: 1, 304, 160>}, {pipeline_mode = #tpu.pipeline_mode<synchronous>, transform_indices = @transform_1, window_bounds = array<i64: 5, 160, 64>}, {pipeline_mode = #tpu.pipeline_mode<synchronous>, transform_indices = @transform_2, window_bounds = array<i64: 1, 64>}, {transform_indices = @transform_3, window_bounds = array<i64: 1, 240, 64>}]} {
    %c0 = arith.constant 0 : index
    %c0_0 = arith.constant 0 : index
    %0 = vector.load %arg3[%c0, %c0_0] : memref<1x64xf32, #tpu.memory_space<vmem>>, vector<1x64xf32>
    %c0_1 = arith.constant 0 : index
    %c0_2 = arith.constant 0 : index
    %c0_3 = arith.constant 0 : index
    %1 = vector.load %arg1[%c0_1, %c0_2, %c0_3] : memref<1x304x160xbf16, #tpu.memory_space<vmem>>, vector<1x240x160xbf16>
    %2 = vector.shape_cast %1 : vector<1x240x160xbf16> to vector<240x160xbf16>
    %c0_4 = arith.constant 0 : index
    %c0_5 = arith.constant 0 : index
    %c0_6 = arith.constant 0 : index
    %3 = vector.load %arg2[%c0_4, %c0_5, %c0_6] : memref<5x160x64xbf16, #tpu.memory_space<vmem>>, vector<1x160x64xbf16>
    %4 = vector.shape_cast %3 : vector<1x160x64xbf16> to vector<160x64xbf16>
    %cst = arith.constant dense<0.000000e+00> : vector<240x64xf32>
    %5 = tpu.matmul %2, %4, %cst {dimension_numbers = #tpu.dot_dimension_numbers<[1], [0], [0], [1], [0, 0, 1, 1], [], []>} : vector<240x160xbf16>, vector<160x64xbf16>, vector<240x64xf32> -> vector<240x64xf32>
    %c0_7 = arith.constant 0 : index
    %c16 = arith.constant 16 : index
    %c0_8 = arith.constant 0 : index
    %6 = vector.load %arg1[%c0_7, %c16, %c0_8] : memref<1x304x160xbf16, #tpu.memory_space<vmem>>, vector<1x240x160xbf16>
    %7 = vector.shape_cast %6 : vector<1x240x160xbf16> to vector<240x160xbf16>
    %c1 = arith.constant 1 : index
    %c0_9 = arith.constant 0 : index
    %c0_10 = arith.constant 0 : index
    %8 = vector.load %arg2[%c1, %c0_9, %c0_10] : memref<5x160x64xbf16, #tpu.memory_space<vmem>>, vector<1x160x64xbf16>
    %9 = vector.shape_cast %8 : vector<1x160x64xbf16> to vector<160x64xbf16>
    %cst_11 = arith.constant dense<0.000000e+00> : vector<240x64xf32>
    %10 = tpu.matmul %7, %9, %cst_11 {dimension_numbers = #tpu.dot_dimension_numbers<[1], [0], [0], [1], [0, 0, 1, 1], [], []>} : vector<240x160xbf16>, vector<160x64xbf16>, vector<240x64xf32> -> vector<240x64xf32>
    %11 = arith.addf %5, %10 : vector<240x64xf32>
    %c0_12 = arith.constant 0 : index
    %c32 = arith.constant 32 : index
    %c0_13 = arith.constant 0 : index
    %12 = vector.load %arg1[%c0_12, %c32, %c0_13] : memref<1x304x160xbf16, #tpu.memory_space<vmem>>, vector<1x240x160xbf16>
    %13 = vector.shape_cast %12 : vector<1x240x160xbf16> to vector<240x160xbf16>
    %c2 = arith.constant 2 : index
    %c0_14 = arith.constant 0 : index
    %c0_15 = arith.constant 0 : index
    %14 = vector.load %arg2[%c2, %c0_14, %c0_15] : memref<5x160x64xbf16, #tpu.memory_space<vmem>>, vector<1x160x64xbf16>
    %15 = vector.shape_cast %14 : vector<1x160x64xbf16> to vector<160x64xbf16>
    %cst_16 = arith.constant dense<0.000000e+00> : vector<240x64xf32>
    %16 = tpu.matmul %13, %15, %cst_16 {dimension_numbers = #tpu.dot_dimension_numbers<[1], [0], [0], [1], [0, 0, 1, 1], [], []>} : vector<240x160xbf16>, vector<160x64xbf16>, vector<240x64xf32> -> vector<240x64xf32>
    %17 = arith.addf %11, %16 : vector<240x64xf32>
    %c0_17 = arith.constant 0 : index
    %c48 = arith.constant 48 : index
    %c0_18 = arith.constant 0 : index
    %18 = vector.load %arg1[%c0_17, %c48, %c0_18] : memref<1x304x160xbf16, #tpu.memory_space<vmem>>, vector<1x240x160xbf16>
    %19 = vector.shape_cast %18 : vector<1x240x160xbf16> to vector<240x160xbf16>
    %c3 = arith.constant 3 : index
    %c0_19 = arith.constant 0 : index
    %c0_20 = arith.constant 0 : index
    %20 = vector.load %arg2[%c3, %c0_19, %c0_20] : memref<5x160x64xbf16, #tpu.memory_space<vmem>>, vector<1x160x64xbf16>
    %21 = vector.shape_cast %20 : vector<1x160x64xbf16> to vector<160x64xbf16>
    %cst_21 = arith.constant dense<0.000000e+00> : vector<240x64xf32>
    %22 = tpu.matmul %19, %21, %cst_21 {dimension_numbers = #tpu.dot_dimension_numbers<[1], [0], [0], [1], [0, 0, 1, 1], [], []>} : vector<240x160xbf16>, vector<160x64xbf16>, vector<240x64xf32> -> vector<240x64xf32>
    %23 = arith.addf %17, %22 : vector<240x64xf32>
    %c0_22 = arith.constant 0 : index
    %c64 = arith.constant 64 : index
    %c0_23 = arith.constant 0 : index
    %24 = vector.load %arg1[%c0_22, %c64, %c0_23] : memref<1x304x160xbf16, #tpu.memory_space<vmem>>, vector<1x240x160xbf16>
    %25 = vector.shape_cast %24 : vector<1x240x160xbf16> to vector<240x160xbf16>
    %c4 = arith.constant 4 : index
    %c0_24 = arith.constant 0 : index
    %c0_25 = arith.constant 0 : index
    %26 = vector.load %arg2[%c4, %c0_24, %c0_25] : memref<5x160x64xbf16, #tpu.memory_space<vmem>>, vector<1x160x64xbf16>
    %27 = vector.shape_cast %26 : vector<1x160x64xbf16> to vector<160x64xbf16>
    %cst_26 = arith.constant dense<0.000000e+00> : vector<240x64xf32>
    %28 = tpu.matmul %25, %27, %cst_26 {dimension_numbers = #tpu.dot_dimension_numbers<[1], [0], [0], [1], [0, 0, 1, 1], [], []>} : vector<240x160xbf16>, vector<160x64xbf16>, vector<240x64xf32> -> vector<240x64xf32>
    %29 = arith.addf %23, %28 : vector<240x64xf32>
    %30 = vector.broadcast %0 : vector<1x64xf32> to vector<240x64xf32>
    %31 = arith.addf %29, %30 : vector<240x64xf32>
    %cst_27 = arith.constant 0.000000e+00 : f32
    %32 = vector.broadcast %cst_27 : f32 to vector<240x64xf32>
    %33 = arith.maximumf %31, %32 : vector<240x64xf32>
    %34 = arith.truncf %33 : vector<240x64xf32> to vector<240x64xbf16>
    %c0_28 = arith.constant 0 : index
    %c0_29 = arith.constant 0 : index
    %c0_30 = arith.constant 0 : index
    %35 = vector.load %arg4[%c0_28, %c0_29, %c0_30] : memref<1x240x64xbf16, #tpu.memory_space<vmem>>, vector<1x240x64xbf16>
    %36 = vector.shape_cast %35 : vector<1x240x64xbf16> to vector<240x64xbf16>
    %37 = vector.shape_cast %34 : vector<240x64xbf16> to vector<1x240x64xbf16>
    tpu.vector_store %arg4[%c0_28, %c0_29, %c0_30], %37 {strides = array<i32>} : memref<1x240x64xbf16, #tpu.memory_space<vmem>>, vector<1x240x64xbf16>,
    return
  }
  func.func @transform_0(%arg0: i32) -> (i32, i32, i32) {
    %c0_i32 = arith.constant 0 : i32
    %c0_i32_0 = arith.constant 0 : i32
    %c0_i32_1 = arith.constant 0 : i32
    return %arg0, %c0_i32, %c0_i32_0 : i32, i32, i32
  }
  func.func @transform_1(%arg0: i32) -> (i32, i32, i32) {
    %c0_i32 = arith.constant 0 : i32
    %c0_i32_0 = arith.constant 0 : i32
    %c0_i32_1 = arith.constant 0 : i32
    %c0_i32_2 = arith.constant 0 : i32
    return %c0_i32, %c0_i32_0, %c0_i32_1 : i32, i32, i32
  }
  func.func @transform_2(%arg0: i32) -> (i32, i32) {
    %c0_i32 = arith.constant 0 : i32
    %c0_i32_0 = arith.constant 0 : i32
    %c0_i32_1 = arith.constant 0 : i32
    return %c0_i32, %c0_i32_0 : i32, i32
  }
  func.func @transform_3(%arg0: i32) -> (i32, i32, i32) {
    %c0_i32 = arith.constant 0 : i32
    %c0_i32_0 = arith.constant 0 : i32
    %c0_i32_1 = arith.constant 0 : i32
    return %arg0, %c0_i32, %c0_i32_0 : i32, i32, i32
  }
}

module attributes {stable_mosaic.version = 11 : i64} {
  func.func @_conv_taps_relu_kernel(%arg0: i32, %arg1: memref<1x88x320xbf16, #tpu.memory_space<vmem>>, %arg2: memref<5x320x128xbf16, #tpu.memory_space<vmem>>, %arg3: memref<1x128xf32, #tpu.memory_space<vmem>>, %arg4: memref<1x56x128xbf16, #tpu.memory_space<vmem>>) attributes {dimension_semantics = [#tpu.dimension_semantics<parallel>], iteration_bounds = array<i64: 2>, scalar_prefetch = 0 : i64, scratch_operands = 0 : i64, tpu.core_type = #tpu.core_type<tc>, window_params = [{transform_indices = @transform_0, window_bounds = array<i64: 1, 88, 320>}, {pipeline_mode = #tpu.pipeline_mode<synchronous>, transform_indices = @transform_1, window_bounds = array<i64: 5, 320, 128>}, {pipeline_mode = #tpu.pipeline_mode<synchronous>, transform_indices = @transform_2, window_bounds = array<i64: 1, 128>}, {transform_indices = @transform_3, window_bounds = array<i64: 1, 56, 128>}]} {
    %c0 = arith.constant 0 : index
    %c0_0 = arith.constant 0 : index
    %0 = vector.load %arg3[%c0, %c0_0] : memref<1x128xf32, #tpu.memory_space<vmem>>, vector<1x128xf32>
    %c0_1 = arith.constant 0 : index
    %c0_2 = arith.constant 0 : index
    %c0_3 = arith.constant 0 : index
    %1 = vector.load %arg1[%c0_1, %c0_2, %c0_3] : memref<1x88x320xbf16, #tpu.memory_space<vmem>>, vector<1x56x320xbf16>
    %2 = vector.shape_cast %1 : vector<1x56x320xbf16> to vector<56x320xbf16>
    %c0_4 = arith.constant 0 : index
    %c0_5 = arith.constant 0 : index
    %c0_6 = arith.constant 0 : index
    %3 = vector.load %arg2[%c0_4, %c0_5, %c0_6] : memref<5x320x128xbf16, #tpu.memory_space<vmem>>, vector<1x320x128xbf16>
    %4 = vector.shape_cast %3 : vector<1x320x128xbf16> to vector<320x128xbf16>
    %cst = arith.constant dense<0.000000e+00> : vector<56x128xf32>
    %5 = tpu.matmul %2, %4, %cst {dimension_numbers = #tpu.dot_dimension_numbers<[1], [0], [0], [1], [0, 0, 1, 1], [], []>} : vector<56x320xbf16>, vector<320x128xbf16>, vector<56x128xf32> -> vector<56x128xf32>
    %c0_7 = arith.constant 0 : index
    %c8 = arith.constant 8 : index
    %c0_8 = arith.constant 0 : index
    %6 = vector.load %arg1[%c0_7, %c8, %c0_8] : memref<1x88x320xbf16, #tpu.memory_space<vmem>>, vector<1x56x320xbf16>
    %7 = vector.shape_cast %6 : vector<1x56x320xbf16> to vector<56x320xbf16>
    %c1 = arith.constant 1 : index
    %c0_9 = arith.constant 0 : index
    %c0_10 = arith.constant 0 : index
    %8 = vector.load %arg2[%c1, %c0_9, %c0_10] : memref<5x320x128xbf16, #tpu.memory_space<vmem>>, vector<1x320x128xbf16>
    %9 = vector.shape_cast %8 : vector<1x320x128xbf16> to vector<320x128xbf16>
    %cst_11 = arith.constant dense<0.000000e+00> : vector<56x128xf32>
    %10 = tpu.matmul %7, %9, %cst_11 {dimension_numbers = #tpu.dot_dimension_numbers<[1], [0], [0], [1], [0, 0, 1, 1], [], []>} : vector<56x320xbf16>, vector<320x128xbf16>, vector<56x128xf32> -> vector<56x128xf32>
    %11 = arith.addf %5, %10 : vector<56x128xf32>
    %c0_12 = arith.constant 0 : index
    %c16 = arith.constant 16 : index
    %c0_13 = arith.constant 0 : index
    %12 = vector.load %arg1[%c0_12, %c16, %c0_13] : memref<1x88x320xbf16, #tpu.memory_space<vmem>>, vector<1x56x320xbf16>
    %13 = vector.shape_cast %12 : vector<1x56x320xbf16> to vector<56x320xbf16>
    %c2 = arith.constant 2 : index
    %c0_14 = arith.constant 0 : index
    %c0_15 = arith.constant 0 : index
    %14 = vector.load %arg2[%c2, %c0_14, %c0_15] : memref<5x320x128xbf16, #tpu.memory_space<vmem>>, vector<1x320x128xbf16>
    %15 = vector.shape_cast %14 : vector<1x320x128xbf16> to vector<320x128xbf16>
    %cst_16 = arith.constant dense<0.000000e+00> : vector<56x128xf32>
    %16 = tpu.matmul %13, %15, %cst_16 {dimension_numbers = #tpu.dot_dimension_numbers<[1], [0], [0], [1], [0, 0, 1, 1], [], []>} : vector<56x320xbf16>, vector<320x128xbf16>, vector<56x128xf32> -> vector<56x128xf32>
    %17 = arith.addf %11, %16 : vector<56x128xf32>
    %c0_17 = arith.constant 0 : index
    %c24 = arith.constant 24 : index
    %c0_18 = arith.constant 0 : index
    %18 = vector.load %arg1[%c0_17, %c24, %c0_18] : memref<1x88x320xbf16, #tpu.memory_space<vmem>>, vector<1x56x320xbf16>
    %19 = vector.shape_cast %18 : vector<1x56x320xbf16> to vector<56x320xbf16>
    %c3 = arith.constant 3 : index
    %c0_19 = arith.constant 0 : index
    %c0_20 = arith.constant 0 : index
    %20 = vector.load %arg2[%c3, %c0_19, %c0_20] : memref<5x320x128xbf16, #tpu.memory_space<vmem>>, vector<1x320x128xbf16>
    %21 = vector.shape_cast %20 : vector<1x320x128xbf16> to vector<320x128xbf16>
    %cst_21 = arith.constant dense<0.000000e+00> : vector<56x128xf32>
    %22 = tpu.matmul %19, %21, %cst_21 {dimension_numbers = #tpu.dot_dimension_numbers<[1], [0], [0], [1], [0, 0, 1, 1], [], []>} : vector<56x320xbf16>, vector<320x128xbf16>, vector<56x128xf32> -> vector<56x128xf32>
    %23 = arith.addf %17, %22 : vector<56x128xf32>
    %c0_22 = arith.constant 0 : index
    %c32 = arith.constant 32 : index
    %c0_23 = arith.constant 0 : index
    %24 = vector.load %arg1[%c0_22, %c32, %c0_23] : memref<1x88x320xbf16, #tpu.memory_space<vmem>>, vector<1x56x320xbf16>
    %25 = vector.shape_cast %24 : vector<1x56x320xbf16> to vector<56x320xbf16>
    %c4 = arith.constant 4 : index
    %c0_24 = arith.constant 0 : index
    %c0_25 = arith.constant 0 : index
    %26 = vector.load %arg2[%c4, %c0_24, %c0_25] : memref<5x320x128xbf16, #tpu.memory_space<vmem>>, vector<1x320x128xbf16>
    %27 = vector.shape_cast %26 : vector<1x320x128xbf16> to vector<320x128xbf16>
    %cst_26 = arith.constant dense<0.000000e+00> : vector<56x128xf32>
    %28 = tpu.matmul %25, %27, %cst_26 {dimension_numbers = #tpu.dot_dimension_numbers<[1], [0], [0], [1], [0, 0, 1, 1], [], []>} : vector<56x320xbf16>, vector<320x128xbf16>, vector<56x128xf32> -> vector<56x128xf32>
    %29 = arith.addf %23, %28 : vector<56x128xf32>
    %30 = vector.broadcast %0 : vector<1x128xf32> to vector<56x128xf32>
    %31 = arith.addf %29, %30 : vector<56x128xf32>
    %cst_27 = arith.constant 0.000000e+00 : f32
    %32 = vector.broadcast %cst_27 : f32 to vector<56x128xf32>
    %33 = arith.maximumf %31, %32 : vector<56x128xf32>
    %34 = arith.truncf %33 : vector<56x128xf32> to vector<56x128xbf16>
    %c0_28 = arith.constant 0 : index
    %c0_29 = arith.constant 0 : index
    %c0_30 = arith.constant 0 : index
    %35 = vector.load %arg4[%c0_28, %c0_29, %c0_30] : memref<1x56x128xbf16, #tpu.memory_space<vmem>>, vector<1x56x128xbf16>
    %36 = vector.shape_cast %35 : vector<1x56x128xbf16> to vector<56x128xbf16>
    %37 = vector.shape_cast %34 : vector<56x128xbf16> to vector<1x56x128xbf16>
    tpu.vector_store %arg4[%c0_28, %c0_29, %c0_30], %37 {strides = array<i32>} : memref<1x56x128xbf16, #tpu.memory_space<vmem>>, vector<1x56x128xbf16>,
    return
  }
  func.func @transform_0(%arg0: i32) -> (i32, i32, i32) {
    %c0_i32 = arith.constant 0 : i32
    %c0_i32_0 = arith.constant 0 : i32
    %c0_i32_1 = arith.constant 0 : i32
    return %arg0, %c0_i32, %c0_i32_0 : i32, i32, i32
  }
  func.func @transform_1(%arg0: i32) -> (i32, i32, i32) {
    %c0_i32 = arith.constant 0 : i32
    %c0_i32_0 = arith.constant 0 : i32
    %c0_i32_1 = arith.constant 0 : i32
    %c0_i32_2 = arith.constant 0 : i32
    return %c0_i32, %c0_i32_0, %c0_i32_1 : i32, i32, i32
  }
  func.func @transform_2(%arg0: i32) -> (i32, i32) {
    %c0_i32 = arith.constant 0 : i32
    %c0_i32_0 = arith.constant 0 : i32
    %c0_i32_1 = arith.constant 0 : i32
    return %c0_i32, %c0_i32_0 : i32, i32
  }
  func.func @transform_3(%arg0: i32) -> (i32, i32, i32) {
    %c0_i32 = arith.constant 0 : i32
    %c0_i32_0 = arith.constant 0 : i32
    %c0_i32_1 = arith.constant 0 : i32
    return %arg0, %c0_i32, %c0_i32_0 : i32, i32, i32
  }
}

module attributes {stable_mosaic.version = 11 : i64} {
  func.func @_fc_fused_kernel(%arg0: i32, %arg1: memref<16x1152xbf16, #tpu.memory_space<vmem>>, %arg2: memref<1152x1024xbf16, #tpu.memory_space<vmem>>, %arg3: memref<1x1024xf32, #tpu.memory_space<vmem>>, %arg4: memref<1024x1024xbf16, #tpu.memory_space<vmem>>, %arg5: memref<1x1024xf32, #tpu.memory_space<vmem>>, %arg6: memref<1024x128xbf16, #tpu.memory_space<vmem>>, %arg7: memref<1x128xf32, #tpu.memory_space<vmem>>, %arg8: memref<16x128xf32, #tpu.memory_space<vmem>>) attributes {dimension_semantics = [#tpu.dimension_semantics<parallel>], iteration_bounds = array<i64: 2>, scalar_prefetch = 0 : i64, scratch_operands = 0 : i64, tpu.core_type = #tpu.core_type<tc>, window_params = [{transform_indices = @transform_0, window_bounds = array<i64: 16, 1152>}, {pipeline_mode = #tpu.pipeline_mode<synchronous>, transform_indices = @transform_1, window_bounds = array<i64: 1152, 1024>}, {pipeline_mode = #tpu.pipeline_mode<synchronous>, transform_indices = @transform_2, window_bounds = array<i64: 1, 1024>}, {pipeline_mode = #tpu.pipeline_mode<synchronous>, transform_indices = @transform_3, window_bounds = array<i64: 1024, 1024>}, {pipeline_mode = #tpu.pipeline_mode<synchronous>, transform_indices = @transform_4, window_bounds = array<i64: 1, 1024>}, {pipeline_mode = #tpu.pipeline_mode<synchronous>, transform_indices = @transform_5, window_bounds = array<i64: 1024, 128>}, {pipeline_mode = #tpu.pipeline_mode<synchronous>, transform_indices = @transform_6, window_bounds = array<i64: 1, 128>}, {transform_indices = @transform_7, window_bounds = array<i64: 16, 128>}]} {
    %c0 = arith.constant 0 : index
    %c0_0 = arith.constant 0 : index
    %0 = vector.load %arg1[%c0, %c0_0] : memref<16x1152xbf16, #tpu.memory_space<vmem>>, vector<16x1152xbf16>
    %c0_1 = arith.constant 0 : index
    %c0_2 = arith.constant 0 : index
    %1 = vector.load %arg2[%c0_1, %c0_2] : memref<1152x1024xbf16, #tpu.memory_space<vmem>>, vector<1152x1024xbf16>
    %cst = arith.constant dense<0.000000e+00> : vector<16x1024xf32>
    %2 = tpu.matmul %0, %1, %cst {dimension_numbers = #tpu.dot_dimension_numbers<[1], [0], [0], [1], [0, 0, 1, 1], [], []>} : vector<16x1152xbf16>, vector<1152x1024xbf16>, vector<16x1024xf32> -> vector<16x1024xf32>
    %c0_3 = arith.constant 0 : index
    %c0_4 = arith.constant 0 : index
    %3 = vector.load %arg3[%c0_3, %c0_4] : memref<1x1024xf32, #tpu.memory_space<vmem>>, vector<1x1024xf32>
    %4 = vector.broadcast %3 : vector<1x1024xf32> to vector<16x1024xf32>
    %5 = arith.addf %2, %4 : vector<16x1024xf32>
    %cst_5 = arith.constant 0.000000e+00 : f32
    %6 = vector.broadcast %cst_5 : f32 to vector<16x1024xf32>
    %7 = arith.maximumf %5, %6 : vector<16x1024xf32>
    %8 = arith.truncf %7 : vector<16x1024xf32> to vector<16x1024xbf16>
    %c0_6 = arith.constant 0 : index
    %c0_7 = arith.constant 0 : index
    %9 = vector.load %arg4[%c0_6, %c0_7] : memref<1024x1024xbf16, #tpu.memory_space<vmem>>, vector<1024x1024xbf16>
    %cst_8 = arith.constant dense<0.000000e+00> : vector<16x1024xf32>
    %10 = tpu.matmul %8, %9, %cst_8 {dimension_numbers = #tpu.dot_dimension_numbers<[1], [0], [0], [1], [0, 0, 1, 1], [], []>} : vector<16x1024xbf16>, vector<1024x1024xbf16>, vector<16x1024xf32> -> vector<16x1024xf32>
    %c0_9 = arith.constant 0 : index
    %c0_10 = arith.constant 0 : index
    %11 = vector.load %arg5[%c0_9, %c0_10] : memref<1x1024xf32, #tpu.memory_space<vmem>>, vector<1x1024xf32>
    %12 = vector.broadcast %11 : vector<1x1024xf32> to vector<16x1024xf32>
    %13 = arith.addf %10, %12 : vector<16x1024xf32>
    %cst_11 = arith.constant 0.000000e+00 : f32
    %14 = vector.broadcast %cst_11 : f32 to vector<16x1024xf32>
    %15 = arith.maximumf %13, %14 : vector<16x1024xf32>
    %16 = arith.truncf %15 : vector<16x1024xf32> to vector<16x1024xbf16>
    %c0_12 = arith.constant 0 : index
    %c0_13 = arith.constant 0 : index
    %17 = vector.load %arg6[%c0_12, %c0_13] : memref<1024x128xbf16, #tpu.memory_space<vmem>>, vector<1024x128xbf16>
    %cst_14 = arith.constant dense<0.000000e+00> : vector<16x128xf32>
    %18 = tpu.matmul %16, %17, %cst_14 {dimension_numbers = #tpu.dot_dimension_numbers<[1], [0], [0], [1], [0, 0, 1, 1], [], []>} : vector<16x1024xbf16>, vector<1024x128xbf16>, vector<16x128xf32> -> vector<16x128xf32>
    %c0_15 = arith.constant 0 : index
    %c0_16 = arith.constant 0 : index
    %19 = vector.load %arg7[%c0_15, %c0_16] : memref<1x128xf32, #tpu.memory_space<vmem>>, vector<1x128xf32>
    %20 = vector.broadcast %19 : vector<1x128xf32> to vector<16x128xf32>
    %21 = arith.addf %18, %20 : vector<16x128xf32>
    %c0_17 = arith.constant 0 : index
    %c0_18 = arith.constant 0 : index
    %22 = vector.load %arg8[%c0_17, %c0_18] : memref<16x128xf32, #tpu.memory_space<vmem>>, vector<16x128xf32>
    tpu.vector_store %arg8[%c0_17, %c0_18], %21 {strides = array<i32>} : memref<16x128xf32, #tpu.memory_space<vmem>>, vector<16x128xf32>,
    return
  }
  func.func @transform_0(%arg0: i32) -> (i32, i32) {
    %c0_i32 = arith.constant 0 : i32
    %c0_i32_0 = arith.constant 0 : i32
    return %arg0, %c0_i32 : i32, i32
  }
  func.func @transform_1(%arg0: i32) -> (i32, i32) {
    %c0_i32 = arith.constant 0 : i32
    %c0_i32_0 = arith.constant 0 : i32
    %c0_i32_1 = arith.constant 0 : i32
    return %c0_i32, %c0_i32_0 : i32, i32
  }
  func.func @transform_2(%arg0: i32) -> (i32, i32) {
    %c0_i32 = arith.constant 0 : i32
    %c0_i32_0 = arith.constant 0 : i32
    %c0_i32_1 = arith.constant 0 : i32
    return %c0_i32, %c0_i32_0 : i32, i32
  }
  func.func @transform_3(%arg0: i32) -> (i32, i32) {
    %c0_i32 = arith.constant 0 : i32
    %c0_i32_0 = arith.constant 0 : i32
    %c0_i32_1 = arith.constant 0 : i32
    return %c0_i32, %c0_i32_0 : i32, i32
  }
  func.func @transform_4(%arg0: i32) -> (i32, i32) {
    %c0_i32 = arith.constant 0 : i32
    %c0_i32_0 = arith.constant 0 : i32
    %c0_i32_1 = arith.constant 0 : i32
    return %c0_i32, %c0_i32_0 : i32, i32
  }
  func.func @transform_5(%arg0: i32) -> (i32, i32) {
    %c0_i32 = arith.constant 0 : i32
    %c0_i32_0 = arith.constant 0 : i32
    %c0_i32_1 = arith.constant 0 : i32
    return %c0_i32, %c0_i32_0 : i32, i32
  }
  func.func @transform_6(%arg0: i32) -> (i32, i32) {
    %c0_i32 = arith.constant 0 : i32
    %c0_i32_0 = arith.constant 0 : i32
    %c0_i32_1 = arith.constant 0 : i32
    return %c0_i32, %c0_i32_0 : i32, i32
  }
  func.func @transform_7(%arg0: i32) -> (i32, i32) {
    %c0_i32 = arith.constant 0 : i32
    %c0_i32_0 = arith.constant 0 : i32
    return %arg0, %c0_i32 : i32, i32
  }
}

</mosaic_0001>

<bundles_post_ra>
// kernel: convfc_forward.4
= control target key start
LH: loop header
LB: loop body
LE: loop exit
PB: predicated region body
PF: predicated region fallthrough
CT: control target
= control target key end

     0   :  { %s3202_s12 = smov 0   ;;  %s3784_s0 = inlined_call_operand.vmem [shape: bf16[2,1024,128], index: 0, kind: input, shape index: {}]   ;;  %s3785_s1 = inlined_call_operand.vmem [shape: bf16[1,128,32], index: 1, kind: input, shape index: {}]   ;;  %s3786_s2 = inlined_call_operand.vmem [shape: f32[1,32], index: 2, kind: input, shape index: {}]   ;;  %s3787_s3 = inlined_call_operand.vmem [shape: bf16[2,1024,32], index: 3, kind: output, shape index: {}]  }
   0x1 LB: > { %s2415_s13 = sadd.s32 4294967295, %s3180_s12   ;;  %p2419_p0 = scmp.ge.s32.totalorder %s3180_s12, 1  ;;  %s3180_s12 = sphi %s3202_s12, %s13_s12  }
   0x2   : > { %p137_p1 = scmp.lt.s32.totalorder %s3180_s12, 3 }
   0x4   : > { %p138_p2 = pnand %p2419_p0, %p137_p1 }
   0x5   : > { %v3077_v0 = vld [vmem:[%s3785_s1] sm:$0xff] (!%p138_p2)   ;;  %v3079_v2 = vld [vmem:[%s3785_s1 + $0x8] sm:$0xff] (!%p138_p2)   ;;  %p161_p3 = scmp.lt.s32.totalorder (!%p138_p2), %s2415_s13, 1  ;;  %v3081_v4 = vld [vmem:[%s3785_s1 + $0x10] sm:$0xff] (!%p138_p2)   ;;  %vm692_vm0 = vcmask (!%p138_p2), 257024  }
   0x6   : > { %141 = sbr.rel (%p138_p2) target bundleno = 381 (0x17d), region = 32  ;;  %v3078_v1 = vld [vmem:[%s3785_s1] sm:$0xff] (!%p138_p2)   ;;  %2877 = vmatprep.subr.bf16.mxu0 (!%p138_p2), %v3077_v0  ;;  %v3080_v3 = vld [vmem:[%s3785_s1 + $0x8] sm:$0xff] (!%p138_p2)   ;;  %v3082_v5 = vld [vmem:[%s3785_s1 + $0x10] sm:$0xff] (!%p138_p2)  }
   0x7   : > { %2925 = vmatprep.subr.bf16.mxu1 (!%p138_p2), %v3078_v1  ;;  %2878 = vmatpush3.bf16.msra.mxu0 (!%p138_p2), %v3077_v0  ;;  %v3083_v6 = vld [vmem:[%s3785_s1 + $0x18] sm:$0xff] (!%p138_p2)   ;;  %v3085_v8 = vld [vmem:[%s3785_s1 + $0x20] sm:$0xff] (!%p138_p2)   ;;  %v3087_v10 = vld [vmem:[%s3785_s1 + $0x28] sm:$0xff] (!%p138_p2)  }
   0x8   : > { %2926 = vmatpush3.bf16.msra.mxu1 (!%p138_p2), %v3078_v1  ;;  %2879 = vmatprep.subr.bf16.mxu0 (!%p138_p2), %v3079_v2  ;;  %v3084_v7 = vld [vmem:[%s3785_s1 + $0x18] sm:$0xff] (!%p138_p2)   ;;  %v3086_v9 = vld [vmem:[%s3785_s1 + $0x20] sm:$0xff] (!%p138_p2)   ;;  %v3088_v11 = vld [vmem:[%s3785_s1 + $0x28] sm:$0xff] (!%p138_p2)  }
   0x9   : > { %2927 = vmatprep.subr.bf16.mxu1 (!%p138_p2), %v3080_v3  ;;  %v3089_v14 = vld [vmem:[%s3785_s1 + $0x30] sm:$0xff] (!%p138_p2)   ;;  %v3091_v16 = vld [vmem:[%s3785_s1 + $0x38] sm:$0xff] (!%p138_p2)   ;;  %v3097_v19 = vld [vmem:[%s3785_s1] sm:$0xff] (!%p138_p2)  }
   0xa   : > { %v3090_v15 = vld [vmem:[%s3785_s1 + $0x30] sm:$0xff] (!%p138_p2)   ;;  %v3092_v17 = vld [vmem:[%s3785_s1 + $0x38] sm:$0xff] (!%p138_p2)   ;;  %v3098_v20 = vld [vmem:[%s3785_s1] sm:$0xff] (!%p138_p2)  }
   0xb   : > { %2880 = vmatpush3.bf16.msra.mxu0 (!%p138_p2), %v3079_v2  ;;  %v3103_v24 = vld [vmem:[%s3785_s1 + $0x8] sm:$0xff] (!%p138_p2)   ;;  %v3109_v27 = vld [vmem:[%s3785_s1 + $0x10] sm:$0xff] (!%p138_p2)   ;;  %v3115_v32 = vld [vmem:[%s3785_s1 + $0x18] sm:$0xff] (!%p138_p2)  }
   0xc   : > { %2928 = vmatpush3.bf16.msra.mxu1 (!%p138_p2), %v3080_v3  ;;  %2881 = vmatprep.subr.bf16.mxu0 (!%p138_p2), %v3081_v4  ;;  %v3104_v25 = vld [vmem:[%s3785_s1 + $0x8] sm:$0xff] (!%p138_p2)   ;;  %v3110_v28 = vld [vmem:[%s3785_s1 + $0x10] sm:$0xff] (!%p138_p2)   ;;  %v3116_v33 = vld [vmem:[%s3785_s1 + $0x18] sm:$0xff] (!%p138_p2)  }
   0xd   : > { %s3789_s13 = smov (!%p161_p3, %s2415_s13), 1  ;;  %2929 = vmatprep.subr.bf16.mxu1 %v3082_v5  ;;  %v3121_v36 = vld [vmem:[%s3785_s1 + $0x20] sm:$0xff]   ;;  %v3127_v40 = vld [vmem:[%s3785_s1 + $0x28] sm:$0xff]   ;;  %v3133_v46 = vld [vmem:[%s3785_s1 + $0x30] sm:$0xff]  }
   0xe   : > { %s2651_s30 = sshll.u32 %s3789_s13, 9  ;;  %v3122_v37 = vld [vmem:[%s3785_s1 + $0x20] sm:$0xff]   ;;  %v3128_v41 = vld [vmem:[%s3785_s1 + $0x28] sm:$0xff]   ;;  %v3134_v47 = vld [vmem:[%s3785_s1 + $0x30] sm:$0xff]  }
   0xf   : > { %2882 = vmatpush3.bf16.msra.mxu0 %v3081_v4  ;;  %s3248_s10 = scalar_lea.vmem %s3784_s0, %s2651_s30  ;;  %v3139_v51 = vld [vmem:[%s3785_s1 + $0x38] sm:$0xff]   ;;  %s3395_s14 = scalar_lea.vmem %s3787_s3, %s2651_s30 }
  0x10   : > { %2930 = vmatpush3.bf16.msra.mxu1 %v3082_v5  ;;  %2883 = vmatprep.subr.bf16.mxu0 %v3083_v6  ;;  %v3093_v12 = vld [vmem:[%s3248_s10] sm:$0xff]   ;;  %v3095_v18 = vld [vmem:[%s3248_s10 + $0x8] sm:$0xff]   ;;  %v3099_v22 = vld [vmem:[%s3248_s10 + $0x10] sm:$0xff]  }
  0x11   : > { %2931 = vmatprep.subr.bf16.mxu1 %v3084_v7  ;;  %v3094_v13 = vld [vmem:[%s3248_s10 + $0x80] sm:$0xff]   ;;  %2893 = vmatprep.mubr.bf16.mxu0 %v3093_v12  ;;  %v3096_v21 = vld [vmem:[%s3248_s10 + $0x88] sm:$0xff]   ;;  %v3100_v23 = vld [vmem:[%s3248_s10 + $0x90] sm:$0xff]  }
  0x12   : > { %2941 = vmatprep.mubr.bf16.mxu1 %v3094_v13  ;;  %v3101_v26 = vld [vmem:[%s3248_s10 + $0x18] sm:$0xff]   ;;  %v3105_v30 = vld [vmem:[%s3248_s10 + $0x20] sm:$0xff]   ;;  %v3107_v34 = vld [vmem:[%s3248_s10 + $0x28] sm:$0xff]  }
  0x13   : > { %2884 = vmatpush3.bf16.msra.mxu0 %v3083_v6  ;;  %v3102_v29 = vld [vmem:[%s3248_s10 + $0x98] sm:$0xff]   ;;  %v3106_v31 = vld [vmem:[%s3248_s10 + $0xa0] sm:$0xff]   ;;  %v3108_v35 = vld [vmem:[%s3248_s10 + $0xa8] sm:$0xff]  }
  0x14   : > { %2932 = vmatpush3.bf16.msra.mxu1 %v3084_v7  ;;  %2885 = vmatprep.subr.bf16.mxu0 %v3085_v8  ;;  %v3111_v38 = vld [vmem:[%s3248_s10 + $0x30] sm:$0xff]   ;;  %v3113_v42 = vld [vmem:[%s3248_s10 + $0x38] sm:$0xff]   ;;  %v3117_v44 = vld [vmem:[%s3248_s10 + $0x40] sm:$0xff]  }
  0x15   : > { %2933 = vmatprep.subr.bf16.mxu1 %v3086_v9  ;;  %v3112_v39 = vld [vmem:[%s3248_s10 + $0xb0] sm:$0xff]   ;;  %v3114_v43 = vld [vmem:[%s3248_s10 + $0xb8] sm:$0xff]   ;;  %v3118_v45 = vld [vmem:[%s3248_s10 + $0xc0] sm:$0xff]  }
  0x16   : > { %v3119_v48 = vld [vmem:[%s3248_s10 + $0x48] sm:$0xff]   ;;  %v3123_v50 = vld [vmem:[%s3248_s10 + $0x50] sm:$0xff]   ;;  %v3140_v52 = vld [vmem:[%s3785_s1 + $0x38] sm:$0xff]  }
  0x17   : > { %2886 = vmatpush3.bf16.msra.mxu0 %v3085_v8  ;;  %v3120_v49 = vld [vmem:[%s3248_s10 + $0xc8] sm:$0xff]   ;;  %v3124_v53 = vld [vmem:[%s3248_s10 + $0xd0] sm:$0xff]   ;;  %v3125_v54 = vld [vmem:[%s3248_s10 + $0x58] sm:$0xff]  }
  0x18   : > { %2934 = vmatpush3.bf16.msra.mxu1 %v3086_v9  ;;  %2887 = vmatprep.subr.bf16.mxu0 %v3087_v10  ;;  %v3126_v55 = vld [vmem:[%s3248_s10 + $0xd8] sm:$0xff]   ;;  %v3129_v56 = vld [vmem:[%s3248_s10 + $0x60] sm:$0xff]   ;;  %v3131_v58 = vld [vmem:[%s3248_s10 + $0x68] sm:$0xff]  }
  0x19   : > { %2935 = vmatprep.subr.bf16.mxu1 %v3088_v11  ;;  %v3130_v57 = vld [vmem:[%s3248_s10 + $0xe0] sm:$0xff]   ;;  %v3132_v59 = vld [vmem:[%s3248_s10 + $0xe8] sm:$0xff]   ;;  %v3135_v60 = vld [vmem:[%s3248_s10 + $0x70] sm:$0xff]  }
  0x1a   : > { %v3136_v61 = vld [vmem:[%s3248_s10 + $0xf0] sm:$0xff]   ;;  %v3137_v62 = vld [vmem:[%s3248_s10 + $0x78] sm:$0xff]   ;;  %v3141_v0 = vld [vmem:[%s3248_s10 + $0x100] sm:$0xff]  }
  0x1b   : > { %2888 = vmatpush3.bf16.msra.mxu0 %v3087_v10  ;;  %v3138_v63 = vld [vmem:[%s3248_s10 + $0xf8] sm:$0xff]   ;;  %v3142_v1 = vld [vmem:[%s3248_s10 + $0x180] sm:$0xff]   ;;  %v3143_v2 = vld [vmem:[%s3248_s10 + $0x108] sm:$0xff]  }
  0x1c   : > { %2936 = vmatpush3.bf16.msra.mxu1 %v3088_v11  ;;  %2889 = vmatprep.subr.bf16.mxu0 %v3089_v14  ;;  %v3144_v3 = vld [vmem:[%s3248_s10 + $0x188] sm:$0xff]   ;;  %v3145_v4 = vld [vmem:[%s3248_s10 + $0x110] sm:$0xff]   ;;  %v3147_v6 = vld [vmem:[%s3248_s10 + $0x118] sm:$0xff]  }
  0x1d   : > { %2937 = vmatprep.subr.bf16.mxu1 %v3090_v15  ;;  %v3146_v5 = vld [vmem:[%s3248_s10 + $0x190] sm:$0xff]   ;;  %v3148_v7 = vld [vmem:[%s3248_s10 + $0x198] sm:$0xff]   ;;  %v3149_v8 = vld [vmem:[%s3248_s10 + $0x120] sm:$0xff]  }
  0x1e   : > { %v3150_v9 = vld [vmem:[%s3248_s10 + $0x1a0] sm:$0xff]   ;;  %v3151_v10 = vld [vmem:[%s3248_s10 + $0x128] sm:$0xff]   ;;  %v3153_v12 = vld [vmem:[%s3248_s10 + $0x130] sm:$0xff]  }
  0x1f   : > { %2890 = vmatpush3.bf16.msra.mxu0 %v3089_v14  ;;  %v3152_v11 = vld [vmem:[%s3248_s10 + $0x1a8] sm:$0xff]   ;;  %v3154_v13 = vld [vmem:[%s3248_s10 + $0x1b0] sm:$0xff]   ;;  %v3155_v14 = vld [vmem:[%s3248_s10 + $0x138] sm:$0xff]  }
  0x20   : > { %2938 = vmatpush3.bf16.msra.mxu1 %v3090_v15  ;;  %2891 = vmatprep.subr.bf16.mxu0 %v3091_v16  ;;  %v3156_v15 = vld [vmem:[%s3248_s10 + $0x1b8] sm:$0xff]  }
  0x21   : > { %2939 = vmatprep.subr.bf16.mxu1 %v3092_v17 }
  0x23   : > { %2892 = vmatpush3.bf16.msra.mxu0 %v3091_v16  ;;  %v3157_v16 = vld [vmem:[%s3248_s10 + $0x140] sm:$0xff]  }
  0x24   : > { %2940 = vmatpush3.bf16.msra.mxu1 %v3092_v17  ;;  %2973 = vmatprep.subr.bf16.mxu0 %v3097_v19  ;;  %v3158_v17 = vld [vmem:[%s3248_s10 + $0x1c0] sm:$0xff]  }
  0x25   : > { %3021 = vmatprep.subr.bf16.mxu1 %v3098_v20 }
  0x26   : > { %2894 = vmatmul.mubr.bf16.vlgmr.msra.gmra.mrb[0].mxu0 %v3095_v18  ;;  %v3159_v18 = vld [vmem:[%s3248_s10 + $0x148] sm:$0xff]  }
  0x27   : > { %2942 = vmatmul.mubr.bf16.vlgmr.msra.gmra.mrb[0].mxu1 %v3096_v21  ;;  %2974 = vmatpush3.bf16.msra.mxu0 %v3097_v19  ;;  %v3160_v19 = vld [vmem:[%s3248_s10 + $0x1c8] sm:$0xff]   ;;  %v3162_v21 = vld [vmem:[%s3248_s10 + $0x1d0] sm:$0xff]  }
  0x28   : > { %3022 = vmatpush3.bf16.msra.mxu1 %v3098_v20  ;;  %2897 = vmatprep.mubr.bf16.mxu0 %v3099_v22  ;;  %v3161_v20 = vld [vmem:[%s3248_s10 + $0x150] sm:$0xff]   ;;  %v3163_v22 = vld [vmem:[%s3248_s10 + $0x158] sm:$0xff]  }
  0x29   : > { %2945 = vmatprep.mubr.bf16.mxu1 %v3100_v23  ;;  %2975 = vmatprep.subr.bf16.mxu0 %v3103_v24  ;;  %v3164_v23 = vld [vmem:[%s3248_s10 + $0x1d8] sm:$0xff]  }
  0x2a   : > { %3023 = vmatprep.subr.bf16.mxu1 %v3104_v25 }
  0x2b   : > { %2976 = vmatpush3.bf16.msra.mxu0 %v3103_v24  ;;  %v3165_v24 = vld [vmem:[%s3248_s10 + $0x160] sm:$0xff]  }
  0x2c   : > { %3024 = vmatpush3.bf16.msra.mxu1 %v3104_v25  ;;  %2977 = vmatprep.subr.bf16.mxu0 %v3109_v27  ;;  %v3166_v25 = vld [vmem:[%s3248_s10 + $0x1e0] sm:$0xff]  }
  0x2d   : > { %3025 = vmatprep.subr.bf16.mxu1 %v3110_v28 }
  0x2e   : > { %2898 = vmatmul.mubr.bf16.gmra.mrb[4].mxu0 %v3101_v26  ;;  %v3167_v26 = vld [vmem:[%s3248_s10 + $0x168] sm:$0xff]  }
  0x2f   : > { %2946 = vmatmul.mubr.bf16.gmra.mrb[4].mxu1 %v3102_v29  ;;  %2901 = vmatprep.mubr.bf16.mxu0 %v3105_v30  ;;  %v3170_v29 = vld [vmem:[%s3248_s10 + $0x1f0] sm:$0xff]   ;;  %v3171_v30 = vld [vmem:[%s3248_s10 + $0x178] sm:$0xff]  }
  0x30   : > { %2949 = vmatprep.mubr.bf16.mxu1 %v3106_v31  ;;  %2978 = vmatpush3.bf16.msra.mxu0 %v3109_v27  ;;  %v3168_v27 = vld [vmem:[%s3248_s10 + $0x1e8] sm:$0xff]   ;;  %v3172_v31 = vld [vmem:[%s3248_s10 + $0x1f8] sm:$0xff]  }
  0x31   : > { %3026 = vmatpush3.bf16.msra.mxu1 %v3110_v28  ;;  %2979 = vmatprep.subr.bf16.mxu0 %v3115_v32  ;;  %v3169_v28 = vld [vmem:[%s3248_s10 + $0x170] sm:$0xff]  }
  0x32   : > { %3027 = vmatprep.subr.bf16.mxu1 %v3116_v33 }
  0x34   : > { %2980 = vmatpush3.bf16.msra.mxu0 %v3115_v32  ;;  %v3383_v32 = vld [vmem:[%s3786_s2] ss:$0 sm:$0xff] }
  0x35   : > { %3028 = vmatpush3.bf16.msra.mxu1 %v3116_v33  ;;  %2981 = vmatprep.subr.bf16.mxu0 %v3121_v36 }
  0x36   : > { %2902 = vmatmul.mubr.bf16.gmra.mrb[8].mxu0 %v3107_v34  ;;  %3029 = vmatprep.subr.bf16.mxu1 %v3122_v37 }
  0x37   : > { %2950 = vmatmul.mubr.bf16.gmra.mrb[8].mxu1 %v3108_v35  ;;  %2905 = vmatprep.mubr.bf16.mxu0 %v3111_v38 }
  0x38   : > { %2953 = vmatprep.mubr.bf16.mxu1 %v3112_v39  ;;  %2982 = vmatpush3.bf16.msra.mxu0 %v3121_v36 }
  0x39   : > { %3030 = vmatpush3.bf16.msra.mxu1 %v3122_v37  ;;  %2983 = vmatprep.subr.bf16.mxu0 %v3127_v40 }
  0x3a   : > { %3031 = vmatprep.subr.bf16.mxu1 %v3128_v41 }
  0x3c   : > { %2984 = vmatpush3.bf16.msra.mxu0 %v3127_v40 }
  0x3d   : > { %3032 = vmatpush3.bf16.msra.mxu1 %v3128_v41  ;;  %2985 = vmatprep.subr.bf16.mxu0 %v3133_v46 }
  0x3e   : > { %2906 = vmatmul.mubr.bf16.gmra.mrb[12].mxu0 %v3113_v42  ;;  %3033 = vmatprep.subr.bf16.mxu1 %v3134_v47 }
  0x3f   : > { %2954 = vmatmul.mubr.bf16.gmra.mrb[12].mxu1 %v3114_v43  ;;  %2909 = vmatprep.mubr.bf16.mxu0 %v3117_v44 }
  0x40   : > { %2957 = vmatprep.mubr.bf16.mxu1 %v3118_v45  ;;  %2986 = vmatpush3.bf16.msra.mxu0 %v3133_v46 }
  0x41   : > { %3034 = vmatpush3.bf16.msra.mxu1 %v3134_v47  ;;  %2987 = vmatprep.subr.bf16.mxu0 %v3139_v51 }
  0x42   : > { %3035 = vmatprep.subr.bf16.mxu1 %v3140_v52 }
  0x44   : > { %2988 = vmatpush3.bf16.msra.mxu0 %v3139_v51 }
  0x45   : > { %3036 = vmatpush3.bf16.msra.mxu1 %v3140_v52 }
  0x46   : > { %2910 = vmatmul.mubr.bf16.gmra.mrb[16].mxu0 %v3119_v48 }
  0x47   : > { %2958 = vmatmul.mubr.bf16.gmra.mrb[16].mxu1 %v3120_v49  ;;  %2913 = vmatprep.mubr.bf16.mxu0 %v3123_v50 }
  0x48   : > { %2961 = vmatprep.mubr.bf16.mxu1 %v3124_v53 }
  0x4e   : > { %2914 = vmatmul.mubr.bf16.gmra.mrb[20].mxu0 %v3125_v54 }
  0x4f   : > { %2962 = vmatmul.mubr.bf16.gmra.mrb[20].mxu1 %v3126_v55  ;;  %2917 = vmatprep.mubr.bf16.mxu0 %v3129_v56 }
  0x50   : > { %2965 = vmatprep.mubr.bf16.mxu1 %v3130_v57 }
  0x56   : > { %2918 = vmatmul.mubr.bf16.gmra.mrb[24].mxu0 %v3131_v58 }
  0x57   : > { %2966 = vmatmul.mubr.bf16.gmra.mrb[24].mxu1 %v3132_v59  ;;  %2921 = vmatprep.mubr.bf16.mxu0 %v3135_v60 }
  0x58   : > { %2969 = vmatprep.mubr.bf16.mxu1 %v3136_v61 }
  0x5e   : > { %2922 = vmatmul.mubr.bf16.gmra.mrb[28].mxu0 %v3137_v62 }
  0x5f   : > { %2970 = vmatmul.mubr.bf16.gmra.mrb[28].mxu1 %v3138_v63  ;;  %2989 = vmatprep.mubr.bf16.mxu0 %v3141_v0 }
  0x60   : > { %3037 = vmatprep.mubr.bf16.mxu1 %v3142_v1 }
  0x66   : > { %2990 = vmatmul.mubr.bf16.vlgmr.msra.gmra.mrb[32].mxu0 %v3143_v2 }
  0x67   : > { %3038 = vmatmul.mubr.bf16.vlgmr.msra.gmra.mrb[32].mxu1 %v3144_v3  ;;  %2993 = vmatprep.mubr.bf16.mxu0 %v3145_v4 }
  0x68   : > { %3041 = vmatprep.mubr.bf16.mxu1 %v3146_v5 }
  0x6e   : > { %2994 = vmatmul.mubr.bf16.gmra.mrb[36].mxu0 %v3147_v6 }
  0x6f   : > { %3042 = vmatmul.mubr.bf16.gmra.mrb[36].mxu1 %v3148_v7  ;;  %2997 = vmatprep.mubr.bf16.mxu0 %v3149_v8 }
  0x70   : > { %3045 = vmatprep.mubr.bf16.mxu1 %v3150_v9 }
  0x76   : > { %2998 = vmatmul.mubr.bf16.gmra.mrb[40].mxu0 %v3151_v10 }
  0x77   : > { %3046 = vmatmul.mubr.bf16.gmra.mrb[40].mxu1 %v3152_v11  ;;  %3001 = vmatprep.mubr.bf16.mxu0 %v3153_v12 }
  0x78   : > { %3049 = vmatprep.mubr.bf16.mxu1 %v3154_v13 }
  0x7e   : > { %3002 = vmatmul.mubr.bf16.gmra.mrb[44].mxu0 %v3155_v14 }
  0x7f   : > { %3050 = vmatmul.mubr.bf16.gmra.mrb[44].mxu1 %v3156_v15  ;;  %3005 = vmatprep.mubr.bf16.mxu0 %v3157_v16 }
  0x80   : > { %3053 = vmatprep.mubr.bf16.mxu1 %v3158_v17 }
  0x86   : > { %3006 = vmatmul.mubr.bf16.gmra.mrb[48].mxu0 %v3159_v18 }
  0x87   : > { %3054 = vmatmul.mubr.bf16.gmra.mrb[48].mxu1 %v3160_v19  ;;  %3009 = vmatprep.mubr.bf16.mxu0 %v3161_v20 }
  0x88   : > { %3057 = vmatprep.mubr.bf16.mxu1 %v3162_v21 }
  0x8e   : > { %3010 = vmatmul.mubr.bf16.gmra.mrb[52].mxu0 %v3163_v22 }
  0x8f   : > { %3058 = vmatmul.mubr.bf16.gmra.mrb[52].mxu1 %v3164_v23  ;;  %3013 = vmatprep.mubr.bf16.mxu0 %v3165_v24 }
  0x90   : > { %3061 = vmatprep.mubr.bf16.mxu1 %v3166_v25 }
  0x96   : > { %3014 = vmatmul.mubr.bf16.gmra.mrb[56].mxu0 %v3167_v26 }
  0x97   : > { %3062 = vmatmul.mubr.bf16.gmra.mrb[56].mxu1 %v3168_v27  ;;  %3017 = vmatprep.mubr.bf16.mxu0 %v3169_v28 }
  0x98   : > { %3065 = vmatprep.mubr.bf16.mxu1 %v3170_v29 }
  0x9e   : > { %3018 = vmatmul.mubr.bf16.gmra.mrb[60].mxu0 %v3171_v30 }
  0x9f   : > { %3066 = vmatmul.mubr.bf16.gmra.mrb[60].mxu1 %v3172_v31 }
  0xf9   : > { %v2895_v33 = vpop.f32.mrb[0].mxu0 }
  0xfa   : > { %v414_v34 = vadd.f32 %v2895_v33, %v3383_v32  ;;  %v2943_v35 = vpop.f32.mrb[0].mxu1  ;;  %v405_v36 = vpop.f32.mrb[1].mxu0 }
  0xfb   : > { %v960_v37 = vadd.f32 %v2943_v35, %v3383_v32  ;;  %v406_v38 = vadd.f32 %v3383_v32, %v405_v36  ;;  %v951_v39 = vpop.f32.mrb[1].mxu1  ;;  %v2896_v40 = vpop.f32.mrb[2].mxu0 }
  0xfc   : > { %v534_v41 = vmax.f32 %v414_v34, 0.0  ;;  %v952_v42 = vadd.f32 %v3383_v32, %v951_v39  ;;  %v417_v43 = vadd.f32 %v2896_v40, %v3383_v32  ;;  %v2944_v44 = vpop.f32.mrb[2].mxu1  ;;  %v408_v45 = vpop.f32.mrb[3].mxu0 }
  0xfd   : > { %v1080_v46 = vmax.f32 %v960_v37, 0.0  ;;  %v532_v47 = vmax.f32 %v406_v38, 0.0  ;;  %v963_v48 = vadd.f32 %v2944_v44, %v3383_v32  ;;  %v409_v49 = vadd.f32 %v3383_v32, %v408_v45  ;;  %v954_v50 = vpop.f32.mrb[3].mxu1 }
  0xfe   : > { %v2655_v51 = vpack.c.bf16 %v534_v41, %v534_v41  ;;  %v1078_v52 = vmax.f32 %v952_v42, 0.0  ;;  %v535_v53 = vmax.f32 %v417_v43, 0.0  ;;  %v955_v54 = vadd.f32 %v3383_v32, %v954_v50 }
  0xff   : > { %v2687_v55 = vpack.c.bf16 %v1080_v46, %v1080_v46  ;;  %v2653_v56 = vpack.c.bf16 %v532_v47, %v532_v47  ;;  %v1081_v57 = vmax.f32 %v963_v48, 0.0  ;;  %v533_v58 = vmax.f32 %v409_v49, 0.0 }
 0x100   : > { %695 = vst.msk [vmem:[%s3395_s14 + $0x8] sm:$0xf] %vm692_vm0, %v2655_v51  ;;  %v2685_v59 = vpack.c.bf16 %v1078_v52, %v1078_v52  ;;  %v2656_v60 = vpack.c.bf16 %v535_v53, %v535_v53  ;;  %v1079_v61 = vmax.f32 %v955_v54, 0.0 }
 0x101   : > { %1240 = vst.msk [vmem:[%s3395_s14 + $0x88] sm:$0xf] %vm692_vm0, %v2687_v55  ;;  %693 = vst.msk [vmem:[%s3395_s14] sm:$0xf] %vm692_vm0, %v2653_v56  ;;  %v2688_v62 = vpack.c.bf16 %v1081_v57, %v1081_v57  ;;  %v2654_v63 = vpack.c.bf16 %v533_v58, %v533_v58  ;;  %v2899_v0 = vpop.f32.mrb[4].mxu0 }
 0x102   : > { %1238 = vst.msk [vmem:[%s3395_s14 + $0x80] sm:$0xf] %vm692_vm0, %v2685_v59  ;;  %696 = vst.msk [vmem:[%s3395_s14 + $0xc] sm:$0xf] %vm692_vm0, %v2656_v60  ;;  %v2686_v1 = vpack.c.bf16 %v1079_v61, %v1079_v61  ;;  %v430_v2 = vadd.f32 %v2899_v0, %v3383_v32  ;;  %v2947_v3 = vpop.f32.mrb[4].mxu1  ;;  %v421_v4 = vpop.f32.mrb[5].mxu0 }
 0x103   : > { %1241 = vst.msk [vmem:[%s3395_s14 + $0x8c] sm:$0xf] %vm692_vm0, %v2688_v62  ;;  %694 = vst.msk [vmem:[%s3395_s14 + $0x4] sm:$0xf] %vm692_vm0, %v2654_v63  ;;  %v976_v5 = vadd.f32 %v2947_v3, %v3383_v32  ;;  %v422_v6 = vadd.f32 %v3383_v32, %v421_v4  ;;  %v967_v7 = vpop.f32.mrb[5].mxu1  ;;  %v2900_v8 = vpop.f32.mrb[6].mxu0 }
 0x104   : > { %1239 = vst.msk [vmem:[%s3395_s14 + $0x84] sm:$0xf] %vm692_vm0, %v2686_v1  ;;  %v538_v9 = vmax.f32 %v430_v2, 0.0  ;;  %v968_v10 = vadd.f32 %v3383_v32, %v967_v7  ;;  %v433_v11 = vadd.f32 %v2900_v8, %v3383_v32  ;;  %v2948_v12 = vpop.f32.mrb[6].mxu1  ;;  %v424_v13 = vpop.f32.mrb[7].mxu0 }
 0x105   : > { %v1084_v14 = vmax.f32 %v976_v5, 0.0  ;;  %v536_v15 = vmax.f32 %v422_v6, 0.0  ;;  %v979_v16 = vadd.f32 %v2948_v12, %v3383_v32  ;;  %v425_v17 = vadd.f32 %v3383_v32, %v424_v13  ;;  %v970_v18 = vpop.f32.mrb[7].mxu1 }
 0x106   : > { %v2659_v19 = vpack.c.bf16 %v538_v9, %v538_v9  ;;  %v1082_v20 = vmax.f32 %v968_v10, 0.0  ;;  %v539_v21 = vmax.f32 %v433_v11, 0.0  ;;  %v971_v22 = vadd.f32 %v3383_v32, %v970_v18 }
 0x107   : > { %v2691_v23 = vpack.c.bf16 %v1084_v14, %v1084_v14  ;;  %v2657_v24 = vpack.c.bf16 %v536_v15, %v536_v15  ;;  %v1085_v25 = vmax.f32 %v979_v16, 0.0  ;;  %v537_v26 = vmax.f32 %v425_v17, 0.0 }
 0x108   : > { %699 = vst.msk [vmem:[%s3395_s14 + $0x18] sm:$0xf] %vm692_vm0, %v2659_v19  ;;  %v2689_v27 = vpack.c.bf16 %v1082_v20, %v1082_v20  ;;  %v2660_v28 = vpack.c.bf16 %v539_v21, %v539_v21  ;;  %v1083_v29 = vmax.f32 %v971_v22, 0.0 }
 0x109   : > { %1244 = vst.msk [vmem:[%s3395_s14 + $0x98] sm:$0xf] %vm692_vm0, %v2691_v23  ;;  %697 = vst.msk [vmem:[%s3395_s14 + $0x10] sm:$0xf] %vm692_vm0, %v2657_v24  ;;  %v2692_v30 = vpack.c.bf16 %v1085_v25, %v1085_v25  ;;  %v2658_v31 = vpack.c.bf16 %v537_v26, %v537_v26  ;;  %v2903_v33 = vpop.f32.mrb[8].mxu0 }
 0x10a   : > { %1242 = vst.msk [vmem:[%s3395_s14 + $0x90] sm:$0xf] %vm692_vm0, %v2689_v27  ;;  %700 = vst.msk [vmem:[%s3395_s14 + $0x1c] sm:$0xf] %vm692_vm0, %v2660_v28  ;;  %v2690_v34 = vpack.c.bf16 %v1083_v29, %v1083_v29  ;;  %v446_v35 = vadd.f32 %v2903_v33, %v3383_v32  ;;  %v2951_v36 = vpop.f32.mrb[8].mxu1  ;;  %v437_v37 = vpop.f32.mrb[9].mxu0 }
 0x10b   : > { %1245 = vst.msk [vmem:[%s3395_s14 + $0x9c] sm:$0xf] %vm692_vm0, %v2692_v30  ;;  %698 = vst.msk [vmem:[%s3395_s14 + $0x14] sm:$0xf] %vm692_vm0, %v2658_v31  ;;  %v992_v38 = vadd.f32 %v2951_v36, %v3383_v32  ;;  %v438_v39 = vadd.f32 %v3383_v32, %v437_v37  ;;  %v983_v40 = vpop.f32.mrb[9].mxu1  ;;  %v2904_v41 = vpop.f32.mrb[10].mxu0 }
 0x10c   : > { %1243 = vst.msk [vmem:[%s3395_s14 + $0x94] sm:$0xf] %vm692_vm0, %v2690_v34  ;;  %v542_v42 = vmax.f32 %v446_v35, 0.0  ;;  %v984_v43 = vadd.f32 %v3383_v32, %v983_v40  ;;  %v449_v44 = vadd.f32 %v2904_v41, %v3383_v32  ;;  %v2952_v45 = vpop.f32.mrb[10].mxu1  ;;  %v440_v46 = vpop.f32.mrb[11].mxu0 }
 0x10d   : > { %v1088_v47 = vmax.f32 %v992_v38, 0.0  ;;  %v540_v48 = vmax.f32 %v438_v39, 0.0  ;;  %v995_v49 = vadd.f32 %v2952_v45, %v3383_v32  ;;  %v441_v50 = vadd.f32 %v3383_v32, %v440_v46  ;;  %v986_v51 = vpop.f32.mrb[11].mxu1 }
 0x10e   : > { %v2663_v52 = vpack.c.bf16 %v542_v42, %v542_v42  ;;  %v1086_v53 = vmax.f32 %v984_v43, 0.0  ;;  %v543_v54 = vmax.f32 %v449_v44, 0.0  ;;  %v987_v55 = vadd.f32 %v3383_v32, %v986_v51 }
 0x10f   : > { %v2695_v56 = vpack.c.bf16 %v1088_v47, %v1088_v47  ;;  %v2661_v57 = vpack.c.bf16 %v540_v48, %v540_v48  ;;  %v1089_v58 = vmax.f32 %v995_v49, 0.0  ;;  %v541_v59 = vmax.f32 %v441_v50, 0.0 }
 0x110   : > { %703 = vst.msk [vmem:[%s3395_s14 + $0x28] sm:$0xf] %vm692_vm0, %v2663_v52  ;;  %v2693_v60 = vpack.c.bf16 %v1086_v53, %v1086_v53  ;;  %v2664_v61 = vpack.c.bf16 %v543_v54, %v543_v54  ;;  %v1087_v62 = vmax.f32 %v987_v55, 0.0 }
 0x111   : > { %1248 = vst.msk [vmem:[%s3395_s14 + $0xa8] sm:$0xf] %vm692_vm0, %v2695_v56  ;;  %701 = vst.msk [vmem:[%s3395_s14 + $0x20] sm:$0xf] %vm692_vm0, %v2661_v57  ;;  %v2696_v63 = vpack.c.bf16 %v1089_v58, %v1089_v58  ;;  %v2662_v0 = vpack.c.bf16 %v541_v59, %v541_v59  ;;  %v2907_v1 = vpop.f32.mrb[12].mxu0 }
 0x112   : > { %1246 = vst.msk [vmem:[%s3395_s14 + $0xa0] sm:$0xf] %vm692_vm0, %v2693_v60  ;;  %704 = vst.msk [vmem:[%s3395_s14 + $0x2c] sm:$0xf] %vm692_vm0, %v2664_v61  ;;  %v2694_v2 = vpack.c.bf16 %v1087_v62, %v1087_v62  ;;  %v462_v3 = vadd.f32 %v2907_v1, %v3383_v32  ;;  %v2955_v4 = vpop.f32.mrb[12].mxu1  ;;  %v453_v5 = vpop.f32.mrb[13].mxu0 }
 0x113   : > { %1249 = vst.msk [vmem:[%s3395_s14 + $0xac] sm:$0xf] %vm692_vm0, %v2696_v63  ;;  %702 = vst.msk [vmem:[%s3395_s14 + $0x24] sm:$0xf] %vm692_vm0, %v2662_v0  ;;  %v1008_v6 = vadd.f32 %v2955_v4, %v3383_v32  ;;  %v454_v7 = vadd.f32 %v3383_v32, %v453_v5  ;;  %v999_v8 = vpop.f32.mrb[13].mxu1  ;;  %v2908_v9 = vpop.f32.mrb[14].mxu0 }
 0x114   : > { %1247 = vst.msk [vmem:[%s3395_s14 + $0xa4] sm:$0xf] %vm692_vm0, %v2694_v2  ;;  %v546_v10 = vmax.f32 %v462_v3, 0.0  ;;  %v1000_v11 = vadd.f32 %v3383_v32, %v999_v8  ;;  %v465_v12 = vadd.f32 %v2908_v9, %v3383_v32  ;;  %v2956_v13 = vpop.f32.mrb[14].mxu1  ;;  %v456_v14 = vpop.f32.mrb[15].mxu0 }
 0x115   : > { %v1092_v15 = vmax.f32 %v1008_v6, 0.0  ;;  %v544_v16 = vmax.f32 %v454_v7, 0.0  ;;  %v1011_v17 = vadd.f32 %v2956_v13, %v3383_v32  ;;  %v457_v18 = vadd.f32 %v3383_v32, %v456_v14  ;;  %v1002_v19 = vpop.f32.mrb[15].mxu1 }
 0x116   : > { %v2667_v20 = vpack.c.bf16 %v546_v10, %v546_v10  ;;  %v1090_v21 = vmax.f32 %v1000_v11, 0.0  ;;  %v547_v22 = vmax.f32 %v465_v12, 0.0  ;;  %v1003_v23 = vadd.f32 %v3383_v32, %v1002_v19 }
 0x117   : > { %v2699_v24 = vpack.c.bf16 %v1092_v15, %v1092_v15  ;;  %v2665_v25 = vpack.c.bf16 %v544_v16, %v544_v16  ;;  %v1093_v26 = vmax.f32 %v1011_v17, 0.0  ;;  %v545_v27 = vmax.f32 %v457_v18, 0.0 }
 0x118   : > { %707 = vst.msk [vmem:[%s3395_s14 + $0x38] sm:$0xf] %vm692_vm0, %v2667_v20  ;;  %v2697_v28 = vpack.c.bf16 %v1090_v21, %v1090_v21  ;;  %v2668_v29 = vpack.c.bf16 %v547_v22, %v547_v22  ;;  %v1091_v30 = vmax.f32 %v1003_v23, 0.0 }
 0x119   : > { %1252 = vst.msk [vmem:[%s3395_s14 + $0xb8] sm:$0xf] %vm692_vm0, %v2699_v24  ;;  %705 = vst.msk [vmem:[%s3395_s14 + $0x30] sm:$0xf] %vm692_vm0, %v2665_v25  ;;  %v2700_v31 = vpack.c.bf16 %v1093_v26, %v1093_v26  ;;  %v2666_v33 = vpack.c.bf16 %v545_v27, %v545_v27  ;;  %v2911_v34 = vpop.f32.mrb[16].mxu0 }
 0x11a   : > { %1250 = vst.msk [vmem:[%s3395_s14 + $0xb0] sm:$0xf] %vm692_vm0, %v2697_v28  ;;  %708 = vst.msk [vmem:[%s3395_s14 + $0x3c] sm:$0xf] %vm692_vm0, %v2668_v29  ;;  %v2698_v35 = vpack.c.bf16 %v1091_v30, %v1091_v30  ;;  %v478_v36 = vadd.f32 %v2911_v34, %v3383_v32  ;;  %v2959_v37 = vpop.f32.mrb[16].mxu1  ;;  %v469_v38 = vpop.f32.mrb[17].mxu0 }
 0x11b   : > { %1253 = vst.msk [vmem:[%s3395_s14 + $0xbc] sm:$0xf] %vm692_vm0, %v2700_v31  ;;  %706 = vst.msk [vmem:[%s3395_s14 + $0x34] sm:$0xf] %vm692_vm0, %v2666_v33  ;;  %v1024_v39 = vadd.f32 %v2959_v37, %v3383_v32  ;;  %v470_v40 = vadd.f32 %v3383_v32, %v469_v38  ;;  %v1015_v41 = vpop.f32.mrb[17].mxu1  ;;  %v2912_v42 = vpop.f32.mrb[18].mxu0 }
 0x11c   : > { %1251 = vst.msk [vmem:[%s3395_s14 + $0xb4] sm:$0xf] %vm692_vm0, %v2698_v35  ;;  %v550_v43 = vmax.f32 %v478_v36, 0.0  ;;  %v1016_v44 = vadd.f32 %v3383_v32, %v1015_v41  ;;  %v481_v45 = vadd.f32 %v2912_v42, %v3383_v32  ;;  %v2960_v46 = vpop.f32.mrb[18].mxu1  ;;  %v472_v47 = vpop.f32.mrb[19].mxu0 }
 0x11d   : > { %v1096_v48 = vmax.f32 %v1024_v39, 0.0  ;;  %v548_v49 = vmax.f32 %v470_v40, 0.0  ;;  %v1027_v50 = vadd.f32 %v2960_v46, %v3383_v32  ;;  %v473_v51 = vadd.f32 %v3383_v32, %v472_v47  ;;  %v1018_v52 = vpop.f32.mrb[19].mxu1 }
 0x11e   : > { %v2671_v53 = vpack.c.bf16 %v550_v43, %v550_v43  ;;  %v1094_v54 = vmax.f32 %v1016_v44, 0.0  ;;  %v551_v55 = vmax.f32 %v481_v45, 0.0  ;;  %v1019_v56 = vadd.f32 %v3383_v32, %v1018_v52 }
 0x11f   : > { %v2703_v57 = vpack.c.bf16 %v1096_v48, %v1096_v48  ;;  %v2669_v58 = vpack.c.bf16 %v548_v49, %v548_v49  ;;  %v1097_v59 = vmax.f32 %v1027_v50, 0.0  ;;  %v549_v60 = vmax.f32 %v473_v51, 0.0 }
 0x120   : > { %711 = vst.msk [vmem:[%s3395_s14 + $0x48] sm:$0xf] %vm692_vm0, %v2671_v53  ;;  %v2701_v61 = vpack.c.bf16 %v1094_v54, %v1094_v54  ;;  %v2672_v62 = vpack.c.bf16 %v551_v55, %v551_v55  ;;  %v1095_v63 = vmax.f32 %v1019_v56, 0.0 }
 0x121   : > { %1256 = vst.msk [vmem:[%s3395_s14 + $0xc8] sm:$0xf] %vm692_vm0, %v2703_v57  ;;  %709 = vst.msk [vmem:[%s3395_s14 + $0x40] sm:$0xf] %vm692_vm0, %v2669_v58  ;;  %v2704_v0 = vpack.c.bf16 %v1097_v59, %v1097_v59  ;;  %v2670_v1 = vpack.c.bf16 %v549_v60, %v549_v60  ;;  %v2915_v2 = vpop.f32.mrb[20].mxu0 }
 0x122   : > { %1254 = vst.msk [vmem:[%s3395_s14 + $0xc0] sm:$0xf] %vm692_vm0, %v2701_v61  ;;  %712 = vst.msk [vmem:[%s3395_s14 + $0x4c] sm:$0xf] %vm692_vm0, %v2672_v62  ;;  %v2702_v3 = vpack.c.bf16 %v1095_v63, %v1095_v63  ;;  %v494_v4 = vadd.f32 %v2915_v2, %v3383_v32  ;;  %v2963_v5 = vpop.f32.mrb[20].mxu1  ;;  %v485_v6 = vpop.f32.mrb[21].mxu0 }
 0x123   : > { %1257 = vst.msk [vmem:[%s3395_s14 + $0xcc] sm:$0xf] %vm692_vm0, %v2704_v0  ;;  %710 = vst.msk [vmem:[%s3395_s14 + $0x44] sm:$0xf] %vm692_vm0, %v2670_v1  ;;  %v1040_v7 = vadd.f32 %v2963_v5, %v3383_v32  ;;  %v486_v8 = vadd.f32 %v3383_v32, %v485_v6  ;;  %v1031_v9 = vpop.f32.mrb[21].mxu1  ;;  %v2916_v10 = vpop.f32.mrb[22].mxu0 }
 0x124   : > { %1255 = vst.msk [vmem:[%s3395_s14 + $0xc4] sm:$0xf] %vm692_vm0, %v2702_v3  ;;  %v554_v11 = vmax.f32 %v494_v4, 0.0  ;;  %v1032_v12 = vadd.f32 %v3383_v32, %v1031_v9  ;;  %v497_v13 = vadd.f32 %v2916_v10, %v3383_v32  ;;  %v2964_v14 = vpop.f32.mrb[22].mxu1  ;;  %v488_v15 = vpop.f32.mrb[23].mxu0 }
 0x125   : > { %v1100_v16 = vmax.f32 %v1040_v7, 0.0  ;;  %v552_v17 = vmax.f32 %v486_v8, 0.0  ;;  %v1043_v18 = vadd.f32 %v2964_v14, %v3383_v32  ;;  %v489_v19 = vadd.f32 %v3383_v32, %v488_v15  ;;  %v1034_v20 = vpop.f32.mrb[23].mxu1 }
 0x126   : > { %v2675_v21 = vpack.c.bf16 %v554_v11, %v554_v11  ;;  %v1098_v22 = vmax.f32 %v1032_v12, 0.0  ;;  %v555_v23 = vmax.f32 %v497_v13, 0.0  ;;  %v1035_v24 = vadd.f32 %v3383_v32, %v1034_v20 }
 0x127   : > { %v2707_v25 = vpack.c.bf16 %v1100_v16, %v1100_v16  ;;  %v2673_v26 = vpack.c.bf16 %v552_v17, %v552_v17  ;;  %v1101_v27 = vmax.f32 %v1043_v18, 0.0  ;;  %v553_v28 = vmax.f32 %v489_v19, 0.0 }
 0x128   : > { %715 = vst.msk [vmem:[%s3395_s14 + $0x58] sm:$0xf] %vm692_vm0, %v2675_v21  ;;  %v2705_v29 = vpack.c.bf16 %v1098_v22, %v1098_v22  ;;  %v2676_v30 = vpack.c.bf16 %v555_v23, %v555_v23  ;;  %v1099_v31 = vmax.f32 %v1035_v24, 0.0 }
 0x129   : > { %1260 = vst.msk [vmem:[%s3395_s14 + $0xd8] sm:$0xf] %vm692_vm0, %v2707_v25  ;;  %713 = vst.msk [vmem:[%s3395_s14 + $0x50] sm:$0xf] %vm692_vm0, %v2673_v26  ;;  %v2708_v33 = vpack.c.bf16 %v1101_v27, %v1101_v27  ;;  %v2674_v34 = vpack.c.bf16 %v553_v28, %v553_v28  ;;  %v2919_v35 = vpop.f32.mrb[24].mxu0 }
 0x12a   : > { %1258 = vst.msk [vmem:[%s3395_s14 + $0xd0] sm:$0xf] %vm692_vm0, %v2705_v29  ;;  %716 = vst.msk [vmem:[%s3395_s14 + $0x5c] sm:$0xf] %vm692_vm0, %v2676_v30  ;;  %v2706_v36 = vpack.c.bf16 %v1099_v31, %v1099_v31  ;;  %v510_v37 = vadd.f32 %v2919_v35, %v3383_v32  ;;  %v2967_v38 = vpop.f32.mrb[24].mxu1  ;;  %v501_v39 = vpop.f32.mrb[25].mxu0 }
 0x12b   : > { %1261 = vst.msk [vmem:[%s3395_s14 + $0xdc] sm:$0xf] %vm692_vm0, %v2708_v33  ;;  %714 = vst.msk [vmem:[%s3395_s14 + $0x54] sm:$0xf] %vm692_vm0, %v2674_v34  ;;  %v1056_v40 = vadd.f32 %v2967_v38, %v3383_v32  ;;  %v502_v41 = vadd.f32 %v3383_v32, %v501_v39  ;;  %v1047_v42 = vpop.f32.mrb[25].mxu1  ;;  %v2920_v43 = vpop.f32.mrb[26].mxu0 }
 0x12c   : > { %1259 = vst.msk [vmem:[%s3395_s14 + $0xd4] sm:$0xf] %vm692_vm0, %v2706_v36  ;;  %v558_v44 = vmax.f32 %v510_v37, 0.0  ;;  %v1048_v45 = vadd.f32 %v3383_v32, %v1047_v42  ;;  %v513_v46 = vadd.f32 %v2920_v43, %v3383_v32  ;;  %v2968_v47 = vpop.f32.mrb[26].mxu1  ;;  %v504_v48 = vpop.f32.mrb[27].mxu0 }
 0x12d   : > { %v1104_v49 = vmax.f32 %v1056_v40, 0.0  ;;  %v556_v50 = vmax.f32 %v502_v41, 0.0  ;;  %v1059_v51 = vadd.f32 %v2968_v47, %v3383_v32  ;;  %v505_v52 = vadd.f32 %v3383_v32, %v504_v48  ;;  %v1050_v53 = vpop.f32.mrb[27].mxu1 }
 0x12e   : > { %v2679_v54 = vpack.c.bf16 %v558_v44, %v558_v44  ;;  %v1102_v55 = vmax.f32 %v1048_v45, 0.0  ;;  %v559_v56 = vmax.f32 %v513_v46, 0.0  ;;  %v1051_v57 = vadd.f32 %v3383_v32, %v1050_v53 }
 0x12f   : > { %v2711_v58 = vpack.c.bf16 %v1104_v49, %v1104_v49  ;;  %v2677_v59 = vpack.c.bf16 %v556_v50, %v556_v50  ;;  %v1105_v60 = vmax.f32 %v1059_v51, 0.0  ;;  %v557_v61 = vmax.f32 %v505_v52, 0.0 }
 0x130   : > { %719 = vst.msk [vmem:[%s3395_s14 + $0x68] sm:$0xf] %vm692_vm0, %v2679_v54  ;;  %v2709_v62 = vpack.c.bf16 %v1102_v55, %v1102_v55  ;;  %v2680_v63 = vpack.c.bf16 %v559_v56, %v559_v56  ;;  %v1103_v0 = vmax.f32 %v1051_v57, 0.0 }
 0x131   : > { %1264 = vst.msk [vmem:[%s3395_s14 + $0xe8] sm:$0xf] %vm692_vm0, %v2711_v58  ;;  %717 = vst.msk [vmem:[%s3395_s14 + $0x60] sm:$0xf] %vm692_vm0, %v2677_v59  ;;  %v2712_v1 = vpack.c.bf16 %v1105_v60, %v1105_v60  ;;  %v2678_v2 = vpack.c.bf16 %v557_v61, %v557_v61  ;;  %v2923_v3 = vpop.f32.mrb[28].mxu0 }
 0x132   : > { %1262 = vst.msk [vmem:[%s3395_s14 + $0xe0] sm:$0xf] %vm692_vm0, %v2709_v62  ;;  %720 = vst.msk [vmem:[%s3395_s14 + $0x6c] sm:$0xf] %vm692_vm0, %v2680_v63  ;;  %v2710_v4 = vpack.c.bf16 %v1103_v0, %v1103_v0  ;;  %v526_v5 = vadd.f32 %v2923_v3, %v3383_v32  ;;  %v2971_v6 = vpop.f32.mrb[28].mxu1  ;;  %v517_v7 = vpop.f32.mrb[29].mxu0 }
 0x133   : > { %1265 = vst.msk [vmem:[%s3395_s14 + $0xec] sm:$0xf] %vm692_vm0, %v2712_v1  ;;  %718 = vst.msk [vmem:[%s3395_s14 + $0x64] sm:$0xf] %vm692_vm0, %v2678_v2  ;;  %v1072_v8 = vadd.f32 %v2971_v6, %v3383_v32  ;;  %v518_v9 = vadd.f32 %v3383_v32, %v517_v7  ;;  %v1063_v10 = vpop.f32.mrb[29].mxu1  ;;  %v2924_v11 = vpop.f32.mrb[30].mxu0 }
 0x134   : > { %1263 = vst.msk [vmem:[%s3395_s14 + $0xe4] sm:$0xf] %vm692_vm0, %v2710_v4  ;;  %v562_v12 = vmax.f32 %v526_v5, 0.0  ;;  %v1064_v13 = vadd.f32 %v3383_v32, %v1063_v10  ;;  %v529_v14 = vadd.f32 %v2924_v11, %v3383_v32  ;;  %v2972_v15 = vpop.f32.mrb[30].mxu1  ;;  %v520_v16 = vpop.f32.mrb[31].mxu0 }
 0x135   : > { %v1108_v17 = vmax.f32 %v1072_v8, 0.0  ;;  %v560_v18 = vmax.f32 %v518_v9, 0.0  ;;  %v1075_v19 = vadd.f32 %v2972_v15, %v3383_v32  ;;  %v521_v20 = vadd.f32 %v3383_v32, %v520_v16  ;;  %v1066_v21 = vpop.f32.mrb[31].mxu1 }
 0x136   : > { %v2683_v22 = vpack.c.bf16 %v562_v12, %v562_v12  ;;  %v1106_v23 = vmax.f32 %v1064_v13, 0.0  ;;  %v563_v24 = vmax.f32 %v529_v14, 0.0  ;;  %v1067_v25 = vadd.f32 %v3383_v32, %v1066_v21 }
 0x137   : > { %v2715_v26 = vpack.c.bf16 %v1108_v17, %v1108_v17  ;;  %v2681_v27 = vpack.c.bf16 %v560_v18, %v560_v18  ;;  %v1109_v28 = vmax.f32 %v1075_v19, 0.0  ;;  %v561_v29 = vmax.f32 %v521_v20, 0.0 }
 0x138   : > { %723 = vst.msk [vmem:[%s3395_s14 + $0x78] sm:$0xf] %vm692_vm0, %v2683_v22  ;;  %v2713_v30 = vpack.c.bf16 %v1106_v23, %v1106_v23  ;;  %v2684_v31 = vpack.c.bf16 %v563_v24, %v563_v24  ;;  %v1107_v33 = vmax.f32 %v1067_v25, 0.0 }
 0x139   : > { %1268 = vst.msk [vmem:[%s3395_s14 + $0xf8] sm:$0xf] %vm692_vm0, %v2715_v26  ;;  %721 = vst.msk [vmem:[%s3395_s14 + $0x70] sm:$0xf] %vm692_vm0, %v2681_v27  ;;  %v2716_v34 = vpack.c.bf16 %v1109_v28, %v1109_v28  ;;  %v2682_v35 = vpack.c.bf16 %v561_v29, %v561_v29  ;;  %v2991_v36 = vpop.f32.mrb[32].mxu0 }
 0x13a   : > { %1266 = vst.msk [vmem:[%s3395_s14 + $0xf0] sm:$0xf] %vm692_vm0, %v2713_v30  ;;  %724 = vst.msk [vmem:[%s3395_s14 + $0x7c] sm:$0xf] %vm692_vm0, %v2684_v31  ;;  %v2714_v37 = vpack.c.bf16 %v1107_v33, %v1107_v33  ;;  %v1505_v38 = vadd.f32 %v2991_v36, %v3383_v32  ;;  %v3039_v39 = vpop.f32.mrb[32].mxu1  ;;  %v1496_v40 = vpop.f32.mrb[33].mxu0 }
 0x13b   : > { %1269 = vst.msk [vmem:[%s3395_s14 + $0xfc] sm:$0xf] %vm692_vm0, %v2716_v34  ;;  %722 = vst.msk [vmem:[%s3395_s14 + $0x74] sm:$0xf] %vm692_vm0, %v2682_v35  ;;  %v2050_v41 = vadd.f32 %v3039_v39, %v3383_v32  ;;  %v1497_v42 = vadd.f32 %v3383_v32, %v1496_v40  ;;  %v2041_v43 = vpop.f32.mrb[33].mxu1  ;;  %v2992_v44 = vpop.f32.mrb[34].mxu0 }
 0x13c   : > { %1267 = vst.msk [vmem:[%s3395_s14 + $0xf4] sm:$0xf] %vm692_vm0, %v2714_v37  ;;  %v1625_v45 = vmax.f32 %v1505_v38, 0.0  ;;  %v2042_v46 = vadd.f32 %v3383_v32, %v2041_v43  ;;  %v1508_v47 = vadd.f32 %v2992_v44, %v3383_v32  ;;  %v3040_v48 = vpop.f32.mrb[34].mxu1  ;;  %v1499_v49 = vpop.f32.mrb[35].mxu0 }
 0x13d   : > { %v2170_v50 = vmax.f32 %v2050_v41, 0.0  ;;  %v1623_v51 = vmax.f32 %v1497_v42, 0.0  ;;  %v2053_v52 = vadd.f32 %v3040_v48, %v3383_v32  ;;  %v1500_v53 = vadd.f32 %v3383_v32, %v1499_v49  ;;  %v2044_v54 = vpop.f32.mrb[35].mxu1 }
 0x13e   : > { %v2719_v55 = vpack.c.bf16 %v1625_v45, %v1625_v45  ;;  %v2168_v56 = vmax.f32 %v2042_v46, 0.0  ;;  %v1626_v57 = vmax.f32 %v1508_v47, 0.0  ;;  %v2045_v58 = vadd.f32 %v3383_v32, %v2044_v54 }
 0x13f   : > { %v2751_v59 = vpack.c.bf16 %v2170_v50, %v2170_v50  ;;  %v2717_v60 = vpack.c.bf16 %v1623_v51, %v1623_v51  ;;  %v2171_v61 = vmax.f32 %v2053_v52, 0.0  ;;  %v1624_v62 = vmax.f32 %v1500_v53, 0.0 }
 0x140   : > { %1785 = vst.msk [vmem:[%s3395_s14 + $0x108] sm:$0xf] %vm692_vm0, %v2719_v55  ;;  %v2749_v63 = vpack.c.bf16 %v2168_v56, %v2168_v56  ;;  %v2720_v0 = vpack.c.bf16 %v1626_v57, %v1626_v57  ;;  %v2169_v1 = vmax.f32 %v2045_v58, 0.0 }
 0x141   : > { %2330 = vst.msk [vmem:[%s3395_s14 + $0x188] sm:$0xf] %vm692_vm0, %v2751_v59  ;;  %1783 = vst.msk [vmem:[%s3395_s14 + $0x100] sm:$0xf] %vm692_vm0, %v2717_v60  ;;  %v2752_v2 = vpack.c.bf16 %v2171_v61, %v2171_v61  ;;  %v2718_v3 = vpack.c.bf16 %v1624_v62, %v1624_v62  ;;  %v2995_v4 = vpop.f32.mrb[36].mxu0 }
 0x142   : > { %2328 = vst.msk [vmem:[%s3395_s14 + $0x180] sm:$0xf] %vm692_vm0, %v2749_v63  ;;  %1786 = vst.msk [vmem:[%s3395_s14 + $0x10c] sm:$0xf] %vm692_vm0, %v2720_v0  ;;  %v2750_v5 = vpack.c.bf16 %v2169_v1, %v2169_v1  ;;  %v1521_v6 = vadd.f32 %v2995_v4, %v3383_v32  ;;  %v3043_v7 = vpop.f32.mrb[36].mxu1  ;;  %v1512_v8 = vpop.f32.mrb[37].mxu0 }
 0x143   : > { %2331 = vst.msk [vmem:[%s3395_s14 + $0x18c] sm:$0xf] %vm692_vm0, %v2752_v2  ;;  %1784 = vst.msk [vmem:[%s3395_s14 + $0x104] sm:$0xf] %vm692_vm0, %v2718_v3  ;;  %v2066_v9 = vadd.f32 %v3043_v7, %v3383_v32  ;;  %v1513_v10 = vadd.f32 %v3383_v32, %v1512_v8  ;;  %v2057_v11 = vpop.f32.mrb[37].mxu1  ;;  %v2996_v12 = vpop.f32.mrb[38].mxu0 }
 0x144   : > { %2329 = vst.msk [vmem:[%s3395_s14 + $0x184] sm:$0xf] %vm692_vm0, %v2750_v5  ;;  %v1629_v13 = vmax.f32 %v1521_v6, 0.0  ;;  %v2058_v14 = vadd.f32 %v3383_v32, %v2057_v11  ;;  %v1524_v15 = vadd.f32 %v2996_v12, %v3383_v32  ;;  %v3044_v16 = vpop.f32.mrb[38].mxu1  ;;  %v1515_v17 = vpop.f32.mrb[39].mxu0 }
 0x145   : > { %v2174_v18 = vmax.f32 %v2066_v9, 0.0  ;;  %v1627_v19 = vmax.f32 %v1513_v10, 0.0  ;;  %v2069_v20 = vadd.f32 %v3044_v16, %v3383_v32  ;;  %v1516_v21 = vadd.f32 %v3383_v32, %v1515_v17  ;;  %v2060_v22 = vpop.f32.mrb[39].mxu1 }
 0x146   : > { %v2723_v23 = vpack.c.bf16 %v1629_v13, %v1629_v13  ;;  %v2172_v24 = vmax.f32 %v2058_v14, 0.0  ;;  %v1630_v25 = vmax.f32 %v1524_v15, 0.0  ;;  %v2061_v26 = vadd.f32 %v3383_v32, %v2060_v22 }
 0x147   : > { %v2755_v27 = vpack.c.bf16 %v2174_v18, %v2174_v18  ;;  %v2721_v28 = vpack.c.bf16 %v1627_v19, %v1627_v19  ;;  %v2175_v29 = vmax.f32 %v2069_v20, 0.0  ;;  %v1628_v30 = vmax.f32 %v1516_v21, 0.0 }
 0x148   : > { %1789 = vst.msk [vmem:[%s3395_s14 + $0x118] sm:$0xf] %vm692_vm0, %v2723_v23  ;;  %v2753_v31 = vpack.c.bf16 %v2172_v24, %v2172_v24  ;;  %v2724_v33 = vpack.c.bf16 %v1630_v25, %v1630_v25  ;;  %v2173_v34 = vmax.f32 %v2061_v26, 0.0 }
 0x149   : > { %2334 = vst.msk [vmem:[%s3395_s14 + $0x198] sm:$0xf] %vm692_vm0, %v2755_v27  ;;  %1787 = vst.msk [vmem:[%s3395_s14 + $0x110] sm:$0xf] %vm692_vm0, %v2721_v28  ;;  %v2756_v35 = vpack.c.bf16 %v2175_v29, %v2175_v29  ;;  %v2722_v36 = vpack.c.bf16 %v1628_v30, %v1628_v30  ;;  %v2999_v37 = vpop.f32.mrb[40].mxu0 }
 0x14a   : > { %2332 = vst.msk [vmem:[%s3395_s14 + $0x190] sm:$0xf] %vm692_vm0, %v2753_v31  ;;  %1790 = vst.msk [vmem:[%s3395_s14 + $0x11c] sm:$0xf] %vm692_vm0, %v2724_v33  ;;  %v2754_v38 = vpack.c.bf16 %v2173_v34, %v2173_v34  ;;  %v1537_v39 = vadd.f32 %v2999_v37, %v3383_v32  ;;  %v3047_v40 = vpop.f32.mrb[40].mxu1  ;;  %v1528_v41 = vpop.f32.mrb[41].mxu0 }
 0x14b   : > { %2335 = vst.msk [vmem:[%s3395_s14 + $0x19c] sm:$0xf] %vm692_vm0, %v2756_v35  ;;  %1788 = vst.msk [vmem:[%s3395_s14 + $0x114] sm:$0xf] %vm692_vm0, %v2722_v36  ;;  %v2082_v42 = vadd.f32 %v3047_v40, %v3383_v32  ;;  %v1529_v43 = vadd.f32 %v3383_v32, %v1528_v41  ;;  %v2073_v44 = vpop.f32.mrb[41].mxu1  ;;  %v3000_v45 = vpop.f32.mrb[42].mxu0 }
 0x14c   : > { %2333 = vst.msk [vmem:[%s3395_s14 + $0x194] sm:$0xf] %vm692_vm0, %v2754_v38  ;;  %v1633_v46 = vmax.f32 %v1537_v39, 0.0  ;;  %v2074_v47 = vadd.f32 %v3383_v32, %v2073_v44  ;;  %v1540_v48 = vadd.f32 %v3000_v45, %v3383_v32  ;;  %v3048_v49 = vpop.f32.mrb[42].mxu1  ;;  %v1531_v50 = vpop.f32.mrb[43].mxu0 }
 0x14d   : > { %v2178_v51 = vmax.f32 %v2082_v42, 0.0  ;;  %v1631_v52 = vmax.f32 %v1529_v43, 0.0  ;;  %v2085_v53 = vadd.f32 %v3048_v49, %v3383_v32  ;;  %v1532_v54 = vadd.f32 %v3383_v32, %v1531_v50  ;;  %v2076_v55 = vpop.f32.mrb[43].mxu1 }
 0x14e   : > { %v2727_v56 = vpack.c.bf16 %v1633_v46, %v1633_v46  ;;  %v2176_v57 = vmax.f32 %v2074_v47, 0.0  ;;  %v1634_v58 = vmax.f32 %v1540_v48, 0.0  ;;  %v2077_v59 = vadd.f32 %v3383_v32, %v2076_v55 }
 0x14f   : > { %v2759_v60 = vpack.c.bf16 %v2178_v51, %v2178_v51  ;;  %v2725_v61 = vpack.c.bf16 %v1631_v52, %v1631_v52  ;;  %v2179_v62 = vmax.f32 %v2085_v53, 0.0  ;;  %v1632_v63 = vmax.f32 %v1532_v54, 0.0 }
 0x150   : > { %1793 = vst.msk [vmem:[%s3395_s14 + $0x128] sm:$0xf] %vm692_vm0, %v2727_v56  ;;  %v2757_v0 = vpack.c.bf16 %v2176_v57, %v2176_v57  ;;  %v2728_v1 = vpack.c.bf16 %v1634_v58, %v1634_v58  ;;  %v2177_v2 = vmax.f32 %v2077_v59, 0.0 }
 0x151   : > { %2338 = vst.msk [vmem:[%s3395_s14 + $0x1a8] sm:$0xf] %vm692_vm0, %v2759_v60  ;;  %1791 = vst.msk [vmem:[%s3395_s14 + $0x120] sm:$0xf] %vm692_vm0, %v2725_v61  ;;  %v2760_v3 = vpack.c.bf16 %v2179_v62, %v2179_v62  ;;  %v2726_v4 = vpack.c.bf16 %v1632_v63, %v1632_v63  ;;  %v3003_v5 = vpop.f32.mrb[44].mxu0 }
 0x152   : > { %2336 = vst.msk [vmem:[%s3395_s14 + $0x1a0] sm:$0xf] %vm692_vm0, %v2757_v0  ;;  %1794 = vst.msk [vmem:[%s3395_s14 + $0x12c] sm:$0xf] %vm692_vm0, %v2728_v1  ;;  %v2758_v6 = vpack.c.bf16 %v2177_v2, %v2177_v2  ;;  %v1553_v7 = vadd.f32 %v3003_v5, %v3383_v32  ;;  %v3051_v8 = vpop.f32.mrb[44].mxu1  ;;  %v1544_v9 = vpop.f32.mrb[45].mxu0 }
 0x153   : > { %2339 = vst.msk [vmem:[%s3395_s14 + $0x1ac] sm:$0xf] %vm692_vm0, %v2760_v3  ;;  %1792 = vst.msk [vmem:[%s3395_s14 + $0x124] sm:$0xf] %vm692_vm0, %v2726_v4  ;;  %v2098_v10 = vadd.f32 %v3051_v8, %v3383_v32  ;;  %v1545_v11 = vadd.f32 %v3383_v32, %v1544_v9  ;;  %v2089_v12 = vpop.f32.mrb[45].mxu1  ;;  %v3004_v13 = vpop.f32.mrb[46].mxu0 }
 0x154   : > { %2337 = vst.msk [vmem:[%s3395_s14 + $0x1a4] sm:$0xf] %vm692_vm0, %v2758_v6  ;;  %v1637_v14 = vmax.f32 %v1553_v7, 0.0  ;;  %v2090_v15 = vadd.f32 %v3383_v32, %v2089_v12  ;;  %v1556_v16 = vadd.f32 %v3004_v13, %v3383_v32  ;;  %v3052_v17 = vpop.f32.mrb[46].mxu1  ;;  %v1547_v18 = vpop.f32.mrb[47].mxu0 }
 0x155   : > { %v2182_v19 = vmax.f32 %v2098_v10, 0.0  ;;  %v1635_v20 = vmax.f32 %v1545_v11, 0.0  ;;  %v2101_v21 = vadd.f32 %v3052_v17, %v3383_v32  ;;  %v1548_v22 = vadd.f32 %v3383_v32, %v1547_v18  ;;  %v2092_v23 = vpop.f32.mrb[47].mxu1  ;;  %v3701_v7 = vld [vmem:[%s3786_s2] ss:$0 sm:$0xff] }
 0x156   : > { %v2731_v24 = vpack.c.bf16 %v1637_v14, %v1637_v14  ;;  %v2180_v25 = vmax.f32 %v2090_v15, 0.0  ;;  %v1638_v26 = vmax.f32 %v1556_v16, 0.0  ;;  %v2093_v27 = vadd.f32 %v3383_v32, %v2092_v23 }
 0x157   : > { %v2763_v28 = vpack.c.bf16 %v2182_v19, %v2182_v19  ;;  %v2729_v29 = vpack.c.bf16 %v1635_v20, %v1635_v20  ;;  %v2183_v30 = vmax.f32 %v2101_v21, 0.0  ;;  %v1636_v31 = vmax.f32 %v1548_v22, 0.0 }
 0x158   : > { %1797 = vst.msk [vmem:[%s3395_s14 + $0x138] sm:$0xf] %vm692_vm0, %v2731_v24  ;;  %v2761_v33 = vpack.c.bf16 %v2180_v25, %v2180_v25  ;;  %v2732_v34 = vpack.c.bf16 %v1638_v26, %v1638_v26  ;;  %v2181_v35 = vmax.f32 %v2093_v27, 0.0 }
 0x159   : > { %2342 = vst.msk [vmem:[%s3395_s14 + $0x1b8] sm:$0xf] %vm692_vm0, %v2763_v28  ;;  %1795 = vst.msk [vmem:[%s3395_s14 + $0x130] sm:$0xf] %vm692_vm0, %v2729_v29  ;;  %v2764_v36 = vpack.c.bf16 %v2183_v30, %v2183_v30  ;;  %v2730_v37 = vpack.c.bf16 %v1636_v31, %v1636_v31  ;;  %v3007_v38 = vpop.f32.mrb[48].mxu0 }
 0x15a   : > { %2340 = vst.msk [vmem:[%s3395_s14 + $0x1b0] sm:$0xf] %vm692_vm0, %v2761_v33  ;;  %1798 = vst.msk [vmem:[%s3395_s14 + $0x13c] sm:$0xf] %vm692_vm0, %v2732_v34  ;;  %v2762_v39 = vpack.c.bf16 %v2181_v35, %v2181_v35  ;;  %v1569_v40 = vadd.f32 %v3007_v38, %v3383_v32  ;;  %v3055_v41 = vpop.f32.mrb[48].mxu1  ;;  %v1560_v42 = vpop.f32.mrb[49].mxu0 }
 0x15b   : > { %2343 = vst.msk [vmem:[%s3395_s14 + $0x1bc] sm:$0xf] %vm692_vm0, %v2764_v36  ;;  %1796 = vst.msk [vmem:[%s3395_s14 + $0x134] sm:$0xf] %vm692_vm0, %v2730_v37  ;;  %v2114_v43 = vadd.f32 %v3055_v41, %v3383_v32  ;;  %v1561_v44 = vadd.f32 %v3383_v32, %v1560_v42  ;;  %v2105_v45 = vpop.f32.mrb[49].mxu1  ;;  %v3008_v46 = vpop.f32.mrb[50].mxu0 }
 0x15c   : > { %2341 = vst.msk [vmem:[%s3395_s14 + $0x1b4] sm:$0xf] %vm692_vm0, %v2762_v39  ;;  %v1641_v47 = vmax.f32 %v1569_v40, 0.0  ;;  %v2106_v48 = vadd.f32 %v3383_v32, %v2105_v45  ;;  %v1572_v49 = vadd.f32 %v3008_v46, %v3383_v32  ;;  %v3056_v50 = vpop.f32.mrb[50].mxu1  ;;  %v1563_v51 = vpop.f32.mrb[51].mxu0 }
 0x15d   : > { %v2186_v52 = vmax.f32 %v2114_v43, 0.0  ;;  %v1639_v53 = vmax.f32 %v1561_v44, 0.0  ;;  %v2117_v54 = vadd.f32 %v3056_v50, %v3383_v32  ;;  %v1564_v55 = vadd.f32 %v3383_v32, %v1563_v51  ;;  %v2108_v56 = vpop.f32.mrb[51].mxu1 }
 0x15e   : > { %v2735_v57 = vpack.c.bf16 %v1641_v47, %v1641_v47  ;;  %v2184_v58 = vmax.f32 %v2106_v48, 0.0  ;;  %v1642_v59 = vmax.f32 %v1572_v49, 0.0  ;;  %v2109_v60 = vadd.f32 %v3383_v32, %v2108_v56 }
 0x15f   : > { %v2767_v61 = vpack.c.bf16 %v2186_v52, %v2186_v52  ;;  %v2733_v62 = vpack.c.bf16 %v1639_v53, %v1639_v53  ;;  %v2187_v63 = vmax.f32 %v2117_v54, 0.0  ;;  %v1640_v0 = vmax.f32 %v1564_v55, 0.0 }
 0x160   : > { %1801 = vst.msk [vmem:[%s3395_s14 + $0x148] sm:$0xf] %vm692_vm0, %v2735_v57  ;;  %v2765_v1 = vpack.c.bf16 %v2184_v58, %v2184_v58  ;;  %v2736_v2 = vpack.c.bf16 %v1642_v59, %v1642_v59  ;;  %v2185_v3 = vmax.f32 %v2109_v60, 0.0 }
 0x161   : > { %2346 = vst.msk [vmem:[%s3395_s14 + $0x1c8] sm:$0xf] %vm692_vm0, %v2767_v61  ;;  %1799 = vst.msk [vmem:[%s3395_s14 + $0x140] sm:$0xf] %vm692_vm0, %v2733_v62  ;;  %v2768_v4 = vpack.c.bf16 %v2187_v63, %v2187_v63  ;;  %v2734_v5 = vpack.c.bf16 %v1640_v0, %v1640_v0  ;;  %v3011_v6 = vpop.f32.mrb[52].mxu0 }
 0x162   : > { %2344 = vst.msk [vmem:[%s3395_s14 + $0x1c0] sm:$0xf] %vm692_vm0, %v2765_v1  ;;  %1802 = vst.msk [vmem:[%s3395_s14 + $0x14c] sm:$0xf] %vm692_vm0, %v2736_v2  ;;  %v2766_v32 = vpack.c.bf16 %v2185_v3, %v2185_v3  ;;  %v1585_v8 = vadd.f32 %v3701_v7, %v3011_v6  ;;  %v3059_v9 = vpop.f32.mrb[52].mxu1  ;;  %v1576_v10 = vpop.f32.mrb[53].mxu0 }
 0x163   : > { %2347 = vst.msk [vmem:[%s3395_s14 + $0x1cc] sm:$0xf] %vm692_vm0, %v2768_v4  ;;  %1800 = vst.msk [vmem:[%s3395_s14 + $0x144] sm:$0xf] %vm692_vm0, %v2734_v5  ;;  %v2130_v11 = vadd.f32 %v3701_v7, %v3059_v9  ;;  %v1577_v12 = vadd.f32 %v3701_v7, %v1576_v10  ;;  %v2121_v13 = vpop.f32.mrb[53].mxu1  ;;  %v3012_v14 = vpop.f32.mrb[54].mxu0 }
 0x164   : > { %2345 = vst.msk [vmem:[%s3395_s14 + $0x1c4] sm:$0xf] %vm692_vm0, %v2766_v32  ;;  %v1645_v15 = vmax.f32 %v1585_v8, 0.0  ;;  %v2122_v16 = vadd.f32 %v3701_v7, %v2121_v13  ;;  %v1588_v17 = vadd.f32 %v3701_v7, %v3012_v14  ;;  %v3060_v18 = vpop.f32.mrb[54].mxu1  ;;  %v1579_v19 = vpop.f32.mrb[55].mxu0 }
 0x165   : > { %v2190_v20 = vmax.f32 %v2130_v11, 0.0  ;;  %v1643_v21 = vmax.f32 %v1577_v12, 0.0  ;;  %v2133_v22 = vadd.f32 %v3701_v7, %v3060_v18  ;;  %v1580_v23 = vadd.f32 %v3701_v7, %v1579_v19  ;;  %v2124_v24 = vpop.f32.mrb[55].mxu1 }
 0x166   : > { %v2739_v25 = vpack.c.bf16 %v1645_v15, %v1645_v15  ;;  %v2188_v26 = vmax.f32 %v2122_v16, 0.0  ;;  %v1646_v27 = vmax.f32 %v1588_v17, 0.0  ;;  %v2125_v28 = vadd.f32 %v3701_v7, %v2124_v24 }
 0x167   : > { %v2771_v29 = vpack.c.bf16 %v2190_v20, %v2190_v20  ;;  %v2737_v30 = vpack.c.bf16 %v1643_v21, %v1643_v21  ;;  %v2191_v31 = vmax.f32 %v2133_v22, 0.0  ;;  %v1644_v33 = vmax.f32 %v1580_v23, 0.0 }
 0x168   : > { %1805 = vst.msk [vmem:[%s3395_s14 + $0x158] sm:$0xf] %vm692_vm0, %v2739_v25  ;;  %v2769_v34 = vpack.c.bf16 %v2188_v26, %v2188_v26  ;;  %v2740_v35 = vpack.c.bf16 %v1646_v27, %v1646_v27  ;;  %v2189_v36 = vmax.f32 %v2125_v28, 0.0 }
 0x169   : > { %2350 = vst.msk [vmem:[%s3395_s14 + $0x1d8] sm:$0xf] %vm692_vm0, %v2771_v29  ;;  %1803 = vst.msk [vmem:[%s3395_s14 + $0x150] sm:$0xf] %vm692_vm0, %v2737_v30  ;;  %v2772_v37 = vpack.c.bf16 %v2191_v31, %v2191_v31  ;;  %v2738_v38 = vpack.c.bf16 %v1644_v33, %v1644_v33  ;;  %v3015_v39 = vpop.f32.mrb[56].mxu0 }
 0x16a   : > { %2348 = vst.msk [vmem:[%s3395_s14 + $0x1d0] sm:$0xf] %vm692_vm0, %v2769_v34  ;;  %1806 = vst.msk [vmem:[%s3395_s14 + $0x15c] sm:$0xf] %vm692_vm0, %v2740_v35  ;;  %v2770_v40 = vpack.c.bf16 %v2189_v36, %v2189_v36  ;;  %v1601_v41 = vadd.f32 %v3701_v7, %v3015_v39  ;;  %v3063_v42 = vpop.f32.mrb[56].mxu1  ;;  %v1592_v43 = vpop.f32.mrb[57].mxu0 }
 0x16b   : > { %2351 = vst.msk [vmem:[%s3395_s14 + $0x1dc] sm:$0xf] %vm692_vm0, %v2772_v37  ;;  %1804 = vst.msk [vmem:[%s3395_s14 + $0x154] sm:$0xf] %vm692_vm0, %v2738_v38  ;;  %v2146_v44 = vadd.f32 %v3701_v7, %v3063_v42  ;;  %v1593_v45 = vadd.f32 %v3701_v7, %v1592_v43  ;;  %v2137_v46 = vpop.f32.mrb[57].mxu1  ;;  %v3016_v47 = vpop.f32.mrb[58].mxu0 }
 0x16c   : > { %2349 = vst.msk [vmem:[%s3395_s14 + $0x1d4] sm:$0xf] %vm692_vm0, %v2770_v40  ;;  %v1649_v48 = vmax.f32 %v1601_v41, 0.0  ;;  %v2138_v49 = vadd.f32 %v3701_v7, %v2137_v46  ;;  %v1604_v50 = vadd.f32 %v3701_v7, %v3016_v47  ;;  %v3064_v51 = vpop.f32.mrb[58].mxu1  ;;  %v1595_v52 = vpop.f32.mrb[59].mxu0 }
 0x16d   : > { %v2194_v53 = vmax.f32 %v2146_v44, 0.0  ;;  %v1647_v54 = vmax.f32 %v1593_v45, 0.0  ;;  %v2149_v55 = vadd.f32 %v3701_v7, %v3064_v51  ;;  %v1596_v56 = vadd.f32 %v3701_v7, %v1595_v52  ;;  %v2140_v57 = vpop.f32.mrb[59].mxu1 }
 0x16e   : > { %v2743_v58 = vpack.c.bf16 %v1649_v48, %v1649_v48  ;;  %v2192_v59 = vmax.f32 %v2138_v49, 0.0  ;;  %v1650_v60 = vmax.f32 %v1604_v50, 0.0  ;;  %v2141_v61 = vadd.f32 %v3701_v7, %v2140_v57 }
 0x16f   : > { %v2775_v62 = vpack.c.bf16 %v2194_v53, %v2194_v53  ;;  %v2741_v63 = vpack.c.bf16 %v1647_v54, %v1647_v54  ;;  %v2195_v0 = vmax.f32 %v2149_v55, 0.0  ;;  %v1648_v1 = vmax.f32 %v1596_v56, 0.0 }
 0x170   : > { %1809 = vst.msk [vmem:[%s3395_s14 + $0x168] sm:$0xf] %vm692_vm0, %v2743_v58  ;;  %v2773_v2 = vpack.c.bf16 %v2192_v59, %v2192_v59  ;;  %v2744_v3 = vpack.c.bf16 %v1650_v60, %v1650_v60  ;;  %v2193_v4 = vmax.f32 %v2141_v61, 0.0 }
 0x171   : > { %2354 = vst.msk [vmem:[%s3395_s14 + $0x1e8] sm:$0xf] %vm692_vm0, %v2775_v62  ;;  %1807 = vst.msk [vmem:[%s3395_s14 + $0x160] sm:$0xf] %vm692_vm0, %v2741_v63  ;;  %v2776_v5 = vpack.c.bf16 %v2195_v0, %v2195_v0  ;;  %v2742_v6 = vpack.c.bf16 %v1648_v1, %v1648_v1  ;;  %v3019_v32 = vpop.f32.mrb[60].mxu0 }
 0x172   : > { %2352 = vst.msk [vmem:[%s3395_s14 + $0x1e0] sm:$0xf] %vm692_vm0, %v2773_v2  ;;  %1810 = vst.msk [vmem:[%s3395_s14 + $0x16c] sm:$0xf] %vm692_vm0, %v2744_v3  ;;  %v2774_v8 = vpack.c.bf16 %v2193_v4, %v2193_v4  ;;  %v1617_v9 = vadd.f32 %v3701_v7, %v3019_v32  ;;  %v3067_v10 = vpop.f32.mrb[60].mxu1  ;;  %v1608_v11 = vpop.f32.mrb[61].mxu0 }
 0x173   : > { %2355 = vst.msk [vmem:[%s3395_s14 + $0x1ec] sm:$0xf] %vm692_vm0, %v2776_v5  ;;  %1808 = vst.msk [vmem:[%s3395_s14 + $0x164] sm:$0xf] %vm692_vm0, %v2742_v6  ;;  %v2162_v12 = vadd.f32 %v3701_v7, %v3067_v10  ;;  %v1609_v13 = vadd.f32 %v3701_v7, %v1608_v11  ;;  %v2153_v14 = vpop.f32.mrb[61].mxu1  ;;  %v3020_v15 = vpop.f32.mrb[62].mxu0 }
 0x174   : > { %2353 = vst.msk [vmem:[%s3395_s14 + $0x1e4] sm:$0xf] %vm692_vm0, %v2774_v8  ;;  %v1653_v16 = vmax.f32 %v1617_v9, 0.0  ;;  %v2154_v17 = vadd.f32 %v3701_v7, %v2153_v14  ;;  %v1620_v18 = vadd.f32 %v3701_v7, %v3020_v15  ;;  %v3068_v19 = vpop.f32.mrb[62].mxu1  ;;  %v1611_v20 = vpop.f32.mrb[63].mxu0 }
 0x175   : > { %v2198_v21 = vmax.f32 %v2162_v12, 0.0  ;;  %v1651_v22 = vmax.f32 %v1609_v13, 0.0  ;;  %v2165_v23 = vadd.f32 %v3701_v7, %v3068_v19  ;;  %v1612_v24 = vadd.f32 %v3701_v7, %v1611_v20  ;;  %v2156_v25 = vpop.f32.mrb[63].mxu1 }
 0x176   : > { %v2747_v26 = vpack.c.bf16 %v1653_v16, %v1653_v16  ;;  %v2196_v27 = vmax.f32 %v2154_v17, 0.0  ;;  %v1654_v28 = vmax.f32 %v1620_v18, 0.0  ;;  %v2157_v29 = vadd.f32 %v3701_v7, %v2156_v25 }
 0x177   : > { %v2779_v30 = vpack.c.bf16 %v2198_v21, %v2198_v21  ;;  %v2745_v31 = vpack.c.bf16 %v1651_v22, %v1651_v22  ;;  %v2199_v33 = vmax.f32 %v2165_v23, 0.0  ;;  %v1652_v34 = vmax.f32 %v1612_v24, 0.0 }
 0x178   : > { %1813 = vst.msk [vmem:[%s3395_s14 + $0x178] sm:$0xf] %vm692_vm0, %v2747_v26  ;;  %v2777_v35 = vpack.c.bf16 %v2196_v27, %v2196_v27  ;;  %v2748_v36 = vpack.c.bf16 %v1654_v28, %v1654_v28  ;;  %v2197_v37 = vmax.f32 %v2157_v29, 0.0 }
 0x179   : > { %2358 = vst.msk [vmem:[%s3395_s14 + $0x1f8] sm:$0xf] %vm692_vm0, %v2779_v30  ;;  %1811 = vst.msk [vmem:[%s3395_s14 + $0x170] sm:$0xf] %vm692_vm0, %v2745_v31  ;;  %v2780_v38 = vpack.c.bf16 %v2199_v33, %v2199_v33  ;;  %v2746_v39 = vpack.c.bf16 %v1652_v34, %v1652_v34 }
 0x17a   : > { %2356 = vst.msk [vmem:[%s3395_s14 + $0x1f0] sm:$0xf] %vm692_vm0, %v2777_v35  ;;  %1814 = vst.msk [vmem:[%s3395_s14 + $0x17c] sm:$0xf] %vm692_vm0, %v2748_v36  ;;  %v2778_v7 = vpack.c.bf16 %v2197_v37, %v2197_v37 }
 0x17b   : > { %2359 = vst.msk [vmem:[%s3395_s14 + $0x1fc] sm:$0xf] %vm692_vm0, %v2780_v38  ;;  %1812 = vst.msk [vmem:[%s3395_s14 + $0x174] sm:$0xf] %vm692_vm0, %v2746_v39 }
 0x17c   : > { %2357 = vst.msk [vmem:[%s3395_s14 + $0x1f4] sm:$0xf] %vm692_vm0, %v2778_v7 }
 0x17d PF: > { %s13_s12 = sadd.s32 1, %s3180_s12  }
 0x17e   : > { %p10_p4 = scmp.ge.s32.totalorder %s13_s12, 4  }
 0x180   :  { %12 = sbr.rel (!%p10_p4) target bundleno = 1 (0x1), region = 62 }

// kernel: convfc_forward.5
= control target key start
LH: loop header
LB: loop body
LE: loop exit
PB: predicated region body
PF: predicated region fallthrough
CT: control target
= control target key end

     0   :  { %s3123_s12 = smov 0   ;;  %s3952_s0 = inlined_call_operand.vmem [shape: bf16[2,304,160], index: 0, kind: input, shape index: {}]   ;;  %s3953_s1 = inlined_call_operand.vmem [shape: bf16[5,160,64], index: 1, kind: input, shape index: {}]   ;;  %s3954_s2 = inlined_call_operand.vmem [shape: f32[1,64], index: 2, kind: input, shape index: {}]   ;;  %s3955_s3 = inlined_call_operand.vmem [shape: bf16[2,240,64], index: 3, kind: output, shape index: {}]  }
   0x1 LB: > { %s2559_s13 = sadd.s32 4294967295, %s3100_s12   ;;  %p2563_p0 = scmp.ge.s32.totalorder %s3100_s12, 1  ;;  %s3100_s12 = sphi %s3123_s12, %s13_s12  }
   0x2   : > { %p137_p1 = scmp.lt.s32.totalorder %s3100_s12, 3 }
   0x4   : > { %p138_p2 = pnand %p2563_p0, %p137_p1 }
   0x5   : > { %v2987_v0 = vld [vmem:[%s3953_s1 + $0x50] sm:$0xff] (!%p138_p2)   ;;  %v3102_v1 = vmov (!%p138_p2), 0   ;;  %p161_p3 = scmp.lt.s32.totalorder (!%p138_p2), %s2559_s13, 1  ;;  %v2988_v2 = vld [vmem:[%s3953_s1 + $0x58] sm:$0xff] (!%p138_p2)   ;;  %v2989_v3 = vld [vmem:[%s3953_s1 + $0x60] sm:$0xff] (!%p138_p2)   ;;  %vm441_vm0 = vcmask (!%p138_p2), 261120  }
   0x6   : > { %141 = sbr.rel (%p138_p2) target bundleno = 565 (0x235), region = 32  ;;  %487 = vmatprep.subr.bf16.mxu0 (!%p138_p2), %v3102_v1  ;;  %2956 = vmatprep.subr.bf16.mxu1 (!%p138_p2), %v3102_v1  ;;  %v2990_v4 = vld [vmem:[%s3953_s1 + $0x68] sm:$0xff] (!%p138_p2)   ;;  %v2991_v7 = vld [vmem:[%s3953_s1 + $0x70] sm:$0xff] (!%p138_p2)   ;;  %v2992_v8 = vld [vmem:[%s3953_s1 + $0x78] sm:$0xff] (!%p138_p2)   ;;  %vm2473_vm1 = vcmask (!%p138_p2), 519168  }
   0x7   : > { %488 = vmatpush1.bf16.msra.mxu0 (!%p138_p2), %v2987_v0  ;;  %2966 = vmatpush1.bf16.msra.mxu1 (!%p138_p2), %v2987_v0  ;;  %v2993_v9 = vld [vmem:[%s3953_s1 + $0x80] sm:$0xff] (!%p138_p2)   ;;  %v2994_v10 = vld [vmem:[%s3953_s1 + $0x88] sm:$0xff] (!%p138_p2)   ;;  %v2995_v11 = vld [vmem:[%s3953_s1 + $0x90] sm:$0xff] (!%p138_p2)  }
   0x8   : > { %489 = vmatprep.subr.bf16.mxu0 (!%p138_p2), %v3102_v1  ;;  %2957 = vmatprep.subr.bf16.mxu1 (!%p138_p2), %v3102_v1  ;;  %v2996_v12 = vld [vmem:[%s3953_s1 + $0x98] sm:$0xff] (!%p138_p2)   ;;  %v3003_v15 = vld [vmem:[%s3953_s1 + $0xa0] sm:$0xff] (!%p138_p2)   ;;  %v3011_v19 = vld [vmem:[%s3953_s1 + $0xa8] sm:$0xff] (!%p138_p2)  }
   0x9   : > { %v3008_v18 = vld [vmem:[%s3953_s1] sm:$0xff] (!%p138_p2)   ;;  %v3012_v21 = vld [vmem:[%s3953_s1 + $0x8] sm:$0xff] (!%p138_p2)   ;;  %v3013_v23 = vld [vmem:[%s3953_s1 + $0xb0] sm:$0xff] (!%p138_p2)  }
   0xa   : > { %v3020_v26 = vld [vmem:[%s3953_s1 + $0x10] sm:$0xff] (!%p138_p2)   ;;  %v3021_v27 = vld [vmem:[%s3953_s1 + $0xb8] sm:$0xff] (!%p138_p2)   ;;  %v3029_v33 = vld [vmem:[%s3953_s1 + $0xc0] sm:$0xff] (!%p138_p2)  }
   0xb   : > { %490 = vmatpush1.bf16.msra.mxu0 (!%p138_p2), %v2988_v2  ;;  %2967 = vmatpush1.bf16.msra.mxu1 (!%p138_p2), %v2988_v2  ;;  %v3028_v30 = vld [vmem:[%s3953_s1 + $0x18] sm:$0xff] (!%p138_p2)   ;;  %v3030_v34 = vld [vmem:[%s3953_s1 + $0x20] sm:$0xff] (!%p138_p2)   ;;  %v3037_v35 = vld [vmem:[%s3953_s1 + $0xc8] sm:$0xff] (!%p138_p2)  }
   0xc   : > { %491 = vmatprep.subr.bf16.mxu0 (!%p138_p2), %v3102_v1  ;;  %2958 = vmatprep.subr.bf16.mxu1 (!%p138_p2), %v3102_v1  ;;  %v3038_v38 = vld [vmem:[%s3953_s1 + $0x28] sm:$0xff] (!%p138_p2)   ;;  %v3045_v41 = vld [vmem:[%s3953_s1 + $0xd0] sm:$0xff] (!%p138_p2)   ;;  %v3047_v43 = vld [vmem:[%s3953_s1 + $0x38] sm:$0xff] (!%p138_p2)  }
   0xd   : > { %s3957_s13 = smov (!%p161_p3, %s2559_s13), 1  ;;  %v3046_v42 = vld [vmem:[%s3953_s1 + $0x30] sm:$0xff]   ;;  %v3048_v46 = vld [vmem:[%s3953_s1 + $0xd8] sm:$0xff]   ;;  %v3055_v49 = vld [vmem:[%s3953_s1 + $0x40] sm:$0xff]  }
   0xe   : > { %s2976_s18 = smul.u32 304, %s3957_s13  ;;  %v3057_v50 = vld [vmem:[%s3953_s1 + $0xe0] sm:$0xff]   ;;  %v3056_v51 = vld [vmem:[%s3953_s1 + $0x48] sm:$0xff]   ;;  %v3065_v63 = vld [vmem:[%s3953_s1 + $0xf0] sm:$0xff]  }
   0xf   : > { %492 = vmatpush1.bf16.msra.mxu0 %v2989_v3  ;;  %2968 = vmatpush1.bf16.msra.mxu1 %v2989_v3  ;;  %v3064_v52 = vld [vmem:[%s3953_s1 + $0xe8] sm:$0xff]   ;;  %v3067_v0 = vld [vmem:[%s3953_s1 + $0xf8] sm:$0xff]   ;;  %v3066_v2 = vld [vmem:[%s3953_s1 + $0x140] sm:$0xff]   ;;  %s2977_s22 = smul.u32 120, %s3957_s13 }
  0x10   : > { %s3152_s23 = scalar_lea.vmem %s3952_s0, %s2976_s18  ;;  %493 = vmatprep.subr.bf16.mxu0 %v3102_v1  ;;  %2959 = vmatprep.subr.bf16.mxu1 %v3102_v1  ;;  %v3069_v3 = vld [vmem:[%s3953_s1 + $0x100] sm:$0xff]  }
  0x11   : > { %v3160_v5 = vld [vmem:[%s3152_s23 + $0x14] ss:$8 sps:$4 sm:$0xff]   ;;  %v3200_v13 = vld [vmem:[%s3152_s23 + $0x10] ss:$8 sps:$4 sm:$0xff]   ;;  %v3209_v16 = vld [vmem:[%s3152_s23 + $0x24] ss:$8 sps:$4 sm:$0xff]   ;;  %s3833_s26 = scalar_lea.vmem %s3955_s3, %s2977_s22 }
  0x12   : > { %v3163_v6 = vld [vmem:[%s3152_s23 + $0x94] ss:$8 sps:$4 sm:$0xff]   ;;  %2626 = vmatprep.mubr.msk.bf16.mxu0 %vm441_vm0, %v3160_v5  ;;  %v3203_v14 = vld [vmem:[%s3152_s23 + $0x90] ss:$8 sps:$4 sm:$0xff]   ;;  %v3212_v17 = vld [vmem:[%s3152_s23 + $0xa4] ss:$8 sps:$4 sm:$0xff]  }
  0x13   : > { %494 = vmatpush1.bf16.msra.mxu0 %v2990_v4  ;;  %2969 = vmatpush1.bf16.msra.mxu1 %v2990_v4  ;;  %v3229_v20 = vld [vmem:[%s3152_s23 + $0x20] ss:$8 sps:$4 sm:$0xff]   ;;  %v3243_v24 = vld [vmem:[%s3152_s23 + $0x34] ss:$8 sps:$4 sm:$0xff]   ;;  %v3263_v28 = vld [vmem:[%s3152_s23 + $0x30] ss:$8 sps:$4 sm:$0xff]  }
  0x14   : > { %495 = vmatprep.subr.bf16.mxu0 %v3102_v1  ;;  %2960 = vmatprep.subr.bf16.mxu1 %v3102_v1  ;;  %v3236_v22 = vld [vmem:[%s3152_s23 + $0xa0] ss:$8 sps:$4 sm:$0xff]   ;;  %v3246_v25 = vld [vmem:[%s3152_s23 + $0xb4] ss:$8 sps:$4 sm:$0xff]   ;;  %v3266_v29 = vld [vmem:[%s3152_s23 + $0xb0] ss:$8 sps:$4 sm:$0xff]  }
  0x15   : > { %2634 = vmatprep.mubr.msk.bf16.mxu1 %vm441_vm0, %v3163_v6  ;;  %v3273_v31 = vld [vmem:[%s3152_s23 + $0x44] ss:$8 sps:$4 sm:$0xff]   ;;  %v3297_v36 = vld [vmem:[%s3152_s23 + $0x40] ss:$8 sps:$4 sm:$0xff]   ;;  %v3306_v39 = vld [vmem:[%s3152_s23 + $0x54] ss:$8 sps:$4 sm:$0xff]  }
  0x16   : > { %v3277_v32 = vld [vmem:[%s3152_s23 + $0xc4] ss:$8 sps:$4 sm:$0xff]   ;;  %v3300_v37 = vld [vmem:[%s3152_s23 + $0xc0] ss:$8 sps:$4 sm:$0xff]   ;;  %v3311_v40 = vld [vmem:[%s3152_s23 + $0xd4] ss:$8 sps:$4 sm:$0xff]  }
  0x17   : > { %496 = vmatpush1.bf16.msra.mxu0 %v2991_v7  ;;  %2970 = vmatpush1.bf16.msra.mxu1 %v2991_v7  ;;  %v3331_v44 = vld [vmem:[%s3152_s23 + $0x50] ss:$8 sps:$4 sm:$0xff]   ;;  %v3340_v47 = vld [vmem:[%s3152_s23 + $0x64] ss:$8 sps:$4 sm:$0xff]   ;;  %v3370_v53 = vld [vmem:[%s3152_s23 + $0x60] ss:$8 sps:$4 sm:$0xff]  }
  0x18   : > { %497 = vmatprep.subr.bf16.mxu0 %v3102_v1  ;;  %2961 = vmatprep.subr.bf16.mxu1 %v3102_v1  ;;  %v3334_v45 = vld [vmem:[%s3152_s23 + $0xd0] ss:$8 sps:$4 sm:$0xff]   ;;  %v3343_v48 = vld [vmem:[%s3152_s23 + $0xe4] ss:$8 sps:$4 sm:$0xff]   ;;  %v3373_v54 = vld [vmem:[%s3152_s23 + $0xe0] ss:$8 sps:$4 sm:$0xff]  }
  0x19   : > { %v3376_v55 = vld [vmem:[%s3152_s23 + $0x74] ss:$8 sps:$4 sm:$0xff]   ;;  %v3390_v57 = vld [vmem:[%s3152_s23 + $0x70] ss:$8 sps:$4 sm:$0xff]   ;;  %v3396_v59 = vld [vmem:[%s3152_s23 + $0x84] ss:$8 sps:$4 sm:$0xff]  }
  0x1a   : > { %v3379_v56 = vld [vmem:[%s3152_s23 + $0xf4] ss:$8 sps:$4 sm:$0xff]   ;;  %v3393_v58 = vld [vmem:[%s3152_s23 + $0xf0] ss:$8 sps:$4 sm:$0xff]   ;;  %v3062_v60 = vld [vmem:[%s3152_s23 + $0x4] ss:$8 sps:$4 sm:$0xff]  }
  0x1b   : > { %498 = vmatpush1.bf16.msra.mxu0 %v2992_v8  ;;  %2971 = vmatpush1.bf16.msra.mxu1 %v2992_v8  ;;  %v3060_v61 = vld [vmem:[%s3152_s23] ss:$8 sps:$4 sm:$0xff]   ;;  %v3070_v7 = vld [vmem:[%s3953_s1 + $0x150] sm:$0xff]  }
  0x1c   : > { %499 = vmatprep.subr.bf16.mxu0 %v3102_v1  ;;  %2962 = vmatprep.subr.bf16.mxu1 %v3102_v1  ;;  %v3406_v62 = vld [vmem:[%s3152_s23 + $0x80] ss:$8 sps:$4 sm:$0xff]   ;;  %v3073_v8 = vld [vmem:[%s3953_s1 + $0x110] sm:$0xff]  }
  0x1d   : > { %v3068_v4 = vld [vmem:[%s3953_s1 + $0x148] sm:$0xff]  }
  0x1f   : > { %500 = vmatpush1.bf16.msra.mxu0 %v2993_v9  ;;  %2972 = vmatpush1.bf16.msra.mxu1 %v2993_v9  ;;  %v3072_v9 = vld [vmem:[%s3953_s1 + $0x158] sm:$0xff]  }
  0x20   : > { %501 = vmatprep.subr.bf16.mxu0 %v3102_v1  ;;  %2963 = vmatprep.subr.bf16.mxu1 %v3102_v1 }
  0x23   : > { %502 = vmatpush1.bf16.msra.mxu0 %v2994_v10  ;;  %2973 = vmatpush1.bf16.msra.mxu1 %v2994_v10  ;;  %v3075_v10 = vld [vmem:[%s3953_s1 + $0x118] sm:$0xff]  }
  0x24   : > { %503 = vmatprep.subr.bf16.mxu0 %v3102_v1  ;;  %2964 = vmatprep.subr.bf16.mxu1 %v3102_v1 }
  0x27   : > { %504 = vmatpush1.bf16.msra.mxu0 %v2995_v11  ;;  %2974 = vmatpush1.bf16.msra.mxu1 %v2995_v11  ;;  %v3074_v11 = vld [vmem:[%s3953_s1 + $0x160] sm:$0xff]  }
  0x28   : > { %505 = vmatprep.subr.bf16.mxu0 %v3102_v1  ;;  %2965 = vmatprep.subr.bf16.mxu1 %v3102_v1 }
  0x2b   : > { %506 = vmatpush1.bf16.msra.mxu0 %v2996_v12  ;;  %2975 = vmatpush1.bf16.msra.mxu1 %v2996_v12  ;;  %v3077_v12 = vld [vmem:[%s3953_s1 + $0x120] sm:$0xff]  }
  0x2c   : > { %1156 = vmatprep.subr.bf16.mxu0 %v3102_v1  ;;  %712 = vmatprep.subr.bf16.mxu1 %v3102_v1 }
  0x2e   : > { %520 = vmatmul.mubr.bf16.vlgmr.msra.gmra.mrb[0].mxu0 %v3200_v13  ;;  %584 = vmatmul.mubr.bf16.vlgmr.msra.gmra.mrb[0].mxu1 %v3203_v14 }
  0x2f   : > { %1157 = vmatpush1.bf16.msra.mxu0 %v3003_v15  ;;  %2627 = vmatprep.mubr.msk.bf16.mxu0 %vm441_vm0, %v3209_v16  ;;  %v3079_v15 = vld [vmem:[%s3953_s1 + $0x128] sm:$0xff]  }
  0x30   : > { %2635 = vmatprep.mubr.msk.bf16.mxu1 %vm441_vm0, %v3212_v17  ;;  %713 = vmatpush1.bf16.msra.mxu1 %v3008_v18  ;;  %v3081_v18 = vld [vmem:[%s3953_s1 + $0x130] sm:$0xff]  }
  0x31   : > { %1158 = vmatprep.subr.bf16.mxu0 %v3102_v1  ;;  %714 = vmatprep.subr.bf16.mxu1 %v3102_v1 }
  0x33   : > { %1159 = vmatpush1.bf16.msra.mxu0 %v3011_v19  ;;  %v3080_v19 = vld [vmem:[%s3953_s1 + $0x178] sm:$0xff]  }
  0x34   : > { %715 = vmatpush1.bf16.msra.mxu1 %v3012_v21  ;;  %1160 = vmatprep.subr.bf16.mxu0 %v3102_v1  ;;  %v3082_v21 = vld [vmem:[%s3953_s1 + $0x180] sm:$0xff]  }
  0x35   : > { %716 = vmatprep.subr.bf16.mxu1 %v3102_v1 }
  0x36   : > { %528 = vmatmul.mubr.bf16.gmra.mrb[4].mxu0 %v3229_v20  ;;  %592 = vmatmul.mubr.bf16.gmra.mrb[4].mxu1 %v3236_v22 }
  0x37   : > { %1161 = vmatpush1.bf16.msra.mxu0 %v3013_v23  ;;  %2628 = vmatprep.mubr.msk.bf16.mxu0 %vm441_vm0, %v3243_v24  ;;  %v3084_v23 = vld [vmem:[%s3953_s1 + $0x188] sm:$0xff]  }
  0x38   : > { %2636 = vmatprep.mubr.msk.bf16.mxu1 %vm441_vm0, %v3246_v25  ;;  %717 = vmatpush1.bf16.msra.mxu1 %v3020_v26  ;;  %v3579_v26 = vld [vmem:[%s3152_s23 + $0x100] ss:$8 sps:$4 sm:$0xff]  }
  0x39   : > { %1162 = vmatprep.subr.bf16.mxu0 %v3102_v1  ;;  %718 = vmatprep.subr.bf16.mxu1 %v3102_v1 }
  0x3b   : > { %1163 = vmatpush1.bf16.msra.mxu0 %v3021_v27 }
  0x3c   : > { %719 = vmatpush1.bf16.msra.mxu1 %v3028_v30  ;;  %1164 = vmatprep.subr.bf16.mxu0 %v3102_v1 }
  0x3d   : > { %720 = vmatprep.subr.bf16.mxu1 %v3102_v1 }
  0x3e   : > { %536 = vmatmul.mubr.bf16.gmra.mrb[8].mxu0 %v3263_v28  ;;  %600 = vmatmul.mubr.bf16.gmra.mrb[8].mxu1 %v3266_v29 }
  0x3f   : > { %2629 = vmatprep.mubr.msk.bf16.mxu0 %vm441_vm0, %v3273_v31  ;;  %2637 = vmatprep.mubr.msk.bf16.mxu1 %vm441_vm0, %v3277_v32 }
  0x40   : > { %1165 = vmatpush1.bf16.msra.mxu0 %v3029_v33  ;;  %721 = vmatpush1.bf16.msra.mxu1 %v3030_v34 }
  0x41   : > { %1166 = vmatprep.subr.bf16.mxu0 %v3102_v1  ;;  %722 = vmatprep.subr.bf16.mxu1 %v3102_v1 }
  0x44   : > { %1167 = vmatpush1.bf16.msra.mxu0 %v3037_v35  ;;  %723 = vmatpush1.bf16.msra.mxu1 %v3038_v38 }
  0x45   : > { %1168 = vmatprep.subr.bf16.mxu0 %v3102_v1  ;;  %724 = vmatprep.subr.bf16.mxu1 %v3102_v1 }
  0x46   : > { %544 = vmatmul.mubr.bf16.gmra.mrb[12].mxu0 %v3297_v36  ;;  %608 = vmatmul.mubr.bf16.gmra.mrb[12].mxu1 %v3300_v37 }
  0x47   : > { %2630 = vmatprep.mubr.msk.bf16.mxu0 %vm441_vm0, %v3306_v39  ;;  %2638 = vmatprep.mubr.msk.bf16.mxu1 %vm441_vm0, %v3311_v40 }
  0x48   : > { %1169 = vmatpush1.bf16.msra.mxu0 %v3045_v41  ;;  %725 = vmatpush1.bf16.msra.mxu1 %v3046_v42 }
  0x49   : > { %726 = vmatprep.subr.bf16.mxu1 %v3102_v1  ;;  %1170 = vmatprep.subr.bf16.mxu0 %v3102_v1 }
  0x4c   : > { %727 = vmatpush1.bf16.msra.mxu1 %v3047_v43  ;;  %1171 = vmatpush1.bf16.msra.mxu0 %v3048_v46 }
  0x4d   : > { %728 = vmatprep.subr.bf16.mxu1 %v3102_v1  ;;  %1172 = vmatprep.subr.bf16.mxu0 %v3102_v1 }
  0x4e   : > { %552 = vmatmul.mubr.bf16.gmra.mrb[16].mxu0 %v3331_v44  ;;  %616 = vmatmul.mubr.bf16.gmra.mrb[16].mxu1 %v3334_v45 }
  0x4f   : > { %2631 = vmatprep.mubr.msk.bf16.mxu0 %vm441_vm0, %v3340_v47  ;;  %2639 = vmatprep.mubr.msk.bf16.mxu1 %vm441_vm0, %v3343_v48 }
  0x50   : > { %729 = vmatpush1.bf16.msra.mxu1 %v3055_v49  ;;  %1173 = vmatpush1.bf16.msra.mxu0 %v3057_v50 }
  0x51   : > { %730 = vmatprep.subr.bf16.mxu1 %v3102_v1  ;;  %1174 = vmatprep.subr.bf16.mxu0 %v3102_v1 }
  0x54   : > { %731 = vmatpush1.bf16.msra.mxu1 %v3056_v51  ;;  %1175 = vmatpush1.bf16.msra.mxu0 %v3064_v52 }
  0x55   : > { %1630 = vmatprep.subr.bf16.mxu1 %v3102_v1  ;;  %2104 = vmatprep.subr.bf16.mxu0 %v3102_v1 }
  0x56   : > { %560 = vmatmul.mubr.bf16.gmra.mrb[20].mxu0 %v3370_v53  ;;  %624 = vmatmul.mubr.bf16.gmra.mrb[20].mxu1 %v3373_v54 }
  0x57   : > { %2632 = vmatprep.mubr.msk.bf16.mxu0 %vm441_vm0, %v3376_v55  ;;  %2640 = vmatprep.mubr.msk.bf16.mxu1 %vm441_vm0, %v3379_v56 }
  0x5e   : > { %568 = vmatmul.mubr.bf16.gmra.mrb[24].mxu0 %v3390_v57  ;;  %632 = vmatmul.mubr.bf16.gmra.mrb[24].mxu1 %v3393_v58 }
  0x5f   : > { %2633 = vmatprep.mubr.msk.bf16.mxu0 %vm441_vm0, %v3396_v59  ;;  %2653 = vmatprep.mubr.msk.bf16.mxu1 %vm441_vm0, %v3062_v60 }
  0x66   : > { %576 = vmatmul.mubr.bf16.gmra.mrb[28].mxu0 %v3406_v62  ;;  %745 = vmatmul.mubr.bf16.vlgmr.msra.gmra.mrb[28].mxu1 %v3060_v61 }
  0x67   : > { %2654 = vmatprep.mubr.msk.bf16.mxu1 %vm441_vm0, %v3160_v5  ;;  %2728 = vmatprep.mubr.msk.bf16.mxu0 %vm441_vm0, %v3209_v16  ;;  %v3071_v5 = vld [vmem:[%s3953_s1 + $0x108] sm:$0xff]  }
  0x68   : > { %1631 = vmatpush1.bf16.msra.mxu1 %v3065_v63 }
  0x69   : > { %1632 = vmatprep.subr.bf16.mxu1 %v3102_v1 }
  0x6c   : > { %1633 = vmatpush1.bf16.msra.mxu1 %v3067_v0 }
  0x6d   : > { %1634 = vmatprep.subr.bf16.mxu1 %v3102_v1 }
  0x6e   : > { %753 = vmatmul.mubr.bf16.gmra.mrb[32].mxu1 %v3200_v13  ;;  %1189 = vmatmul.mubr.bf16.vlgmr.msra.gmra.mrb[32].mxu0 %v3229_v20  ;;  %v3076_v13 = vld [vmem:[%s3953_s1 + $0x168] sm:$0xff]  }
  0x6f   : > { %2105 = vmatpush1.bf16.msra.mxu0 %v3066_v2  ;;  %2655 = vmatprep.mubr.msk.bf16.mxu1 %vm441_vm0, %v3209_v16  ;;  %v3078_v16 = vld [vmem:[%s3953_s1 + $0x170] sm:$0xff]  }
  0x70   : > { %2729 = vmatprep.mubr.msk.bf16.mxu0 %vm441_vm0, %v3243_v24  ;;  %2106 = vmatprep.subr.bf16.mxu0 %v3102_v1 }
  0x71   : > { %1635 = vmatpush1.bf16.msra.mxu1 %v3069_v3 }
  0x72   : > { %1636 = vmatprep.subr.bf16.mxu1 %v3102_v1 }
  0x73   : > { %2107 = vmatpush1.bf16.msra.mxu0 %v3068_v4 }
  0x74   : > { %2108 = vmatprep.subr.bf16.mxu0 %v3102_v1 }
  0x75   : > { %1637 = vmatpush1.bf16.msra.mxu1 %v3071_v5 }
  0x76   : > { %761 = vmatmul.mubr.bf16.gmra.mrb[36].mxu1 %v3229_v20  ;;  %1197 = vmatmul.mubr.bf16.gmra.mrb[36].mxu0 %v3263_v28  ;;  %v3083_v20 = vld [vmem:[%s3953_s1 + $0x138] sm:$0xff]  }
  0x77   : > { %2656 = vmatprep.mubr.msk.bf16.mxu1 %vm441_vm0, %v3243_v24  ;;  %2730 = vmatprep.mubr.msk.bf16.mxu0 %vm441_vm0, %v3273_v31 }
  0x78   : > { %2109 = vmatpush1.bf16.msra.mxu0 %v3070_v7  ;;  %1638 = vmatprep.subr.bf16.mxu1 %v3102_v1 }
  0x79   : > { %2110 = vmatprep.subr.bf16.mxu0 %v3102_v1  ;;  %1639 = vmatpush1.bf16.msra.mxu1 %v3073_v8 }
  0x7a   : > { %1640 = vmatprep.subr.bf16.mxu1 %v3102_v1 }
  0x7c   : > { %2111 = vmatpush1.bf16.msra.mxu0 %v3072_v9 }
  0x7d   : > { %2112 = vmatprep.subr.bf16.mxu0 %v3102_v1  ;;  %1641 = vmatpush1.bf16.msra.mxu1 %v3075_v10 }
  0x7e   : > { %769 = vmatmul.mubr.bf16.gmra.mrb[40].mxu1 %v3263_v28  ;;  %1205 = vmatmul.mubr.bf16.gmra.mrb[40].mxu0 %v3297_v36 }
  0x7f   : > { %2657 = vmatprep.mubr.msk.bf16.mxu1 %vm441_vm0, %v3273_v31  ;;  %2731 = vmatprep.mubr.msk.bf16.mxu0 %vm441_vm0, %v3306_v39 }
  0x80   : > { %2113 = vmatpush1.bf16.msra.mxu0 %v3074_v11  ;;  %1642 = vmatprep.subr.bf16.mxu1 %v3102_v1 }
  0x81   : > { %2114 = vmatprep.subr.bf16.mxu0 %v3102_v1  ;;  %1643 = vmatpush1.bf16.msra.mxu1 %v3077_v12 }
  0x82   : > { %1644 = vmatprep.subr.bf16.mxu1 %v3102_v1 }
  0x84   : > { %2115 = vmatpush1.bf16.msra.mxu0 %v3076_v13 }
  0x85   : > { %2116 = vmatprep.subr.bf16.mxu0 %v3102_v1  ;;  %1645 = vmatpush1.bf16.msra.mxu1 %v3079_v15 }
  0x86   : > { %777 = vmatmul.mubr.bf16.gmra.mrb[44].mxu1 %v3297_v36  ;;  %1213 = vmatmul.mubr.bf16.gmra.mrb[44].mxu0 %v3331_v44 }
  0x87   : > { %2658 = vmatprep.mubr.msk.bf16.mxu1 %vm441_vm0, %v3306_v39  ;;  %2732 = vmatprep.mubr.msk.bf16.mxu0 %vm441_vm0, %v3340_v47 }
  0x88   : > { %2117 = vmatpush1.bf16.msra.mxu0 %v3078_v16  ;;  %1646 = vmatprep.subr.bf16.mxu1 %v3102_v1 }
  0x89   : > { %2118 = vmatprep.subr.bf16.mxu0 %v3102_v1  ;;  %1647 = vmatpush1.bf16.msra.mxu1 %v3081_v18 }
  0x8a   : > { %1648 = vmatprep.subr.bf16.mxu1 %v3102_v1 }
  0x8c   : > { %2119 = vmatpush1.bf16.msra.mxu0 %v3080_v19 }
  0x8d   : > { %2120 = vmatprep.subr.bf16.mxu0 %v3102_v1  ;;  %1649 = vmatpush1.bf16.msra.mxu1 %v3083_v20 }
  0x8e   : > { %785 = vmatmul.mubr.bf16.gmra.mrb[48].mxu1 %v3331_v44  ;;  %1221 = vmatmul.mubr.bf16.gmra.mrb[48].mxu0 %v3370_v53 }
  0x8f   : > { %2659 = vmatprep.mubr.msk.bf16.mxu1 %vm441_vm0, %v3340_v47  ;;  %2733 = vmatprep.mubr.msk.bf16.mxu0 %vm441_vm0, %v3376_v55 }
  0x90   : > { %2121 = vmatpush1.bf16.msra.mxu0 %v3082_v21 }
  0x91   : > { %2122 = vmatprep.subr.bf16.mxu0 %v3102_v1  ;;  %v3570_v1 = vld [vmem:[%s3152_s23 + $0x104] ss:$8 sps:$4 sm:$0xff]  }
  0x94   : > { %2123 = vmatpush1.bf16.msra.mxu0 %v3084_v23 }
  0x96   : > { %793 = vmatmul.mubr.bf16.gmra.mrb[52].mxu1 %v3370_v53  ;;  %1229 = vmatmul.mubr.bf16.gmra.mrb[52].mxu0 %v3390_v57 }
  0x97   : > { %2660 = vmatprep.mubr.msk.bf16.mxu1 %vm441_vm0, %v3376_v55  ;;  %2734 = vmatprep.mubr.msk.bf16.mxu0 %vm441_vm0, %v3396_v59 }
  0x9e   : > { %801 = vmatmul.mubr.bf16.gmra.mrb[56].mxu1 %v3390_v57  ;;  %1237 = vmatmul.mubr.bf16.gmra.mrb[56].mxu0 %v3406_v62 }
  0x9f   : > { %2661 = vmatprep.mubr.msk.bf16.mxu1 %vm441_vm0, %v3396_v59  ;;  %2735 = vmatprep.mubr.msk.bf16.mxu0 %vm441_vm0, %v3163_v6 }
  0xa6   : > { %809 = vmatmul.mubr.bf16.gmra.mrb[60].mxu1 %v3406_v62  ;;  %1245 = vmatmul.mubr.bf16.gmra.mrb[60].mxu0 %v3203_v14 }
  0xa7   : > { %2662 = vmatprep.mubr.msk.bf16.mxu1 %vm441_vm0, %v3163_v6  ;;  %2736 = vmatprep.mubr.msk.bf16.mxu0 %vm441_vm0, %v3212_v17 }
  0xae   : > { %817 = vmatmul.mubr.bf16.gmra.mrb[64].mxu1 %v3203_v14  ;;  %1253 = vmatmul.mubr.bf16.gmra.mrb[64].mxu0 %v3236_v22 }
  0xaf   : > { %2663 = vmatprep.mubr.msk.bf16.mxu1 %vm441_vm0, %v3212_v17  ;;  %2737 = vmatprep.mubr.msk.bf16.mxu0 %vm441_vm0, %v3246_v25 }
  0xb6   : > { %825 = vmatmul.mubr.bf16.gmra.mrb[68].mxu1 %v3236_v22  ;;  %1261 = vmatmul.mubr.bf16.gmra.mrb[68].mxu0 %v3266_v29 }
  0xb7   : > { %2664 = vmatprep.mubr.msk.bf16.mxu1 %vm441_vm0, %v3246_v25  ;;  %2738 = vmatprep.mubr.msk.bf16.mxu0 %vm441_vm0, %v3277_v32 }
  0xbe   : > { %833 = vmatmul.mubr.bf16.gmra.mrb[72].mxu1 %v3266_v29  ;;  %1269 = vmatmul.mubr.bf16.gmra.mrb[72].mxu0 %v3300_v37 }
  0xbf   : > { %2665 = vmatprep.mubr.msk.bf16.mxu1 %vm441_vm0, %v3277_v32  ;;  %2739 = vmatprep.mubr.msk.bf16.mxu0 %vm441_vm0, %v3311_v40 }
  0xc6   : > { %841 = vmatmul.mubr.bf16.gmra.mrb[76].mxu1 %v3300_v37  ;;  %1277 = vmatmul.mubr.bf16.gmra.mrb[76].mxu0 %v3334_v45 }
  0xc7   : > { %2666 = vmatprep.mubr.msk.bf16.mxu1 %vm441_vm0, %v3311_v40  ;;  %2740 = vmatprep.mubr.msk.bf16.mxu0 %vm441_vm0, %v3343_v48 }
  0xce   : > { %849 = vmatmul.mubr.bf16.gmra.mrb[80].mxu1 %v3334_v45  ;;  %1285 = vmatmul.mubr.bf16.gmra.mrb[80].mxu0 %v3373_v54 }
  0xcf   : > { %2667 = vmatprep.mubr.msk.bf16.mxu1 %vm441_vm0, %v3343_v48  ;;  %2741 = vmatprep.mubr.msk.bf16.mxu0 %vm441_vm0, %v3379_v56 }
  0xd6   : > { %857 = vmatmul.mubr.bf16.gmra.mrb[84].mxu1 %v3373_v54  ;;  %1293 = vmatmul.mubr.bf16.gmra.mrb[84].mxu0 %v3393_v58 }
  0xd7   : > { %2742 = vmatprep.mubr.msk.bf16.mxu0 %vm441_vm0, %v3570_v1  ;;  %2803 = vmatprep.mubr.msk.bf16.mxu1 %vm441_vm0, %v3243_v24 }
  0xde   : > { %1301 = vmatmul.mubr.bf16.gmra.mrb[88].mxu0 %v3579_v26  ;;  %1663 = vmatmul.mubr.bf16.vlgmr.msra.gmra.mrb[88].mxu1 %v3263_v28 }
  0xdf   : > { %2804 = vmatprep.mubr.msk.bf16.mxu1 %vm441_vm0, %v3273_v31  ;;  %2878 = vmatprep.mubr.msk.bf16.mxu0 %vm441_vm0, %v3273_v31 }
  0xe6   : > { %1671 = vmatmul.mubr.bf16.gmra.mrb[92].mxu1 %v3297_v36  ;;  %2137 = vmatmul.mubr.bf16.vlgmr.msra.gmra.mrb[92].mxu0 %v3297_v36 }
  0xe7   : > { %2805 = vmatprep.mubr.msk.bf16.mxu1 %vm441_vm0, %v3306_v39  ;;  %2879 = vmatprep.mubr.msk.bf16.mxu0 %vm441_vm0, %v3306_v39 }
  0xee   : > { %1679 = vmatmul.mubr.bf16.gmra.mrb[96].mxu1 %v3331_v44  ;;  %2145 = vmatmul.mubr.bf16.gmra.mrb[96].mxu0 %v3331_v44 }
  0xef   : > { %2806 = vmatprep.mubr.msk.bf16.mxu1 %vm441_vm0, %v3340_v47  ;;  %2880 = vmatprep.mubr.msk.bf16.mxu0 %vm441_vm0, %v3340_v47 }
  0xf6   : > { %1687 = vmatmul.mubr.bf16.gmra.mrb[100].mxu1 %v3370_v53  ;;  %2153 = vmatmul.mubr.bf16.gmra.mrb[100].mxu0 %v3370_v53 }
  0xf7   : > { %2807 = vmatprep.mubr.msk.bf16.mxu1 %vm441_vm0, %v3376_v55  ;;  %2881 = vmatprep.mubr.msk.bf16.mxu0 %vm441_vm0, %v3376_v55 }
  0xfe   : > { %1695 = vmatmul.mubr.bf16.gmra.mrb[104].mxu1 %v3390_v57  ;;  %2161 = vmatmul.mubr.bf16.gmra.mrb[104].mxu0 %v3390_v57 }
  0xff   : > { %2808 = vmatprep.mubr.msk.bf16.mxu1 %vm441_vm0, %v3396_v59  ;;  %2882 = vmatprep.mubr.msk.bf16.mxu0 %vm441_vm0, %v3396_v59 }
 0x101   : > { %v3611_v24 = vpop.f32.mrb[0].mxu0  ;;  %v3613_v27 = vpop.f32.mrb[0].mxu1 }
 0x102   : > { %v523_v28 = vpop.f32.mrb[1].mxu0  ;;  %v587_v30 = vpop.f32.mrb[1].mxu1 }
 0x103   : > { %v3615_v31 = vpop.f32.mrb[2].mxu0  ;;  %v3617_v33 = vpop.f32.mrb[2].mxu1 }
 0x104   : > { %v526_v34 = vpop.f32.mrb[3].mxu0  ;;  %v590_v35 = vpop.f32.mrb[3].mxu1 }
 0x106   : > { %1703 = vmatmul.mubr.bf16.gmra.mrb[108].mxu1 %v3406_v62  ;;  %2169 = vmatmul.mubr.bf16.gmra.mrb[108].mxu0 %v3406_v62 }
 0x107   : > { %2809 = vmatprep.mubr.msk.bf16.mxu1 %vm441_vm0, %v3163_v6  ;;  %2883 = vmatprep.mubr.msk.bf16.mxu0 %vm441_vm0, %v3163_v6 }
 0x109   : > { %v3625_v36 = vpop.f32.mrb[4].mxu0  ;;  %v3627_v38 = vpop.f32.mrb[4].mxu1 }
 0x10a   : > { %v531_v39 = vpop.f32.mrb[5].mxu0  ;;  %v595_v41 = vpop.f32.mrb[5].mxu1 }
 0x10b   : > { %v3629_v42 = vpop.f32.mrb[6].mxu0  ;;  %v3631_v43 = vpop.f32.mrb[6].mxu1 }
 0x10c   : > { %v534_v44 = vpop.f32.mrb[7].mxu0  ;;  %v598_v46 = vpop.f32.mrb[7].mxu1 }
 0x10e   : > { %1711 = vmatmul.mubr.bf16.gmra.mrb[112].mxu1 %v3203_v14  ;;  %2177 = vmatmul.mubr.bf16.gmra.mrb[112].mxu0 %v3203_v14 }
 0x10f   : > { %2810 = vmatprep.mubr.msk.bf16.mxu1 %vm441_vm0, %v3212_v17  ;;  %2884 = vmatprep.mubr.msk.bf16.mxu0 %vm441_vm0, %v3212_v17 }
 0x111   : > { %v3639_v6 = vpop.f32.mrb[8].mxu0  ;;  %v3641_v47 = vpop.f32.mrb[8].mxu1 }
 0x112   : > { %v539_v49 = vpop.f32.mrb[9].mxu0  ;;  %v603_v50 = vpop.f32.mrb[9].mxu1 }
 0x113   : > { %v3643_v51 = vpop.f32.mrb[10].mxu0  ;;  %v3645_v52 = vpop.f32.mrb[10].mxu1 }
 0x114   : > { %v542_v53 = vpop.f32.mrb[11].mxu0  ;;  %v606_v55 = vpop.f32.mrb[11].mxu1 }
 0x115   : > { %v3088_v55 = vld [vmem:[%s3152_s23 + $0x114] ss:$8 sps:$4 sm:$0xff]  }
 0x116   : > { %1719 = vmatmul.mubr.bf16.gmra.mrb[116].mxu1 %v3236_v22  ;;  %2185 = vmatmul.mubr.bf16.gmra.mrb[116].mxu0 %v3236_v22 }
 0x117   : > { %2811 = vmatprep.mubr.msk.bf16.mxu1 %vm441_vm0, %v3246_v25  ;;  %2885 = vmatprep.mubr.msk.bf16.mxu0 %vm441_vm0, %v3246_v25 }
 0x119   : > { %v3653_v14 = vpop.f32.mrb[12].mxu0  ;;  %v3655_v17 = vpop.f32.mrb[12].mxu1 }
 0x11a   : > { %v547_v57 = vpop.f32.mrb[13].mxu0  ;;  %v611_v59 = vpop.f32.mrb[13].mxu1 }
 0x11b   : > { %v3657_v60 = vpop.f32.mrb[14].mxu0  ;;  %v3659_v61 = vpop.f32.mrb[14].mxu1 }
 0x11c   : > { %v550_v62 = vpop.f32.mrb[15].mxu0  ;;  %v614_v63 = vpop.f32.mrb[15].mxu1 }
 0x11e   : > { %1727 = vmatmul.mubr.bf16.gmra.mrb[120].mxu1 %v3266_v29  ;;  %2193 = vmatmul.mubr.bf16.gmra.mrb[120].mxu0 %v3266_v29 }
 0x11f   : > { %2812 = vmatprep.mubr.msk.bf16.mxu1 %vm441_vm0, %v3277_v32  ;;  %2886 = vmatprep.mubr.msk.bf16.mxu0 %vm441_vm0, %v3277_v32 }
 0x121   : > { %v3667_v22 = vpop.f32.mrb[16].mxu0  ;;  %v3669_v25 = vpop.f32.mrb[16].mxu1 }
 0x122   : > { %v555_v0 = vpop.f32.mrb[17].mxu0  ;;  %v619_v2 = vpop.f32.mrb[17].mxu1 }
 0x123   : > { %v3671_v3 = vpop.f32.mrb[18].mxu0  ;;  %v3673_v4 = vpop.f32.mrb[18].mxu1 }
 0x124   : > { %v558_v5 = vpop.f32.mrb[19].mxu0  ;;  %v622_v7 = vpop.f32.mrb[19].mxu1 }
 0x125   : > { %v3090_v5 = vld [vmem:[%s3152_s23 + $0x110] ss:$8 sps:$4 sm:$0xff]  }
 0x126   : > { %1735 = vmatmul.mubr.bf16.gmra.mrb[124].mxu1 %v3300_v37  ;;  %2201 = vmatmul.mubr.bf16.gmra.mrb[124].mxu0 %v3300_v37 }
 0x127   : > { %2813 = vmatprep.mubr.msk.bf16.mxu1 %vm441_vm0, %v3311_v40  ;;  %2887 = vmatprep.mubr.msk.bf16.mxu0 %vm441_vm0, %v3311_v40 }
 0x129   : > { %v3681_v29 = vpop.f32.mrb[20].mxu0  ;;  %v3683_v32 = vpop.f32.mrb[20].mxu1 }
 0x12a   : > { %v563_v8 = vpop.f32.mrb[21].mxu0  ;;  %v627_v9 = vpop.f32.mrb[21].mxu1 }
 0x12b   : > { %v3685_v10 = vpop.f32.mrb[22].mxu0  ;;  %v3687_v11 = vpop.f32.mrb[22].mxu1  ;;  %v3091_v9 = vld [vmem:[%s3152_s23 + $0x124] ss:$8 sps:$4 sm:$0xff]  }
 0x12c   : > { %v566_v12 = vpop.f32.mrb[23].mxu0  ;;  %v630_v13 = vpop.f32.mrb[23].mxu1 }
 0x12e   : > { %1743 = vmatmul.mubr.bf16.gmra.mrb[128].mxu1 %v3334_v45  ;;  %2209 = vmatmul.mubr.bf16.gmra.mrb[128].mxu0 %v3334_v45 }
 0x12f   : > { %2814 = vmatprep.mubr.msk.bf16.mxu1 %vm441_vm0, %v3343_v48  ;;  %2888 = vmatprep.mubr.msk.bf16.mxu0 %vm441_vm0, %v3343_v48 }
 0x131   : > { %v3695_v37 = vpop.f32.mrb[24].mxu0  ;;  %v3697_v40 = vpop.f32.mrb[24].mxu1 }
 0x132   : > { %v571_v15 = vpop.f32.mrb[25].mxu0  ;;  %v635_v16 = vpop.f32.mrb[25].mxu1 }
 0x133   : > { %v3699_v18 = vpop.f32.mrb[26].mxu0  ;;  %v3701_v19 = vpop.f32.mrb[26].mxu1 }
 0x134   : > { %v574_v20 = vpop.f32.mrb[27].mxu0  ;;  %v638_v21 = vpop.f32.mrb[27].mxu1 }
 0x136   : > { %1751 = vmatmul.mubr.bf16.gmra.mrb[132].mxu1 %v3373_v54  ;;  %2217 = vmatmul.mubr.bf16.gmra.mrb[132].mxu0 %v3373_v54 }
 0x137   : > { %2815 = vmatprep.mubr.msk.bf16.mxu1 %vm441_vm0, %v3379_v56  ;;  %2889 = vmatprep.mubr.msk.bf16.mxu0 %vm441_vm0, %v3379_v56 }
 0x139   : > { %v3709_v45 = vpop.f32.mrb[28].mxu0  ;;  %v746_v48 = vpop.f32.mrb[28].mxu1 }
 0x13a   : > { %v747_v23 = vadd.f32 %v746_v48, %v3611_v24  ;;  %v579_v28 = vpop.f32.mrb[29].mxu0  ;;  %v748_v30 = vpop.f32.mrb[29].mxu1 }
 0x13b   : > { %v3712_v34 = vpop.f32.mrb[30].mxu0  ;;  %v749_v35 = vpop.f32.mrb[30].mxu1  ;;  %v3093_v28 = vld [vmem:[%s3152_s23 + $0x120] ss:$8 sps:$4 sm:$0xff]  }
 0x13c   : > { %v750_v39 = vadd.f32 %v749_v35, %v3615_v31  ;;  %v582_v54 = vpop.f32.mrb[31].mxu0  ;;  %v751_v41 = vpop.f32.mrb[31].mxu1 }
 0x13e   : > { %1759 = vmatmul.mubr.bf16.gmra.mrb[136].mxu1 %v3393_v58  ;;  %2225 = vmatmul.mubr.bf16.gmra.mrb[136].mxu0 %v3393_v58 }
 0x13f   : > { %2816 = vmatprep.mubr.msk.bf16.mxu1 %vm441_vm0, %v3570_v1  ;;  %2890 = vmatprep.mubr.msk.bf16.mxu0 %vm441_vm0, %v3570_v1 }
 0x141   : > { %v754_v56 = vpop.f32.mrb[32].mxu1  ;;  %v1190_v24 = vpop.f32.mrb[32].mxu0 }
 0x142   : > { %v755_v44 = vadd.f32 %v754_v56, %v3625_v36  ;;  %v3722_v46 = vadd.f32 %v1190_v24, %v747_v23  ;;  %v756_v49 = vpop.f32.mrb[33].mxu1  ;;  %v1192_v31 = vpop.f32.mrb[33].mxu0 }
 0x143   : > { %v757_v50 = vpop.f32.mrb[34].mxu1  ;;  %v1193_v53 = vpop.f32.mrb[34].mxu0 }
 0x144   : > { %v758_v58 = vadd.f32 %v757_v50, %v3629_v42  ;;  %v3726_v57 = vadd.f32 %v1193_v53, %v750_v39  ;;  %v1195_v59 = vpop.f32.mrb[35].mxu0  ;;  %v759_v62 = vpop.f32.mrb[35].mxu1 }
 0x146   : > { %1767 = vmatmul.mubr.bf16.gmra.mrb[140].mxu1 %v3579_v26  ;;  %2233 = vmatmul.mubr.bf16.gmra.mrb[140].mxu0 %v3579_v26 }
 0x147   : > { %2817 = vmatprep.mubr.msk.bf16.mxu1 %vm441_vm0, %v3088_v55  ;;  %2891 = vmatprep.mubr.msk.bf16.mxu0 %vm441_vm0, %v3088_v55 }
 0x149   : > { %v762_v1 = vpop.f32.mrb[36].mxu1  ;;  %v1198_v36 = vpop.f32.mrb[36].mxu0 }
 0x14a   : > { %v763_v63 = vadd.f32 %v762_v1, %v3639_v6  ;;  %v3733_v0 = vadd.f32 %v1198_v36, %v755_v44  ;;  %v764_v42 = vpop.f32.mrb[37].mxu1  ;;  %v1200_v2 = vpop.f32.mrb[37].mxu0 }
 0x14b   : > { %v765_v7 = vpop.f32.mrb[38].mxu1  ;;  %v1201_v8 = vpop.f32.mrb[38].mxu0 }
 0x14c   : > { %v766_v12 = vadd.f32 %v765_v7, %v3643_v51  ;;  %v3738_v26 = vadd.f32 %v1201_v8, %v758_v58  ;;  %v1203_v13 = vpop.f32.mrb[39].mxu0  ;;  %v767_v15 = vpop.f32.mrb[39].mxu1 }
 0x14e   : > { %1775 = vmatmul.mubr.bf16.gmra.mrb[144].mxu1 %v3090_v5  ;;  %2241 = vmatmul.mubr.bf16.gmra.mrb[144].mxu0 %v3090_v5 }
 0x14f   : > { %2892 = vmatprep.mubr.msk.bf16.mxu0 %vm441_vm0, %v3091_v9 }
 0x151   : > { %v770_v6 = vpop.f32.mrb[40].mxu1  ;;  %v1206_v16 = vpop.f32.mrb[40].mxu0 }
 0x152   : > { %v771_v20 = vadd.f32 %v770_v6, %v3653_v14  ;;  %v3742_v21 = vadd.f32 %v1206_v16, %v763_v63  ;;  %v772_v48 = vpop.f32.mrb[41].mxu1  ;;  %v1208_v23 = vpop.f32.mrb[41].mxu0 }
 0x153   : > { %v773_v30 = vpop.f32.mrb[42].mxu1  ;;  %v1209_v35 = vpop.f32.mrb[42].mxu0 }
 0x154   : > { %v774_v51 = vadd.f32 %v773_v30, %v3657_v60  ;;  %v3746_v39 = vadd.f32 %v1209_v35, %v766_v12  ;;  %v1211_v54 = vpop.f32.mrb[43].mxu0  ;;  %v775_v41 = vpop.f32.mrb[43].mxu1 }
 0x156   : > { %2249 = vmatmul.mubr.bf16.gmra.mrb[148].mxu0 %v3093_v28 }
 0x159   : > { %v778_v56 = vpop.f32.mrb[44].mxu1  ;;  %v1214_v24 = vpop.f32.mrb[44].mxu0 }
 0x15a   : > { %v779_v44 = vadd.f32 %v778_v56, %v3667_v22  ;;  %v3749_v49 = vadd.f32 %v1214_v24, %v771_v20  ;;  %v780_v14 = vpop.f32.mrb[45].mxu1  ;;  %v1216_v31 = vpop.f32.mrb[45].mxu0 }
 0x15b   : > { %v781_v50 = vpop.f32.mrb[46].mxu1  ;;  %v1217_v53 = vpop.f32.mrb[46].mxu0 }
 0x15c   : > { %v782_v55 = vadd.f32 %v781_v50, %v3671_v3  ;;  %v3752_v58 = vadd.f32 %v1217_v53, %v774_v51  ;;  %v1219_v60 = vpop.f32.mrb[47].mxu0  ;;  %v783_v59 = vpop.f32.mrb[47].mxu1 }
 0x161   : > { %v786_v62 = vpop.f32.mrb[48].mxu1  ;;  %v1222_v1 = vpop.f32.mrb[48].mxu0 }
 0x162   : > { %v787_v36 = vadd.f32 %v786_v62, %v3681_v29  ;;  %v3755_v63 = vadd.f32 %v1222_v1, %v779_v44  ;;  %v788_v42 = vpop.f32.mrb[49].mxu1  ;;  %v1224_v22 = vpop.f32.mrb[49].mxu0 }
 0x163   : > { %v789_v2 = vpop.f32.mrb[50].mxu1  ;;  %v1225_v5 = vpop.f32.mrb[50].mxu0 }
 0x164   : > { %v790_v7 = vadd.f32 %v789_v2, %v3685_v10  ;;  %v3758_v8 = vadd.f32 %v1225_v5, %v782_v55  ;;  %v1227_v9 = vpop.f32.mrb[51].mxu0  ;;  %v791_v3 = vpop.f32.mrb[51].mxu1 }
 0x169   : > { %v794_v12 = vpop.f32.mrb[52].mxu1  ;;  %v1230_v13 = vpop.f32.mrb[52].mxu0 }
 0x16a   : > { %v795_v15 = vadd.f32 %v794_v12, %v3695_v37  ;;  %v3761_v6 = vadd.f32 %v1230_v13, %v787_v36  ;;  %v796_v16 = vpop.f32.mrb[53].mxu1  ;;  %v1232_v29 = vpop.f32.mrb[53].mxu0 }
 0x16b   : > { %v797_v20 = vpop.f32.mrb[54].mxu1  ;;  %v1233_v48 = vpop.f32.mrb[54].mxu0 }
 0x16c   : > { %v798_v23 = vadd.f32 %v797_v20, %v3699_v18  ;;  %v3764_v28 = vadd.f32 %v1233_v48, %v790_v7  ;;  %v1235_v30 = vpop.f32.mrb[55].mxu0  ;;  %v799_v10 = vpop.f32.mrb[55].mxu1 }
 0x171   : > { %v802_v35 = vpop.f32.mrb[56].mxu1  ;;  %v1238_v51 = vpop.f32.mrb[56].mxu0 }
 0x172   : > { %v803_v54 = vadd.f32 %v802_v35, %v3709_v45  ;;  %v3767_v41 = vadd.f32 %v1238_v51, %v795_v15  ;;  %v804_v56 = vpop.f32.mrb[57].mxu1  ;;  %v1240_v37 = vpop.f32.mrb[57].mxu0 }
 0x173   : > { %v805_v24 = vpop.f32.mrb[58].mxu1  ;;  %v1241_v44 = vpop.f32.mrb[58].mxu0 }
 0x174   : > { %v806_v14 = vadd.f32 %v805_v24, %v3712_v34  ;;  %v3770_v31 = vadd.f32 %v1241_v44, %v798_v23  ;;  %v1243_v50 = vpop.f32.mrb[59].mxu0  ;;  %v807_v18 = vpop.f32.mrb[59].mxu1 }
 0x179   : > { %v810_v53 = vpop.f32.mrb[60].mxu1  ;;  %v1246_v55 = vpop.f32.mrb[60].mxu0 }
 0x17a   : > { %v811_v60 = vadd.f32 %v810_v53, %v3613_v27  ;;  %v3773_v59 = vadd.f32 %v1246_v55, %v803_v54  ;;  %v812_v62 = vpop.f32.mrb[61].mxu1  ;;  %v1248_v45 = vpop.f32.mrb[61].mxu0 }
 0x17b   : > { %v813_v1 = vpop.f32.mrb[62].mxu1  ;;  %v1249_v36 = vpop.f32.mrb[62].mxu0 }
 0x17c   : > { %v814_v42 = vadd.f32 %v813_v1, %v3617_v33  ;;  %v3776_v22 = vadd.f32 %v1249_v36, %v806_v14  ;;  %v1251_v2 = vpop.f32.mrb[63].mxu0  ;;  %v815_v34 = vpop.f32.mrb[63].mxu1 }
 0x181   : > { %v818_v5 = vpop.f32.mrb[64].mxu1  ;;  %v1254_v7 = vpop.f32.mrb[64].mxu0 }
 0x182   : > { %v819_v9 = vadd.f32 %v818_v5, %v3627_v38  ;;  %v3779_v3 = vadd.f32 %v1254_v7, %v811_v60  ;;  %v820_v12 = vpop.f32.mrb[65].mxu1  ;;  %v1256_v27 = vpop.f32.mrb[65].mxu0 }
 0x183   : > { %v821_v13 = vpop.f32.mrb[66].mxu1  ;;  %v1257_v15 = vpop.f32.mrb[66].mxu0 }
 0x184   : > { %v822_v16 = vadd.f32 %v821_v13, %v3631_v43  ;;  %v3782_v29 = vadd.f32 %v1257_v15, %v814_v42  ;;  %v1259_v20 = vpop.f32.mrb[67].mxu0  ;;  %v823_v33 = vpop.f32.mrb[67].mxu1 }
 0x189   : > { %v826_v48 = vpop.f32.mrb[68].mxu1  ;;  %v1262_v23 = vpop.f32.mrb[68].mxu0 }
 0x18a   : > { %v827_v30 = vadd.f32 %v826_v48, %v3641_v47  ;;  %v3785_v10 = vadd.f32 %v1262_v23, %v819_v9  ;;  %v828_v35 = vpop.f32.mrb[69].mxu1  ;;  %v1264_v38 = vpop.f32.mrb[69].mxu0 }
 0x18b   : > { %v829_v51 = vpop.f32.mrb[70].mxu1  ;;  %v1265_v54 = vpop.f32.mrb[70].mxu0 }
 0x18c   : > { %v830_v56 = vadd.f32 %v829_v51, %v3645_v52  ;;  %v3788_v37 = vadd.f32 %v1265_v54, %v822_v16  ;;  %v1267_v24 = vpop.f32.mrb[71].mxu0  ;;  %v831_v43 = vpop.f32.mrb[71].mxu1 }
 0x191   : > { %v834_v44 = vpop.f32.mrb[72].mxu1  ;;  %v1270_v14 = vpop.f32.mrb[72].mxu0 }
 0x192   : > { %v835_v50 = vadd.f32 %v834_v44, %v3655_v17  ;;  %v3791_v18 = vadd.f32 %v1270_v14, %v827_v30  ;;  %v836_v53 = vpop.f32.mrb[73].mxu1  ;;  %v1272_v47 = vpop.f32.mrb[73].mxu0 }
 0x193   : > { %v837_v55 = vpop.f32.mrb[74].mxu1  ;;  %v1273_v60 = vpop.f32.mrb[74].mxu0 }
 0x194   : > { %v838_v62 = vadd.f32 %v837_v55, %v3659_v61  ;;  %v3794_v45 = vadd.f32 %v1273_v60, %v830_v56  ;;  %v1275_v1 = vpop.f32.mrb[75].mxu0  ;;  %v839_v52 = vpop.f32.mrb[75].mxu1 }
 0x199   : > { %v842_v36 = vpop.f32.mrb[76].mxu1  ;;  %v1278_v42 = vpop.f32.mrb[76].mxu0 }
 0x19a   : > { %v843_v2 = vadd.f32 %v842_v36, %v3669_v25  ;;  %v3797_v34 = vadd.f32 %v1278_v42, %v835_v50  ;;  %v844_v5 = vpop.f32.mrb[77].mxu1  ;;  %v1280_v17 = vpop.f32.mrb[77].mxu0 }
 0x19b   : > { %v845_v7 = vpop.f32.mrb[78].mxu1  ;;  %v1281_v9 = vpop.f32.mrb[78].mxu0 }
 0x19c   : > { %v846_v12 = vadd.f32 %v845_v7, %v3673_v4  ;;  %v3800_v27 = vadd.f32 %v1281_v9, %v838_v62  ;;  %v1283_v13 = vpop.f32.mrb[79].mxu0  ;;  %v847_v61 = vpop.f32.mrb[79].mxu1 }
 0x1a1   : > { %v850_v15 = vpop.f32.mrb[80].mxu1  ;;  %v1286_v16 = vpop.f32.mrb[80].mxu0 }
 0x1a2   : > { %v851_v20 = vadd.f32 %v850_v15, %v3683_v32  ;;  %v3803_v33 = vadd.f32 %v1286_v16, %v843_v2  ;;  %v852_v48 = vpop.f32.mrb[81].mxu1  ;;  %v1288_v25 = vpop.f32.mrb[81].mxu0 }
 0x1a3   : > { %v853_v23 = vpop.f32.mrb[82].mxu1  ;;  %v1289_v30 = vpop.f32.mrb[82].mxu0 }
 0x1a4   : > { %v854_v35 = vadd.f32 %v853_v23, %v3687_v11  ;;  %v3806_v38 = vadd.f32 %v1289_v30, %v846_v12  ;;  %v1291_v51 = vpop.f32.mrb[83].mxu0  ;;  %v855_v4 = vpop.f32.mrb[83].mxu1  ;;  %v3823_v12 = vld [vmem:[%s3954_s2] ss:$0 sm:$0xff] }
 0x1a9   : > { %v858_v54 = vpop.f32.mrb[84].mxu1  ;;  %v1294_v56 = vpop.f32.mrb[84].mxu0 }
 0x1aa   : > { %v859_v24 = vadd.f32 %v858_v54, %v3697_v40  ;;  %v3809_v43 = vadd.f32 %v1294_v56, %v851_v20  ;;  %v860_v44 = vpop.f32.mrb[85].mxu1  ;;  %v1296_v32 = vpop.f32.mrb[85].mxu0 }
 0x1ab   : > { %v861_v14 = vpop.f32.mrb[86].mxu1  ;;  %v1297_v50 = vpop.f32.mrb[86].mxu0 }
 0x1ac   : > { %v862_v53 = vadd.f32 %v861_v14, %v3701_v19  ;;  %v3812_v47 = vadd.f32 %v1297_v50, %v854_v35  ;;  %v1299_v55 = vpop.f32.mrb[87].mxu0  ;;  %v863_v11 = vpop.f32.mrb[87].mxu1 }
 0x1b1   : > { %v1302_v60 = vpop.f32.mrb[88].mxu0  ;;  %v1664_v62 = vpop.f32.mrb[88].mxu1 }
 0x1b2   : > { %v3814_v1 = vadd.f32 %v1302_v60, %v859_v24  ;;  %v1783_v52 = vadd.f32 %v1664_v62, %v3722_v46  ;;  %v1304_v40 = vpop.f32.mrb[89].mxu0  ;;  %v1666_v36 = vpop.f32.mrb[89].mxu1 }
 0x1b3   : > { %v1305_v42 = vpop.f32.mrb[90].mxu0  ;;  %v1667_v2 = vpop.f32.mrb[90].mxu1 }
 0x1b4   : > { %v3817_v5 = vadd.f32 %v1305_v42, %v862_v53  ;;  %v1784_v17 = vadd.f32 %v1667_v2, %v3726_v57  ;;  %v1307_v19 = vpop.f32.mrb[91].mxu0  ;;  %v1669_v7 = vpop.f32.mrb[91].mxu1 }
 0x1b9   : > { %v1672_v9 = vpop.f32.mrb[92].mxu1  ;;  %v2138_v13 = vpop.f32.mrb[92].mxu0 }
 0x1ba   : > { %v1785_v46 = vadd.f32 %v1672_v9, %v3733_v0  ;;  %v2257_v61 = vadd.f32 %v2138_v13, %v1783_v52  ;;  %v1674_v15 = vpop.f32.mrb[93].mxu1  ;;  %v2140_v16 = vpop.f32.mrb[93].mxu0 }
 0x1bb   : > { %v1675_v20 = vpop.f32.mrb[94].mxu1  ;;  %v2141_v48 = vpop.f32.mrb[94].mxu0 }
 0x1bc   : > { %v2293_v25 = vadd.f32 %v3823_v12, %v2257_v61  ;;  %v1786_v57 = vadd.f32 %v1675_v20, %v3738_v26  ;;  %v2258_v23 = vadd.f32 %v2141_v48, %v1784_v17  ;;  %v2143_v30 = vpop.f32.mrb[95].mxu0  ;;  %v1677_v35 = vpop.f32.mrb[95].mxu1 }
 0x1be   : > { %v2323_v51 = vmax.f32 %v2293_v25, 0.0  ;;  %v2294_v4 = vadd.f32 %v3823_v12, %v2258_v23 }
 0x1c0   : > { %v2926_v0 = vpack.c.bf16 %v2323_v51, %v2323_v51  ;;  %v2324_v54 = vmax.f32 %v2294_v4, 0.0 }
 0x1c1   : > { %v1680_v56 = vpop.f32.mrb[96].mxu1  ;;  %v2146_v24 = vpop.f32.mrb[96].mxu0 }
 0x1c2   : > { %2474 = vst.msk [vmem:[%s3833_s26] sm:$0xf] %vm2473_vm1, %v2926_v0  ;;  %v2927_v26 = vpack.c.bf16 %v2324_v54, %v2324_v54  ;;  %v1787_v44 = vadd.f32 %v1680_v56, %v3742_v21  ;;  %v2259_v32 = vadd.f32 %v2146_v24, %v1785_v46  ;;  %v1682_v14 = vpop.f32.mrb[97].mxu1  ;;  %v2148_v50 = vpop.f32.mrb[97].mxu0 }
 0x1c3   : > { %v1683_v53 = vpop.f32.mrb[98].mxu1  ;;  %v2149_v55 = vpop.f32.mrb[98].mxu0 }
 0x1c4   : > { %2475 = vst.msk [vmem:[%s3833_s26 + $0x4] sm:$0xf] %vm2473_vm1, %v2927_v26  ;;  %v2295_v11 = vadd.f32 %v3823_v12, %v2259_v32  ;;  %v1788_v60 = vadd.f32 %v1683_v53, %v3746_v39  ;;  %v2260_v62 = vadd.f32 %v2149_v55, %v1786_v57  ;;  %v2151_v52 = vpop.f32.mrb[99].mxu0  ;;  %v1685_v40 = vpop.f32.mrb[99].mxu1 }
 0x1c6   : > { %v2325_v36 = vmax.f32 %v2295_v11, 0.0  ;;  %v2296_v42 = vadd.f32 %v3823_v12, %v2260_v62 }
 0x1c8   : > { %v2928_v21 = vpack.c.bf16 %v2325_v36, %v2325_v36  ;;  %v2326_v2 = vmax.f32 %v2296_v42, 0.0 }
 0x1c9   : > { %v1688_v17 = vpop.f32.mrb[100].mxu1  ;;  %v2154_v19 = vpop.f32.mrb[100].mxu0 }
 0x1ca   : > { %2476 = vst.msk [vmem:[%s3833_s26 + $0x8] sm:$0xf] %vm2473_vm1, %v2928_v21  ;;  %v2929_v7 = vpack.c.bf16 %v2326_v2, %v2326_v2  ;;  %v1789_v9 = vadd.f32 %v1688_v17, %v3749_v49  ;;  %v2261_v13 = vadd.f32 %v2154_v19, %v1787_v44  ;;  %v1690_v46 = vpop.f32.mrb[101].mxu1  ;;  %v2156_v39 = vpop.f32.mrb[101].mxu0 }
 0x1cb   : > { %v1691_v61 = vpop.f32.mrb[102].mxu1  ;;  %v2157_v15 = vpop.f32.mrb[102].mxu0 }
 0x1cc   : > { %2477 = vst.msk [vmem:[%s3833_s26 + $0xc] sm:$0xf] %vm2473_vm1, %v2929_v7  ;;  %v2297_v16 = vadd.f32 %v3823_v12, %v2261_v13  ;;  %v1790_v20 = vadd.f32 %v1691_v61, %v3752_v58  ;;  %v2262_v48 = vadd.f32 %v2157_v15, %v1788_v60  ;;  %v2159_v25 = vpop.f32.mrb[103].mxu0  ;;  %v1693_v57 = vpop.f32.mrb[103].mxu1 }
 0x1ce   : > { %v2327_v23 = vmax.f32 %v2297_v16, 0.0  ;;  %v2298_v30 = vadd.f32 %v3823_v12, %v2262_v48 }
 0x1d0   : > { %v2930_v49 = vpack.c.bf16 %v2327_v23, %v2327_v23  ;;  %v2328_v35 = vmax.f32 %v2298_v30, 0.0 }
 0x1d1   : > { %v1696_v51 = vpop.f32.mrb[104].mxu1  ;;  %v2162_v4 = vpop.f32.mrb[104].mxu0 }
 0x1d2   : > { %2478 = vst.msk [vmem:[%s3833_s26 + $0x10] sm:$0xf] %vm2473_vm1, %v2930_v49  ;;  %v2931_v0 = vpack.c.bf16 %v2328_v35, %v2328_v35  ;;  %v1791_v54 = vadd.f32 %v1696_v51, %v3755_v63  ;;  %v2263_v56 = vadd.f32 %v2162_v4, %v1789_v9  ;;  %v1698_v24 = vpop.f32.mrb[105].mxu1  ;;  %v2164_v58 = vpop.f32.mrb[105].mxu0 }
 0x1d3   : > { %v1699_v26 = vpop.f32.mrb[106].mxu1  ;;  %v2165_v44 = vpop.f32.mrb[106].mxu0 }
 0x1d4   : > { %2479 = vst.msk [vmem:[%s3833_s26 + $0x14] sm:$0xf] %vm2473_vm1, %v2931_v0  ;;  %v2299_v32 = vadd.f32 %v3823_v12, %v2263_v56  ;;  %v1792_v14 = vadd.f32 %v1699_v26, %v3758_v8  ;;  %v2264_v50 = vadd.f32 %v2165_v44, %v1790_v20  ;;  %v2167_v53 = vpop.f32.mrb[107].mxu0  ;;  %v1701_v55 = vpop.f32.mrb[107].mxu1 }
 0x1d6   : > { %v2329_v11 = vmax.f32 %v2299_v32, 0.0  ;;  %v2300_v60 = vadd.f32 %v3823_v12, %v2264_v50 }
 0x1d8   : > { %v2932_v63 = vpack.c.bf16 %v2329_v11, %v2329_v11  ;;  %v2330_v62 = vmax.f32 %v2300_v60, 0.0 }
 0x1d9   : > { %v1704_v52 = vpop.f32.mrb[108].mxu1  ;;  %v2170_v40 = vpop.f32.mrb[108].mxu0 }
 0x1da   : > { %2480 = vst.msk [vmem:[%s3833_s26 + $0x18] sm:$0xf] %vm2473_vm1, %v2932_v63  ;;  %v2933_v36 = vpack.c.bf16 %v2330_v62, %v2330_v62  ;;  %v1793_v42 = vadd.f32 %v1704_v52, %v3761_v6  ;;  %v2265_v21 = vadd.f32 %v2170_v40, %v1791_v54  ;;  %v1706_v2 = vpop.f32.mrb[109].mxu1  ;;  %v2172_v8 = vpop.f32.mrb[109].mxu0 }
 0x1db   : > { %v1707_v17 = vpop.f32.mrb[110].mxu1  ;;  %v2173_v19 = vpop.f32.mrb[110].mxu0 }
 0x1dc   : > { %2481 = vst.msk [vmem:[%s3833_s26 + $0x1c] sm:$0xf] %vm2473_vm1, %v2933_v36  ;;  %v2301_v7 = vadd.f32 %v3823_v12, %v2265_v21  ;;  %v1794_v9 = vadd.f32 %v1707_v17, %v3764_v28  ;;  %v2266_v13 = vadd.f32 %v2173_v19, %v1792_v14  ;;  %v2175_v46 = vpop.f32.mrb[111].mxu0  ;;  %v1709_v39 = vpop.f32.mrb[111].mxu1 }
 0x1de   : > { %v2331_v61 = vmax.f32 %v2301_v7, 0.0  ;;  %v2302_v15 = vadd.f32 %v3823_v12, %v2266_v13 }
 0x1e0   : > { %v2934_v6 = vpack.c.bf16 %v2331_v61, %v2331_v61  ;;  %v2332_v16 = vmax.f32 %v2302_v15, 0.0 }
 0x1e1   : > { %v1712_v20 = vpop.f32.mrb[112].mxu1  ;;  %v2178_v48 = vpop.f32.mrb[112].mxu0 }
 0x1e2   : > { %2482 = vst.msk [vmem:[%s3833_s26 + $0x20] sm:$0xf] %vm2473_vm1, %v2934_v6  ;;  %v2935_v25 = vpack.c.bf16 %v2332_v16, %v2332_v16  ;;  %v1795_v57 = vadd.f32 %v1712_v20, %v3767_v41  ;;  %v2267_v23 = vadd.f32 %v2178_v48, %v1793_v42  ;;  %v1714_v30 = vpop.f32.mrb[113].mxu1  ;;  %v2180_v28 = vpop.f32.mrb[113].mxu0 }
 0x1e3   : > { %v1715_v49 = vpop.f32.mrb[114].mxu1  ;;  %v2181_v35 = vpop.f32.mrb[114].mxu0 }
 0x1e4   : > { %2483 = vst.msk [vmem:[%s3833_s26 + $0x24] sm:$0xf] %vm2473_vm1, %v2935_v25  ;;  %v2303_v51 = vadd.f32 %v3823_v12, %v2267_v23  ;;  %v1796_v4 = vadd.f32 %v1715_v49, %v3770_v31  ;;  %v2268_v0 = vadd.f32 %v2181_v35, %v1794_v9  ;;  %v2183_v54 = vpop.f32.mrb[115].mxu0  ;;  %v1717_v56 = vpop.f32.mrb[115].mxu1 }
 0x1e6   : > { %v2333_v24 = vmax.f32 %v2303_v51, 0.0  ;;  %v2304_v58 = vadd.f32 %v3823_v12, %v2268_v0 }
 0x1e8   : > { %v2936_v41 = vpack.c.bf16 %v2333_v24, %v2333_v24  ;;  %v2334_v26 = vmax.f32 %v2304_v58, 0.0 }
 0x1e9   : > { %v1720_v44 = vpop.f32.mrb[116].mxu1  ;;  %v2186_v32 = vpop.f32.mrb[116].mxu0 }
 0x1ea   : > { %2484 = vst.msk [vmem:[%s3833_s26 + $0x28] sm:$0xf] %vm2473_vm1, %v2936_v41  ;;  %v2937_v14 = vpack.c.bf16 %v2334_v26, %v2334_v26  ;;  %v1797_v50 = vadd.f32 %v1720_v44, %v3773_v59  ;;  %v2269_v53 = vadd.f32 %v2186_v32, %v1795_v57  ;;  %v1722_v55 = vpop.f32.mrb[117].mxu1  ;;  %v2188_v31 = vpop.f32.mrb[117].mxu0 }
 0x1eb   : > { %v1723_v11 = vpop.f32.mrb[118].mxu1  ;;  %v2189_v60 = vpop.f32.mrb[118].mxu0 }
 0x1ec   : > { %2485 = vst.msk [vmem:[%s3833_s26 + $0x2c] sm:$0xf] %vm2473_vm1, %v2937_v14  ;;  %v2305_v63 = vadd.f32 %v3823_v12, %v2269_v53  ;;  %v1798_v62 = vadd.f32 %v1723_v11, %v3776_v22  ;;  %v2270_v52 = vadd.f32 %v2189_v60, %v1796_v4  ;;  %v2191_v40 = vpop.f32.mrb[119].mxu0  ;;  %v1725_v36 = vpop.f32.mrb[119].mxu1 }
 0x1ee   : > { %v2335_v42 = vmax.f32 %v2305_v63, 0.0  ;;  %v2306_v21 = vadd.f32 %v3823_v12, %v2270_v52 }
 0x1f0   : > { %v2938_v59 = vpack.c.bf16 %v2335_v42, %v2335_v42  ;;  %v2336_v2 = vmax.f32 %v2306_v21, 0.0 }
 0x1f1   : > { %v1728_v8 = vpop.f32.mrb[120].mxu1  ;;  %v2194_v17 = vpop.f32.mrb[120].mxu0 }
 0x1f2   : > { %2486 = vst.msk [vmem:[%s3833_s26 + $0x30] sm:$0xf] %vm2473_vm1, %v2938_v59  ;;  %v2939_v19 = vpack.c.bf16 %v2336_v2, %v2336_v2  ;;  %v1799_v7 = vadd.f32 %v1728_v8, %v3779_v3  ;;  %v2271_v9 = vadd.f32 %v2194_v17, %v1797_v50  ;;  %v1730_v13 = vpop.f32.mrb[121].mxu1  ;;  %v2196_v22 = vpop.f32.mrb[121].mxu0 }
 0x1f3   : > { %v1731_v46 = vpop.f32.mrb[122].mxu1  ;;  %v2197_v39 = vpop.f32.mrb[122].mxu0 }
 0x1f4   : > { %2487 = vst.msk [vmem:[%s3833_s26 + $0x34] sm:$0xf] %vm2473_vm1, %v2939_v19  ;;  %v2307_v61 = vadd.f32 %v3823_v12, %v2271_v9  ;;  %v1800_v15 = vadd.f32 %v1731_v46, %v3782_v29  ;;  %v2272_v6 = vadd.f32 %v2197_v39, %v1798_v62  ;;  %v2199_v16 = vpop.f32.mrb[123].mxu0  ;;  %v1733_v20 = vpop.f32.mrb[123].mxu1 }
 0x1f6   : > { %v2337_v48 = vmax.f32 %v2307_v61, 0.0  ;;  %v2308_v25 = vadd.f32 %v3823_v12, %v2272_v6 }
 0x1f8   : > { %v2940_v3 = vpack.c.bf16 %v2337_v48, %v2337_v48  ;;  %v2338_v57 = vmax.f32 %v2308_v25, 0.0 }
 0x1f9   : > { %v1736_v23 = vpop.f32.mrb[124].mxu1  ;;  %v2202_v30 = vpop.f32.mrb[124].mxu0 }
 0x1fa   : > { %2488 = vst.msk [vmem:[%s3833_s26 + $0x38] sm:$0xf] %vm2473_vm1, %v2940_v3  ;;  %v2941_v28 = vpack.c.bf16 %v2338_v57, %v2338_v57  ;;  %v1801_v49 = vadd.f32 %v1736_v23, %v3785_v10  ;;  %v2273_v35 = vadd.f32 %v2202_v30, %v1799_v7  ;;  %v1738_v51 = vpop.f32.mrb[125].mxu1  ;;  %v2204_v29 = vpop.f32.mrb[125].mxu0 }
 0x1fb   : > { %v1739_v4 = vpop.f32.mrb[126].mxu1  ;;  %v2205_v0 = vpop.f32.mrb[126].mxu0 }
 0x1fc   : > { %2489 = vst.msk [vmem:[%s3833_s26 + $0x3c] sm:$0xf] %vm2473_vm1, %v2941_v28  ;;  %v2309_v54 = vadd.f32 %v3823_v12, %v2273_v35  ;;  %v1802_v56 = vadd.f32 %v1739_v4, %v3788_v37  ;;  %v2274_v24 = vadd.f32 %v2205_v0, %v1800_v15  ;;  %v2207_v58 = vpop.f32.mrb[127].mxu0  ;;  %v1741_v41 = vpop.f32.mrb[127].mxu1 }
 0x1fe   : > { %v2339_v26 = vmax.f32 %v2309_v54, 0.0  ;;  %v2310_v44 = vadd.f32 %v3823_v12, %v2274_v24 }
 0x200   : > { %v2942_v10 = vpack.c.bf16 %v2339_v26, %v2339_v26  ;;  %v2340_v32 = vmax.f32 %v2310_v44, 0.0 }
 0x201   : > { %v1744_v14 = vpop.f32.mrb[128].mxu1  ;;  %v2210_v50 = vpop.f32.mrb[128].mxu0 }
 0x202   : > { %2490 = vst.msk [vmem:[%s3833_s26 + $0x40] sm:$0xf] %vm2473_vm1, %v2942_v10  ;;  %v2943_v53 = vpack.c.bf16 %v2340_v32, %v2340_v32  ;;  %v1803_v55 = vadd.f32 %v1744_v14, %v3791_v18  ;;  %v2275_v31 = vadd.f32 %v2210_v50, %v1801_v49  ;;  %v1746_v11 = vpop.f32.mrb[129].mxu1  ;;  %v2212_v37 = vpop.f32.mrb[129].mxu0 }
 0x203   : > { %v1747_v60 = vpop.f32.mrb[130].mxu1  ;;  %v2213_v63 = vpop.f32.mrb[130].mxu0 }
 0x204   : > { %2491 = vst.msk [vmem:[%s3833_s26 + $0x44] sm:$0xf] %vm2473_vm1, %v2943_v53  ;;  %v2311_v62 = vadd.f32 %v3823_v12, %v2275_v31  ;;  %v1804_v52 = vadd.f32 %v1747_v60, %v3794_v45  ;;  %v2276_v40 = vadd.f32 %v2213_v63, %v1802_v56  ;;  %v2215_v36 = vpop.f32.mrb[131].mxu0  ;;  %v1749_v42 = vpop.f32.mrb[131].mxu1 }
 0x206   : > { %v2341_v21 = vmax.f32 %v2311_v62, 0.0  ;;  %v2312_v59 = vadd.f32 %v3823_v12, %v2276_v40 }
 0x208   : > { %v2944_v18 = vpack.c.bf16 %v2341_v21, %v2341_v21  ;;  %v2342_v2 = vmax.f32 %v2312_v59, 0.0 }
 0x209   : > { %v1752_v8 = vpop.f32.mrb[132].mxu1  ;;  %v2218_v17 = vpop.f32.mrb[132].mxu0 }
 0x20a   : > { %2492 = vst.msk [vmem:[%s3833_s26 + $0x48] sm:$0xf] %vm2473_vm1, %v2944_v18  ;;  %v2945_v19 = vpack.c.bf16 %v2342_v2, %v2342_v2  ;;  %v1805_v7 = vadd.f32 %v1752_v8, %v3797_v34  ;;  %v2277_v9 = vadd.f32 %v2218_v17, %v1803_v55  ;;  %v1754_v13 = vpop.f32.mrb[133].mxu1  ;;  %v2220_v45 = vpop.f32.mrb[133].mxu0 }
 0x20b   : > { %v1755_v22 = vpop.f32.mrb[134].mxu1  ;;  %v2221_v46 = vpop.f32.mrb[134].mxu0 }
 0x20c   : > { %2493 = vst.msk [vmem:[%s3833_s26 + $0x4c] sm:$0xf] %vm2473_vm1, %v2945_v19  ;;  %v2313_v39 = vadd.f32 %v3823_v12, %v2277_v9  ;;  %v1806_v61 = vadd.f32 %v1755_v22, %v3800_v27  ;;  %v2278_v15 = vadd.f32 %v2221_v46, %v1804_v52  ;;  %v2223_v6 = vpop.f32.mrb[135].mxu0  ;;  %v1757_v16 = vpop.f32.mrb[135].mxu1 }
 0x20e   : > { %v2343_v20 = vmax.f32 %v2313_v39, 0.0  ;;  %v2314_v48 = vadd.f32 %v3823_v12, %v2278_v15 }
 0x210   : > { %v2946_v34 = vpack.c.bf16 %v2343_v20, %v2343_v20  ;;  %v2344_v25 = vmax.f32 %v2314_v48, 0.0 }
 0x211   : > { %v1760_v3 = vpop.f32.mrb[136].mxu1  ;;  %v2226_v57 = vpop.f32.mrb[136].mxu0 }
 0x212   : > { %2494 = vst.msk [vmem:[%s3833_s26 + $0x50] sm:$0xf] %vm2473_vm1, %v2946_v34  ;;  %v2947_v23 = vpack.c.bf16 %v2344_v25, %v2344_v25  ;;  %v1807_v30 = vadd.f32 %v1760_v3, %v3803_v33  ;;  %v2279_v28 = vadd.f32 %v2226_v57, %v1805_v7  ;;  %v1762_v49 = vpop.f32.mrb[137].mxu1  ;;  %v2228_v27 = vpop.f32.mrb[137].mxu0 }
 0x213   : > { %v1763_v35 = vpop.f32.mrb[138].mxu1  ;;  %v2229_v51 = vpop.f32.mrb[138].mxu0 }
 0x214   : > { %2495 = vst.msk [vmem:[%s3833_s26 + $0x54] sm:$0xf] %vm2473_vm1, %v2947_v23  ;;  %v2315_v29 = vadd.f32 %v3823_v12, %v2279_v28  ;;  %v1808_v4 = vadd.f32 %v1763_v35, %v3806_v38  ;;  %v2280_v0 = vadd.f32 %v2229_v51, %v1806_v61  ;;  %v2231_v54 = vpop.f32.mrb[139].mxu0  ;;  %v1765_v56 = vpop.f32.mrb[139].mxu1 }
 0x216   : > { %v2345_v24 = vmax.f32 %v2315_v29, 0.0  ;;  %v2316_v58 = vadd.f32 %v3823_v12, %v2280_v0 }
 0x218   : > { %v2948_v33 = vpack.c.bf16 %v2345_v24, %v2345_v24  ;;  %v2346_v41 = vmax.f32 %v2316_v58, 0.0 }
 0x219   : > { %v1768_v26 = vpop.f32.mrb[140].mxu1  ;;  %v2234_v44 = vpop.f32.mrb[140].mxu0 }
 0x21a   : > { %2496 = vst.msk [vmem:[%s3833_s26 + $0x58] sm:$0xf] %vm2473_vm1, %v2948_v33  ;;  %v2949_v10 = vpack.c.bf16 %v2346_v41, %v2346_v41  ;;  %v1809_v32 = vadd.f32 %v1768_v26, %v3809_v43  ;;  %v2281_v14 = vadd.f32 %v2234_v44, %v1807_v30  ;;  %v1770_v50 = vpop.f32.mrb[141].mxu1  ;;  %v2236_v38 = vpop.f32.mrb[141].mxu0 }
 0x21b   : > { %v1771_v53 = vpop.f32.mrb[142].mxu1  ;;  %v2237_v55 = vpop.f32.mrb[142].mxu0 }
 0x21c   : > { %2497 = vst.msk [vmem:[%s3833_s26 + $0x5c] sm:$0xf] %vm2473_vm1, %v2949_v10  ;;  %v2317_v31 = vadd.f32 %v3823_v12, %v2281_v14  ;;  %v1810_v11 = vadd.f32 %v1771_v53, %v3812_v47  ;;  %v2282_v37 = vadd.f32 %v2237_v55, %v1808_v4  ;;  %v2239_v60 = vpop.f32.mrb[143].mxu0  ;;  %v1773_v63 = vpop.f32.mrb[143].mxu1 }
 0x21e   : > { %v2347_v62 = vmax.f32 %v2317_v31, 0.0  ;;  %v2318_v52 = vadd.f32 %v3823_v12, %v2282_v37 }
 0x220   : > { %v2950_v43 = vpack.c.bf16 %v2347_v62, %v2347_v62  ;;  %v2348_v40 = vmax.f32 %v2318_v52, 0.0 }
 0x221   : > { %v1776_v36 = vpop.f32.mrb[144].mxu1  ;;  %v2242_v42 = vpop.f32.mrb[144].mxu0 }
 0x222   : > { %2498 = vst.msk [vmem:[%s3833_s26 + $0x60] sm:$0xf] %vm2473_vm1, %v2950_v43  ;;  %v2951_v21 = vpack.c.bf16 %v2348_v40, %v2348_v40  ;;  %v1811_v59 = vadd.f32 %v1776_v36, %v3814_v1  ;;  %v2283_v18 = vadd.f32 %v2242_v42, %v1809_v32  ;;  %v1778_v2 = vpop.f32.mrb[145].mxu1  ;;  %v2244_v47 = vpop.f32.mrb[145].mxu0 }
 0x223   : > { %v1779_v8 = vpop.f32.mrb[146].mxu1  ;;  %v2245_v17 = vpop.f32.mrb[146].mxu0 }
 0x224   : > { %2499 = vst.msk [vmem:[%s3833_s26 + $0x64] sm:$0xf] %vm2473_vm1, %v2951_v21  ;;  %v2319_v19 = vadd.f32 %v3823_v12, %v2283_v18  ;;  %v1812_v7 = vadd.f32 %v1779_v8, %v3817_v5  ;;  %v2284_v9 = vadd.f32 %v2245_v17, %v1810_v11  ;;  %v2247_v13 = vpop.f32.mrb[147].mxu0  ;;  %v1781_v45 = vpop.f32.mrb[147].mxu1 }
 0x226   : > { %v2349_v22 = vmax.f32 %v2319_v19, 0.0  ;;  %v2320_v46 = vadd.f32 %v3823_v12, %v2284_v9 }
 0x228   : > { %v2952_v1 = vpack.c.bf16 %v2349_v22, %v2349_v22  ;;  %v2350_v39 = vmax.f32 %v2320_v46, 0.0 }
 0x229   : > { %v2250_v61 = vpop.f32.mrb[148].mxu0 }
 0x22a   : > { %2500 = vst.msk [vmem:[%s3833_s26 + $0x68] sm:$0xf] %vm2473_vm1, %v2952_v1  ;;  %v2953_v15 = vpack.c.bf16 %v2350_v39, %v2350_v39  ;;  %v2285_v6 = vadd.f32 %v2250_v61, %v1811_v59  ;;  %v2252_v16 = vpop.f32.mrb[149].mxu0 }
 0x22b   : > { %v2253_v20 = vpop.f32.mrb[150].mxu0 }
 0x22c   : > { %2501 = vst.msk [vmem:[%s3833_s26 + $0x6c] sm:$0xf] %vm2473_vm1, %v2953_v15  ;;  %v2321_v5 = vadd.f32 %v3823_v12, %v2285_v6  ;;  %v2286_v48 = vadd.f32 %v2253_v20, %v1812_v7  ;;  %v2255_v34 = vpop.f32.mrb[151].mxu0 }
 0x22e   : > { %v2351_v25 = vmax.f32 %v2321_v5, 0.0  ;;  %v2322_v3 = vadd.f32 %v3823_v12, %v2286_v48 }
 0x230   : > { %v2954_v57 = vpack.c.bf16 %v2351_v25, %v2351_v25  ;;  %v2352_v23 = vmax.f32 %v2322_v3, 0.0 }
 0x232   : > { %2502 = vst.msk [vmem:[%s3833_s26 + $0x70] sm:$0xf] %vm2473_vm1, %v2954_v57  ;;  %v2955_v30 = vpack.c.bf16 %v2352_v23, %v2352_v23 }
 0x234   : > { %2503 = vst.msk [vmem:[%s3833_s26 + $0x74] sm:$0xf] %vm2473_vm1, %v2955_v30 }
 0x235 PF: > { %s13_s12 = sadd.s32 1, %s3100_s12  }
 0x236   : > { %p10_p4 = scmp.ge.s32.totalorder %s13_s12, 4  }
 0x238   :  { %12 = sbr.rel (!%p10_p4) target bundleno = 1 (0x1), region = 66 }

// kernel: convfc_forward.6
= control target key start
LH: loop header
LB: loop body
LE: loop exit
PB: predicated region body
PF: predicated region fallthrough
CT: control target
= control target key end

     0   :  { %s3036_s12 = smov 0   ;;  %s3532_s0 = inlined_call_operand.vmem [shape: bf16[2,88,320], index: 0, kind: input, shape index: {}]   ;;  %s3533_s1 = inlined_call_operand.vmem [shape: bf16[5,320,128], index: 1, kind: input, shape index: {}]   ;;  %s3534_s2 = inlined_call_operand.vmem [shape: f32[1,128], index: 2, kind: input, shape index: {}]   ;;  %s3535_s3 = inlined_call_operand.vmem [shape: bf16[2,56,128], index: 3, kind: output, shape index: {}]  }
   0x1 LB: > { %s2113_s13 = sadd.s32 4294967295, %s3014_s12   ;;  %p2117_p0 = scmp.ge.s32.totalorder %s3014_s12, 1  ;;  %s3014_s12 = sphi %s3036_s12, %s13_s12  }
   0x2   : > { %p137_p1 = scmp.lt.s32.totalorder %s3014_s12, 3 }
   0x4   : > { %p138_p2 = pnand %p2117_p0, %p137_p1 }
   0x5   : > { %v2860_v0 = vld [vmem:[%s3533_s1 + $0xe0] sm:$0xff] (!%p138_p2)   ;;  %p161_p3 = scmp.lt.s32.totalorder (!%p138_p2), %s2113_s13, 1  ;;  %v2863_v3 = vld [vmem:[%s3533_s1 + $0xe8] sm:$0xff] (!%p138_p2)   ;;  %v2866_v6 = vld [vmem:[%s3533_s1 + $0xf0] sm:$0xff] (!%p138_p2)   ;;  %vm445_vm0 = vcmask (!%p138_p2), 523264  }
   0x6   : > { %141 = sbr.rel (%p138_p2) target bundleno = 385 (0x181), region = 32  ;;  %v2861_v1 = vld [vmem:[%s3533_s1 + $0x120] sm:$0xff] (!%p138_p2)   ;;  %2494 = vmatprep.subr.bf16.mxu0 (!%p138_p2), %v2860_v0  ;;  %v2864_v4 = vld [vmem:[%s3533_s1 + $0x128] sm:$0xff] (!%p138_p2)   ;;  %v2867_v7 = vld [vmem:[%s3533_s1 + $0x130] sm:$0xff] (!%p138_p2)  }
   0x7   : > { %v2862_v2 = vld [vmem:[%s3533_s1 + $0xa0] sm:$0xff] (!%p138_p2)   ;;  %2734 = vmatprep.subr.bf16.mxu1 (!%p138_p2), %v2861_v1  ;;  %v2865_v5 = vld [vmem:[%s3533_s1 + $0xa8] sm:$0xff] (!%p138_p2)   ;;  %v2868_v8 = vld [vmem:[%s3533_s1 + $0xb0] sm:$0xff] (!%p138_p2)  }
   0x8   : > { %2495 = vmatpush3.bf16.msra.mxu0 (!%p138_p2), %v2862_v2  ;;  %2735 = vmatpush3.bf16.msra.mxu1 (!%p138_p2), %v2861_v1  ;;  %v2869_v9 = vld [vmem:[%s3533_s1 + $0xf8] sm:$0xff] (!%p138_p2)   ;;  %v2872_v12 = vld [vmem:[%s3533_s1 + $0x100] sm:$0xff] (!%p138_p2)   ;;  %v2880_v23 = vld [vmem:[%s3533_s1 + $0x108] sm:$0xff] (!%p138_p2)  }
   0x9   : > { %2496 = vmatprep.subr.bf16.mxu0 (!%p138_p2), %v2863_v3  ;;  %2736 = vmatprep.subr.bf16.mxu1 (!%p138_p2), %v2864_v4  ;;  %v2870_v10 = vld [vmem:[%s3533_s1 + $0x138] sm:$0xff] (!%p138_p2)   ;;  %v2877_v20 = vld [vmem:[%s3533_s1 + $0x40] sm:$0xff] (!%p138_p2)   ;;  %v2881_v24 = vld [vmem:[%s3533_s1 + $0x48] sm:$0xff] (!%p138_p2)  }
   0xa   : > { %v2871_v11 = vld [vmem:[%s3533_s1 + $0xb8] sm:$0xff] (!%p138_p2)   ;;  %v2878_v21 = vld [vmem:[%s3533_s1 + $0xc0] sm:$0xff] (!%p138_p2)   ;;  %v2882_v25 = vld [vmem:[%s3533_s1 + $0xc8] sm:$0xff] (!%p138_p2)  }
   0xb   : > { %v2879_v22 = vld [vmem:[%s3533_s1] sm:$0xff] (!%p138_p2)   ;;  %v2883_v26 = vld [vmem:[%s3533_s1 + $0x8] sm:$0xff] (!%p138_p2)   ;;  %v2884_v27 = vld [vmem:[%s3533_s1 + $0x110] sm:$0xff] (!%p138_p2)  }
   0xc   : > { %2497 = vmatpush3.bf16.msra.mxu0 (!%p138_p2), %v2865_v5  ;;  %2737 = vmatpush3.bf16.msra.mxu1 (!%p138_p2), %v2864_v4  ;;  %v2885_v28 = vld [vmem:[%s3533_s1 + $0x50] sm:$0xff] (!%p138_p2)   ;;  %v2888_v31 = vld [vmem:[%s3533_s1 + $0x118] sm:$0xff] (!%p138_p2)   ;;  %v2894_v39 = vld [vmem:[%s3533_s1 + $0x60] sm:$0xff] (!%p138_p2)  }
   0xd   : > { %s3537_s13 = smov (!%p161_p3, %s2113_s13), 1  ;;  %2498 = vmatprep.subr.bf16.mxu0 %v2866_v6  ;;  %2738 = vmatprep.subr.bf16.mxu1 %v2867_v7  ;;  %v2886_v29 = vld [vmem:[%s3533_s1 + $0xd0] sm:$0xff]   ;;  %v2889_v32 = vld [vmem:[%s3533_s1 + $0x58] sm:$0xff]   ;;  %v2895_v40 = vld [vmem:[%s3533_s1 + $0x180] sm:$0xff]  }
   0xe   : > { %s2850_s28 = smul.u32 132, %s3537_s13  ;;  %v2887_v30 = vld [vmem:[%s3533_s1 + $0x10] sm:$0xff]   ;;  %v2890_v33 = vld [vmem:[%s3533_s1 + $0xd8] sm:$0xff]   ;;  %v2896_v41 = vld [vmem:[%s3533_s1 + $0x20] sm:$0xff]  }
   0xf   : > { %v2891_v34 = vld [vmem:[%s3533_s1 + $0x18] sm:$0xff]   ;;  %v2897_v42 = vld [vmem:[%s3533_s1 + $0x140] sm:$0xff]   ;;  %v2898_v43 = vld [vmem:[%s3533_s1 + $0x68] sm:$0xff]   ;;  %s2851_s26 = smul.u32 28, %s3537_s13 }
  0x10   : > { %s3083_s14 = scalar_lea.vmem %s3532_s0, %s2850_s28  ;;  %2499 = vmatpush3.bf16.msra.mxu0 %v2868_v8  ;;  %2739 = vmatpush3.bf16.msra.mxu1 %v2867_v7  ;;  %v2899_v44 = vld [vmem:[%s3533_s1 + $0x188] sm:$0xff]   ;;  %v2906_v55 = vld [vmem:[%s3533_s1 + $0x70] sm:$0xff]   ;;  %v2910_v59 = vld [vmem:[%s3533_s1 + $0x78] sm:$0xff]  }
  0x11   : > { %2500 = vmatprep.subr.bf16.mxu0 %v2869_v9  ;;  %2740 = vmatprep.subr.bf16.mxu1 %v2870_v10  ;;  %v3092_v13 = vld [vmem:[%s3083_s14 + $0x14] sm:$0xf]  ;;  %v3095_v14 = vld [vmem:[%s3083_s14 + $0x20] sm:$0xf]  ;;  %v3098_v15 = vld [vmem:[%s3083_s14 + $0x2c] sm:$0xf]  ;;  %s3522_s29 = scalar_lea.vmem %s3535_s3, %s2851_s26 }
  0x12   : > { %v3101_v16 = vld [vmem:[%s3083_s14 + $0x38] sm:$0xf]  ;;  %v2162_v17 = vcombine.low %v3092_v13, %v3095_v14  ;;  %v2201_v19 = vcombine.low %v3095_v14, %v3098_v15  ;;  %v3157_v35 = vld [vmem:[%s3083_s14 + $0xc] sm:$0xff]  ;;  %v179_v47 = vld [vmem:[%s3083_s14 + $0x24] sm:$0xff] }
  0x13   : > { %v2165_v18 = vcombine.low %v3098_v15, %v3101_v16  ;;  %v3160_v36 = vld [vmem:[%s3083_s14 + $0x18] sm:$0xff]  ;;  %v2900_v45 = vld [vmem:[%s3533_s1 + $0x28] sm:$0xff]   ;;  %v3192_v48 = vld [vmem:[%s3083_s14 + $0x30] sm:$0xff] }
  0x14   : > { %2501 = vmatpush3.bf16.msra.mxu0 %v2871_v11  ;;  %2741 = vmatpush3.bf16.msra.mxu1 %v2870_v10  ;;  %v2161_v37 = vcombine.high %v3157_v35, %v3160_v36  ;;  %v2160_v38 = vcombine.low %v3157_v35, %v3160_v36  ;;  %v2901_v46 = vld [vmem:[%s3533_s1 + $0x148] sm:$0xff]   ;;  %v3195_v49 = vcombine.high %v179_v47, %v3192_v48  ;;  %v3198_v50 = vld [vmem:[%s3083_s14 + $0x44] sm:$0xf]  ;;  %v3201_v51 = vld [vmem:[%s3083_s14 + $0x50] sm:$0xf] }
  0x15   : > { %2502 = vmatprep.subr.bf16.mxu0 %v2872_v12  ;;  %2742 = vmatprep.mubr.msk.bf16.mxu1 %vm445_vm0, %v2162_v17  ;;  %v3204_v52 = vcombine.low %v179_v47, %v3192_v48  ;;  %v2168_v53 = vcombine.low %v3198_v50, %v3201_v51  ;;  %v2905_v54 = vld [vmem:[%s3083_s14 + $0x5c] ss:$0 sps:$4 sm:$0xff]   ;;  %v2907_v56 = vld [vmem:[%s3533_s1 + $0x190] sm:$0xff]   ;;  %v3239_v0 = vld [vmem:[%s3083_s14 + $0x48] sm:$0xff]  ;;  %v2200_v7 = vcombine.high %v3160_v36, %v179_v47 }
  0x16   : > { %2542 = vmatprep.subr.bf16.mxu1 %v2877_v20  ;;  %490 = vmatprep.mubr.bf16.mxu0 %v2161_v37  ;;  %v2908_v57 = vld [vmem:[%s3533_s1 + $0x30] sm:$0xff]   ;;  %v2911_v60 = vld [vmem:[%s3533_s1 + $0x198] sm:$0xff]   ;;  %v173_v2 = vld [vmem:[%s3083_s14] sm:$0xff]  ;;  %v2199_v20 = vcombine.low %v3160_v36, %v179_v47  ;;  %v2205_v37 = vcombine.low %v3239_v0, %v3239_v0  ;;  %v2207_v15 = vcombine.low %v3201_v51, %v3201_v51 }
  0x17   : > { %2743 = vmatmul.mubr.msk.bf16.vlgmr.msra.gmra.mrb[0].mxu1 %vm445_vm0, %v2165_v18  ;;  %v2909_v58 = vld [vmem:[%s3533_s1 + $0x150] sm:$0xff]   ;;  %v2912_v61 = vld [vmem:[%s3533_s1 + $0x38] sm:$0xff]   ;;  %v2196_v4 = vcombine.low %v173_v2, %v3157_v35  ;;  %v2197_v5 = vcombine.high %v173_v2, %v3157_v35  ;;  %v2918_v6 = vld [vmem:[%s3533_s1 + $0x1a0] sm:$0xff]  }
  0x18   : > { %2503 = vmatpush3.bf16.msra.mxu0 %v2878_v21  ;;  %2543 = vmatpush3.bf16.msra.mxu1 %v2879_v22  ;;  %v2913_v62 = vld [vmem:[%s3533_s1 + $0x158] sm:$0xff]   ;;  %v2919_v8 = vld [vmem:[%s3533_s1 + $0x160] sm:$0xff]   ;;  %v2920_v9 = vld [vmem:[%s3533_s1 + $0x1a8] sm:$0xff]  }
  0x19   : > { %2504 = vmatprep.subr.bf16.mxu0 %v2880_v23  ;;  %2544 = vmatprep.subr.bf16.mxu1 %v2881_v24  ;;  %v183_v63 = vld [vmem:[%s3083_s14 + $0x3c] sm:$0xff]  ;;  %v3263_v10 = vld [vmem:[%s3083_s14 + $0x54] sm:$0xff]  ;;  %v2921_v11 = vld [vmem:[%s3533_s1 + $0x168] sm:$0xff]  }
  0x1a   : > { %2746 = vmatprep.mubr.msk.bf16.mxu1 %vm445_vm0, %v2168_v53  ;;  %v3242_v1 = vcombine.high %v183_v63, %v3239_v0  ;;  %v3246_v3 = vcombine.low %v183_v63, %v3239_v0  ;;  %v2170_v12 = vcombine.high %v3263_v10, %v3263_v10  ;;  %v2926_v17 = vld [vmem:[%s3533_s1 + $0x1b0] sm:$0xff]   ;;  %v2169_v18 = vcombine.low %v3263_v10, %v3263_v10  ;;  %v2932_v23 = vld [vmem:[%s3533_s1 + $0x80] sm:$0xff]   ;;  %v2928_v24 = vld [vmem:[%s3533_s1 + $0x1b8] sm:$0xff]  }
  0x1b   : > { %v2927_v21 = vld [vmem:[%s3533_s1 + $0x170] sm:$0xff]   ;;  %v3280_v22 = vcombine.high %v3192_v48, %v183_v63  ;;  %v2937_v35 = vld [vmem:[%s3533_s1 + $0x1e8] sm:$0xff]   ;;  %v2204_v53 = vcombine.low %v3101_v16, %v3198_v50  ;;  %v2962_v51 = vld [vmem:[%s3533_s1 + $0x258] sm:$0xff]  }
  0x1c   : > { %2505 = vmatpush3.bf16.msra.mxu0 %v2882_v25  ;;  %2545 = vmatpush3.bf16.msra.mxu1 %v2883_v26  ;;  %v2935_v25 = vld [vmem:[%s3533_s1 + $0x88] sm:$0xff]   ;;  %v2929_v26 = vld [vmem:[%s3533_s1 + $0x178] sm:$0xff]   ;;  %v2941_v36 = vld [vmem:[%s3533_s1 + $0x230] sm:$0xff]  }
  0x1d   : > { %2506 = vmatprep.subr.bf16.mxu0 %v2884_v27  ;;  %2546 = vmatprep.subr.bf16.mxu1 %v2885_v28  ;;  %v2933_v27 = vld [vmem:[%s3533_s1 + $0x220] sm:$0xff]   ;;  %v2940_v28 = vld [vmem:[%s3533_s1 + $0x90] sm:$0xff]   ;;  %v2951_v47 = vld [vmem:[%s3533_s1 + $0x1c8] sm:$0xff]  }
  0x1e   : > { %v2958_v16 = vld [vmem:[%s3533_s1 + $0x1d0] sm:$0xff]  }
  0x1f   : > { %2747 = vmatmul.mubr.msk.bf16.gmra.mrb[4].mxu1 %vm445_vm0, %v2905_v54  ;;  %v2959_v14 = vld [vmem:[%s3533_s1 + $0x250] sm:$0xff]  }
  0x20   : > { %2507 = vmatpush3.bf16.msra.mxu0 %v2886_v29  ;;  %2547 = vmatpush3.bf16.msra.mxu1 %v2887_v30  ;;  %v3302_v29 = vcombine.low %v3192_v48, %v183_v63  ;;  %v2934_v30 = vld [vmem:[%s3533_s1 + $0x1e0] sm:$0xff]   ;;  %v2952_v48 = vld [vmem:[%s3533_s1 + $0x248] sm:$0xff]   ;;  %v2960_v50 = vld [vmem:[%s3533_s1 + $0x210] sm:$0xff]  }
  0x21   : > { %2508 = vmatprep.subr.bf16.mxu0 %v2888_v31  ;;  %2548 = vmatprep.subr.bf16.mxu1 %v2889_v32  ;;  %v2206_v31 = vcombine.high %v3239_v0, %v3239_v0  ;;  %v2936_v32 = vld [vmem:[%s3533_s1 + $0x228] sm:$0xff]   ;;  %v2972_v2 = vld [vmem:[%s3083_s14 + $0x50] ss:$12 sps:$4 sm:$0xff]  }
  0x22   : > { %775 = vmatprep.mubr.bf16.mxu1 %v2197_v5  ;;  %v2969_v63 = vld [vmem:[%s3533_s1 + $0x268] sm:$0xff]   ;;  %v2975_v5 = vld [vmem:[%s3533_s1 + $0x2d0] sm:$0xff]  }
  0x24   : > { %2509 = vmatpush3.bf16.msra.mxu0 %v2890_v33  ;;  %2549 = vmatpush3.bf16.msra.mxu1 %v2891_v34  ;;  %v174_v33 = vld [vmem:[%s3083_s14 + $0x8] sm:$0xf]  ;;  %v2943_v34 = vld [vmem:[%s3533_s1 + $0x98] sm:$0xff]  }
  0x25   : > { %2550 = vmatprep.subr.bf16.mxu1 %v2894_v39  ;;  %2590 = vmatprep.subr.bf16.mxu0 %v2895_v40  ;;  %v2942_v39 = vld [vmem:[%s3533_s1 + $0x1f0] sm:$0xff]   ;;  %v2944_v40 = vld [vmem:[%s3533_s1 + $0x238] sm:$0xff]  }
  0x27   : > { %491 = vmatmul.mubr.bf16.vlgmr.msra.gmra.mrb[0].mxu0 %v2160_v38  ;;  %v2198_v38 = vcombine.low %v174_v33, %v3092_v13  ;;  %v2948_v13 = vld [vmem:[%s3533_s1 + $0x1c0] sm:$0xff]   ;;  %v2997_v33 = vld [vmem:[%s3533_s1 + $0x2f8] sm:$0xff]  }
  0x28   : > { %2551 = vmatpush3.bf16.msra.mxu1 %v2896_v41  ;;  %2591 = vmatpush3.bf16.msra.mxu0 %v2897_v42  ;;  %v3335_v41 = vcombine.high %v3239_v0, %v3263_v10  ;;  %v2945_v42 = vld [vmem:[%s3533_s1 + $0x1f8] sm:$0xff]  }
  0x29   : > { %2552 = vmatprep.subr.bf16.mxu1 %v2898_v43  ;;  %2592 = vmatprep.subr.bf16.mxu0 %v2899_v44  ;;  %v2949_v43 = vld [vmem:[%s3533_s1 + $0x240] sm:$0xff]  }
  0x2a   : > { %498 = vmatprep.mubr.bf16.mxu0 %v3195_v49  ;;  %v2950_v44 = vld [vmem:[%s3533_s1 + $0x200] sm:$0xff]  }
  0x2c   : > { %2553 = vmatpush3.bf16.msra.mxu1 %v2900_v45  ;;  %2593 = vmatpush3.bf16.msra.mxu0 %v2901_v46  ;;  %v3354_v45 = vcombine.low %v3239_v0, %v3263_v10  ;;  %v3357_v46 = vld [vmem:[%s3083_s14 + $0x60] sm:$0xff]  ;;  %v2970_v0 = vld [vmem:[%s3533_s1 + $0x2c8] sm:$0xff]  }
  0x2d   : > { %2554 = vmatprep.subr.bf16.mxu1 %v2906_v55  ;;  %2594 = vmatprep.subr.bf16.mxu0 %v2907_v56  ;;  %v2282_v54 = vcombine.high %v3357_v46, %v3357_v46  ;;  %v2953_v55 = vld [vmem:[%s3533_s1 + $0x208] sm:$0xff]   ;;  %v2961_v56 = vld [vmem:[%s3533_s1 + $0x1d8] sm:$0xff]  }
  0x2f   : > { %499 = vmatmul.mubr.bf16.gmra.mrb[4].mxu0 %v3204_v52 }
  0x30   : > { %2555 = vmatpush3.bf16.msra.mxu1 %v2908_v57  ;;  %2595 = vmatpush3.bf16.msra.mxu0 %v2909_v58  ;;  %v2964_v57 = vld [vmem:[%s3083_s14 + $0x20] ss:$12 sps:$4 sm:$0xff]   ;;  %v2963_v58 = vld [vmem:[%s3533_s1 + $0x218] sm:$0xff]  }
  0x31   : > { %2556 = vmatprep.subr.bf16.mxu1 %v2910_v59  ;;  %2596 = vmatprep.subr.bf16.mxu0 %v2911_v60  ;;  %v2966_v59 = vld [vmem:[%s3533_s1 + $0x260] sm:$0xff]  }
  0x32   : > { %506 = vmatprep.mubr.bf16.mxu0 %v3242_v1  ;;  %v2967_v60 = vld [vmem:[%s3533_s1 + $0x2c0] sm:$0xff]  }
  0x34   : > { %2557 = vmatpush3.bf16.msra.mxu1 %v2912_v61  ;;  %2597 = vmatpush3.bf16.msra.mxu0 %v2913_v62  ;;  %v2965_v61 = vld [vmem:[%s3083_s14 + $0x38] ss:$12 sps:$4 sm:$0xff]  }
  0x35   : > { %2598 = vmatprep.subr.bf16.mxu0 %v2918_v6  ;;  %2750 = vmatprep.subr.bf16.mxu1 %v2932_v23  ;;  %v2968_v62 = vld [vmem:[%s3533_s1 + $0x280] sm:$0xff]   ;;  %v2976_v6 = vld [vmem:[%s3533_s1 + $0x290] sm:$0xff]  }
  0x37   : > { %507 = vmatmul.mubr.bf16.gmra.mrb[8].mxu0 %v3246_v3  ;;  %776 = vmatmul.mubr.bf16.vlgmr.msra.gmra.mrb[8].mxu1 %v2196_v4  ;;  %v2974_v4 = vld [vmem:[%s3533_s1 + $0x270] sm:$0xff]  }
  0x38   : > { %2599 = vmatpush3.bf16.msra.mxu0 %v2919_v8  ;;  %783 = vmatprep.mubr.bf16.mxu1 %v2200_v7  ;;  %v2978_v8 = vld [vmem:[%s3533_s1 + $0x2d8] sm:$0xff]  }
  0x39   : > { %2600 = vmatprep.subr.bf16.mxu0 %v2920_v9  ;;  %514 = vmatprep.mubr.bf16.mxu0 %v2170_v12  ;;  %v2981_v9 = vld [vmem:[%s3083_s14 + $0x2c] ss:$12 sps:$4 sm:$0xff]   ;;  %v2984_v12 = vld [vmem:[%s3533_s1 + $0x2e0] sm:$0xff]  }
  0x3a   : > { %2751 = vmatpush3.bf16.msra.mxu1 %v2932_v23  ;;  %v2987_v23 = vld [vmem:[%s3533_s1 + $0x2e8] sm:$0xff]  }
  0x3b   : > { %2752 = vmatprep.subr.bf16.mxu1 %v2935_v25 }
  0x3c   : > { %2601 = vmatpush3.bf16.msra.mxu0 %v2921_v11  ;;  %v2979_v11 = vld [vmem:[%s3533_s1 + $0x298] sm:$0xff]  }
  0x3d   : > { %2602 = vmatprep.subr.bf16.mxu0 %v2926_v17  ;;  %v2983_v17 = vld [vmem:[%s3083_s14 + $0x44] ss:$12 sps:$4 sm:$0xff]  }
  0x3e   : > { %2753 = vmatpush3.bf16.msra.mxu1 %v2935_v25 }
  0x3f   : > { %515 = vmatmul.mubr.bf16.gmra.mrb[12].mxu0 %v2169_v18  ;;  %784 = vmatmul.mubr.bf16.gmra.mrb[12].mxu1 %v2199_v20  ;;  %v2985_v18 = vld [vmem:[%s3533_s1 + $0x300] sm:$0xff]  }
  0x40   : > { %1145 = vmatprep.mubr.bf16.mxu0 %v2200_v7  ;;  %2603 = vmatpush3.bf16.msra.mxu0 %v2927_v21  ;;  %v2977_v7 = vld [vmem:[%s3533_s1 + $0x278] sm:$0xff]   ;;  %v1260_v21 = vld [vmem:[%s3083_s14 + $0x6c] sm:$0xff] }
  0x41   : > { %791 = vmatprep.mubr.bf16.mxu1 %v3280_v22  ;;  %2604 = vmatprep.subr.bf16.mxu0 %v2928_v24  ;;  %v2988_v24 = vld [vmem:[%s3533_s1 + $0x308] sm:$0xff]   ;;  %v2358_v25 = vcombine.high %v1260_v21, %v1260_v21 }
  0x42   : > { %2754 = vmatprep.subr.bf16.mxu1 %v2940_v28 }
  0x43   : > { %2755 = vmatpush3.bf16.msra.mxu1 %v2940_v28  ;;  %v2995_v28 = vld [vmem:[%s3533_s1 + $0x310] sm:$0xff]  }
  0x44   : > { %2605 = vmatpush3.bf16.msra.mxu0 %v2929_v26  ;;  %2756 = vmatprep.subr.bf16.mxu1 %v2943_v34  ;;  %v2991_v26 = vld [vmem:[%s3083_s14 + $0x5c] ss:$12 sps:$4 sm:$0xff]  }
  0x45   : > { %2638 = vmatprep.subr.bf16.mxu0 %v2933_v27  ;;  %v2994_v27 = vld [vmem:[%s3533_s1 + $0x2f0] sm:$0xff]  }
  0x47   : > { %792 = vmatmul.mubr.bf16.gmra.mrb[16].mxu1 %v3302_v29  ;;  %1146 = vmatmul.mubr.bf16.vlgmr.msra.gmra.mrb[16].mxu0 %v2199_v20  ;;  %v2354_v20 = vcombine.low %v3263_v10, %v3357_v46 }
  0x48   : > { %2639 = vmatpush3.bf16.msra.mxu0 %v2934_v30  ;;  %799 = vmatprep.mubr.bf16.mxu1 %v2206_v31  ;;  %v2357_v30 = vcombine.low %v1260_v21, %v1260_v21  ;;  %v2993_v31 = vld [vmem:[%s3083_s14 + $0x74] ss:$0 sps:$4 sm:$0xff]  }
  0x49   : > { %2640 = vmatprep.subr.bf16.mxu0 %v2936_v32  ;;  %1153 = vmatprep.mubr.bf16.mxu0 %v3280_v22  ;;  %v2996_v32 = vld [vmem:[%s3533_s1 + $0x2b0] sm:$0xff]  }
  0x4a   : > { %2757 = vmatpush3.bf16.msra.mxu1 %v2943_v34  ;;  %v2998_v34 = vld [vmem:[%s3533_s1 + $0x318] sm:$0xff]  }
  0x4b   : > { %2766 = vmatprep.subr.bf16.mxu1 %v2948_v13 }
  0x4c   : > { %2641 = vmatpush3.bf16.msra.mxu0 %v2937_v35  ;;  %v3000_v35 = vld [vmem:[%s3083_s14 + $0x38] ss:$12 sps:$4 sm:$0xff]  }
  0x4d   : > { %2642 = vmatprep.subr.bf16.mxu0 %v2941_v36  ;;  %v2999_v36 = vld [vmem:[%s3533_s1 + $0x2b8] sm:$0xff]  }
  0x4f   : > { %800 = vmatmul.mubr.bf16.gmra.mrb[20].mxu1 %v2205_v37  ;;  %1154 = vmatmul.mubr.bf16.gmra.mrb[20].mxu0 %v3302_v29  ;;  %v3001_v37 = vld [vmem:[%s3083_s14 + $0x50] ss:$12 sps:$4 sm:$0xff]  }
  0x50   : > { %2643 = vmatpush3.bf16.msra.mxu0 %v2942_v39  ;;  %2758 = vmatprep.mubr.msk.bf16.mxu1 %vm445_vm0, %v2198_v38  ;;  %v3004_v38 = vld [vmem:[%s3083_s14 + $0x68] ss:$12 sps:$4 sm:$0xff]   ;;  %v3005_v39 = vld [vmem:[%s3083_s14 + $0x80] ss:$0 sps:$4 sm:$0xff]  }
  0x51   : > { %2644 = vmatprep.subr.bf16.mxu0 %v2944_v40  ;;  %1161 = vmatprep.mubr.bf16.mxu0 %v3335_v41  ;;  %v2431_v40 = vcombine.high %v3357_v46, %v1260_v21 }
  0x54   : > { %2645 = vmatpush3.bf16.msra.mxu0 %v2945_v42 }
  0x55   : > { %2646 = vmatprep.subr.bf16.mxu0 %v2949_v43 }
  0x57   : > { %2759 = vmatmul.mubr.msk.bf16.vlgmr.msra.gmra.mrb[0].mxu1 %vm445_vm0, %v2201_v19  ;;  %1162 = vmatmul.mubr.bf16.gmra.mrb[24].mxu0 %v3354_v45  ;;  %v2281_v19 = vcombine.low %v3357_v46, %v3357_v46 }
  0x58   : > { %2767 = vmatpush3.bf16.msra.mxu1 %v2948_v13  ;;  %2647 = vmatpush3.bf16.msra.mxu0 %v2950_v44  ;;  %v2430_v13 = vcombine.low %v3357_v46, %v1260_v21 }
  0x59   : > { %2768 = vmatprep.subr.bf16.mxu1 %v2951_v47  ;;  %2648 = vmatprep.subr.bf16.mxu0 %v2952_v48 }
  0x5a   : > { %2762 = vmatprep.mubr.msk.bf16.mxu1 %vm445_vm0, %v2204_v53  ;;  %1169 = vmatprep.mubr.bf16.mxu0 %v2282_v54 }
  0x5c   : > { %2769 = vmatpush3.bf16.msra.mxu1 %v2951_v47  ;;  %2649 = vmatpush3.bf16.msra.mxu0 %v2953_v55 }
  0x5d   : > { %2770 = vmatprep.subr.bf16.mxu1 %v2958_v16  ;;  %2650 = vmatprep.subr.bf16.mxu0 %v2959_v14 }
  0x5f   : > { %2763 = vmatmul.mubr.msk.bf16.gmra.mrb[24].mxu1 %vm445_vm0, %v2207_v15  ;;  %1170 = vmatmul.mubr.bf16.gmra.mrb[28].mxu0 %v2281_v19 }
  0x60   : > { %2771 = vmatpush3.bf16.msra.mxu1 %v2958_v16  ;;  %2651 = vmatpush3.bf16.msra.mxu0 %v2960_v50 }
  0x61   : > { %2772 = vmatprep.subr.bf16.mxu1 %v2961_v56  ;;  %2652 = vmatprep.subr.bf16.mxu0 %v2962_v51 }
  0x62   : > { %2774 = vmatprep.mubr.msk.bf16.mxu1 %vm445_vm0, %v2964_v57  ;;  %1522 = vmatprep.mubr.bf16.mxu0 %v3195_v49  ;;  %v2971_v49 = vld [vmem:[%s3533_s1 + $0x288] sm:$0xff]  }
  0x64   : > { %2773 = vmatpush3.bf16.msra.mxu1 %v2961_v56  ;;  %2653 = vmatpush3.bf16.msra.mxu0 %v2963_v58 }
  0x65   : > { %2782 = vmatprep.subr.bf16.mxu1 %v2966_v59  ;;  %2686 = vmatprep.subr.bf16.mxu0 %v2967_v60 }
  0x67   : > { %2775 = vmatmul.mubr.msk.bf16.vlgmr.msra.gmra.mrb[0].mxu1 %vm445_vm0, %v2965_v61  ;;  %1523 = vmatmul.mubr.bf16.vlgmr.msra.gmra.mrb[32].mxu0 %v3204_v52  ;;  %v2973_v52 = vld [vmem:[%s3083_s14 + $0x68] ss:$0 sps:$4 sm:$0xff]  }
  0x68   : > { %2783 = vmatpush3.bf16.msra.mxu1 %v2966_v59  ;;  %2687 = vmatpush3.bf16.msra.mxu0 %v2968_v62 }
  0x69   : > { %2784 = vmatprep.subr.bf16.mxu1 %v2969_v63  ;;  %2688 = vmatprep.subr.bf16.mxu0 %v2970_v0 }
  0x6a   : > { %2778 = vmatprep.mubr.msk.bf16.mxu1 %vm445_vm0, %v2972_v2  ;;  %1530 = vmatprep.mubr.bf16.mxu0 %v3242_v1  ;;  %v2355_v1 = vcombine.high %v3263_v10, %v3357_v46  ;;  %v2989_v10 = vld [vmem:[%s3533_s1 + $0x2a8] sm:$0xff]  }
  0x6c   : > { %2785 = vmatpush3.bf16.msra.mxu1 %v2969_v63  ;;  %2689 = vmatpush3.bf16.msra.mxu0 %v2971_v49 }
  0x6d   : > { %2786 = vmatprep.subr.bf16.mxu1 %v2974_v4  ;;  %2690 = vmatprep.subr.bf16.mxu0 %v2975_v5 }
  0x6f   : > { %2779 = vmatmul.mubr.msk.bf16.gmra.mrb[28].mxu1 %vm445_vm0, %v2973_v52  ;;  %1531 = vmatmul.mubr.bf16.gmra.mrb[36].mxu0 %v3246_v3  ;;  %v2986_v3 = vld [vmem:[%s3533_s1 + $0x2a0] sm:$0xff]  }
  0x70   : > { %2787 = vmatpush3.bf16.msra.mxu1 %v2974_v4  ;;  %2691 = vmatpush3.bf16.msra.mxu0 %v2976_v6 }
  0x71   : > { %2788 = vmatprep.subr.bf16.mxu1 %v2977_v7  ;;  %2692 = vmatprep.subr.bf16.mxu0 %v2978_v8 }
  0x72   : > { %1538 = vmatprep.mubr.bf16.mxu0 %v2355_v1  ;;  %2790 = vmatprep.mubr.msk.bf16.mxu1 %vm445_vm0, %v2981_v9 }
  0x74   : > { %2789 = vmatpush3.bf16.msra.mxu1 %v2977_v7  ;;  %2693 = vmatpush3.bf16.msra.mxu0 %v2979_v11 }
  0x75   : > { %2694 = vmatprep.subr.bf16.mxu0 %v2984_v12  ;;  %2798 = vmatprep.subr.bf16.mxu1 %v2985_v18 }
  0x77   : > { %1539 = vmatmul.mubr.bf16.gmra.mrb[40].mxu0 %v2354_v20  ;;  %2791 = vmatmul.mubr.msk.bf16.vlgmr.msra.gmra.mrb[0].mxu1 %vm445_vm0, %v2983_v17 }
  0x78   : > { %2695 = vmatpush3.bf16.msra.mxu0 %v2986_v3  ;;  %2799 = vmatpush3.bf16.msra.mxu1 %v2985_v18 }
  0x79   : > { %2696 = vmatprep.subr.bf16.mxu0 %v2987_v23  ;;  %2800 = vmatprep.subr.bf16.mxu1 %v2988_v24 }
  0x7a   : > { %1546 = vmatprep.mubr.bf16.mxu0 %v2358_v25  ;;  %2794 = vmatprep.mubr.msk.bf16.mxu1 %vm445_vm0, %v2991_v26 }
  0x7c   : > { %2697 = vmatpush3.bf16.msra.mxu0 %v2989_v10  ;;  %2801 = vmatpush3.bf16.msra.mxu1 %v2988_v24 }
  0x7d   : > { %2698 = vmatprep.subr.bf16.mxu0 %v2994_v27  ;;  %2802 = vmatprep.subr.bf16.mxu1 %v2995_v28 }
  0x7f   : > { %1547 = vmatmul.mubr.bf16.gmra.mrb[44].mxu0 %v2357_v30  ;;  %2795 = vmatmul.mubr.msk.bf16.gmra.mrb[32].mxu1 %vm445_vm0, %v2993_v31 }
  0x80   : > { %2699 = vmatpush3.bf16.msra.mxu0 %v2996_v32  ;;  %2803 = vmatpush3.bf16.msra.mxu1 %v2995_v28 }
  0x81   : > { %2700 = vmatprep.subr.bf16.mxu0 %v2997_v33  ;;  %2804 = vmatprep.subr.bf16.mxu1 %v2998_v34 }
  0x82   : > { %1899 = vmatprep.mubr.bf16.mxu0 %v3280_v22  ;;  %2806 = vmatprep.mubr.msk.bf16.mxu1 %vm445_vm0, %v3000_v35  ;;  %v1637_v22 = vld [vmem:[%s3083_s14 + $0x78] sm:$0xff] }
  0x83   : > { %v2434_v42 = vcombine.high %v1637_v22, %v1637_v22 }
  0x84   : > { %2701 = vmatpush3.bf16.msra.mxu0 %v2999_v36  ;;  %2805 = vmatpush3.bf16.msra.mxu1 %v2998_v34 }
  0x87   : > { %1900 = vmatmul.mubr.bf16.vlgmr.msra.gmra.mrb[48].mxu0 %v3302_v29  ;;  %2807 = vmatmul.mubr.msk.bf16.vlgmr.msra.gmra.mrb[0].mxu1 %vm445_vm0, %v3001_v37  ;;  %v2433_v29 = vcombine.low %v1637_v22, %v1637_v22 }
  0x88   : > { %1907 = vmatprep.mubr.bf16.mxu0 %v3335_v41  ;;  %2810 = vmatprep.mubr.msk.bf16.mxu1 %vm445_vm0, %v3004_v38 }
  0x8f   : > { %1908 = vmatmul.mubr.bf16.gmra.mrb[52].mxu0 %v3354_v45  ;;  %2811 = vmatmul.mubr.msk.bf16.gmra.mrb[36].mxu1 %vm445_vm0, %v3005_v39 }
  0x90   : > { %1915 = vmatprep.mubr.bf16.mxu0 %v2431_v40 }
  0x97   : > { %1916 = vmatmul.mubr.bf16.gmra.mrb[56].mxu0 %v2430_v13 }
  0x98   : > { %1923 = vmatprep.mubr.bf16.mxu0 %v2434_v42 }
  0x9f   : > { %1924 = vmatmul.mubr.bf16.gmra.mrb[60].mxu0 %v2433_v29 }
  0xf2   : > { %v2748_v55 = vpop.f32.mrb[4].mxu1 }
  0xf3   : > { %v572_v16 = vpop.f32.mrb[5].mxu1 }
  0xf4   : > { %v2749_v19 = vpop.f32.mrb[6].mxu1 }
  0xf5   : > { %v575_v46 = vpop.f32.mrb[7].mxu1 }
  0xfa   : > { %v2510_v43 = vpop.f32.mrb[0].mxu0 }
  0xfb   : > { %v2511_v41 = vpop.f32.mrb[1].mxu0 }
  0xfc   : > { %v2512_v44 = vadd.f32 %v2511_v41, %v2510_v43  ;;  %v2513_v47 = vpop.f32.mrb[2].mxu0 }
  0xfd   : > { %v2514_v48 = vpop.f32.mrb[3].mxu0 }
  0xfe   : > { %v2515_v53 = vadd.f32 %v2514_v48, %v2513_v47 }
 0x102   : > { %v2516_v54 = vpop.f32.mrb[4].mxu0 }
 0x103   : > { %v2517_v45 = vpop.f32.mrb[5].mxu0 }
 0x104   : > { %v2518_v14 = vadd.f32 %v2517_v45, %v2516_v54  ;;  %v2519_v15 = vpop.f32.mrb[6].mxu0 }
 0x105   : > { %v2520_v50 = vpop.f32.mrb[7].mxu0 }
 0x106   : > { %v2521_v56 = vadd.f32 %v2520_v50, %v2519_v15 }
 0x10a   : > { %v2522_v51 = vpop.f32.mrb[8].mxu0  ;;  %v2558_v57 = vpop.f32.mrb[8].mxu1 }
 0x10b   : > { %v2523_v58 = vpop.f32.mrb[9].mxu0  ;;  %v2559_v60 = vpop.f32.mrb[9].mxu1 }
 0x10c   : > { %v2524_v59 = vadd.f32 %v2523_v58, %v2522_v51  ;;  %v2525_v61 = vpop.f32.mrb[10].mxu0  ;;  %v2560_v62 = vadd.f32 %v2559_v60, %v2558_v57  ;;  %v2561_v63 = vpop.f32.mrb[10].mxu1 }
 0x10d   : > { %v2526_v0 = vpop.f32.mrb[11].mxu0  ;;  %v2562_v4 = vpop.f32.mrb[11].mxu1 }
 0x10e   : > { %v573_v2 = vadd.f32 %v2524_v59, %v572_v16  ;;  %v2527_v49 = vadd.f32 %v2526_v0, %v2525_v61  ;;  %v2819_v5 = vadd.f32 %v2560_v62, %v2512_v44  ;;  %v2563_v52 = vadd.f32 %v2562_v4, %v2561_v63 }
 0x110   : > { %v576_v6 = vadd.f32 %v2527_v49, %v575_v46  ;;  %v2829_v7 = vadd.f32 %v2563_v52, %v2515_v53 }
 0x112   : > { %v2528_v8 = vpop.f32.mrb[12].mxu0  ;;  %v2564_v1 = vpop.f32.mrb[12].mxu1 }
 0x113   : > { %v2529_v9 = vpop.f32.mrb[13].mxu0  ;;  %v2565_v12 = vpop.f32.mrb[13].mxu1 }
 0x114   : > { %v2530_v11 = vadd.f32 %v2529_v9, %v2528_v8  ;;  %v2531_v17 = vpop.f32.mrb[14].mxu0  ;;  %v2566_v18 = vadd.f32 %v2565_v12, %v2564_v1  ;;  %v2567_v3 = vpop.f32.mrb[14].mxu1 }
 0x115   : > { %v2532_v20 = vpop.f32.mrb[15].mxu0  ;;  %v2568_v23 = vpop.f32.mrb[15].mxu1 }
 0x116   : > { %v581_v21 = vadd.f32 %v2748_v55, %v2530_v11  ;;  %v2814_v24 = vadd.f32 %v2566_v18, %v2518_v14  ;;  %v2569_v25 = vadd.f32 %v2568_v23, %v2567_v3 }
 0x118   : > { %v2824_v26 = vadd.f32 %v2569_v25, %v2521_v56 }
 0x11a   : > { %v2570_v10 = vpop.f32.mrb[16].mxu1  ;;  %v2606_v27 = vpop.f32.mrb[16].mxu0 }
 0x11b   : > { %v2571_v28 = vpop.f32.mrb[17].mxu1  ;;  %v2607_v30 = vpop.f32.mrb[17].mxu0 }
 0x11c   : > { %v2572_v31 = vadd.f32 %v2571_v28, %v2570_v10  ;;  %v2608_v32 = vadd.f32 %v2607_v30, %v2606_v27  ;;  %v2573_v33 = vpop.f32.mrb[18].mxu1  ;;  %v2609_v34 = vpop.f32.mrb[18].mxu0 }
 0x11d   : > { %v2574_v35 = vpop.f32.mrb[19].mxu1  ;;  %v2610_v36 = vpop.f32.mrb[19].mxu0 }
 0x11e   : > { %v2820_v37 = vadd.f32 %v2819_v5, %v2608_v32  ;;  %v2575_v38 = vadd.f32 %v2574_v35, %v2573_v33  ;;  %v2611_v39 = vadd.f32 %v2610_v36, %v2609_v34  ;;  %v794_v40 = vadd.f32 %v2572_v31, %v573_v2 }
 0x120   : > { %v2830_v22 = vadd.f32 %v2829_v7, %v2611_v39  ;;  %v797_v13 = vadd.f32 %v2575_v38, %v576_v6 }
 0x122   : > { %v2576_v42 = vpop.f32.mrb[20].mxu1  ;;  %v2612_v29 = vpop.f32.mrb[20].mxu0 }
 0x123   : > { %v2577_v43 = vpop.f32.mrb[21].mxu1  ;;  %v2613_v41 = vpop.f32.mrb[21].mxu0 }
 0x124   : > { %v2578_v44 = vadd.f32 %v2577_v43, %v2576_v42  ;;  %v2614_v47 = vadd.f32 %v2613_v41, %v2612_v29  ;;  %v2615_v48 = vpop.f32.mrb[22].mxu0  ;;  %v2579_v53 = vpop.f32.mrb[22].mxu1 }
 0x125   : > { %v2616_v54 = vpop.f32.mrb[23].mxu0  ;;  %v2580_v55 = vpop.f32.mrb[23].mxu1 }
 0x126   : > { %v2815_v45 = vadd.f32 %v2814_v24, %v2614_v47  ;;  %v2617_v16 = vadd.f32 %v2616_v54, %v2615_v48  ;;  %v802_v14 = vadd.f32 %v2578_v44, %v581_v21 }
 0x128   : > { %v2825_v15 = vadd.f32 %v2824_v26, %v2617_v16 }
 0x12a   : > { %v2618_v19 = vpop.f32.mrb[24].mxu0 }
 0x12b   : > { %v2619_v50 = vpop.f32.mrb[25].mxu0 }
 0x12c   : > { %v2620_v46 = vadd.f32 %v2619_v50, %v2618_v19  ;;  %v2621_v56 = vpop.f32.mrb[26].mxu0 }
 0x12d   : > { %v2622_v51 = vpop.f32.mrb[27].mxu0 }
 0x12e   : > { %v2623_v57 = vadd.f32 %v2622_v51, %v2621_v56 }
 0x132   : > { %v2764_v58 = vpop.f32.mrb[24].mxu1  ;;  %v2624_v59 = vpop.f32.mrb[28].mxu0 }
 0x133   : > { %v866_v60 = vadd.f32 %v2764_v58, %v802_v14  ;;  %v857_v61 = vpop.f32.mrb[25].mxu1  ;;  %v2625_v62 = vpop.f32.mrb[29].mxu0 }
 0x134   : > { %v858_v63 = vadd.f32 %v857_v61, %v794_v40  ;;  %v2626_v0 = vadd.f32 %v2625_v62, %v2624_v59  ;;  %v2765_v2 = vpop.f32.mrb[26].mxu1  ;;  %v2627_v49 = vpop.f32.mrb[30].mxu0 }
 0x135   : > { %v860_v4 = vpop.f32.mrb[27].mxu1  ;;  %v2628_v5 = vpop.f32.mrb[31].mxu0 }
 0x136   : > { %v861_v52 = vadd.f32 %v860_v4, %v797_v13 }
 0x13a   : > { %v2654_v6 = vpop.f32.mrb[32].mxu0 }
 0x13b   : > { %v2655_v7 = vpop.f32.mrb[33].mxu0 }
 0x13c   : > { %v2656_v8 = vadd.f32 %v2655_v7, %v2654_v6  ;;  %v2657_v1 = vpop.f32.mrb[34].mxu0 }
 0x13d   : > { %v2658_v9 = vpop.f32.mrb[35].mxu0 }
 0x13e   : > { %v2821_v11 = vadd.f32 %v2820_v37, %v2656_v8  ;;  %v2659_v12 = vadd.f32 %v2658_v9, %v2657_v1 }
 0x140   : > { %v2831_v17 = vadd.f32 %v2830_v22, %v2659_v12 }
 0x142   : > { %v2780_v18 = vpop.f32.mrb[28].mxu1  ;;  %v2660_v3 = vpop.f32.mrb[36].mxu0 }
 0x143   : > { %v1236_v20 = vadd.f32 %v2780_v18, %v2626_v0  ;;  %v1227_v21 = vpop.f32.mrb[29].mxu1  ;;  %v2661_v23 = vpop.f32.mrb[37].mxu0  ;;  %v2460_v0 = vld [vmem:[%s3534_s2] ss:$0 sm:$0xff] }
 0x144   : > { %v1228_v24 = vadd.f32 %v2620_v46, %v1227_v21  ;;  %v2662_v25 = vadd.f32 %v2661_v23, %v2660_v3  ;;  %v2781_v26 = vpop.f32.mrb[30].mxu1  ;;  %v2663_v10 = vpop.f32.mrb[38].mxu0 }
 0x145   : > { %v1247_v27 = vadd.f32 %v1236_v20, %v866_v60  ;;  %v1230_v28 = vpop.f32.mrb[31].mxu1  ;;  %v2664_v30 = vpop.f32.mrb[39].mxu0 }
 0x146   : > { %v1245_v31 = vadd.f32 %v1228_v24, %v858_v63  ;;  %v2816_v32 = vadd.f32 %v2815_v45, %v2662_v25  ;;  %v1231_v33 = vadd.f32 %v2623_v57, %v1230_v28  ;;  %v2665_v34 = vadd.f32 %v2664_v30, %v2663_v10 }
 0x148   : > { %v1246_v35 = vadd.f32 %v1231_v33, %v861_v52  ;;  %v2826_v36 = vadd.f32 %v2825_v15, %v2665_v34 }
 0x14a   : > { %v2666_v37 = vpop.f32.mrb[40].mxu0 }
 0x14b   : > { %v2667_v38 = vpop.f32.mrb[41].mxu0 }
 0x14c   : > { %v2668_v39 = vadd.f32 %v2667_v38, %v2666_v37  ;;  %v2669_v40 = vpop.f32.mrb[42].mxu0 }
 0x14d   : > { %v2670_v22 = vpop.f32.mrb[43].mxu0 }
 0x14e   : > { %v2671_v13 = vadd.f32 %v2670_v22, %v2669_v40 }
 0x152   : > { %v2672_v42 = vpop.f32.mrb[44].mxu0  ;;  %v2796_v29 = vpop.f32.mrb[32].mxu1 }
 0x153   : > { %v2673_v43 = vpop.f32.mrb[45].mxu0  ;;  %v1604_v41 = vpop.f32.mrb[33].mxu1 }
 0x154   : > { %v2674_v44 = vadd.f32 %v2673_v43, %v2672_v42  ;;  %v1605_v47 = vadd.f32 %v2668_v39, %v1604_v41  ;;  %v2675_v48 = vpop.f32.mrb[46].mxu0  ;;  %v2797_v53 = vpop.f32.mrb[34].mxu1 }
 0x155   : > { %v2676_v54 = vpop.f32.mrb[47].mxu0  ;;  %v1607_v55 = vpop.f32.mrb[35].mxu1 }
 0x156   : > { %v1613_v45 = vadd.f32 %v2796_v29, %v2674_v44  ;;  %v1622_v16 = vadd.f32 %v1605_v47, %v1245_v31  ;;  %v1608_v14 = vadd.f32 %v2671_v13, %v1607_v55 }
 0x158   : > { %v3513_v15 = vadd.f32 %v1613_v45, %v1247_v27  ;;  %v1623_v19 = vadd.f32 %v1608_v14, %v1246_v35 }
 0x15a   : > { %v2702_v50 = vpop.f32.mrb[48].mxu0  ;;  %v2808_v46 = vpop.f32.mrb[0].mxu1 }
 0x15b   : > { %v2703_v56 = vpop.f32.mrb[49].mxu0  ;;  %v1965_v51 = vpop.f32.mrb[1].mxu1 }
 0x15c   : > { %v2704_v57 = vadd.f32 %v2703_v56, %v2702_v50  ;;  %v2705_v58 = vpop.f32.mrb[50].mxu0  ;;  %v2809_v59 = vpop.f32.mrb[2].mxu1 }
 0x15d   : > { %v2706_v60 = vpop.f32.mrb[51].mxu0  ;;  %v1968_v61 = vpop.f32.mrb[3].mxu1 }
 0x15e   : > { %v2822_v62 = vadd.f32 %v2821_v11, %v2704_v57  ;;  %v2707_v63 = vadd.f32 %v2706_v60, %v2705_v58 }
 0x160   : > { %v2823_v2 = vadd.f32 %v2822_v62, %v1965_v51  ;;  %v2832_v49 = vadd.f32 %v2831_v17, %v2707_v63 }
 0x162   : > { %v2008_v4 = vadd.f32 %v2823_v2, %v2460_v0  ;;  %v2833_v5 = vadd.f32 %v2832_v49, %v1968_v61  ;;  %v2708_v52 = vpop.f32.mrb[52].mxu0  ;;  %v2812_v6 = vpop.f32.mrb[36].mxu1 }
 0x163   : > { %v2709_v7 = vpop.f32.mrb[53].mxu0  ;;  %v1981_v8 = vpop.f32.mrb[37].mxu1 }
 0x164   : > { %v2009_v1 = vadd.f32 %v2833_v5, %v2460_v0  ;;  %v2710_v9 = vadd.f32 %v2709_v7, %v2708_v52  ;;  %v2711_v12 = vpop.f32.mrb[54].mxu0  ;;  %v2813_v18 = vpop.f32.mrb[38].mxu1  ;;  %v2015_v20 = vmax.f32 %v2008_v4, 0.0 }
 0x165   : > { %v2712_v3 = vpop.f32.mrb[55].mxu0  ;;  %v1984_v11 = vpop.f32.mrb[39].mxu1 }
 0x166   : > { %v2016_v21 = vmax.f32 %v2009_v1, 0.0  ;;  %v2817_v23 = vadd.f32 %v2816_v32, %v2710_v9  ;;  %v2713_v24 = vadd.f32 %v2712_v3, %v2711_v12 }
 0x168   : > { %v2480_v17 = vpack.c.bf16 %v2016_v21, %v2015_v20  ;;  %v2818_v25 = vadd.f32 %v2817_v23, %v2808_v46  ;;  %v2827_v26 = vadd.f32 %v2826_v36, %v2713_v24 }
 0x16a   : > { %2481 = vst [vmem:[%s3522_s29] sm:$0xff] %v2480_v17   ;;  %v2010_v10 = vadd.f32 %v2818_v25, %v2460_v0  ;;  %v2828_v27 = vadd.f32 %v2827_v26, %v2809_v59  ;;  %v2714_v28 = vpop.f32.mrb[56].mxu0 }
 0x16b   : > { %v2715_v30 = vpop.f32.mrb[57].mxu0 }
 0x16c   : > { %v2011_v31 = vadd.f32 %v2828_v27, %v2460_v0  ;;  %v2716_v33 = vadd.f32 %v2715_v30, %v2714_v28  ;;  %v2717_v34 = vpop.f32.mrb[58].mxu0  ;;  %v2017_v35 = vmax.f32 %v2010_v10, 0.0 }
 0x16d   : > { %v2718_v32 = vpop.f32.mrb[59].mxu0 }
 0x16e   : > { %v2018_v37 = vmax.f32 %v2011_v31, 0.0  ;;  %v2719_v38 = vadd.f32 %v2718_v32, %v2717_v34  ;;  %v1982_v39 = vadd.f32 %v2716_v33, %v1981_v8 }
 0x170   : > { %v2485_v40 = vpack.c.bf16 %v2018_v37, %v2017_v35  ;;  %v1999_v22 = vadd.f32 %v1982_v39, %v1622_v16  ;;  %v1985_v13 = vadd.f32 %v2719_v38, %v1984_v11 }
 0x172   : > { %2492 = vst [vmem:[%s3522_s29 + $0x8] sm:$0xff] %v2485_v40   ;;  %v2012_v36 = vadd.f32 %v2460_v0, %v1999_v22  ;;  %v2000_v42 = vadd.f32 %v1985_v13, %v1623_v19  ;;  %v2720_v29 = vpop.f32.mrb[60].mxu0 }
 0x173   : > { %v2721_v43 = vpop.f32.mrb[61].mxu0 }
 0x174   : > { %v2013_v41 = vadd.f32 %v2460_v0, %v2000_v42  ;;  %v2722_v44 = vadd.f32 %v2721_v43, %v2720_v29  ;;  %v2723_v47 = vpop.f32.mrb[62].mxu0  ;;  %v2019_v53 = vmax.f32 %v2012_v36, 0.0 }
 0x175   : > { %v2724_v48 = vpop.f32.mrb[63].mxu0 }
 0x176   : > { %v2020_v54 = vmax.f32 %v2013_v41, 0.0  ;;  %v1990_v55 = vadd.f32 %v2812_v6, %v2722_v44 }
 0x178   : > { %v2490_v45 = vpack.c.bf16 %v2020_v54, %v2019_v53  ;;  %v2001_v14 = vadd.f32 %v1990_v55, %v3513_v15 }
 0x17a   : > { %2493 = vst [vmem:[%s3522_s29 + $0x10] sm:$0xff] %v2490_v45   ;;  %v2014_v16 = vadd.f32 %v2460_v0, %v2001_v14 }
 0x17c   : > { %v2021_v50 = vmax.f32 %v2014_v16, 0.0 }
 0x17e   : > { %v2476_v46 = vpack.c.bf16 %v2021_v50, %v2021_v50 }
 0x180   : > { %2057 = vst [vmem:[%s3522_s29 + $0x18] sm:$0xf] %v2476_v46 }
 0x181 PF: > { %s13_s12 = sadd.s32 1, %s3014_s12  }
 0x182   : > { %p10_p4 = scmp.ge.s32.totalorder %s13_s12, 4  }
 0x184   :  { %12 = sbr.rel (!%p10_p4) target bundleno = 1 (0x1), region = 66 }

// kernel: convfc_forward.7
= control target key start
LH: loop header
LB: loop body
LE: loop exit
PB: predicated region body
PF: predicated region fallthrough
CT: control target
= control target key end

     0   :  { %s10842_s24 = smov 0   ;;  %s14483_s0 = inlined_call_operand.vmem [shape: bf16[32,1152], index: 0, kind: input, shape index: {}]   ;;  %s14484_s1 = inlined_call_operand.vmem [shape: bf16[1152,1024], index: 1, kind: input, shape index: {}]   ;;  %s14485_s2 = inlined_call_operand.vmem [shape: f32[1,1024], index: 2, kind: input, shape index: {}]   ;;  %s14486_s3 = inlined_call_operand.vmem [shape: bf16[1024,1024], index: 3, kind: input, shape index: {}]   ;;  %s14487_s4 = inlined_call_operand.vmem [shape: f32[1,1024], index: 4, kind: input, shape index: {}]   ;;  %s14488_s5 = inlined_call_operand.vmem [shape: bf16[1024,128], index: 5, kind: input, shape index: {}]   ;;  %s14489_s6 = inlined_call_operand.vmem [shape: f32[1,128], index: 6, kind: input, shape index: {}]   ;;  %s14490_s7 = inlined_call_operand.vmem [shape: f32[32,128], index: 7, kind: output, shape index: {}]  }
   0x1 LB: > { %s9291_s25 = sadd.s32 4294967295, %s10799_s24   ;;  %p9295_p0 = scmp.ge.s32.totalorder %s10799_s24, 1  ;;  %s10799_s24 = sphi %s10842_s24, %s17_s24  }
   0x2   : > { %p239_p1 = scmp.lt.s32.totalorder %s10799_s24, 3 }
   0x4   : > { %p240_p2 = pnand %p9295_p0, %p239_p1 }
   0x5   : > { %v296_v0 = vld [vmem:[%s14484_s1] sm:$0xff] (!%p240_p2)  ;;  %v297_v2 = vld [vmem:[%s14484_s1 + $0x8] sm:$0xff] (!%p240_p2)  ;;  %s9296_s29 = sshll.u32 (!%p240_p2), %s9291_s25, 1 }
   0x6   : > { %243 = sbr.rel (%p240_p2) target bundleno = 1571 (0x623), region = 48  ;;  %v300_v1 = vld [vmem:[%s14484_s1 + $0x20] sm:$0xff] (!%p240_p2)  ;;  %v301_v4 = vld [vmem:[%s14484_s1 + $0x28] sm:$0xff] (!%p240_p2)  ;;  %p273_p3 = scmp.lt.s32.totalorder (!%p240_p2), %s9296_s29, 3 }
   0x7   : > { %v9310_v3 = vcombine.high (!%p240_p2), %v296_v0, %v300_v1  ;;  %v9309_v5 = vcombine.low (!%p240_p2), %v296_v0, %v300_v1  ;;  %v304_v6 = vld [vmem:[%s14484_s1 + $0x40] sm:$0xff] (!%p240_p2)  ;;  %v9312_v8 = vcombine.high (!%p240_p2), %v297_v2, %v301_v4  ;;  %v9311_v9 = vcombine.low (!%p240_p2), %v297_v2, %v301_v4  ;;  %v305_v11 = vld [vmem:[%s14484_s1 + $0x48] sm:$0xff] (!%p240_p2) }
   0x8   : > { %v308_v7 = vld [vmem:[%s14484_s1 + $0x60] sm:$0xff] (!%p240_p2)  ;;  %v309_v12 = vld [vmem:[%s14484_s1 + $0x68] sm:$0xff] (!%p240_p2) }
   0x9   : > { %v9318_v10 = vcombine.high (!%p240_p2), %v304_v6, %v308_v7  ;;  %v312_v13 = vld [vmem:[%s14484_s1 + $0x80] sm:$0xff] (!%p240_p2)  ;;  %3840 = vmatprep.subr.bf16.mxu0 (!%p240_p2), %v9310_v3  ;;  %v9320_v14 = vcombine.high (!%p240_p2), %v305_v11, %v309_v12  ;;  %v313_v16 = vld [vmem:[%s14484_s1 + $0x88] sm:$0xff] (!%p240_p2)  ;;  %4055 = vmatprep.subr.bf16.mxu1 (!%p240_p2), %v9312_v8  ;;  %v9317_v18 = vcombine.low (!%p240_p2), %v304_v6, %v308_v7 }
   0xa   : > { %v316_v15 = vld [vmem:[%s14484_s1 + $0xa0] sm:$0xff] (!%p240_p2)  ;;  %v317_v17 = vld [vmem:[%s14484_s1 + $0xa8] sm:$0xff] (!%p240_p2)  ;;  %3841 = vmatpush1.bf16.msra.mxu0 (!%p240_p2), %v9309_v5  ;;  %4056 = vmatpush1.bf16.msra.mxu1 (!%p240_p2), %v9311_v9  ;;  %v9319_v19 = vcombine.low (!%p240_p2), %v305_v11, %v309_v12 }
   0xb   : > { %3842 = vmatprep.subr.bf16.mxu0 (!%p240_p2), %v9318_v10  ;;  %v9326_v20 = vcombine.high (!%p240_p2), %v312_v13, %v316_v15  ;;  %4057 = vmatprep.subr.bf16.mxu1 (!%p240_p2), %v9320_v14  ;;  %v9328_v21 = vcombine.high (!%p240_p2), %v313_v16, %v317_v17  ;;  %v320_v22 = vld [vmem:[%s14484_s1 + $0xc0] sm:$0xff] (!%p240_p2)  ;;  %v321_v24 = vld [vmem:[%s14484_s1 + $0xc8] sm:$0xff] (!%p240_p2)  ;;  %v9325_v26 = vcombine.low (!%p240_p2), %v312_v13, %v316_v15 }
   0xc   : > { %v324_v23 = vld [vmem:[%s14484_s1 + $0xe0] sm:$0xff] (!%p240_p2)  ;;  %v325_v25 = vld [vmem:[%s14484_s1 + $0xe8] sm:$0xff] (!%p240_p2)  ;;  %v9327_v27 = vcombine.low (!%p240_p2), %v313_v16, %v317_v17 }
   0xd   : > { %v9334_v28 = vcombine.high %v320_v22, %v324_v23  ;;  %v9336_v29 = vcombine.high %v321_v24, %v325_v25  ;;  %v328_v30 = vld [vmem:[%s14484_s1 + $0x100] sm:$0xff]  ;;  %v329_v32 = vld [vmem:[%s14484_s1 + $0x108] sm:$0xff]  ;;  %s14492_s29 = smov (!%p273_p3, %s9296_s29), 3  ;;  %v9333_v34 = vcombine.low %v320_v22, %v324_v23  ;;  %v9335_v35 = vcombine.low %v321_v24, %v325_v25 }
   0xe   : > { %3843 = vmatpush1.bf16.msra.mxu0 %v9317_v18  ;;  %4058 = vmatpush1.bf16.msra.mxu1 %v9319_v19  ;;  %v332_v31 = vld [vmem:[%s14484_s1 + $0x120] sm:$0xff]  ;;  %v333_v33 = vld [vmem:[%s14484_s1 + $0x128] sm:$0xff]  ;;  %s10696_s10 = smul.u32 36, %s14492_s29 }
   0xf   : > { %3844 = vmatprep.subr.bf16.mxu0 %v9326_v20  ;;  %4059 = vmatprep.subr.bf16.mxu1 %v9328_v21  ;;  %v9342_v36 = vcombine.high %v328_v30, %v332_v31  ;;  %v9344_v37 = vcombine.high %v329_v32, %v333_v33  ;;  %v336_v38 = vld [vmem:[%s14484_s1 + $0x140] sm:$0xff]  ;;  %v337_v40 = vld [vmem:[%s14484_s1 + $0x148] sm:$0xff]  ;;  %v9341_v42 = vcombine.low %v328_v30, %v332_v31 }
  0x10   : > { %v340_v39 = vld [vmem:[%s14484_s1 + $0x160] sm:$0xff]  ;;  %v341_v41 = vld [vmem:[%s14484_s1 + $0x168] sm:$0xff]  ;;  %v9343_v43 = vcombine.low %v329_v32, %v333_v33  ;;  %s10940_s20 = scalar_lea.vmem %s14483_s0, %s10696_s10 }
  0x11   : > { %v9350_v44 = vcombine.high %v336_v38, %v340_v39  ;;  %v9352_v45 = vcombine.high %v337_v40, %v341_v41  ;;  %v344_v46 = vld [vmem:[%s14484_s1 + $0x180] sm:$0xff]  ;;  %v345_v48 = vld [vmem:[%s14484_s1 + $0x188] sm:$0xff]  ;;  %v9349_v50 = vcombine.low %v336_v38, %v340_v39  ;;  %v9351_v51 = vcombine.low %v337_v40, %v341_v41 }
  0x12   : > { %3845 = vmatpush1.bf16.msra.mxu0 %v9325_v26  ;;  %4060 = vmatpush1.bf16.msra.mxu1 %v9327_v27  ;;  %v348_v47 = vld [vmem:[%s14484_s1 + $0x1a0] sm:$0xff]  ;;  %v349_v49 = vld [vmem:[%s14484_s1 + $0x1a8] sm:$0xff] }
  0x13   : > { %3846 = vmatprep.subr.bf16.mxu0 %v9334_v28  ;;  %4061 = vmatprep.subr.bf16.mxu1 %v9336_v29  ;;  %v9358_v52 = vcombine.high %v344_v46, %v348_v47  ;;  %v9360_v53 = vcombine.high %v345_v48, %v349_v49  ;;  %v352_v54 = vld [vmem:[%s14484_s1 + $0x1c0] sm:$0xff]  ;;  %v353_v57 = vld [vmem:[%s14484_s1 + $0x1c8] sm:$0xff]  ;;  %v9357_v59 = vcombine.low %v344_v46, %v348_v47 }
  0x14   : > { %v356_v55 = vld [vmem:[%s14484_s1 + $0x1e0] sm:$0xff]  ;;  %v357_v58 = vld [vmem:[%s14484_s1 + $0x1e8] sm:$0xff]  ;;  %v9359_v60 = vcombine.low %v345_v48, %v349_v49 }
  0x15   : > { %v10706_v56 = vld [vmem:[%s10940_s20 + $0x4] ss:$36 sps:$4 sm:$0xff]   ;;  %v9366_v61 = vcombine.high %v352_v54, %v356_v55  ;;  %v9368_v62 = vcombine.high %v353_v57, %v357_v58  ;;  %v9365_v3 = vcombine.low %v352_v54, %v356_v55  ;;  %v9367_v4 = vcombine.low %v353_v57, %v357_v58 }
  0x16   : > { %3847 = vmatpush1.bf16.msra.mxu0 %v9333_v34  ;;  %4062 = vmatpush1.bf16.msra.mxu1 %v9335_v35  ;;  %v360_v63 = vld [vmem:[%s14484_s1 + $0x200] sm:$0xff]  ;;  %v361_v1 = vld [vmem:[%s14484_s1 + $0x208] sm:$0xff] }
  0x17   : > { %3848 = vmatprep.subr.bf16.mxu0 %v9342_v36  ;;  %4063 = vmatprep.subr.bf16.mxu1 %v9344_v37  ;;  %v364_v0 = vld [vmem:[%s14484_s1 + $0x220] sm:$0xff]  ;;  %v365_v2 = vld [vmem:[%s14484_s1 + $0x228] sm:$0xff] }
  0x18   : > { %3872 = vmatprep.mubr.bf16.mxu0 %v10706_v56  ;;  %4087 = vmatprep.mubr.bf16.mxu1 %v10706_v56  ;;  %v9374_v5 = vcombine.high %v360_v63, %v364_v0  ;;  %v9376_v6 = vcombine.high %v361_v1, %v365_v2  ;;  %v368_v7 = vld [vmem:[%s14484_s1 + $0x240] sm:$0xff]  ;;  %v369_v9 = vld [vmem:[%s14484_s1 + $0x248] sm:$0xff]  ;;  %v9373_v11 = vcombine.low %v360_v63, %v364_v0 }
  0x19   : > { %v372_v8 = vld [vmem:[%s14484_s1 + $0x260] sm:$0xff]  ;;  %v373_v10 = vld [vmem:[%s14484_s1 + $0x268] sm:$0xff]  ;;  %v9375_v12 = vcombine.low %v361_v1, %v365_v2 }
  0x1a   : > { %3849 = vmatpush1.bf16.msra.mxu0 %v9341_v42  ;;  %4064 = vmatpush1.bf16.msra.mxu1 %v9343_v43  ;;  %v9382_v13 = vcombine.high %v368_v7, %v372_v8  ;;  %v9384_v14 = vcombine.high %v369_v9, %v373_v10  ;;  %v376_v15 = vld [vmem:[%s14484_s1 + $0x280] sm:$0xff]  ;;  %v377_v17 = vld [vmem:[%s14484_s1 + $0x288] sm:$0xff]  ;;  %v9381_v19 = vcombine.low %v368_v7, %v372_v8 }
  0x1b   : > { %3850 = vmatprep.subr.bf16.mxu0 %v9350_v44  ;;  %4065 = vmatprep.subr.bf16.mxu1 %v9352_v45  ;;  %v380_v16 = vld [vmem:[%s14484_s1 + $0x2a0] sm:$0xff]  ;;  %v381_v18 = vld [vmem:[%s14484_s1 + $0x2a8] sm:$0xff]  ;;  %v9383_v20 = vcombine.low %v369_v9, %v373_v10 }
  0x1c   : > { %v9390_v21 = vcombine.high %v376_v15, %v380_v16  ;;  %v9392_v22 = vcombine.high %v377_v17, %v381_v18  ;;  %v384_v23 = vld [vmem:[%s14484_s1 + $0x2c0] sm:$0xff]  ;;  %v385_v25 = vld [vmem:[%s14484_s1 + $0x2c8] sm:$0xff]  ;;  %v9389_v27 = vcombine.low %v376_v15, %v380_v16  ;;  %v9391_v28 = vcombine.low %v377_v17, %v381_v18 }
  0x1d   : > { %v388_v24 = vld [vmem:[%s14484_s1 + $0x2e0] sm:$0xff]  ;;  %v389_v26 = vld [vmem:[%s14484_s1 + $0x2e8] sm:$0xff] }
  0x1e   : > { %3851 = vmatpush1.bf16.msra.mxu0 %v9349_v50  ;;  %4066 = vmatpush1.bf16.msra.mxu1 %v9351_v51  ;;  %v9398_v29 = vcombine.high %v384_v23, %v388_v24  ;;  %v9400_v30 = vcombine.high %v385_v25, %v389_v26  ;;  %v392_v31 = vld [vmem:[%s14484_s1 + $0x300] sm:$0xff]  ;;  %v393_v33 = vld [vmem:[%s14484_s1 + $0x308] sm:$0xff]  ;;  %v9397_v35 = vcombine.low %v384_v23, %v388_v24 }
  0x1f   : > { %3852 = vmatprep.subr.bf16.mxu0 %v9358_v52  ;;  %4067 = vmatprep.subr.bf16.mxu1 %v9360_v53  ;;  %v396_v32 = vld [vmem:[%s14484_s1 + $0x320] sm:$0xff]  ;;  %v397_v34 = vld [vmem:[%s14484_s1 + $0x328] sm:$0xff]  ;;  %v9399_v36 = vcombine.low %v385_v25, %v389_v26 }
  0x20   : > { %v9406_v37 = vcombine.high %v392_v31, %v396_v32  ;;  %v9408_v38 = vcombine.high %v393_v33, %v397_v34  ;;  %v400_v39 = vld [vmem:[%s14484_s1 + $0x340] sm:$0xff]  ;;  %v401_v41 = vld [vmem:[%s14484_s1 + $0x348] sm:$0xff]  ;;  %v9405_v43 = vcombine.low %v392_v31, %v396_v32  ;;  %v9407_v44 = vcombine.low %v393_v33, %v397_v34 }
  0x21   : > { %v404_v40 = vld [vmem:[%s14484_s1 + $0x360] sm:$0xff]  ;;  %v405_v42 = vld [vmem:[%s14484_s1 + $0x368] sm:$0xff] }
  0x22   : > { %3853 = vmatpush1.bf16.msra.mxu0 %v9357_v59  ;;  %4068 = vmatpush1.bf16.msra.mxu1 %v9359_v60  ;;  %v9414_v45 = vcombine.high %v400_v39, %v404_v40  ;;  %v9416_v46 = vcombine.high %v401_v41, %v405_v42  ;;  %v408_v47 = vld [vmem:[%s14484_s1 + $0x380] sm:$0xff]  ;;  %v409_v49 = vld [vmem:[%s14484_s1 + $0x388] sm:$0xff]  ;;  %v9413_v51 = vcombine.low %v400_v39, %v404_v40 }
  0x23   : > { %3854 = vmatprep.subr.bf16.mxu0 %v9366_v61  ;;  %4069 = vmatprep.subr.bf16.mxu1 %v9368_v62  ;;  %v412_v48 = vld [vmem:[%s14484_s1 + $0x3a0] sm:$0xff]  ;;  %v413_v50 = vld [vmem:[%s14484_s1 + $0x3a8] sm:$0xff]  ;;  %v9415_v52 = vcombine.low %v401_v41, %v405_v42 }
  0x24   : > { %v9422_v53 = vcombine.high %v408_v47, %v412_v48  ;;  %v9424_v54 = vcombine.high %v409_v49, %v413_v50  ;;  %v416_v55 = vld [vmem:[%s14484_s1 + $0x3c0] sm:$0xff]  ;;  %v417_v57 = vld [vmem:[%s14484_s1 + $0x3c8] sm:$0xff]  ;;  %v9421_v59 = vcombine.low %v408_v47, %v412_v48  ;;  %v9423_v60 = vcombine.low %v409_v49, %v413_v50 }
  0x25   : > { %v420_v56 = vld [vmem:[%s14484_s1 + $0x3e0] sm:$0xff]  ;;  %v421_v58 = vld [vmem:[%s14484_s1 + $0x3e8] sm:$0xff] }
  0x26   : > { %3855 = vmatpush1.bf16.msra.mxu0 %v9365_v3  ;;  %4070 = vmatpush1.bf16.msra.mxu1 %v9367_v4  ;;  %v9430_v61 = vcombine.high %v416_v55, %v420_v56  ;;  %v9432_v62 = vcombine.high %v417_v57, %v421_v58  ;;  %v424_v63 = vld [vmem:[%s14484_s1 + $0x400] sm:$0xff]  ;;  %v425_v1 = vld [vmem:[%s14484_s1 + $0x408] sm:$0xff]  ;;  %v9429_v3 = vcombine.low %v416_v55, %v420_v56 }
  0x27   : > { %3856 = vmatprep.subr.bf16.mxu0 %v9374_v5  ;;  %4071 = vmatprep.subr.bf16.mxu1 %v9376_v6  ;;  %v428_v0 = vld [vmem:[%s14484_s1 + $0x420] sm:$0xff]  ;;  %v429_v2 = vld [vmem:[%s14484_s1 + $0x428] sm:$0xff]  ;;  %v9431_v4 = vcombine.low %v417_v57, %v421_v58 }
  0x28   : > { %v9438_v5 = vcombine.high %v424_v63, %v428_v0  ;;  %v9440_v6 = vcombine.high %v425_v1, %v429_v2  ;;  %v432_v7 = vld [vmem:[%s14484_s1 + $0x440] sm:$0xff]  ;;  %v433_v10 = vld [vmem:[%s14484_s1 + $0x448] sm:$0xff] }
  0x29   : > { %v436_v8 = vld [vmem:[%s14484_s1 + $0x460] sm:$0xff]  ;;  %v10709_v18 = vld [vmem:[%s10940_s20 + $0xc] ss:$36 sps:$4 sm:$0xff]  }
  0x2a   : > { %3857 = vmatpush1.bf16.msra.mxu0 %v9373_v11  ;;  %4072 = vmatpush1.bf16.msra.mxu1 %v9375_v12  ;;  %v10708_v9 = vld [vmem:[%s10940_s20] ss:$36 sps:$4 sm:$0xff]   ;;  %v437_v11 = vld [vmem:[%s14484_s1 + $0x468] sm:$0xff]  ;;  %v9437_v12 = vcombine.low %v424_v63, %v428_v0 }
  0x2b   : > { %3858 = vmatprep.subr.bf16.mxu0 %v9382_v13  ;;  %4073 = vmatprep.subr.bf16.mxu1 %v9384_v14  ;;  %v9439_v13 = vcombine.low %v425_v1, %v429_v2  ;;  %v9446_v14 = vcombine.high %v432_v7, %v436_v8  ;;  %v440_v15 = vld [vmem:[%s14484_s1 + $0x480] sm:$0xff]  ;;  %v9448_v16 = vcombine.high %v433_v10, %v437_v11  ;;  %v457_v34 = vld [vmem:[%s14484_s1 + $0x508] sm:$0xff] }
  0x2c   : > { %v444_v17 = vld [vmem:[%s14484_s1 + $0x4a0] sm:$0xff]  ;;  %v465_v42 = vld [vmem:[%s14484_s1 + $0x548] sm:$0xff] }
  0x2d   : > { %v9454_v23 = vcombine.high %v440_v15, %v444_v17  ;;  %v448_v24 = vld [vmem:[%s14484_s1 + $0x4c0] sm:$0xff]  ;;  %v473_v50 = vld [vmem:[%s14484_s1 + $0x588] sm:$0xff] }
  0x2e   : > { %3859 = vmatpush1.bf16.msra.mxu0 %v9381_v19  ;;  %4074 = vmatpush1.bf16.msra.mxu1 %v9383_v20  ;;  %v441_v19 = vld [vmem:[%s14484_s1 + $0x488] sm:$0xff]  ;;  %v452_v25 = vld [vmem:[%s14484_s1 + $0x4e0] sm:$0xff] }
  0x2f   : > { %3860 = vmatprep.subr.bf16.mxu0 %v9390_v21  ;;  %4075 = vmatprep.subr.bf16.mxu1 %v9392_v22  ;;  %v445_v20 = vld [vmem:[%s14484_s1 + $0x4a8] sm:$0xff]  ;;  %v9445_v21 = vcombine.low %v432_v7, %v436_v8  ;;  %v9447_v22 = vcombine.low %v433_v10, %v437_v11  ;;  %v9462_v31 = vcombine.high %v448_v24, %v452_v25  ;;  %v456_v32 = vld [vmem:[%s14484_s1 + $0x500] sm:$0xff] }
  0x30   : > { %v9456_v26 = vcombine.high %v441_v19, %v445_v20  ;;  %v460_v33 = vld [vmem:[%s14484_s1 + $0x520] sm:$0xff]  ;;  %v481_v58 = vld [vmem:[%s14484_s1 + $0x5c8] sm:$0xff] }
  0x31   : > { %v9470_v39 = vcombine.high %v456_v32, %v460_v33  ;;  %v464_v40 = vld [vmem:[%s14484_s1 + $0x540] sm:$0xff]  ;;  %v489_v2 = vld [vmem:[%s14484_s1 + $0x608] sm:$0xff] }
  0x32   : > { %3861 = vmatpush1.bf16.msra.mxu0 %v9389_v27  ;;  %4076 = vmatpush1.bf16.msra.mxu1 %v9391_v28  ;;  %v449_v27 = vld [vmem:[%s14484_s1 + $0x4c8] sm:$0xff]  ;;  %v468_v41 = vld [vmem:[%s14484_s1 + $0x560] sm:$0xff] }
  0x33   : > { %3862 = vmatprep.subr.bf16.mxu0 %v9398_v29  ;;  %4077 = vmatprep.subr.bf16.mxu1 %v9400_v30  ;;  %v453_v28 = vld [vmem:[%s14484_s1 + $0x4e8] sm:$0xff]  ;;  %v9453_v29 = vcombine.low %v440_v15, %v444_v17  ;;  %v9455_v30 = vcombine.low %v441_v19, %v445_v20  ;;  %v9478_v47 = vcombine.high %v464_v40, %v468_v41  ;;  %v472_v48 = vld [vmem:[%s14484_s1 + $0x580] sm:$0xff] }
  0x34   : > { %v476_v49 = vld [vmem:[%s14484_s1 + $0x5a0] sm:$0xff]  ;;  %v497_v10 = vld [vmem:[%s14484_s1 + $0x648] sm:$0xff] }
  0x35   : > { %v9486_v55 = vcombine.high %v472_v48, %v476_v49  ;;  %v480_v56 = vld [vmem:[%s14484_s1 + $0x5c0] sm:$0xff]  ;;  %v509_v20 = vld [vmem:[%s14484_s1 + $0x6a8] sm:$0xff] }
  0x36   : > { %3863 = vmatpush1.bf16.msra.mxu0 %v9397_v35  ;;  %4078 = vmatpush1.bf16.msra.mxu1 %v9399_v36  ;;  %v9464_v35 = vcombine.high %v449_v27, %v453_v28  ;;  %v461_v36 = vld [vmem:[%s14484_s1 + $0x528] sm:$0xff]  ;;  %v484_v57 = vld [vmem:[%s14484_s1 + $0x5e0] sm:$0xff] }
  0x37   : > { %3864 = vmatprep.subr.bf16.mxu0 %v9406_v37  ;;  %4079 = vmatprep.subr.bf16.mxu1 %v9408_v38  ;;  %v9461_v37 = vcombine.low %v448_v24, %v452_v25  ;;  %v9463_v38 = vcombine.low %v449_v27, %v453_v28  ;;  %v9494_v63 = vcombine.high %v480_v56, %v484_v57  ;;  %v488_v0 = vld [vmem:[%s14484_s1 + $0x600] sm:$0xff]  ;;  %v517_v28 = vld [vmem:[%s14484_s1 + $0x6e8] sm:$0xff] }
  0x38   : > { %v492_v1 = vld [vmem:[%s14484_s1 + $0x620] sm:$0xff] }
  0x39   : > { %v9502_v7 = vcombine.high %v488_v0, %v492_v1  ;;  %v496_v8 = vld [vmem:[%s14484_s1 + $0x640] sm:$0xff] }
  0x3a   : > { %3865 = vmatpush1.bf16.msra.mxu0 %v9405_v43  ;;  %4080 = vmatpush1.bf16.msra.mxu1 %v9407_v44  ;;  %v9472_v43 = vcombine.high %v457_v34, %v461_v36  ;;  %v469_v44 = vld [vmem:[%s14484_s1 + $0x568] sm:$0xff]  ;;  %v508_v17 = vld [vmem:[%s14484_s1 + $0x6a0] sm:$0xff] }
  0x3b   : > { %3866 = vmatprep.subr.bf16.mxu0 %v9414_v45  ;;  %4081 = vmatprep.subr.bf16.mxu1 %v9416_v46  ;;  %v9469_v45 = vcombine.low %v456_v32, %v460_v33  ;;  %v9471_v46 = vcombine.low %v457_v34, %v461_v36  ;;  %v512_v24 = vld [vmem:[%s14484_s1 + $0x6c0] sm:$0xff]  ;;  %v521_v34 = vld [vmem:[%s14484_s1 + $0x708] sm:$0xff] }
  0x3c   : > { %v516_v25 = vld [vmem:[%s14484_s1 + $0x6e0] sm:$0xff]  ;;  %v525_v36 = vld [vmem:[%s14484_s1 + $0x728] sm:$0xff] }
  0x3d   : > { %v520_v32 = vld [vmem:[%s14484_s1 + $0x700] sm:$0xff] }
  0x3e   : > { %3867 = vmatpush1.bf16.msra.mxu0 %v9413_v51  ;;  %4082 = vmatpush1.bf16.msra.mxu1 %v9415_v52  ;;  %v9480_v51 = vcombine.high %v465_v42, %v469_v44  ;;  %v477_v52 = vld [vmem:[%s14484_s1 + $0x5a8] sm:$0xff]  ;;  %v524_v33 = vld [vmem:[%s14484_s1 + $0x720] sm:$0xff] }
  0x3f   : > { %3868 = vmatprep.subr.bf16.mxu0 %v9422_v53  ;;  %4083 = vmatprep.subr.bf16.mxu1 %v9424_v54  ;;  %v9477_v53 = vcombine.low %v464_v40, %v468_v41  ;;  %v9479_v54 = vcombine.low %v465_v42, %v469_v44  ;;  %v528_v40 = vld [vmem:[%s14484_s1 + $0x740] sm:$0xff]  ;;  %v529_v42 = vld [vmem:[%s14484_s1 + $0x748] sm:$0xff] }
  0x40   : > { %v532_v41 = vld [vmem:[%s14484_s1 + $0x760] sm:$0xff]  ;;  %v533_v44 = vld [vmem:[%s14484_s1 + $0x768] sm:$0xff] }
  0x42   : > { %3869 = vmatpush1.bf16.msra.mxu0 %v9421_v59  ;;  %4084 = vmatpush1.bf16.msra.mxu1 %v9423_v60  ;;  %v9488_v59 = vcombine.high %v473_v50, %v477_v52  ;;  %v485_v60 = vld [vmem:[%s14484_s1 + $0x5e8] sm:$0xff] }
  0x43   : > { %3870 = vmatprep.subr.bf16.mxu0 %v9430_v61  ;;  %4085 = vmatprep.subr.bf16.mxu1 %v9432_v62  ;;  %v9485_v61 = vcombine.low %v472_v48, %v476_v49  ;;  %v9487_v62 = vcombine.low %v473_v50, %v477_v52  ;;  %v536_v48 = vld [vmem:[%s14484_s1 + $0x780] sm:$0xff]  ;;  %v537_v50 = vld [vmem:[%s14484_s1 + $0x788] sm:$0xff] }
  0x44   : > { %v540_v49 = vld [vmem:[%s14484_s1 + $0x7a0] sm:$0xff]  ;;  %v541_v52 = vld [vmem:[%s14484_s1 + $0x7a8] sm:$0xff] }
  0x46   : > { %3871 = vmatpush1.bf16.msra.mxu0 %v9429_v3  ;;  %4086 = vmatpush1.bf16.msra.mxu1 %v9431_v4  ;;  %v9496_v3 = vcombine.high %v481_v58, %v485_v60  ;;  %v493_v4 = vld [vmem:[%s14484_s1 + $0x628] sm:$0xff] }
  0x47   : > { %3883 = vmatprep.subr.bf16.mxu0 %v9438_v5  ;;  %4098 = vmatprep.subr.bf16.mxu1 %v9440_v6  ;;  %v9493_v5 = vcombine.low %v480_v56, %v484_v57  ;;  %v9495_v6 = vcombine.low %v481_v58, %v485_v60  ;;  %v9504_v11 = vcombine.high %v489_v2, %v493_v4  ;;  %v544_v56 = vld [vmem:[%s14484_s1 + $0x7c0] sm:$0xff]  ;;  %v545_v58 = vld [vmem:[%s14484_s1 + $0x7c8] sm:$0xff] }
  0x48   : > { %v548_v57 = vld [vmem:[%s14484_s1 + $0x7e0] sm:$0xff]  ;;  %v549_v60 = vld [vmem:[%s14484_s1 + $0x7e8] sm:$0xff] }
  0x49   : > { %3873 = vmatmul.mubr.bf16.vlgmr.msra.gmra.mrb[0].mxu0 %v10708_v9  ;;  %4088 = vmatmul.mubr.bf16.vlgmr.msra.gmra.mrb[0].mxu1 %v10708_v9  ;;  %v500_v9 = vld [vmem:[%s14484_s1 + $0x660] sm:$0xff] }
  0x4a   : > { %3884 = vmatpush1.bf16.msra.mxu0 %v9437_v12  ;;  %4099 = vmatpush1.bf16.msra.mxu1 %v9439_v13  ;;  %v501_v12 = vld [vmem:[%s14484_s1 + $0x668] sm:$0xff]  ;;  %v9501_v13 = vcombine.low %v488_v0, %v492_v1  ;;  %v9510_v15 = vcombine.high %v496_v8, %v500_v9  ;;  %v552_v0 = vld [vmem:[%s14484_s1 + $0x800] sm:$0xff] }
  0x4b   : > { %3885 = vmatprep.subr.bf16.mxu0 %v9446_v14  ;;  %4100 = vmatprep.subr.bf16.mxu1 %v9448_v16  ;;  %v9503_v14 = vcombine.low %v489_v2, %v493_v4  ;;  %v504_v16 = vld [vmem:[%s14484_s1 + $0x680] sm:$0xff]  ;;  %v9512_v19 = vcombine.high %v497_v10, %v501_v12  ;;  %v553_v2 = vld [vmem:[%s14484_s1 + $0x808] sm:$0xff] }
  0x4c   : > { %3915 = vmatprep.mubr.bf16.mxu0 %v10709_v18  ;;  %4130 = vmatprep.mubr.bf16.mxu1 %v10709_v18  ;;  %v505_v18 = vld [vmem:[%s14484_s1 + $0x688] sm:$0xff]  ;;  %v556_v1 = vld [vmem:[%s14484_s1 + $0x820] sm:$0xff] }
  0x4d   : > { %v9520_v27 = vcombine.high %v505_v18, %v509_v20  ;;  %v557_v4 = vld [vmem:[%s14484_s1 + $0x828] sm:$0xff] }
  0x4e   : > { %3886 = vmatpush1.bf16.msra.mxu0 %v9445_v21  ;;  %4101 = vmatpush1.bf16.msra.mxu1 %v9447_v22  ;;  %v9509_v21 = vcombine.low %v496_v8, %v500_v9  ;;  %v9511_v22 = vcombine.low %v497_v10, %v501_v12  ;;  %v10711_v8 = vld [vmem:[%s10940_s20 + $0x8] ss:$36 sps:$4 sm:$0xff]   ;;  %v560_v9 = vld [vmem:[%s14484_s1 + $0x840] sm:$0xff]  ;;  %v9568_v12 = vcombine.high %v553_v2, %v557_v4 }
  0x4f   : > { %3887 = vmatprep.subr.bf16.mxu0 %v9454_v23  ;;  %4102 = vmatprep.subr.bf16.mxu1 %v9456_v26  ;;  %v9518_v23 = vcombine.high %v504_v16, %v508_v17  ;;  %v513_v26 = vld [vmem:[%s14484_s1 + $0x6c8] sm:$0xff]  ;;  %v564_v10 = vld [vmem:[%s14484_s1 + $0x860] sm:$0xff] }
  0x52   : > { %3888 = vmatpush1.bf16.msra.mxu0 %v9453_v29  ;;  %4103 = vmatpush1.bf16.msra.mxu1 %v9455_v30  ;;  %v9517_v29 = vcombine.low %v504_v16, %v508_v17  ;;  %v9519_v30 = vcombine.low %v505_v18, %v509_v20  ;;  %v9574_v16 = vcombine.high %v560_v9, %v564_v10  ;;  %v568_v17 = vld [vmem:[%s14484_s1 + $0x880] sm:$0xff]  ;;  %v569_v20 = vld [vmem:[%s14484_s1 + $0x888] sm:$0xff] }
  0x53   : > { %3889 = vmatprep.subr.bf16.mxu0 %v9462_v31  ;;  %4104 = vmatprep.subr.bf16.mxu1 %v9464_v35  ;;  %v9526_v31 = vcombine.high %v512_v24, %v516_v25  ;;  %v9528_v35 = vcombine.high %v513_v26, %v517_v28  ;;  %v572_v18 = vld [vmem:[%s14484_s1 + $0x8a0] sm:$0xff] }
  0x56   : > { %3890 = vmatpush1.bf16.msra.mxu0 %v9461_v37  ;;  %4105 = vmatpush1.bf16.msra.mxu1 %v9463_v38  ;;  %v9525_v37 = vcombine.low %v512_v24, %v516_v25  ;;  %v9527_v38 = vcombine.low %v513_v26, %v517_v28  ;;  %v9582_v25 = vcombine.high %v568_v17, %v572_v18  ;;  %v576_v26 = vld [vmem:[%s14484_s1 + $0x8c0] sm:$0xff]  ;;  %v577_v28 = vld [vmem:[%s14484_s1 + $0x8c8] sm:$0xff] }
  0x57   : > { %3891 = vmatprep.subr.bf16.mxu0 %v9470_v39  ;;  %4106 = vmatprep.subr.bf16.mxu1 %v9472_v43  ;;  %v9534_v39 = vcombine.high %v520_v32, %v524_v33  ;;  %v9536_v43 = vcombine.high %v521_v34, %v525_v36 }
  0x5a   : > { %3892 = vmatpush1.bf16.msra.mxu0 %v9469_v45  ;;  %4107 = vmatpush1.bf16.msra.mxu1 %v9471_v46  ;;  %v9533_v45 = vcombine.low %v520_v32, %v524_v33  ;;  %v9535_v46 = vcombine.low %v521_v34, %v525_v36  ;;  %v588_v36 = vld [vmem:[%s14484_s1 + $0x920] sm:$0xff] }
  0x5b   : > { %3893 = vmatprep.subr.bf16.mxu0 %v9478_v47  ;;  %4108 = vmatprep.subr.bf16.mxu1 %v9480_v51  ;;  %v9542_v47 = vcombine.high %v528_v40, %v532_v41  ;;  %v9544_v51 = vcombine.high %v529_v42, %v533_v44 }
  0x5e   : > { %3894 = vmatpush1.bf16.msra.mxu0 %v9477_v53  ;;  %4109 = vmatpush1.bf16.msra.mxu1 %v9479_v54  ;;  %v9541_v53 = vcombine.low %v528_v40, %v532_v41  ;;  %v9543_v54 = vcombine.low %v529_v42, %v533_v44  ;;  %v596_v44 = vld [vmem:[%s14484_s1 + $0x960] sm:$0xff] }
  0x5f   : > { %3895 = vmatprep.subr.bf16.mxu0 %v9486_v55  ;;  %4110 = vmatprep.subr.bf16.mxu1 %v9488_v59  ;;  %v9550_v55 = vcombine.high %v536_v48, %v540_v49  ;;  %v9552_v59 = vcombine.high %v537_v50, %v541_v52 }
  0x62   : > { %3896 = vmatpush1.bf16.msra.mxu0 %v9485_v61  ;;  %4111 = vmatpush1.bf16.msra.mxu1 %v9487_v62  ;;  %v9549_v61 = vcombine.low %v536_v48, %v540_v49  ;;  %v9551_v62 = vcombine.low %v537_v50, %v541_v52  ;;  %v604_v52 = vld [vmem:[%s14484_s1 + $0x9a0] sm:$0xff] }
  0x63   : > { %3897 = vmatprep.subr.bf16.mxu0 %v9494_v63  ;;  %4112 = vmatprep.subr.bf16.mxu1 %v9496_v3  ;;  %v9558_v63 = vcombine.high %v544_v56, %v548_v57  ;;  %v9560_v3 = vcombine.high %v545_v58, %v549_v60 }
  0x66   : > { %3898 = vmatpush1.bf16.msra.mxu0 %v9493_v5  ;;  %4113 = vmatpush1.bf16.msra.mxu1 %v9495_v6  ;;  %v9557_v5 = vcombine.low %v544_v56, %v548_v57  ;;  %v9559_v6 = vcombine.low %v545_v58, %v549_v60  ;;  %v612_v60 = vld [vmem:[%s14484_s1 + $0x9e0] sm:$0xff] }
  0x67   : > { %3899 = vmatprep.subr.bf16.mxu0 %v9502_v7  ;;  %4114 = vmatprep.subr.bf16.mxu1 %v9504_v11  ;;  %v9566_v7 = vcombine.high %v552_v0, %v556_v1  ;;  %v561_v11 = vld [vmem:[%s14484_s1 + $0x848] sm:$0xff] }
  0x6a   : > { %3900 = vmatpush1.bf16.msra.mxu0 %v9501_v13  ;;  %4115 = vmatpush1.bf16.msra.mxu1 %v9503_v14  ;;  %v565_v13 = vld [vmem:[%s14484_s1 + $0x868] sm:$0xff]  ;;  %v9565_v14 = vcombine.low %v552_v0, %v556_v1 }
  0x6b   : > { %3901 = vmatprep.subr.bf16.mxu0 %v9510_v15  ;;  %4116 = vmatprep.subr.bf16.mxu1 %v9512_v19  ;;  %v9567_v15 = vcombine.low %v553_v2, %v557_v4  ;;  %v9576_v19 = vcombine.high %v561_v11, %v565_v13  ;;  %v9575_v24 = vcombine.low %v561_v11, %v565_v13  ;;  %v620_v4 = vld [vmem:[%s14484_s1 + $0xa20] sm:$0xff]  ;;  %v625_v13 = vld [vmem:[%s14484_s1 + $0xa48] sm:$0xff] }
  0x6c   : > { %v624_v11 = vld [vmem:[%s14484_s1 + $0xa40] sm:$0xff] }
  0x6e   : > { %3902 = vmatpush1.bf16.msra.mxu0 %v9509_v21  ;;  %4117 = vmatpush1.bf16.msra.mxu1 %v9511_v22  ;;  %v573_v21 = vld [vmem:[%s14484_s1 + $0x8a8] sm:$0xff]  ;;  %v10712_v22 = vld [vmem:[%s10940_s20 + $0x14] ss:$36 sps:$4 sm:$0xff]  }
  0x6f   : > { %3903 = vmatprep.subr.bf16.mxu0 %v9518_v23  ;;  %4118 = vmatprep.subr.bf16.mxu1 %v9520_v27  ;;  %v9573_v23 = vcombine.low %v560_v9, %v564_v10  ;;  %v580_v27 = vld [vmem:[%s14484_s1 + $0x8e0] sm:$0xff]  ;;  %v9583_v32 = vcombine.low %v569_v20, %v573_v21 }
  0x70   : > { %v9590_v33 = vcombine.high %v576_v26, %v580_v27 }
  0x72   : > { %3904 = vmatpush1.bf16.msra.mxu0 %v9517_v29  ;;  %4119 = vmatpush1.bf16.msra.mxu1 %v9519_v30  ;;  %v9584_v29 = vcombine.high %v569_v20, %v573_v21  ;;  %v581_v30 = vld [vmem:[%s14484_s1 + $0x8e8] sm:$0xff]  ;;  %v636_v20 = vld [vmem:[%s14484_s1 + $0xaa0] sm:$0xff] }
  0x73   : > { %3905 = vmatprep.subr.bf16.mxu0 %v9526_v31  ;;  %4120 = vmatprep.subr.bf16.mxu1 %v9528_v35  ;;  %v9581_v31 = vcombine.low %v568_v17, %v572_v18  ;;  %v9592_v34 = vcombine.high %v577_v28, %v581_v30  ;;  %v584_v35 = vld [vmem:[%s14484_s1 + $0x900] sm:$0xff]  ;;  %v9591_v40 = vcombine.low %v577_v28, %v581_v30  ;;  %v633_v21 = vld [vmem:[%s14484_s1 + $0xa88] sm:$0xff] }
  0x74   : > { %v9598_v41 = vcombine.high %v584_v35, %v588_v36  ;;  %v644_v28 = vld [vmem:[%s14484_s1 + $0xae0] sm:$0xff]  ;;  %v645_v30 = vld [vmem:[%s14484_s1 + $0xae8] sm:$0xff] }
  0x76   : > { %3906 = vmatpush1.bf16.msra.mxu0 %v9525_v37  ;;  %4121 = vmatpush1.bf16.msra.mxu1 %v9527_v38  ;;  %v585_v37 = vld [vmem:[%s14484_s1 + $0x908] sm:$0xff] }
  0x77   : > { %3907 = vmatprep.subr.bf16.mxu0 %v9534_v39  ;;  %4122 = vmatprep.subr.bf16.mxu1 %v9536_v43  ;;  %v589_v38 = vld [vmem:[%s14484_s1 + $0x928] sm:$0xff]  ;;  %v9589_v39 = vcombine.low %v576_v26, %v580_v27  ;;  %v592_v43 = vld [vmem:[%s14484_s1 + $0x940] sm:$0xff] }
  0x78   : > { %v9600_v42 = vcombine.high %v585_v37, %v589_v38  ;;  %v9599_v48 = vcombine.low %v585_v37, %v589_v38  ;;  %v9606_v49 = vcombine.high %v592_v43, %v596_v44  ;;  %v640_v27 = vld [vmem:[%s14484_s1 + $0xac0] sm:$0xff]  ;;  %v649_v37 = vld [vmem:[%s14484_s1 + $0xb08] sm:$0xff] }
  0x79   : > { %v653_v38 = vld [vmem:[%s14484_s1 + $0xb28] sm:$0xff] }
  0x7a   : > { %3908 = vmatpush1.bf16.msra.mxu0 %v9533_v45  ;;  %4123 = vmatpush1.bf16.msra.mxu1 %v9535_v46  ;;  %v593_v45 = vld [vmem:[%s14484_s1 + $0x948] sm:$0xff] }
  0x7b   : > { %3909 = vmatprep.subr.bf16.mxu0 %v9542_v47  ;;  %4124 = vmatprep.subr.bf16.mxu1 %v9544_v51  ;;  %v597_v46 = vld [vmem:[%s14484_s1 + $0x968] sm:$0xff]  ;;  %v9597_v47 = vcombine.low %v584_v35, %v588_v36  ;;  %v600_v51 = vld [vmem:[%s14484_s1 + $0x980] sm:$0xff] }
  0x7c   : > { %v9608_v50 = vcombine.high %v593_v45, %v597_v46  ;;  %v9607_v56 = vcombine.low %v593_v45, %v597_v46  ;;  %v9614_v57 = vcombine.high %v600_v51, %v604_v52  ;;  %v648_v35 = vld [vmem:[%s14484_s1 + $0xb00] sm:$0xff]  ;;  %v657_v45 = vld [vmem:[%s14484_s1 + $0xb48] sm:$0xff] }
  0x7d   : > { %v652_v36 = vld [vmem:[%s14484_s1 + $0xb20] sm:$0xff]  ;;  %v661_v46 = vld [vmem:[%s14484_s1 + $0xb68] sm:$0xff] }
  0x7e   : > { %3910 = vmatpush1.bf16.msra.mxu0 %v9541_v53  ;;  %4125 = vmatpush1.bf16.msra.mxu1 %v9543_v54  ;;  %v601_v53 = vld [vmem:[%s14484_s1 + $0x988] sm:$0xff] }
  0x7f   : > { %3911 = vmatprep.subr.bf16.mxu0 %v9550_v55  ;;  %4126 = vmatprep.subr.bf16.mxu1 %v9552_v59  ;;  %v605_v54 = vld [vmem:[%s14484_s1 + $0x9a8] sm:$0xff]  ;;  %v9605_v55 = vcombine.low %v592_v43, %v596_v44  ;;  %v608_v59 = vld [vmem:[%s14484_s1 + $0x9c0] sm:$0xff] }
  0x80   : > { %v9616_v58 = vcombine.high %v601_v53, %v605_v54  ;;  %v9615_v0 = vcombine.low %v601_v53, %v605_v54  ;;  %v9622_v1 = vcombine.high %v608_v59, %v612_v60  ;;  %v656_v43 = vld [vmem:[%s14484_s1 + $0xb40] sm:$0xff]  ;;  %v665_v53 = vld [vmem:[%s14484_s1 + $0xb88] sm:$0xff] }
  0x81   : > { %v660_v44 = vld [vmem:[%s14484_s1 + $0xb60] sm:$0xff]  ;;  %v669_v54 = vld [vmem:[%s14484_s1 + $0xba8] sm:$0xff] }
  0x82   : > { %3912 = vmatpush1.bf16.msra.mxu0 %v9549_v61  ;;  %4127 = vmatpush1.bf16.msra.mxu1 %v9551_v62  ;;  %v609_v61 = vld [vmem:[%s14484_s1 + $0x9c8] sm:$0xff] }
  0x83   : > { %3913 = vmatprep.subr.bf16.mxu0 %v9558_v63  ;;  %4128 = vmatprep.subr.bf16.mxu1 %v9560_v3  ;;  %v613_v62 = vld [vmem:[%s14484_s1 + $0x9e8] sm:$0xff]  ;;  %v9613_v63 = vcombine.low %v600_v51, %v604_v52  ;;  %v616_v3 = vld [vmem:[%s14484_s1 + $0xa00] sm:$0xff] }
  0x84   : > { %v9624_v2 = vcombine.high %v609_v61, %v613_v62  ;;  %v9630_v9 = vcombine.high %v616_v3, %v620_v4  ;;  %v664_v51 = vld [vmem:[%s14484_s1 + $0xb80] sm:$0xff] }
  0x85   : > { %v668_v52 = vld [vmem:[%s14484_s1 + $0xba0] sm:$0xff] }
  0x86   : > { %3914 = vmatpush1.bf16.msra.mxu0 %v9557_v5  ;;  %4129 = vmatpush1.bf16.msra.mxu1 %v9559_v6  ;;  %v617_v5 = vld [vmem:[%s14484_s1 + $0xa08] sm:$0xff] }
  0x87   : > { %3926 = vmatprep.subr.bf16.mxu0 %v9566_v7  ;;  %4141 = vmatprep.subr.bf16.mxu1 %v9568_v12  ;;  %v621_v6 = vld [vmem:[%s14484_s1 + $0xa28] sm:$0xff]  ;;  %v9621_v7 = vcombine.low %v608_v59, %v612_v60  ;;  %v628_v12 = vld [vmem:[%s14484_s1 + $0xa60] sm:$0xff] }
  0x88   : > { %v9632_v10 = vcombine.high %v617_v5, %v621_v6  ;;  %v9638_v17 = vcombine.high %v624_v11, %v628_v12  ;;  %v672_v59 = vld [vmem:[%s14484_s1 + $0xbc0] sm:$0xff] }
  0x89   : > { %3916 = vmatmul.mubr.bf16.vlgmr.msra.gmra.mrb[0].mxu0 %v10711_v8  ;;  %4131 = vmatmul.mubr.bf16.vlgmr.msra.gmra.mrb[0].mxu1 %v10711_v8  ;;  %v9623_v8 = vcombine.low %v609_v61, %v613_v62  ;;  %v676_v60 = vld [vmem:[%s14484_s1 + $0xbe0] sm:$0xff]  ;;  %v673_v61 = vld [vmem:[%s14484_s1 + $0xbc8] sm:$0xff] }
  0x8a   : > { %3927 = vmatpush1.bf16.msra.mxu0 %v9565_v14  ;;  %4142 = vmatpush1.bf16.msra.mxu1 %v9567_v15  ;;  %v629_v14 = vld [vmem:[%s14484_s1 + $0xa68] sm:$0xff]  ;;  %v9629_v15 = vcombine.low %v616_v3, %v620_v4  ;;  %v680_v3 = vld [vmem:[%s14484_s1 + $0xc00] sm:$0xff] }
  0x8b   : > { %3928 = vmatprep.subr.bf16.mxu0 %v9574_v16  ;;  %4143 = vmatprep.subr.bf16.mxu1 %v9576_v19  ;;  %v9631_v16 = vcombine.low %v617_v5, %v621_v6  ;;  %v9640_v18 = vcombine.high %v625_v13, %v629_v14  ;;  %v632_v19 = vld [vmem:[%s14484_s1 + $0xa80] sm:$0xff]  ;;  %v677_v62 = vld [vmem:[%s14484_s1 + $0xbe8] sm:$0xff] }
  0x8c   : > { %3958 = vmatprep.mubr.bf16.mxu0 %v10712_v22  ;;  %4173 = vmatprep.mubr.bf16.mxu1 %v10712_v22  ;;  %v637_v22 = vld [vmem:[%s14484_s1 + $0xaa8] sm:$0xff]  ;;  %v684_v4 = vld [vmem:[%s14484_s1 + $0xc20] sm:$0xff] }
  0x8d   : > { %v9648_v26 = vcombine.high %v633_v21, %v637_v22  ;;  %v681_v5 = vld [vmem:[%s14484_s1 + $0xc08] sm:$0xff] }
  0x8e   : > { %3929 = vmatpush1.bf16.msra.mxu0 %v9573_v23  ;;  %4144 = vmatpush1.bf16.msra.mxu1 %v9575_v24  ;;  %v9637_v23 = vcombine.low %v624_v11, %v628_v12  ;;  %v9639_v24 = vcombine.low %v625_v13, %v629_v14  ;;  %v685_v6 = vld [vmem:[%s14484_s1 + $0xc28] sm:$0xff]  ;;  %v688_v11 = vld [vmem:[%s14484_s1 + $0xc40] sm:$0xff]  ;;  %v10714_v13 = vld [vmem:[%s10940_s20 + $0x10] ss:$36 sps:$4 sm:$0xff]  }
  0x8f   : > { %3930 = vmatprep.subr.bf16.mxu0 %v9582_v25  ;;  %4145 = vmatprep.subr.bf16.mxu1 %v9584_v29  ;;  %v9646_v25 = vcombine.high %v632_v19, %v636_v20  ;;  %v641_v29 = vld [vmem:[%s14484_s1 + $0xac8] sm:$0xff]  ;;  %v692_v12 = vld [vmem:[%s14484_s1 + $0xc60] sm:$0xff] }
  0x90   : > { %v689_v14 = vld [vmem:[%s14484_s1 + $0xc48] sm:$0xff] }
  0x92   : > { %3931 = vmatpush1.bf16.msra.mxu0 %v9581_v31  ;;  %4146 = vmatpush1.bf16.msra.mxu1 %v9583_v32  ;;  %v9645_v31 = vcombine.low %v632_v19, %v636_v20  ;;  %v9647_v32 = vcombine.low %v633_v21, %v637_v22  ;;  %v696_v20 = vld [vmem:[%s14484_s1 + $0xc80] sm:$0xff] }
  0x93   : > { %3932 = vmatprep.subr.bf16.mxu0 %v9590_v33  ;;  %4147 = vmatprep.subr.bf16.mxu1 %v9592_v34  ;;  %v9654_v33 = vcombine.high %v640_v27, %v644_v28  ;;  %v9656_v34 = vcombine.high %v641_v29, %v645_v30  ;;  %v700_v21 = vld [vmem:[%s14484_s1 + $0xca0] sm:$0xff] }
  0x94   : > { %v10715_v22 = vld [vmem:[%s10940_s20 + $0x1c] ss:$36 sps:$4 sm:$0xff]  }
  0x96   : > { %3933 = vmatpush1.bf16.msra.mxu0 %v9589_v39  ;;  %4148 = vmatpush1.bf16.msra.mxu1 %v9591_v40  ;;  %v9653_v39 = vcombine.low %v640_v27, %v644_v28  ;;  %v9655_v40 = vcombine.low %v641_v29, %v645_v30  ;;  %v9710_v27 = vcombine.high %v696_v20, %v700_v21  ;;  %v704_v29 = vld [vmem:[%s14484_s1 + $0xcc0] sm:$0xff] }
  0x97   : > { %3934 = vmatprep.subr.bf16.mxu0 %v9598_v41  ;;  %4149 = vmatprep.subr.bf16.mxu1 %v9600_v42  ;;  %v9662_v41 = vcombine.high %v648_v35, %v652_v36  ;;  %v9664_v42 = vcombine.high %v649_v37, %v653_v38  ;;  %v708_v30 = vld [vmem:[%s14484_s1 + $0xce0] sm:$0xff] }
  0x9a   : > { %3935 = vmatpush1.bf16.msra.mxu0 %v9597_v47  ;;  %4150 = vmatpush1.bf16.msra.mxu1 %v9599_v48  ;;  %v9661_v47 = vcombine.low %v648_v35, %v652_v36  ;;  %v9663_v48 = vcombine.low %v649_v37, %v653_v38  ;;  %v9718_v35 = vcombine.high %v704_v29, %v708_v30  ;;  %v712_v37 = vld [vmem:[%s14484_s1 + $0xd00] sm:$0xff] }
  0x9b   : > { %3936 = vmatprep.subr.bf16.mxu0 %v9606_v49  ;;  %4151 = vmatprep.subr.bf16.mxu1 %v9608_v50  ;;  %v9670_v49 = vcombine.high %v656_v43, %v660_v44  ;;  %v9672_v50 = vcombine.high %v657_v45, %v661_v46  ;;  %v716_v38 = vld [vmem:[%s14484_s1 + $0xd20] sm:$0xff] }
  0x9e   : > { %3937 = vmatpush1.bf16.msra.mxu0 %v9605_v55  ;;  %4152 = vmatpush1.bf16.msra.mxu1 %v9607_v56  ;;  %v9669_v55 = vcombine.low %v656_v43, %v660_v44  ;;  %v9671_v56 = vcombine.low %v657_v45, %v661_v46  ;;  %v9726_v43 = vcombine.high %v712_v37, %v716_v38  ;;  %v720_v45 = vld [vmem:[%s14484_s1 + $0xd40] sm:$0xff] }
  0x9f   : > { %3938 = vmatprep.subr.bf16.mxu0 %v9614_v57  ;;  %4153 = vmatprep.subr.bf16.mxu1 %v9616_v58  ;;  %v9678_v57 = vcombine.high %v664_v51, %v668_v52  ;;  %v9680_v58 = vcombine.high %v665_v53, %v669_v54  ;;  %v724_v46 = vld [vmem:[%s14484_s1 + $0xd60] sm:$0xff] }
  0xa2   : > { %3939 = vmatpush1.bf16.msra.mxu0 %v9613_v63  ;;  %4154 = vmatpush1.bf16.msra.mxu1 %v9615_v0  ;;  %v9677_v63 = vcombine.low %v664_v51, %v668_v52  ;;  %v9679_v0 = vcombine.low %v665_v53, %v669_v54  ;;  %v9734_v51 = vcombine.high %v720_v45, %v724_v46  ;;  %v728_v53 = vld [vmem:[%s14484_s1 + $0xd80] sm:$0xff] }
  0xa3   : > { %3940 = vmatprep.subr.bf16.mxu0 %v9622_v1  ;;  %4155 = vmatprep.subr.bf16.mxu1 %v9624_v2  ;;  %v9686_v1 = vcombine.high %v672_v59, %v676_v60  ;;  %v9688_v2 = vcombine.high %v673_v61, %v677_v62  ;;  %v732_v54 = vld [vmem:[%s14484_s1 + $0xda0] sm:$0xff] }
  0xa6   : > { %3941 = vmatpush1.bf16.msra.mxu0 %v9621_v7  ;;  %4156 = vmatpush1.bf16.msra.mxu1 %v9623_v8  ;;  %v9685_v7 = vcombine.low %v672_v59, %v676_v60  ;;  %v9687_v8 = vcombine.low %v673_v61, %v677_v62  ;;  %v9742_v59 = vcombine.high %v728_v53, %v732_v54  ;;  %v736_v61 = vld [vmem:[%s14484_s1 + $0xdc0] sm:$0xff] }
  0xa7   : > { %3942 = vmatprep.subr.bf16.mxu0 %v9630_v9  ;;  %4157 = vmatprep.subr.bf16.mxu1 %v9632_v10  ;;  %v9694_v9 = vcombine.high %v680_v3, %v684_v4  ;;  %v9696_v10 = vcombine.high %v681_v5, %v685_v6  ;;  %v740_v62 = vld [vmem:[%s14484_s1 + $0xde0] sm:$0xff] }
  0xaa   : > { %3943 = vmatpush1.bf16.msra.mxu0 %v9629_v15  ;;  %4158 = vmatpush1.bf16.msra.mxu1 %v9631_v16  ;;  %v693_v15 = vld [vmem:[%s14484_s1 + $0xc68] sm:$0xff]  ;;  %v9693_v16 = vcombine.low %v680_v3, %v684_v4  ;;  %v9750_v3 = vcombine.high %v736_v61, %v740_v62 }
  0xab   : > { %3944 = vmatprep.subr.bf16.mxu0 %v9638_v17  ;;  %4159 = vmatprep.subr.bf16.mxu1 %v9640_v18  ;;  %v9695_v17 = vcombine.low %v681_v5, %v685_v6  ;;  %v9702_v18 = vcombine.high %v688_v11, %v692_v12  ;;  %v9704_v19 = vcombine.high %v689_v14, %v693_v15  ;;  %v744_v5 = vld [vmem:[%s14484_s1 + $0xe00] sm:$0xff] }
  0xac   : > { %v748_v6 = vld [vmem:[%s14484_s1 + $0xe20] sm:$0xff] }
  0xae   : > { %3945 = vmatpush1.bf16.msra.mxu0 %v9637_v23  ;;  %4160 = vmatpush1.bf16.msra.mxu1 %v9639_v24  ;;  %v697_v23 = vld [vmem:[%s14484_s1 + $0xc88] sm:$0xff] }
  0xaf   : > { %3946 = vmatprep.subr.bf16.mxu0 %v9646_v25  ;;  %4161 = vmatprep.subr.bf16.mxu1 %v9648_v26  ;;  %v701_v24 = vld [vmem:[%s14484_s1 + $0xca8] sm:$0xff]  ;;  %v9701_v25 = vcombine.low %v688_v11, %v692_v12  ;;  %v9703_v26 = vcombine.low %v689_v14, %v693_v15  ;;  %v9758_v11 = vcombine.high %v744_v5, %v748_v6  ;;  %v756_v14 = vld [vmem:[%s14484_s1 + $0xe60] sm:$0xff] }
  0xb0   : > { %v9712_v28 = vcombine.high %v697_v23, %v701_v24  ;;  %v753_v15 = vld [vmem:[%s14484_s1 + $0xe48] sm:$0xff] }
  0xb2   : > { %3947 = vmatpush1.bf16.msra.mxu0 %v9645_v31  ;;  %4162 = vmatpush1.bf16.msra.mxu1 %v9647_v32  ;;  %v705_v31 = vld [vmem:[%s14484_s1 + $0xcc8] sm:$0xff] }
  0xb3   : > { %3948 = vmatprep.subr.bf16.mxu0 %v9654_v33  ;;  %4163 = vmatprep.subr.bf16.mxu1 %v9656_v34  ;;  %v709_v32 = vld [vmem:[%s14484_s1 + $0xce8] sm:$0xff]  ;;  %v9709_v33 = vcombine.low %v696_v20, %v700_v21  ;;  %v9711_v34 = vcombine.low %v697_v23, %v701_v24  ;;  %v760_v21 = vld [vmem:[%s14484_s1 + $0xe80] sm:$0xff] }
  0xb4   : > { %v9720_v36 = vcombine.high %v705_v31, %v709_v32  ;;  %v761_v23 = vld [vmem:[%s14484_s1 + $0xe88] sm:$0xff] }
  0xb5   : > { %v765_v24 = vld [vmem:[%s14484_s1 + $0xea8] sm:$0xff] }
  0xb6   : > { %3949 = vmatpush1.bf16.msra.mxu0 %v9653_v39  ;;  %4164 = vmatpush1.bf16.msra.mxu1 %v9655_v40  ;;  %v713_v39 = vld [vmem:[%s14484_s1 + $0xd08] sm:$0xff] }
  0xb7   : > { %3950 = vmatprep.subr.bf16.mxu0 %v9662_v41  ;;  %4165 = vmatprep.subr.bf16.mxu1 %v9664_v42  ;;  %v717_v40 = vld [vmem:[%s14484_s1 + $0xd28] sm:$0xff]  ;;  %v9717_v41 = vcombine.low %v704_v29, %v708_v30  ;;  %v9719_v42 = vcombine.low %v705_v31, %v709_v32  ;;  %v768_v29 = vld [vmem:[%s14484_s1 + $0xec0] sm:$0xff] }
  0xb8   : > { %v9728_v44 = vcombine.high %v713_v39, %v717_v40  ;;  %v772_v30 = vld [vmem:[%s14484_s1 + $0xee0] sm:$0xff]  ;;  %v769_v31 = vld [vmem:[%s14484_s1 + $0xec8] sm:$0xff] }
  0xb9   : > { %v773_v32 = vld [vmem:[%s14484_s1 + $0xee8] sm:$0xff] }
  0xba   : > { %3951 = vmatpush1.bf16.msra.mxu0 %v9661_v47  ;;  %4166 = vmatpush1.bf16.msra.mxu1 %v9663_v48  ;;  %v721_v47 = vld [vmem:[%s14484_s1 + $0xd48] sm:$0xff] }
  0xbb   : > { %3952 = vmatprep.subr.bf16.mxu0 %v9670_v49  ;;  %4167 = vmatprep.subr.bf16.mxu1 %v9672_v50  ;;  %v725_v48 = vld [vmem:[%s14484_s1 + $0xd68] sm:$0xff]  ;;  %v9725_v49 = vcombine.low %v712_v37, %v716_v38  ;;  %v9727_v50 = vcombine.low %v713_v39, %v717_v40  ;;  %v776_v37 = vld [vmem:[%s14484_s1 + $0xf00] sm:$0xff] }
  0xbc   : > { %v9736_v52 = vcombine.high %v721_v47, %v725_v48  ;;  %v780_v38 = vld [vmem:[%s14484_s1 + $0xf20] sm:$0xff]  ;;  %v777_v39 = vld [vmem:[%s14484_s1 + $0xf08] sm:$0xff] }
  0xbd   : > { %v781_v40 = vld [vmem:[%s14484_s1 + $0xf28] sm:$0xff] }
  0xbe   : > { %3953 = vmatpush1.bf16.msra.mxu0 %v9669_v55  ;;  %4168 = vmatpush1.bf16.msra.mxu1 %v9671_v56  ;;  %v729_v55 = vld [vmem:[%s14484_s1 + $0xd88] sm:$0xff] }
  0xbf   : > { %3954 = vmatprep.subr.bf16.mxu0 %v9678_v57  ;;  %4169 = vmatprep.subr.bf16.mxu1 %v9680_v58  ;;  %v733_v56 = vld [vmem:[%s14484_s1 + $0xda8] sm:$0xff]  ;;  %v9733_v57 = vcombine.low %v720_v45, %v724_v46  ;;  %v9735_v58 = vcombine.low %v721_v47, %v725_v48  ;;  %v784_v45 = vld [vmem:[%s14484_s1 + $0xf40] sm:$0xff] }
  0xc0   : > { %v9744_v60 = vcombine.high %v729_v55, %v733_v56  ;;  %v788_v46 = vld [vmem:[%s14484_s1 + $0xf60] sm:$0xff]  ;;  %v785_v47 = vld [vmem:[%s14484_s1 + $0xf48] sm:$0xff] }
  0xc1   : > { %v789_v48 = vld [vmem:[%s14484_s1 + $0xf68] sm:$0xff] }
  0xc2   : > { %3955 = vmatpush1.bf16.msra.mxu0 %v9677_v63  ;;  %4170 = vmatpush1.bf16.msra.mxu1 %v9679_v0  ;;  %v737_v63 = vld [vmem:[%s14484_s1 + $0xdc8] sm:$0xff] }
  0xc3   : > { %3956 = vmatprep.subr.bf16.mxu0 %v9686_v1  ;;  %4171 = vmatprep.subr.bf16.mxu1 %v9688_v2  ;;  %v741_v0 = vld [vmem:[%s14484_s1 + $0xde8] sm:$0xff]  ;;  %v9741_v1 = vcombine.low %v728_v53, %v732_v54  ;;  %v9743_v2 = vcombine.low %v729_v55, %v733_v56  ;;  %v792_v53 = vld [vmem:[%s14484_s1 + $0xf80] sm:$0xff] }
  0xc4   : > { %v9752_v4 = vcombine.high %v737_v63, %v741_v0  ;;  %v796_v54 = vld [vmem:[%s14484_s1 + $0xfa0] sm:$0xff]  ;;  %v793_v55 = vld [vmem:[%s14484_s1 + $0xf88] sm:$0xff] }
  0xc5   : > { %v797_v56 = vld [vmem:[%s14484_s1 + $0xfa8] sm:$0xff] }
  0xc6   : > { %3957 = vmatpush1.bf16.msra.mxu0 %v9685_v7  ;;  %4172 = vmatpush1.bf16.msra.mxu1 %v9687_v8  ;;  %v745_v7 = vld [vmem:[%s14484_s1 + $0xe08] sm:$0xff] }
  0xc7   : > { %3969 = vmatprep.subr.bf16.mxu0 %v9694_v9  ;;  %4184 = vmatprep.subr.bf16.mxu1 %v9696_v10  ;;  %v749_v8 = vld [vmem:[%s14484_s1 + $0xe28] sm:$0xff]  ;;  %v9749_v9 = vcombine.low %v736_v61, %v740_v62  ;;  %v9751_v10 = vcombine.low %v737_v63, %v741_v0  ;;  %v800_v61 = vld [vmem:[%s14484_s1 + $0xfc0] sm:$0xff] }
  0xc8   : > { %v9760_v12 = vcombine.high %v745_v7, %v749_v8  ;;  %v804_v62 = vld [vmem:[%s14484_s1 + $0xfe0] sm:$0xff]  ;;  %v801_v63 = vld [vmem:[%s14484_s1 + $0xfc8] sm:$0xff] }
  0xc9   : > { %3959 = vmatmul.mubr.bf16.vlgmr.msra.gmra.mrb[0].mxu0 %v10714_v13  ;;  %4174 = vmatmul.mubr.bf16.vlgmr.msra.gmra.mrb[0].mxu1 %v10714_v13  ;;  %v752_v13 = vld [vmem:[%s14484_s1 + $0xe40] sm:$0xff]  ;;  %v805_v0 = vld [vmem:[%s14484_s1 + $0xfe8] sm:$0xff] }
  0xca   : > { %3970 = vmatpush1.bf16.msra.mxu0 %v9693_v16  ;;  %4185 = vmatpush1.bf16.msra.mxu1 %v9695_v17  ;;  %v757_v16 = vld [vmem:[%s14484_s1 + $0xe68] sm:$0xff]  ;;  %v9757_v17 = vcombine.low %v744_v5, %v748_v6  ;;  %v808_v5 = vld [vmem:[%s14484_s1 + $0x1000] sm:$0xff] }
  0xcb   : > { %3971 = vmatprep.subr.bf16.mxu0 %v9702_v18  ;;  %4186 = vmatprep.subr.bf16.mxu1 %v9704_v19  ;;  %v9759_v18 = vcombine.low %v745_v7, %v749_v8  ;;  %v9766_v19 = vcombine.high %v752_v13, %v756_v14  ;;  %v9768_v20 = vcombine.high %v753_v15, %v757_v16  ;;  %v812_v6 = vld [vmem:[%s14484_s1 + $0x1020] sm:$0xff]  ;;  %v809_v7 = vld [vmem:[%s14484_s1 + $0x1008] sm:$0xff] }
  0xcc   : > { %4001 = vmatprep.mubr.bf16.mxu0 %v10715_v22  ;;  %4216 = vmatprep.mubr.bf16.mxu1 %v10715_v22  ;;  %v764_v22 = vld [vmem:[%s14484_s1 + $0xea0] sm:$0xff]  ;;  %v813_v8 = vld [vmem:[%s14484_s1 + $0x1028] sm:$0xff] }
  0xce   : > { %3972 = vmatpush1.bf16.msra.mxu0 %v9701_v25  ;;  %4187 = vmatpush1.bf16.msra.mxu1 %v9703_v26  ;;  %v9765_v25 = vcombine.low %v752_v13, %v756_v14  ;;  %v9767_v26 = vcombine.low %v753_v15, %v757_v16  ;;  %v816_v13 = vld [vmem:[%s14484_s1 + $0x1040] sm:$0xff]  ;;  %v10717_v15 = vld [vmem:[%s10940_s20 + $0x18] ss:$36 sps:$4 sm:$0xff]   ;;  %v817_v16 = vld [vmem:[%s14484_s1 + $0x1048] sm:$0xff] }
  0xcf   : > { %3973 = vmatprep.subr.bf16.mxu0 %v9710_v27  ;;  %4188 = vmatprep.subr.bf16.mxu1 %v9712_v28  ;;  %v9774_v27 = vcombine.high %v760_v21, %v764_v22  ;;  %v9776_v28 = vcombine.high %v761_v23, %v765_v24  ;;  %v820_v14 = vld [vmem:[%s14484_s1 + $0x1060] sm:$0xff] }
  0xd2   : > { %3974 = vmatpush1.bf16.msra.mxu0 %v9709_v33  ;;  %4189 = vmatpush1.bf16.msra.mxu1 %v9711_v34  ;;  %v9773_v33 = vcombine.low %v760_v21, %v764_v22  ;;  %v9775_v34 = vcombine.low %v761_v23, %v765_v24  ;;  %v824_v22 = vld [vmem:[%s14484_s1 + $0x1080] sm:$0xff]  ;;  %v825_v24 = vld [vmem:[%s14484_s1 + $0x1088] sm:$0xff] }
  0xd3   : > { %3975 = vmatprep.subr.bf16.mxu0 %v9718_v35  ;;  %4190 = vmatprep.subr.bf16.mxu1 %v9720_v36  ;;  %v9782_v35 = vcombine.high %v768_v29, %v772_v30  ;;  %v9784_v36 = vcombine.high %v769_v31, %v773_v32  ;;  %v828_v23 = vld [vmem:[%s14484_s1 + $0x10a0] sm:$0xff] }
  0xd6   : > { %3976 = vmatpush1.bf16.msra.mxu0 %v9717_v41  ;;  %4191 = vmatpush1.bf16.msra.mxu1 %v9719_v42  ;;  %v9781_v41 = vcombine.low %v768_v29, %v772_v30  ;;  %v9783_v42 = vcombine.low %v769_v31, %v773_v32  ;;  %v832_v30 = vld [vmem:[%s14484_s1 + $0x10c0] sm:$0xff]  ;;  %v10801_v32 = vmov 0  }
  0xd7   : > { %3977 = vmatprep.subr.bf16.mxu0 %v9726_v43  ;;  %4192 = vmatprep.subr.bf16.mxu1 %v9728_v44  ;;  %v9790_v43 = vcombine.high %v776_v37, %v780_v38  ;;  %v9792_v44 = vcombine.high %v777_v39, %v781_v40  ;;  %v836_v31 = vld [vmem:[%s14484_s1 + $0x10e0] sm:$0xff] }
  0xda   : > { %3978 = vmatpush1.bf16.msra.mxu0 %v9725_v49  ;;  %4193 = vmatpush1.bf16.msra.mxu1 %v9727_v50  ;;  %v9789_v49 = vcombine.low %v776_v37, %v780_v38  ;;  %v9791_v50 = vcombine.low %v777_v39, %v781_v40  ;;  %v9846_v37 = vcombine.high %v832_v30, %v836_v31  ;;  %v840_v39 = vld [vmem:[%s14484_s1 + $0x1100] sm:$0xff] }
  0xdb   : > { %3979 = vmatprep.subr.bf16.mxu0 %v9734_v51  ;;  %4194 = vmatprep.subr.bf16.mxu1 %v9736_v52  ;;  %v9798_v51 = vcombine.high %v784_v45, %v788_v46  ;;  %v9800_v52 = vcombine.high %v785_v47, %v789_v48  ;;  %v844_v40 = vld [vmem:[%s14484_s1 + $0x1120] sm:$0xff] }
  0xde   : > { %3980 = vmatpush1.bf16.msra.mxu0 %v9733_v57  ;;  %4195 = vmatpush1.bf16.msra.mxu1 %v9735_v58  ;;  %v9797_v57 = vcombine.low %v784_v45, %v788_v46  ;;  %v9799_v58 = vcombine.low %v785_v47, %v789_v48  ;;  %v9854_v45 = vcombine.high %v840_v39, %v844_v40  ;;  %v848_v47 = vld [vmem:[%s14484_s1 + $0x1140] sm:$0xff] }
  0xdf   : > { %3981 = vmatprep.subr.bf16.mxu0 %v9742_v59  ;;  %4196 = vmatprep.subr.bf16.mxu1 %v9744_v60  ;;  %v9806_v59 = vcombine.high %v792_v53, %v796_v54  ;;  %v9808_v60 = vcombine.high %v793_v55, %v797_v56  ;;  %v852_v48 = vld [vmem:[%s14484_s1 + $0x1160] sm:$0xff] }
  0xe2   : > { %3982 = vmatpush1.bf16.msra.mxu0 %v9741_v1  ;;  %4197 = vmatpush1.bf16.msra.mxu1 %v9743_v2  ;;  %v9805_v1 = vcombine.low %v792_v53, %v796_v54  ;;  %v9807_v2 = vcombine.low %v793_v55, %v797_v56  ;;  %v9862_v53 = vcombine.high %v848_v47, %v852_v48  ;;  %v856_v55 = vld [vmem:[%s14484_s1 + $0x1180] sm:$0xff] }
  0xe3   : > { %3983 = vmatprep.subr.bf16.mxu0 %v9750_v3  ;;  %4198 = vmatprep.subr.bf16.mxu1 %v9752_v4  ;;  %v9814_v3 = vcombine.high %v800_v61, %v804_v62  ;;  %v9816_v4 = vcombine.high %v801_v63, %v805_v0  ;;  %v860_v56 = vld [vmem:[%s14484_s1 + $0x11a0] sm:$0xff] }
  0xe6   : > { %3984 = vmatpush1.bf16.msra.mxu0 %v9749_v9  ;;  %4199 = vmatpush1.bf16.msra.mxu1 %v9751_v10  ;;  %v9813_v9 = vcombine.low %v800_v61, %v804_v62  ;;  %v9815_v10 = vcombine.low %v801_v63, %v805_v0  ;;  %v9870_v61 = vcombine.high %v856_v55, %v860_v56  ;;  %v864_v63 = vld [vmem:[%s14484_s1 + $0x11c0] sm:$0xff] }
  0xe7   : > { %3985 = vmatprep.subr.bf16.mxu0 %v9758_v11  ;;  %4200 = vmatprep.subr.bf16.mxu1 %v9760_v12  ;;  %v9822_v11 = vcombine.high %v808_v5, %v812_v6  ;;  %v9824_v12 = vcombine.high %v809_v7, %v813_v8  ;;  %v868_v0 = vld [vmem:[%s14484_s1 + $0x11e0] sm:$0xff] }
  0xea   : > { %3986 = vmatpush1.bf16.msra.mxu0 %v9757_v17  ;;  %4201 = vmatpush1.bf16.msra.mxu1 %v9759_v18  ;;  %v821_v17 = vld [vmem:[%s14484_s1 + $0x1068] sm:$0xff]  ;;  %v9821_v18 = vcombine.low %v808_v5, %v812_v6  ;;  %v9878_v5 = vcombine.high %v864_v63, %v868_v0 }
  0xeb   : > { %3987 = vmatprep.subr.bf16.mxu0 %v9766_v19  ;;  %4202 = vmatprep.subr.bf16.mxu1 %v9768_v20  ;;  %v9823_v19 = vcombine.low %v809_v7, %v813_v8  ;;  %v9830_v20 = vcombine.high %v816_v13, %v820_v14  ;;  %v9832_v21 = vcombine.high %v817_v16, %v821_v17  ;;  %v298_v7 = vld [vmem:[%s14484_s1 + $0x10] sm:$0xff] }
  0xec   : > { %v302_v8 = vld [vmem:[%s14484_s1 + $0x30] sm:$0xff] }
  0xee   : > { %3988 = vmatpush1.bf16.msra.mxu0 %v9765_v25  ;;  %4203 = vmatpush1.bf16.msra.mxu1 %v9767_v26  ;;  %v829_v25 = vld [vmem:[%s14484_s1 + $0x10a8] sm:$0xff]  ;;  %v9829_v26 = vcombine.low %v816_v13, %v820_v14  ;;  %v9314_v13 = vcombine.high %v298_v7, %v302_v8 }
  0xef   : > { %3989 = vmatprep.subr.bf16.mxu0 %v9774_v27  ;;  %4204 = vmatprep.subr.bf16.mxu1 %v9776_v28  ;;  %v9831_v27 = vcombine.low %v817_v16, %v821_v17  ;;  %v9838_v28 = vcombine.high %v824_v22, %v828_v23  ;;  %v9840_v29 = vcombine.high %v825_v24, %v829_v25  ;;  %v310_v16 = vld [vmem:[%s14484_s1 + $0x70] sm:$0xff]  ;;  %v10718_v17 = vld [vmem:[%s10940_s20 + $0x20] ss:$36 sps:$4 sm:$0xff]  }
  0xf2   : > { %3990 = vmatpush1.bf16.msra.mxu0 %v9773_v33  ;;  %4205 = vmatpush1.bf16.msra.mxu1 %v9775_v34  ;;  %v833_v33 = vld [vmem:[%s14484_s1 + $0x10c8] sm:$0xff] }
  0xf3   : > { %3991 = vmatprep.subr.bf16.mxu0 %v9782_v35  ;;  %4206 = vmatprep.subr.bf16.mxu1 %v9784_v36  ;;  %v837_v34 = vld [vmem:[%s14484_s1 + $0x10e8] sm:$0xff]  ;;  %v9837_v35 = vcombine.low %v824_v22, %v828_v23  ;;  %v9839_v36 = vcombine.low %v825_v24, %v829_v25  ;;  %v314_v24 = vld [vmem:[%s14484_s1 + $0x90] sm:$0xff] }
  0xf4   : > { %v9848_v38 = vcombine.high %v833_v33, %v837_v34  ;;  %v318_v25 = vld [vmem:[%s14484_s1 + $0xb0] sm:$0xff] }
  0xf6   : > { %3992 = vmatpush1.bf16.msra.mxu0 %v9781_v41  ;;  %4207 = vmatpush1.bf16.msra.mxu1 %v9783_v42  ;;  %v841_v41 = vld [vmem:[%s14484_s1 + $0x1108] sm:$0xff] }
  0xf7   : > { %3993 = vmatprep.subr.bf16.mxu0 %v9790_v43  ;;  %4208 = vmatprep.subr.bf16.mxu1 %v9792_v44  ;;  %v845_v42 = vld [vmem:[%s14484_s1 + $0x1128] sm:$0xff]  ;;  %v9845_v43 = vcombine.low %v832_v30, %v836_v31  ;;  %v9847_v44 = vcombine.low %v833_v33, %v837_v34  ;;  %v9330_v30 = vcombine.high %v314_v24, %v318_v25  ;;  %v322_v33 = vld [vmem:[%s14484_s1 + $0xd0] sm:$0xff] }
  0xf8   : > { %v9856_v46 = vcombine.high %v841_v41, %v845_v42  ;;  %v326_v34 = vld [vmem:[%s14484_s1 + $0xf0] sm:$0xff] }
  0xfa   : > { %3994 = vmatpush1.bf16.msra.mxu0 %v9789_v49  ;;  %4209 = vmatpush1.bf16.msra.mxu1 %v9791_v50  ;;  %v849_v49 = vld [vmem:[%s14484_s1 + $0x1148] sm:$0xff] }
  0xfb   : > { %3995 = vmatprep.subr.bf16.mxu0 %v9798_v51  ;;  %4210 = vmatprep.subr.bf16.mxu1 %v9800_v52  ;;  %v853_v50 = vld [vmem:[%s14484_s1 + $0x1168] sm:$0xff]  ;;  %v9853_v51 = vcombine.low %v840_v39, %v844_v40  ;;  %v9855_v52 = vcombine.low %v841_v41, %v845_v42  ;;  %v9338_v40 = vcombine.high %v322_v33, %v326_v34  ;;  %v330_v42 = vld [vmem:[%s14484_s1 + $0x110] sm:$0xff] }
  0xfc   : > { %v9864_v54 = vcombine.high %v849_v49, %v853_v50 }
  0xfe   : > { %3996 = vmatpush1.bf16.msra.mxu0 %v9797_v57  ;;  %4211 = vmatpush1.bf16.msra.mxu1 %v9799_v58  ;;  %v857_v57 = vld [vmem:[%s14484_s1 + $0x1188] sm:$0xff] }
  0xff   : > { %3997 = vmatprep.subr.bf16.mxu0 %v9806_v59  ;;  %4212 = vmatprep.subr.bf16.mxu1 %v9808_v60  ;;  %v861_v58 = vld [vmem:[%s14484_s1 + $0x11a8] sm:$0xff]  ;;  %v9861_v59 = vcombine.low %v848_v47, %v852_v48  ;;  %v9863_v60 = vcombine.low %v849_v49, %v853_v50  ;;  %v338_v50 = vld [vmem:[%s14484_s1 + $0x150] sm:$0xff] }
 0x100   : > { %v9872_v62 = vcombine.high %v857_v57, %v861_v58 }
 0x102   : > { %3998 = vmatpush1.bf16.msra.mxu0 %v9805_v1  ;;  %4213 = vmatpush1.bf16.msra.mxu1 %v9807_v2  ;;  %v865_v1 = vld [vmem:[%s14484_s1 + $0x11c8] sm:$0xff] }
 0x103   : > { %3999 = vmatprep.subr.bf16.mxu0 %v9814_v3  ;;  %4214 = vmatprep.subr.bf16.mxu1 %v9816_v4  ;;  %v869_v2 = vld [vmem:[%s14484_s1 + $0x11e8] sm:$0xff]  ;;  %v9869_v3 = vcombine.low %v856_v55, %v860_v56  ;;  %v9871_v4 = vcombine.low %v857_v57, %v861_v58  ;;  %v346_v58 = vld [vmem:[%s14484_s1 + $0x190] sm:$0xff] }
 0x104   : > { %v9880_v6 = vcombine.high %v865_v1, %v869_v2 }
 0x106   : > { %4000 = vmatpush1.bf16.msra.mxu0 %v9813_v9  ;;  %4215 = vmatpush1.bf16.msra.mxu1 %v9815_v10  ;;  %v299_v9 = vld [vmem:[%s14484_s1 + $0x18] sm:$0xff] }
 0x107   : > { %4012 = vmatprep.subr.bf16.mxu0 %v9822_v11  ;;  %4227 = vmatprep.subr.bf16.mxu1 %v9824_v12  ;;  %v303_v10 = vld [vmem:[%s14484_s1 + $0x38] sm:$0xff]  ;;  %v9877_v11 = vcombine.low %v864_v63, %v868_v0  ;;  %v9879_v12 = vcombine.low %v865_v1, %v869_v2  ;;  %v354_v2 = vld [vmem:[%s14484_s1 + $0x1d0] sm:$0xff] }
 0x108   : > { %v9316_v14 = vcombine.high %v299_v9, %v303_v10 }
 0x109   : > { %4002 = vmatmul.mubr.bf16.vlgmr.msra.gmra.mrb[0].mxu0 %v10717_v15  ;;  %4217 = vmatmul.mubr.bf16.vlgmr.msra.gmra.mrb[0].mxu1 %v10717_v15  ;;  %v306_v15 = vld [vmem:[%s14484_s1 + $0x50] sm:$0xff] }
 0x10a   : > { %4013 = vmatpush1.bf16.msra.mxu0 %v9821_v18  ;;  %4228 = vmatpush1.bf16.msra.mxu1 %v9823_v19  ;;  %v307_v18 = vld [vmem:[%s14484_s1 + $0x58] sm:$0xff]  ;;  %v9322_v22 = vcombine.high %v306_v15, %v310_v16 }
 0x10b   : > { %4014 = vmatprep.subr.bf16.mxu0 %v9830_v20  ;;  %4229 = vmatprep.subr.bf16.mxu1 %v9832_v21  ;;  %v311_v19 = vld [vmem:[%s14484_s1 + $0x78] sm:$0xff]  ;;  %v9313_v20 = vcombine.low %v298_v7, %v302_v8  ;;  %v9315_v21 = vcombine.low %v299_v9, %v303_v10  ;;  %v362_v10 = vld [vmem:[%s14484_s1 + $0x210] sm:$0xff] }
 0x10c   : > { %4044 = vmatprep.mubr.bf16.mxu0 %v10801_v32  ;;  %4259 = vmatprep.mubr.bf16.mxu1 %v10801_v32  ;;  %v9324_v23 = vcombine.high %v307_v18, %v311_v19 }
 0x10e   : > { %4015 = vmatpush1.bf16.msra.mxu0 %v9829_v26  ;;  %4230 = vmatpush1.bf16.msra.mxu1 %v9831_v27  ;;  %v315_v26 = vld [vmem:[%s14484_s1 + $0x98] sm:$0xff] }
 0x10f   : > { %4016 = vmatprep.subr.bf16.mxu0 %v9838_v28  ;;  %4231 = vmatprep.subr.bf16.mxu1 %v9840_v29  ;;  %v319_v27 = vld [vmem:[%s14484_s1 + $0xb8] sm:$0xff]  ;;  %v9321_v28 = vcombine.low %v306_v15, %v310_v16  ;;  %v9323_v29 = vcombine.low %v307_v18, %v311_v19  ;;  %v370_v18 = vld [vmem:[%s14484_s1 + $0x250] sm:$0xff] }
 0x110   : > { %v9332_v31 = vcombine.high %v315_v26, %v319_v27  ;;  %v9331_v39 = vcombine.low %v315_v26, %v319_v27  ;;  %v374_v19 = vld [vmem:[%s14484_s1 + $0x270] sm:$0xff] }
 0x111   : > { %v378_v26 = vld [vmem:[%s14484_s1 + $0x290] sm:$0xff] }
 0x112   : > { %4017 = vmatpush1.bf16.msra.mxu0 %v9837_v35  ;;  %4232 = vmatpush1.bf16.msra.mxu1 %v9839_v36  ;;  %v10783_v35 = vld [vmem:[%s10940_s20 + $0x4] ss:$36 sps:$4 sm:$0xff]   ;;  %v323_v36 = vld [vmem:[%s14484_s1 + $0xd8] sm:$0xff]  ;;  %v382_v27 = vld [vmem:[%s14484_s1 + $0x2b0] sm:$0xff] }
 0x113   : > { %4018 = vmatprep.subr.bf16.mxu0 %v9846_v37  ;;  %4233 = vmatprep.subr.bf16.mxu1 %v9848_v38  ;;  %v327_v37 = vld [vmem:[%s14484_s1 + $0xf8] sm:$0xff]  ;;  %v9329_v38 = vcombine.low %v314_v24, %v318_v25  ;;  %v9386_v24 = vcombine.high %v370_v18, %v374_v19 }
 0x114   : > { %v9340_v41 = vcombine.high %v323_v36, %v327_v37  ;;  %v9339_v47 = vcombine.low %v323_v36, %v327_v37  ;;  %v390_v36 = vld [vmem:[%s14484_s1 + $0x2f0] sm:$0xff]  ;;  %v387_v37 = vld [vmem:[%s14484_s1 + $0x2d8] sm:$0xff] }
 0x116   : > { %4019 = vmatpush1.bf16.msra.mxu0 %v9845_v43  ;;  %4234 = vmatpush1.bf16.msra.mxu1 %v9847_v44  ;;  %v334_v43 = vld [vmem:[%s14484_s1 + $0x130] sm:$0xff]  ;;  %v331_v44 = vld [vmem:[%s14484_s1 + $0x118] sm:$0xff] }
 0x117   : > { %4020 = vmatprep.subr.bf16.mxu0 %v9854_v45  ;;  %4235 = vmatprep.subr.bf16.mxu1 %v9856_v46  ;;  %v335_v45 = vld [vmem:[%s14484_s1 + $0x138] sm:$0xff]  ;;  %v9337_v46 = vcombine.low %v322_v33, %v326_v34  ;;  %v9346_v48 = vcombine.high %v330_v42, %v334_v43  ;;  %v9394_v33 = vcombine.high %v378_v26, %v382_v27 }
 0x118   : > { %v9348_v49 = vcombine.high %v331_v44, %v335_v45  ;;  %v9347_v55 = vcombine.low %v331_v44, %v335_v45  ;;  %v398_v44 = vld [vmem:[%s14484_s1 + $0x330] sm:$0xff]  ;;  %v395_v45 = vld [vmem:[%s14484_s1 + $0x318] sm:$0xff] }
 0x11a   : > { %4021 = vmatpush1.bf16.msra.mxu0 %v9853_v51  ;;  %4236 = vmatpush1.bf16.msra.mxu1 %v9855_v52  ;;  %v342_v51 = vld [vmem:[%s14484_s1 + $0x170] sm:$0xff]  ;;  %v339_v52 = vld [vmem:[%s14484_s1 + $0x158] sm:$0xff] }
 0x11b   : > { %4022 = vmatprep.subr.bf16.mxu0 %v9862_v53  ;;  %4237 = vmatprep.subr.bf16.mxu1 %v9864_v54  ;;  %v343_v53 = vld [vmem:[%s14484_s1 + $0x178] sm:$0xff]  ;;  %v9345_v54 = vcombine.low %v330_v42, %v334_v43  ;;  %v9354_v56 = vcombine.high %v338_v50, %v342_v51  ;;  %v394_v43 = vld [vmem:[%s14484_s1 + $0x310] sm:$0xff] }
 0x11c   : > { %v9356_v57 = vcombine.high %v339_v52, %v343_v53  ;;  %v9355_v63 = vcombine.low %v339_v52, %v343_v53  ;;  %v406_v52 = vld [vmem:[%s14484_s1 + $0x370] sm:$0xff]  ;;  %v403_v53 = vld [vmem:[%s14484_s1 + $0x358] sm:$0xff] }
 0x11e   : > { %4023 = vmatpush1.bf16.msra.mxu0 %v9861_v59  ;;  %4238 = vmatpush1.bf16.msra.mxu1 %v9863_v60  ;;  %v350_v59 = vld [vmem:[%s14484_s1 + $0x1b0] sm:$0xff]  ;;  %v347_v60 = vld [vmem:[%s14484_s1 + $0x198] sm:$0xff] }
 0x11f   : > { %4024 = vmatprep.subr.bf16.mxu0 %v9870_v61  ;;  %4239 = vmatprep.subr.bf16.mxu1 %v9872_v62  ;;  %v351_v61 = vld [vmem:[%s14484_s1 + $0x1b8] sm:$0xff]  ;;  %v9353_v62 = vcombine.low %v338_v50, %v342_v51  ;;  %v9362_v0 = vcombine.high %v346_v58, %v350_v59  ;;  %v402_v51 = vld [vmem:[%s14484_s1 + $0x350] sm:$0xff] }
 0x120   : > { %v9364_v1 = vcombine.high %v347_v60, %v351_v61  ;;  %v9363_v7 = vcombine.low %v347_v60, %v351_v61  ;;  %v414_v60 = vld [vmem:[%s14484_s1 + $0x3b0] sm:$0xff]  ;;  %v411_v61 = vld [vmem:[%s14484_s1 + $0x398] sm:$0xff] }
 0x122   : > { %4025 = vmatpush1.bf16.msra.mxu0 %v9869_v3  ;;  %4240 = vmatpush1.bf16.msra.mxu1 %v9871_v4  ;;  %v358_v3 = vld [vmem:[%s14484_s1 + $0x1f0] sm:$0xff]  ;;  %v355_v4 = vld [vmem:[%s14484_s1 + $0x1d8] sm:$0xff] }
 0x123   : > { %4026 = vmatprep.subr.bf16.mxu0 %v9878_v5  ;;  %4241 = vmatprep.subr.bf16.mxu1 %v9880_v6  ;;  %v359_v5 = vld [vmem:[%s14484_s1 + $0x1f8] sm:$0xff]  ;;  %v9361_v6 = vcombine.low %v346_v58, %v350_v59  ;;  %v9370_v8 = vcombine.high %v354_v2, %v358_v3  ;;  %v410_v59 = vld [vmem:[%s14484_s1 + $0x390] sm:$0xff] }
 0x124   : > { %v9372_v9 = vcombine.high %v355_v4, %v359_v5  ;;  %v9371_v15 = vcombine.low %v355_v4, %v359_v5  ;;  %v422_v4 = vld [vmem:[%s14484_s1 + $0x3f0] sm:$0xff]  ;;  %v419_v5 = vld [vmem:[%s14484_s1 + $0x3d8] sm:$0xff] }
 0x126   : > { %4027 = vmatpush1.bf16.msra.mxu0 %v9877_v11  ;;  %4242 = vmatpush1.bf16.msra.mxu1 %v9879_v12  ;;  %v366_v11 = vld [vmem:[%s14484_s1 + $0x230] sm:$0xff]  ;;  %v363_v12 = vld [vmem:[%s14484_s1 + $0x218] sm:$0xff] }
 0x127   : > { %4270 = vmatprep.subr.bf16.mxu0 %v9314_v13  ;;  %4485 = vmatprep.subr.bf16.mxu1 %v9316_v14  ;;  %v367_v13 = vld [vmem:[%s14484_s1 + $0x238] sm:$0xff]  ;;  %v9369_v14 = vcombine.low %v354_v2, %v358_v3  ;;  %v9378_v16 = vcombine.high %v362_v10, %v366_v11  ;;  %v418_v3 = vld [vmem:[%s14484_s1 + $0x3d0] sm:$0xff] }
 0x129   : > { %4045 = vmatmul.mubr.bf16.vlgmr.msra.gmra.mrb[0].mxu0 %v10718_v17  ;;  %4260 = vmatmul.mubr.bf16.vlgmr.msra.gmra.mrb[0].mxu1 %v10718_v17  ;;  %v9380_v17 = vcombine.high %v363_v12, %v367_v13 }
 0x12a   : > { %4271 = vmatpush1.bf16.msra.mxu0 %v9313_v20  ;;  %4486 = vmatpush1.bf16.msra.mxu1 %v9315_v21  ;;  %v371_v20 = vld [vmem:[%s14484_s1 + $0x258] sm:$0xff] }
 0x12b   : > { %4272 = vmatprep.subr.bf16.mxu0 %v9322_v22  ;;  %4487 = vmatprep.subr.bf16.mxu1 %v9324_v23  ;;  %v375_v21 = vld [vmem:[%s14484_s1 + $0x278] sm:$0xff]  ;;  %v9377_v22 = vcombine.low %v362_v10, %v366_v11  ;;  %v9379_v23 = vcombine.low %v363_v12, %v367_v13  ;;  %v426_v11 = vld [vmem:[%s14484_s1 + $0x410] sm:$0xff] }
 0x12c   : > { %4302 = vmatprep.mubr.bf16.mxu0 %v10783_v35  ;;  %4517 = vmatprep.mubr.bf16.mxu1 %v10783_v35  ;;  %v9388_v25 = vcombine.high %v371_v20, %v375_v21  ;;  %v386_v35 = vld [vmem:[%s14484_s1 + $0x2d0] sm:$0xff]  ;;  %v427_v13 = vld [vmem:[%s14484_s1 + $0x418] sm:$0xff] }
 0x12d   : > { %v430_v12 = vld [vmem:[%s14484_s1 + $0x430] sm:$0xff] }
 0x12e   : > { %4273 = vmatpush1.bf16.msra.mxu0 %v9321_v28  ;;  %4488 = vmatpush1.bf16.msra.mxu1 %v9323_v29  ;;  %v379_v28 = vld [vmem:[%s14484_s1 + $0x298] sm:$0xff] }
 0x12f   : > { %4274 = vmatprep.subr.bf16.mxu0 %v9330_v30  ;;  %4489 = vmatprep.subr.bf16.mxu1 %v9332_v31  ;;  %v383_v29 = vld [vmem:[%s14484_s1 + $0x2b8] sm:$0xff]  ;;  %v9385_v30 = vcombine.low %v370_v18, %v374_v19  ;;  %v9387_v31 = vcombine.low %v371_v20, %v375_v21  ;;  %v434_v19 = vld [vmem:[%s14484_s1 + $0x450] sm:$0xff] }
 0x130   : > { %v9396_v34 = vcombine.high %v379_v28, %v383_v29  ;;  %v438_v20 = vld [vmem:[%s14484_s1 + $0x470] sm:$0xff]  ;;  %v435_v21 = vld [vmem:[%s14484_s1 + $0x458] sm:$0xff] }
 0x132   : > { %4275 = vmatpush1.bf16.msra.mxu0 %v9329_v38  ;;  %4490 = vmatpush1.bf16.msra.mxu1 %v9331_v39  ;;  %v391_v38 = vld [vmem:[%s14484_s1 + $0x2f8] sm:$0xff]  ;;  %v9393_v39 = vcombine.low %v378_v26, %v382_v27  ;;  %v442_v27 = vld [vmem:[%s14484_s1 + $0x490] sm:$0xff] }
 0x133   : > { %4276 = vmatprep.subr.bf16.mxu0 %v9338_v40  ;;  %4491 = vmatprep.subr.bf16.mxu1 %v9340_v41  ;;  %v9395_v40 = vcombine.low %v379_v28, %v383_v29  ;;  %v9402_v41 = vcombine.high %v386_v35, %v390_v36  ;;  %v9404_v42 = vcombine.high %v387_v37, %v391_v38  ;;  %v446_v28 = vld [vmem:[%s14484_s1 + $0x4b0] sm:$0xff]  ;;  %v10784_v29 = vld [vmem:[%s10940_s20] ss:$36 sps:$4 sm:$0xff]  }
 0x136   : > { %4277 = vmatpush1.bf16.msra.mxu0 %v9337_v46  ;;  %4492 = vmatpush1.bf16.msra.mxu1 %v9339_v47  ;;  %v399_v46 = vld [vmem:[%s14484_s1 + $0x338] sm:$0xff]  ;;  %v9401_v47 = vcombine.low %v386_v35, %v390_v36  ;;  %v9458_v35 = vcombine.high %v442_v27, %v446_v28 }
 0x137   : > { %4278 = vmatprep.subr.bf16.mxu0 %v9346_v48  ;;  %4493 = vmatprep.subr.bf16.mxu1 %v9348_v49  ;;  %v9403_v48 = vcombine.low %v387_v37, %v391_v38  ;;  %v9410_v49 = vcombine.high %v394_v43, %v398_v44  ;;  %v9412_v50 = vcombine.high %v395_v45, %v399_v46  ;;  %v450_v37 = vld [vmem:[%s14484_s1 + $0x4d0] sm:$0xff] }
 0x138   : > { %v454_v38 = vld [vmem:[%s14484_s1 + $0x4f0] sm:$0xff] }
 0x13a   : > { %4279 = vmatpush1.bf16.msra.mxu0 %v9345_v54  ;;  %4494 = vmatpush1.bf16.msra.mxu1 %v9347_v55  ;;  %v407_v54 = vld [vmem:[%s14484_s1 + $0x378] sm:$0xff]  ;;  %v9409_v55 = vcombine.low %v394_v43, %v398_v44  ;;  %v9466_v44 = vcombine.high %v450_v37, %v454_v38 }
 0x13b   : > { %4280 = vmatprep.subr.bf16.mxu0 %v9354_v56  ;;  %4495 = vmatprep.subr.bf16.mxu1 %v9356_v57  ;;  %v9411_v56 = vcombine.low %v395_v45, %v399_v46  ;;  %v9418_v57 = vcombine.high %v402_v51, %v406_v52  ;;  %v9420_v58 = vcombine.high %v403_v53, %v407_v54  ;;  %v458_v46 = vld [vmem:[%s14484_s1 + $0x510] sm:$0xff] }
 0x13e   : > { %4281 = vmatpush1.bf16.msra.mxu0 %v9353_v62  ;;  %4496 = vmatpush1.bf16.msra.mxu1 %v9355_v63  ;;  %v415_v62 = vld [vmem:[%s14484_s1 + $0x3b8] sm:$0xff]  ;;  %v9417_v63 = vcombine.low %v402_v51, %v406_v52 }
 0x13f   : > { %4282 = vmatprep.subr.bf16.mxu0 %v9362_v0  ;;  %4497 = vmatprep.subr.bf16.mxu1 %v9364_v1  ;;  %v9419_v0 = vcombine.low %v403_v53, %v407_v54  ;;  %v9426_v1 = vcombine.high %v410_v59, %v414_v60  ;;  %v9428_v2 = vcombine.high %v411_v61, %v415_v62  ;;  %v466_v54 = vld [vmem:[%s14484_s1 + $0x550] sm:$0xff] }
 0x142   : > { %4283 = vmatpush1.bf16.msra.mxu0 %v9361_v6  ;;  %4498 = vmatpush1.bf16.msra.mxu1 %v9363_v7  ;;  %v423_v6 = vld [vmem:[%s14484_s1 + $0x3f8] sm:$0xff]  ;;  %v9425_v7 = vcombine.low %v410_v59, %v414_v60 }
 0x143   : > { %4284 = vmatprep.subr.bf16.mxu0 %v9370_v8  ;;  %4499 = vmatprep.subr.bf16.mxu1 %v9372_v9  ;;  %v9427_v8 = vcombine.low %v411_v61, %v415_v62  ;;  %v9434_v9 = vcombine.high %v418_v3, %v422_v4  ;;  %v9436_v10 = vcombine.high %v419_v5, %v423_v6  ;;  %v474_v62 = vld [vmem:[%s14484_s1 + $0x590] sm:$0xff] }
 0x146   : > { %4285 = vmatpush1.bf16.msra.mxu0 %v9369_v14  ;;  %4500 = vmatpush1.bf16.msra.mxu1 %v9371_v15  ;;  %v431_v14 = vld [vmem:[%s14484_s1 + $0x438] sm:$0xff]  ;;  %v9433_v15 = vcombine.low %v418_v3, %v422_v4 }
 0x147   : > { %4286 = vmatprep.subr.bf16.mxu0 %v9378_v16  ;;  %4501 = vmatprep.subr.bf16.mxu1 %v9380_v17  ;;  %v9435_v16 = vcombine.low %v419_v5, %v423_v6  ;;  %v9442_v17 = vcombine.high %v426_v11, %v430_v12  ;;  %v9444_v18 = vcombine.high %v427_v13, %v431_v14  ;;  %v482_v6 = vld [vmem:[%s14484_s1 + $0x5d0] sm:$0xff] }
 0x14a   : > { %4287 = vmatpush1.bf16.msra.mxu0 %v9377_v22  ;;  %4502 = vmatpush1.bf16.msra.mxu1 %v9379_v23  ;;  %v439_v22 = vld [vmem:[%s14484_s1 + $0x478] sm:$0xff]  ;;  %v9441_v23 = vcombine.low %v426_v11, %v430_v12 }
 0x14b   : > { %4288 = vmatprep.subr.bf16.mxu0 %v9386_v24  ;;  %4503 = vmatprep.subr.bf16.mxu1 %v9388_v25  ;;  %v9443_v24 = vcombine.low %v427_v13, %v431_v14  ;;  %v9450_v25 = vcombine.high %v434_v19, %v438_v20  ;;  %v9452_v26 = vcombine.high %v435_v21, %v439_v22  ;;  %v490_v14 = vld [vmem:[%s14484_s1 + $0x610] sm:$0xff] }
 0x14e   : > { %4289 = vmatpush1.bf16.msra.mxu0 %v9385_v30  ;;  %4504 = vmatpush1.bf16.msra.mxu1 %v9387_v31  ;;  %v443_v30 = vld [vmem:[%s14484_s1 + $0x498] sm:$0xff] }
 0x14f   : > { %4290 = vmatprep.subr.bf16.mxu0 %v9394_v33  ;;  %4505 = vmatprep.subr.bf16.mxu1 %v9396_v34  ;;  %v447_v31 = vld [vmem:[%s14484_s1 + $0x4b8] sm:$0xff]  ;;  %v9449_v33 = vcombine.low %v434_v19, %v438_v20  ;;  %v9451_v34 = vcombine.low %v435_v21, %v439_v22  ;;  %v498_v22 = vld [vmem:[%s14484_s1 + $0x650] sm:$0xff] }
 0x150   : > { %v9460_v36 = vcombine.high %v443_v30, %v447_v31  ;;  %v9459_v43 = vcombine.low %v443_v30, %v447_v31  ;;  %v506_v30 = vld [vmem:[%s14484_s1 + $0x690] sm:$0xff] }
 0x151   : > { %v510_v31 = vld [vmem:[%s14484_s1 + $0x6b0] sm:$0xff] }
 0x152   : > { %4291 = vmatpush1.bf16.msra.mxu0 %v9393_v39  ;;  %4506 = vmatpush1.bf16.msra.mxu1 %v9395_v40  ;;  %v10785_v39 = vld [vmem:[%s10940_s20 + $0xc] ss:$36 sps:$4 sm:$0xff]   ;;  %v451_v40 = vld [vmem:[%s14484_s1 + $0x4d8] sm:$0xff] }
 0x153   : > { %4292 = vmatprep.subr.bf16.mxu0 %v9402_v41  ;;  %4507 = vmatprep.subr.bf16.mxu1 %v9404_v42  ;;  %v455_v41 = vld [vmem:[%s14484_s1 + $0x4f8] sm:$0xff]  ;;  %v9457_v42 = vcombine.low %v442_v27, %v446_v28 }
 0x154   : > { %v9468_v45 = vcombine.high %v451_v40, %v455_v41  ;;  %v9467_v51 = vcombine.low %v451_v40, %v455_v41  ;;  %v518_v40 = vld [vmem:[%s14484_s1 + $0x6f0] sm:$0xff]  ;;  %v515_v41 = vld [vmem:[%s14484_s1 + $0x6d8] sm:$0xff] }
 0x156   : > { %4293 = vmatpush1.bf16.msra.mxu0 %v9401_v47  ;;  %4508 = vmatpush1.bf16.msra.mxu1 %v9403_v48  ;;  %v462_v47 = vld [vmem:[%s14484_s1 + $0x530] sm:$0xff]  ;;  %v459_v48 = vld [vmem:[%s14484_s1 + $0x518] sm:$0xff] }
 0x157   : > { %4294 = vmatprep.subr.bf16.mxu0 %v9410_v49  ;;  %4509 = vmatprep.subr.bf16.mxu1 %v9412_v50  ;;  %v463_v49 = vld [vmem:[%s14484_s1 + $0x538] sm:$0xff]  ;;  %v9465_v50 = vcombine.low %v450_v37, %v454_v38  ;;  %v9474_v52 = vcombine.high %v458_v46, %v462_v47  ;;  %v9522_v37 = vcombine.high %v506_v30, %v510_v31 }
 0x158   : > { %v9476_v53 = vcombine.high %v459_v48, %v463_v49  ;;  %v9475_v59 = vcombine.low %v459_v48, %v463_v49  ;;  %v526_v48 = vld [vmem:[%s14484_s1 + $0x730] sm:$0xff]  ;;  %v523_v49 = vld [vmem:[%s14484_s1 + $0x718] sm:$0xff] }
 0x15a   : > { %4295 = vmatpush1.bf16.msra.mxu0 %v9409_v55  ;;  %4510 = vmatpush1.bf16.msra.mxu1 %v9411_v56  ;;  %v470_v55 = vld [vmem:[%s14484_s1 + $0x570] sm:$0xff]  ;;  %v467_v56 = vld [vmem:[%s14484_s1 + $0x558] sm:$0xff] }
 0x15b   : > { %4296 = vmatprep.subr.bf16.mxu0 %v9418_v57  ;;  %4511 = vmatprep.subr.bf16.mxu1 %v9420_v58  ;;  %v471_v57 = vld [vmem:[%s14484_s1 + $0x578] sm:$0xff]  ;;  %v9473_v58 = vcombine.low %v458_v46, %v462_v47  ;;  %v9482_v60 = vcombine.high %v466_v54, %v470_v55  ;;  %v522_v47 = vld [vmem:[%s14484_s1 + $0x710] sm:$0xff] }
 0x15c   : > { %v9484_v61 = vcombine.high %v467_v56, %v471_v57  ;;  %v9483_v3 = vcombine.low %v467_v56, %v471_v57  ;;  %v534_v56 = vld [vmem:[%s14484_s1 + $0x770] sm:$0xff]  ;;  %v531_v57 = vld [vmem:[%s14484_s1 + $0x758] sm:$0xff] }
 0x15e   : > { %4297 = vmatpush1.bf16.msra.mxu0 %v9417_v63  ;;  %4512 = vmatpush1.bf16.msra.mxu1 %v9419_v0  ;;  %v478_v63 = vld [vmem:[%s14484_s1 + $0x5b0] sm:$0xff]  ;;  %v475_v0 = vld [vmem:[%s14484_s1 + $0x598] sm:$0xff] }
 0x15f   : > { %4298 = vmatprep.subr.bf16.mxu0 %v9426_v1  ;;  %4513 = vmatprep.subr.bf16.mxu1 %v9428_v2  ;;  %v479_v1 = vld [vmem:[%s14484_s1 + $0x5b8] sm:$0xff]  ;;  %v9481_v2 = vcombine.low %v466_v54, %v470_v55  ;;  %v9490_v4 = vcombine.high %v474_v62, %v478_v63  ;;  %v530_v55 = vld [vmem:[%s14484_s1 + $0x750] sm:$0xff] }
 0x160   : > { %v9492_v5 = vcombine.high %v475_v0, %v479_v1  ;;  %v9491_v11 = vcombine.low %v475_v0, %v479_v1  ;;  %v542_v0 = vld [vmem:[%s14484_s1 + $0x7b0] sm:$0xff]  ;;  %v539_v1 = vld [vmem:[%s14484_s1 + $0x798] sm:$0xff] }
 0x162   : > { %4299 = vmatpush1.bf16.msra.mxu0 %v9425_v7  ;;  %4514 = vmatpush1.bf16.msra.mxu1 %v9427_v8  ;;  %v486_v7 = vld [vmem:[%s14484_s1 + $0x5f0] sm:$0xff]  ;;  %v483_v8 = vld [vmem:[%s14484_s1 + $0x5d8] sm:$0xff] }
 0x163   : > { %4300 = vmatprep.subr.bf16.mxu0 %v9434_v9  ;;  %4515 = vmatprep.subr.bf16.mxu1 %v9436_v10  ;;  %v487_v9 = vld [vmem:[%s14484_s1 + $0x5f8] sm:$0xff]  ;;  %v9489_v10 = vcombine.low %v474_v62, %v478_v63  ;;  %v9498_v12 = vcombine.high %v482_v6, %v486_v7  ;;  %v538_v63 = vld [vmem:[%s14484_s1 + $0x790] sm:$0xff] }
 0x164   : > { %v9500_v13 = vcombine.high %v483_v8, %v487_v9  ;;  %v9499_v19 = vcombine.low %v483_v8, %v487_v9  ;;  %v550_v8 = vld [vmem:[%s14484_s1 + $0x7f0] sm:$0xff]  ;;  %v547_v9 = vld [vmem:[%s14484_s1 + $0x7d8] sm:$0xff] }
 0x166   : > { %4301 = vmatpush1.bf16.msra.mxu0 %v9433_v15  ;;  %4516 = vmatpush1.bf16.msra.mxu1 %v9435_v16  ;;  %v494_v15 = vld [vmem:[%s14484_s1 + $0x630] sm:$0xff]  ;;  %v491_v16 = vld [vmem:[%s14484_s1 + $0x618] sm:$0xff] }
 0x167   : > { %4313 = vmatprep.subr.bf16.mxu0 %v9442_v17  ;;  %4528 = vmatprep.subr.bf16.mxu1 %v9444_v18  ;;  %v495_v17 = vld [vmem:[%s14484_s1 + $0x638] sm:$0xff]  ;;  %v9497_v18 = vcombine.low %v482_v6, %v486_v7  ;;  %v9506_v20 = vcombine.high %v490_v14, %v494_v15  ;;  %v546_v7 = vld [vmem:[%s14484_s1 + $0x7d0] sm:$0xff] }
 0x168   : > { %v9508_v21 = vcombine.high %v491_v16, %v495_v17  ;;  %v9507_v27 = vcombine.low %v491_v16, %v495_v17  ;;  %v558_v16 = vld [vmem:[%s14484_s1 + $0x830] sm:$0xff]  ;;  %v555_v17 = vld [vmem:[%s14484_s1 + $0x818] sm:$0xff] }
 0x169   : > { %4303 = vmatmul.mubr.bf16.vlgmr.msra.gmra.mrb[4].mxu0 %v10784_v29  ;;  %4518 = vmatmul.mubr.bf16.vlgmr.msra.gmra.mrb[4].mxu1 %v10784_v29 }
 0x16a   : > { %4314 = vmatpush1.bf16.msra.mxu0 %v9441_v23  ;;  %4529 = vmatpush1.bf16.msra.mxu1 %v9443_v24  ;;  %v502_v23 = vld [vmem:[%s14484_s1 + $0x670] sm:$0xff]  ;;  %v499_v24 = vld [vmem:[%s14484_s1 + $0x658] sm:$0xff] }
 0x16b   : > { %4315 = vmatprep.subr.bf16.mxu0 %v9450_v25  ;;  %4530 = vmatprep.subr.bf16.mxu1 %v9452_v26  ;;  %v503_v25 = vld [vmem:[%s14484_s1 + $0x678] sm:$0xff]  ;;  %v9505_v26 = vcombine.low %v490_v14, %v494_v15  ;;  %v9514_v28 = vcombine.high %v498_v22, %v502_v23  ;;  %v554_v15 = vld [vmem:[%s14484_s1 + $0x810] sm:$0xff] }
 0x16c   : > { %4345 = vmatprep.mubr.bf16.mxu0 %v10785_v39  ;;  %4560 = vmatprep.mubr.bf16.mxu1 %v10785_v39  ;;  %v9516_v29 = vcombine.high %v499_v24, %v503_v25  ;;  %v514_v39 = vld [vmem:[%s14484_s1 + $0x6d0] sm:$0xff] }
 0x16e   : > { %4316 = vmatpush1.bf16.msra.mxu0 %v9449_v33  ;;  %4531 = vmatpush1.bf16.msra.mxu1 %v9451_v34  ;;  %v507_v33 = vld [vmem:[%s14484_s1 + $0x698] sm:$0xff] }
 0x16f   : > { %4317 = vmatprep.subr.bf16.mxu0 %v9458_v35  ;;  %4532 = vmatprep.subr.bf16.mxu1 %v9460_v36  ;;  %v511_v34 = vld [vmem:[%s14484_s1 + $0x6b8] sm:$0xff]  ;;  %v9513_v35 = vcombine.low %v498_v22, %v502_v23  ;;  %v9515_v36 = vcombine.low %v499_v24, %v503_v25  ;;  %v562_v23 = vld [vmem:[%s14484_s1 + $0x850] sm:$0xff] }
 0x170   : > { %v9524_v38 = vcombine.high %v507_v33, %v511_v34  ;;  %v566_v24 = vld [vmem:[%s14484_s1 + $0x870] sm:$0xff]  ;;  %v563_v25 = vld [vmem:[%s14484_s1 + $0x858] sm:$0xff] }
 0x172   : > { %4318 = vmatpush1.bf16.msra.mxu0 %v9457_v42  ;;  %4533 = vmatpush1.bf16.msra.mxu1 %v9459_v43  ;;  %v519_v42 = vld [vmem:[%s14484_s1 + $0x6f8] sm:$0xff]  ;;  %v9521_v43 = vcombine.low %v506_v30, %v510_v31  ;;  %v570_v31 = vld [vmem:[%s14484_s1 + $0x890] sm:$0xff] }
 0x173   : > { %4319 = vmatprep.subr.bf16.mxu0 %v9466_v44  ;;  %4534 = vmatprep.subr.bf16.mxu1 %v9468_v45  ;;  %v9523_v44 = vcombine.low %v507_v33, %v511_v34  ;;  %v9530_v45 = vcombine.high %v514_v39, %v518_v40  ;;  %v9532_v46 = vcombine.high %v515_v41, %v519_v42  ;;  %v574_v33 = vld [vmem:[%s14484_s1 + $0x8b0] sm:$0xff]  ;;  %v10786_v34 = vld [vmem:[%s10940_s20 + $0x8] ss:$36 sps:$4 sm:$0xff]  }
 0x176   : > { %4320 = vmatpush1.bf16.msra.mxu0 %v9465_v50  ;;  %4535 = vmatpush1.bf16.msra.mxu1 %v9467_v51  ;;  %v527_v50 = vld [vmem:[%s14484_s1 + $0x738] sm:$0xff]  ;;  %v9529_v51 = vcombine.low %v514_v39, %v518_v40  ;;  %v9586_v39 = vcombine.high %v570_v31, %v574_v33 }
 0x177   : > { %4321 = vmatprep.subr.bf16.mxu0 %v9474_v52  ;;  %4536 = vmatprep.subr.bf16.mxu1 %v9476_v53  ;;  %v9531_v52 = vcombine.low %v515_v41, %v519_v42  ;;  %v9538_v53 = vcombine.high %v522_v47, %v526_v48  ;;  %v9540_v54 = vcombine.high %v523_v49, %v527_v50  ;;  %v578_v41 = vld [vmem:[%s14484_s1 + $0x8d0] sm:$0xff] }
 0x178   : > { %v582_v42 = vld [vmem:[%s14484_s1 + $0x8f0] sm:$0xff] }
 0x17a   : > { %4322 = vmatpush1.bf16.msra.mxu0 %v9473_v58  ;;  %4537 = vmatpush1.bf16.msra.mxu1 %v9475_v59  ;;  %v535_v58 = vld [vmem:[%s14484_s1 + $0x778] sm:$0xff]  ;;  %v9537_v59 = vcombine.low %v522_v47, %v526_v48  ;;  %v9594_v48 = vcombine.high %v578_v41, %v582_v42 }
 0x17b   : > { %4323 = vmatprep.subr.bf16.mxu0 %v9482_v60  ;;  %4538 = vmatprep.subr.bf16.mxu1 %v9484_v61  ;;  %v9539_v60 = vcombine.low %v523_v49, %v527_v50  ;;  %v9546_v61 = vcombine.high %v530_v55, %v534_v56  ;;  %v9548_v62 = vcombine.high %v531_v57, %v535_v58  ;;  %v586_v50 = vld [vmem:[%s14484_s1 + $0x910] sm:$0xff] }
 0x17e   : > { %4324 = vmatpush1.bf16.msra.mxu0 %v9481_v2  ;;  %4539 = vmatpush1.bf16.msra.mxu1 %v9483_v3  ;;  %v543_v2 = vld [vmem:[%s14484_s1 + $0x7b8] sm:$0xff]  ;;  %v9545_v3 = vcombine.low %v530_v55, %v534_v56 }
 0x17f   : > { %4325 = vmatprep.subr.bf16.mxu0 %v9490_v4  ;;  %4540 = vmatprep.subr.bf16.mxu1 %v9492_v5  ;;  %v9547_v4 = vcombine.low %v531_v57, %v535_v58  ;;  %v9554_v5 = vcombine.high %v538_v63, %v542_v0  ;;  %v9556_v6 = vcombine.high %v539_v1, %v543_v2  ;;  %v594_v58 = vld [vmem:[%s14484_s1 + $0x950] sm:$0xff] }
 0x182   : > { %4326 = vmatpush1.bf16.msra.mxu0 %v9489_v10  ;;  %4541 = vmatpush1.bf16.msra.mxu1 %v9491_v11  ;;  %v551_v10 = vld [vmem:[%s14484_s1 + $0x7f8] sm:$0xff]  ;;  %v9553_v11 = vcombine.low %v538_v63, %v542_v0 }
 0x183   : > { %4327 = vmatprep.subr.bf16.mxu0 %v9498_v12  ;;  %4542 = vmatprep.subr.bf16.mxu1 %v9500_v13  ;;  %v9555_v12 = vcombine.low %v539_v1, %v543_v2  ;;  %v9562_v13 = vcombine.high %v546_v7, %v550_v8  ;;  %v9564_v14 = vcombine.high %v547_v9, %v551_v10  ;;  %v602_v2 = vld [vmem:[%s14484_s1 + $0x990] sm:$0xff] }
 0x186   : > { %4328 = vmatpush1.bf16.msra.mxu0 %v9497_v18  ;;  %4543 = vmatpush1.bf16.msra.mxu1 %v9499_v19  ;;  %v559_v18 = vld [vmem:[%s14484_s1 + $0x838] sm:$0xff]  ;;  %v9561_v19 = vcombine.low %v546_v7, %v550_v8 }
 0x187   : > { %4329 = vmatprep.subr.bf16.mxu0 %v9506_v20  ;;  %4544 = vmatprep.subr.bf16.mxu1 %v9508_v21  ;;  %v9563_v20 = vcombine.low %v547_v9, %v551_v10  ;;  %v9570_v21 = vcombine.high %v554_v15, %v558_v16  ;;  %v9572_v22 = vcombine.high %v555_v17, %v559_v18  ;;  %v610_v10 = vld [vmem:[%s14484_s1 + $0x9d0] sm:$0xff] }
 0x18a   : > { %4330 = vmatpush1.bf16.msra.mxu0 %v9505_v26  ;;  %4545 = vmatpush1.bf16.msra.mxu1 %v9507_v27  ;;  %v567_v26 = vld [vmem:[%s14484_s1 + $0x878] sm:$0xff]  ;;  %v9569_v27 = vcombine.low %v554_v15, %v558_v16 }
 0x18b   : > { %4331 = vmatprep.subr.bf16.mxu0 %v9514_v28  ;;  %4546 = vmatprep.subr.bf16.mxu1 %v9516_v29  ;;  %v9571_v28 = vcombine.low %v555_v17, %v559_v18  ;;  %v9578_v29 = vcombine.high %v562_v23, %v566_v24  ;;  %v9580_v30 = vcombine.high %v563_v25, %v567_v26  ;;  %v618_v18 = vld [vmem:[%s14484_s1 + $0xa10] sm:$0xff] }
 0x18e   : > { %4332 = vmatpush1.bf16.msra.mxu0 %v9513_v35  ;;  %4547 = vmatpush1.bf16.msra.mxu1 %v9515_v36  ;;  %v571_v35 = vld [vmem:[%s14484_s1 + $0x898] sm:$0xff] }
 0x18f   : > { %4333 = vmatprep.subr.bf16.mxu0 %v9522_v37  ;;  %4548 = vmatprep.subr.bf16.mxu1 %v9524_v38  ;;  %v575_v36 = vld [vmem:[%s14484_s1 + $0x8b8] sm:$0xff]  ;;  %v9577_v37 = vcombine.low %v562_v23, %v566_v24  ;;  %v9579_v38 = vcombine.low %v563_v25, %v567_v26  ;;  %v626_v26 = vld [vmem:[%s14484_s1 + $0xa50] sm:$0xff] }
 0x190   : > { %v9588_v40 = vcombine.high %v571_v35, %v575_v36  ;;  %v9587_v47 = vcombine.low %v571_v35, %v575_v36  ;;  %v634_v35 = vld [vmem:[%s14484_s1 + $0xa90] sm:$0xff] }
 0x191   : > { %v638_v36 = vld [vmem:[%s14484_s1 + $0xab0] sm:$0xff] }
 0x192   : > { %4334 = vmatpush1.bf16.msra.mxu0 %v9521_v43  ;;  %4549 = vmatpush1.bf16.msra.mxu1 %v9523_v44  ;;  %v10787_v43 = vld [vmem:[%s10940_s20 + $0x14] ss:$36 sps:$4 sm:$0xff]  }
 0x193   : > { %4335 = vmatprep.subr.bf16.mxu0 %v9530_v45  ;;  %4550 = vmatprep.subr.bf16.mxu1 %v9532_v46  ;;  %v579_v44 = vld [vmem:[%s14484_s1 + $0x8d8] sm:$0xff]  ;;  %v9585_v46 = vcombine.low %v570_v31, %v574_v33 }
 0x194   : > { %v583_v45 = vld [vmem:[%s14484_s1 + $0x8f8] sm:$0xff] }
 0x195   : > { %v9596_v49 = vcombine.high %v579_v44, %v583_v45  ;;  %v9595_v55 = vcombine.low %v579_v44, %v583_v45  ;;  %v646_v44 = vld [vmem:[%s14484_s1 + $0xaf0] sm:$0xff]  ;;  %v643_v45 = vld [vmem:[%s14484_s1 + $0xad8] sm:$0xff] }
 0x196   : > { %4336 = vmatpush1.bf16.msra.mxu0 %v9529_v51  ;;  %4551 = vmatpush1.bf16.msra.mxu1 %v9531_v52  ;;  %v590_v51 = vld [vmem:[%s14484_s1 + $0x930] sm:$0xff]  ;;  %v587_v52 = vld [vmem:[%s14484_s1 + $0x918] sm:$0xff] }
 0x197   : > { %4337 = vmatprep.subr.bf16.mxu0 %v9538_v53  ;;  %4552 = vmatprep.subr.bf16.mxu1 %v9540_v54  ;;  %v591_v53 = vld [vmem:[%s14484_s1 + $0x938] sm:$0xff]  ;;  %v9593_v54 = vcombine.low %v578_v41, %v582_v42  ;;  %v9602_v56 = vcombine.high %v586_v50, %v590_v51  ;;  %v9650_v41 = vcombine.high %v634_v35, %v638_v36 }
 0x198   : > { %v9604_v57 = vcombine.high %v587_v52, %v591_v53  ;;  %v9603_v63 = vcombine.low %v587_v52, %v591_v53  ;;  %v654_v52 = vld [vmem:[%s14484_s1 + $0xb30] sm:$0xff]  ;;  %v651_v53 = vld [vmem:[%s14484_s1 + $0xb18] sm:$0xff] }
 0x19a   : > { %4338 = vmatpush1.bf16.msra.mxu0 %v9537_v59  ;;  %4553 = vmatpush1.bf16.msra.mxu1 %v9539_v60  ;;  %v598_v59 = vld [vmem:[%s14484_s1 + $0x970] sm:$0xff]  ;;  %v595_v60 = vld [vmem:[%s14484_s1 + $0x958] sm:$0xff] }
 0x19b   : > { %4339 = vmatprep.subr.bf16.mxu0 %v9546_v61  ;;  %4554 = vmatprep.subr.bf16.mxu1 %v9548_v62  ;;  %v599_v61 = vld [vmem:[%s14484_s1 + $0x978] sm:$0xff]  ;;  %v9601_v62 = vcombine.low %v586_v50, %v590_v51  ;;  %v9610_v0 = vcombine.high %v594_v58, %v598_v59  ;;  %v650_v51 = vld [vmem:[%s14484_s1 + $0xb10] sm:$0xff] }
 0x19c   : > { %v9612_v1 = vcombine.high %v595_v60, %v599_v61  ;;  %v9611_v7 = vcombine.low %v595_v60, %v599_v61  ;;  %v662_v60 = vld [vmem:[%s14484_s1 + $0xb70] sm:$0xff]  ;;  %v659_v61 = vld [vmem:[%s14484_s1 + $0xb58] sm:$0xff] }
 0x19e   : > { %4340 = vmatpush1.bf16.msra.mxu0 %v9545_v3  ;;  %4555 = vmatpush1.bf16.msra.mxu1 %v9547_v4  ;;  %v606_v3 = vld [vmem:[%s14484_s1 + $0x9b0] sm:$0xff]  ;;  %v603_v4 = vld [vmem:[%s14484_s1 + $0x998] sm:$0xff] }
 0x19f   : > { %4341 = vmatprep.subr.bf16.mxu0 %v9554_v5  ;;  %4556 = vmatprep.subr.bf16.mxu1 %v9556_v6  ;;  %v607_v5 = vld [vmem:[%s14484_s1 + $0x9b8] sm:$0xff]  ;;  %v9609_v6 = vcombine.low %v594_v58, %v598_v59  ;;  %v9618_v8 = vcombine.high %v602_v2, %v606_v3  ;;  %v658_v59 = vld [vmem:[%s14484_s1 + $0xb50] sm:$0xff] }
 0x1a0   : > { %v9620_v9 = vcombine.high %v603_v4, %v607_v5  ;;  %v9619_v15 = vcombine.low %v603_v4, %v607_v5  ;;  %v670_v4 = vld [vmem:[%s14484_s1 + $0xbb0] sm:$0xff]  ;;  %v667_v5 = vld [vmem:[%s14484_s1 + $0xb98] sm:$0xff] }
 0x1a2   : > { %4342 = vmatpush1.bf16.msra.mxu0 %v9553_v11  ;;  %4557 = vmatpush1.bf16.msra.mxu1 %v9555_v12  ;;  %v614_v11 = vld [vmem:[%s14484_s1 + $0x9f0] sm:$0xff]  ;;  %v611_v12 = vld [vmem:[%s14484_s1 + $0x9d8] sm:$0xff] }
 0x1a3   : > { %4343 = vmatprep.subr.bf16.mxu0 %v9562_v13  ;;  %4558 = vmatprep.subr.bf16.mxu1 %v9564_v14  ;;  %v615_v13 = vld [vmem:[%s14484_s1 + $0x9f8] sm:$0xff]  ;;  %v9617_v14 = vcombine.low %v602_v2, %v606_v3  ;;  %v9626_v16 = vcombine.high %v610_v10, %v614_v11  ;;  %v666_v3 = vld [vmem:[%s14484_s1 + $0xb90] sm:$0xff] }
 0x1a4   : > { %v9628_v17 = vcombine.high %v611_v12, %v615_v13  ;;  %v9627_v23 = vcombine.low %v611_v12, %v615_v13  ;;  %v678_v12 = vld [vmem:[%s14484_s1 + $0xbf0] sm:$0xff]  ;;  %v675_v13 = vld [vmem:[%s14484_s1 + $0xbd8] sm:$0xff] }
 0x1a6   : > { %4344 = vmatpush1.bf16.msra.mxu0 %v9561_v19  ;;  %4559 = vmatpush1.bf16.msra.mxu1 %v9563_v20  ;;  %v622_v19 = vld [vmem:[%s14484_s1 + $0xa30] sm:$0xff]  ;;  %v619_v20 = vld [vmem:[%s14484_s1 + $0xa18] sm:$0xff] }
 0x1a7   : > { %4356 = vmatprep.subr.bf16.mxu0 %v9570_v21  ;;  %4571 = vmatprep.subr.bf16.mxu1 %v9572_v22  ;;  %v623_v21 = vld [vmem:[%s14484_s1 + $0xa38] sm:$0xff]  ;;  %v9625_v22 = vcombine.low %v610_v10, %v614_v11  ;;  %v9634_v24 = vcombine.high %v618_v18, %v622_v19  ;;  %v674_v11 = vld [vmem:[%s14484_s1 + $0xbd0] sm:$0xff] }
 0x1a8   : > { %v9636_v25 = vcombine.high %v619_v20, %v623_v21  ;;  %v9635_v31 = vcombine.low %v619_v20, %v623_v21  ;;  %v686_v20 = vld [vmem:[%s14484_s1 + $0xc30] sm:$0xff]  ;;  %v683_v21 = vld [vmem:[%s14484_s1 + $0xc18] sm:$0xff] }
 0x1a9   : > { %4346 = vmatmul.mubr.bf16.vlgmr.msra.gmra.mrb[4].mxu0 %v10786_v34  ;;  %4561 = vmatmul.mubr.bf16.vlgmr.msra.gmra.mrb[4].mxu1 %v10786_v34 }
 0x1aa   : > { %4357 = vmatpush1.bf16.msra.mxu0 %v9569_v27  ;;  %4572 = vmatpush1.bf16.msra.mxu1 %v9571_v28  ;;  %v630_v27 = vld [vmem:[%s14484_s1 + $0xa70] sm:$0xff]  ;;  %v627_v28 = vld [vmem:[%s14484_s1 + $0xa58] sm:$0xff] }
 0x1ab   : > { %4358 = vmatprep.subr.bf16.mxu0 %v9578_v29  ;;  %4573 = vmatprep.subr.bf16.mxu1 %v9580_v30  ;;  %v631_v29 = vld [vmem:[%s14484_s1 + $0xa78] sm:$0xff]  ;;  %v9633_v30 = vcombine.low %v618_v18, %v622_v19  ;;  %v9642_v33 = vcombine.high %v626_v26, %v630_v27  ;;  %v682_v19 = vld [vmem:[%s14484_s1 + $0xc10] sm:$0xff] }
 0x1ac   : > { %4388 = vmatprep.mubr.bf16.mxu0 %v10787_v43  ;;  %4603 = vmatprep.mubr.bf16.mxu1 %v10787_v43  ;;  %v9644_v34 = vcombine.high %v627_v28, %v631_v29  ;;  %v642_v43 = vld [vmem:[%s14484_s1 + $0xad0] sm:$0xff] }
 0x1ae   : > { %4359 = vmatpush1.bf16.msra.mxu0 %v9577_v37  ;;  %4574 = vmatpush1.bf16.msra.mxu1 %v9579_v38  ;;  %v635_v37 = vld [vmem:[%s14484_s1 + $0xa98] sm:$0xff] }
 0x1af   : > { %4360 = vmatprep.subr.bf16.mxu0 %v9586_v39  ;;  %4575 = vmatprep.subr.bf16.mxu1 %v9588_v40  ;;  %v639_v38 = vld [vmem:[%s14484_s1 + $0xab8] sm:$0xff]  ;;  %v9641_v39 = vcombine.low %v626_v26, %v630_v27  ;;  %v9643_v40 = vcombine.low %v627_v28, %v631_v29  ;;  %v690_v27 = vld [vmem:[%s14484_s1 + $0xc50] sm:$0xff] }
 0x1b0   : > { %v9652_v42 = vcombine.high %v635_v37, %v639_v38  ;;  %v694_v28 = vld [vmem:[%s14484_s1 + $0xc70] sm:$0xff]  ;;  %v691_v29 = vld [vmem:[%s14484_s1 + $0xc58] sm:$0xff] }
 0x1b2   : > { %4361 = vmatpush1.bf16.msra.mxu0 %v9585_v46  ;;  %4576 = vmatpush1.bf16.msra.mxu1 %v9587_v47  ;;  %v647_v46 = vld [vmem:[%s14484_s1 + $0xaf8] sm:$0xff]  ;;  %v9649_v47 = vcombine.low %v634_v35, %v638_v36  ;;  %v698_v36 = vld [vmem:[%s14484_s1 + $0xc90] sm:$0xff] }
 0x1b3   : > { %4362 = vmatprep.subr.bf16.mxu0 %v9594_v48  ;;  %4577 = vmatprep.subr.bf16.mxu1 %v9596_v49  ;;  %v9651_v48 = vcombine.low %v635_v37, %v639_v38  ;;  %v9658_v49 = vcombine.high %v642_v43, %v646_v44  ;;  %v9660_v50 = vcombine.high %v643_v45, %v647_v46  ;;  %v702_v37 = vld [vmem:[%s14484_s1 + $0xcb0] sm:$0xff] }
 0x1b4   : > { %v10788_v38 = vld [vmem:[%s10940_s20 + $0x10] ss:$36 sps:$4 sm:$0xff]  }
 0x1b6   : > { %4363 = vmatpush1.bf16.msra.mxu0 %v9593_v54  ;;  %4578 = vmatpush1.bf16.msra.mxu1 %v9595_v55  ;;  %v655_v54 = vld [vmem:[%s14484_s1 + $0xb38] sm:$0xff]  ;;  %v9657_v55 = vcombine.low %v642_v43, %v646_v44  ;;  %v9714_v43 = vcombine.high %v698_v36, %v702_v37 }
 0x1b7   : > { %4364 = vmatprep.subr.bf16.mxu0 %v9602_v56  ;;  %4579 = vmatprep.subr.bf16.mxu1 %v9604_v57  ;;  %v9659_v56 = vcombine.low %v643_v45, %v647_v46  ;;  %v9666_v57 = vcombine.high %v650_v51, %v654_v52  ;;  %v9668_v58 = vcombine.high %v651_v53, %v655_v54  ;;  %v706_v45 = vld [vmem:[%s14484_s1 + $0xcd0] sm:$0xff] }
 0x1b8   : > { %v710_v46 = vld [vmem:[%s14484_s1 + $0xcf0] sm:$0xff] }
 0x1ba   : > { %4365 = vmatpush1.bf16.msra.mxu0 %v9601_v62  ;;  %4580 = vmatpush1.bf16.msra.mxu1 %v9603_v63  ;;  %v663_v62 = vld [vmem:[%s14484_s1 + $0xb78] sm:$0xff]  ;;  %v9665_v63 = vcombine.low %v650_v51, %v654_v52  ;;  %v9713_v51 = vcombine.low %v698_v36, %v702_v37 }
 0x1bb   : > { %4366 = vmatprep.subr.bf16.mxu0 %v9610_v0  ;;  %4581 = vmatprep.subr.bf16.mxu1 %v9612_v1  ;;  %v9667_v0 = vcombine.low %v651_v53, %v655_v54  ;;  %v9674_v1 = vcombine.high %v658_v59, %v662_v60  ;;  %v9676_v2 = vcombine.high %v659_v61, %v663_v62 }
 0x1bc   : > { %v9722_v53 = vcombine.high %v706_v45, %v710_v46 }
 0x1be   : > { %4367 = vmatpush1.bf16.msra.mxu0 %v9609_v6  ;;  %4582 = vmatpush1.bf16.msra.mxu1 %v9611_v7  ;;  %v671_v6 = vld [vmem:[%s14484_s1 + $0xbb8] sm:$0xff]  ;;  %v9673_v7 = vcombine.low %v658_v59, %v662_v60  ;;  %v9721_v60 = vcombine.low %v706_v45, %v710_v46 }
 0x1bf   : > { %4368 = vmatprep.subr.bf16.mxu0 %v9618_v8  ;;  %4583 = vmatprep.subr.bf16.mxu1 %v9620_v9  ;;  %v9675_v8 = vcombine.low %v659_v61, %v663_v62  ;;  %v9682_v9 = vcombine.high %v666_v3, %v670_v4  ;;  %v9684_v10 = vcombine.high %v667_v5, %v671_v6 }
 0x1c2   : > { %4369 = vmatpush1.bf16.msra.mxu0 %v9617_v14  ;;  %4584 = vmatpush1.bf16.msra.mxu1 %v9619_v15  ;;  %v679_v14 = vld [vmem:[%s14484_s1 + $0xbf8] sm:$0xff]  ;;  %v9681_v15 = vcombine.low %v666_v3, %v670_v4 }
 0x1c3   : > { %4370 = vmatprep.subr.bf16.mxu0 %v9626_v16  ;;  %4585 = vmatprep.subr.bf16.mxu1 %v9628_v17  ;;  %v9683_v16 = vcombine.low %v667_v5, %v671_v6  ;;  %v9690_v17 = vcombine.high %v674_v11, %v678_v12  ;;  %v9692_v18 = vcombine.high %v675_v13, %v679_v14  ;;  %v723_v3 = vld [vmem:[%s14484_s1 + $0xd58] sm:$0xff]  ;;  %v872_v6 = vld [vmem:[%s14485_s2] sm:$0xff] }
 0x1c4   : > { %v727_v4 = vld [vmem:[%s14484_s1 + $0xd78] sm:$0xff] }
 0x1c6   : > { %4371 = vmatpush1.bf16.msra.mxu0 %v9625_v22  ;;  %4586 = vmatpush1.bf16.msra.mxu1 %v9627_v23  ;;  %v687_v22 = vld [vmem:[%s14484_s1 + $0xc38] sm:$0xff]  ;;  %v9689_v23 = vcombine.low %v674_v11, %v678_v12  ;;  %v9740_v12 = vcombine.high %v723_v3, %v727_v4 }
 0x1c7   : > { %4372 = vmatprep.subr.bf16.mxu0 %v9634_v24  ;;  %4587 = vmatprep.subr.bf16.mxu1 %v9636_v25  ;;  %v9691_v24 = vcombine.low %v675_v13, %v679_v14  ;;  %v9698_v25 = vcombine.high %v682_v19, %v686_v20  ;;  %v9700_v26 = vcombine.high %v683_v21, %v687_v22  ;;  %v730_v13 = vld [vmem:[%s14484_s1 + $0xd90] sm:$0xff] }
 0x1c8   : > { %v734_v14 = vld [vmem:[%s14484_s1 + $0xdb0] sm:$0xff] }
 0x1ca   : > { %4373 = vmatpush1.bf16.msra.mxu0 %v9633_v30  ;;  %4588 = vmatpush1.bf16.msra.mxu1 %v9635_v31  ;;  %v695_v30 = vld [vmem:[%s14484_s1 + $0xc78] sm:$0xff]  ;;  %v9697_v31 = vcombine.low %v682_v19, %v686_v20 }
 0x1cb   : > { %4374 = vmatprep.subr.bf16.mxu0 %v9642_v33  ;;  %4589 = vmatprep.subr.bf16.mxu1 %v9644_v34  ;;  %v9699_v33 = vcombine.low %v683_v21, %v687_v22  ;;  %v9706_v34 = vcombine.high %v690_v27, %v694_v28  ;;  %v9708_v35 = vcombine.high %v691_v29, %v695_v30 }
 0x1cc   : > { %v9739_v22 = vcombine.low %v723_v3, %v727_v4 }
 0x1ce   : > { %4375 = vmatpush1.bf16.msra.mxu0 %v9641_v39  ;;  %4590 = vmatpush1.bf16.msra.mxu1 %v9643_v40  ;;  %v699_v39 = vld [vmem:[%s14484_s1 + $0xc98] sm:$0xff] }
 0x1cf   : > { %4376 = vmatprep.subr.bf16.mxu0 %v9650_v41  ;;  %4591 = vmatprep.subr.bf16.mxu1 %v9652_v42  ;;  %v703_v40 = vld [vmem:[%s14484_s1 + $0xcb8] sm:$0xff]  ;;  %v9705_v41 = vcombine.low %v690_v27, %v694_v28  ;;  %v9707_v42 = vcombine.low %v691_v29, %v695_v30  ;;  %v742_v27 = vld [vmem:[%s14484_s1 + $0xdf0] sm:$0xff] }
 0x1d0   : > { %v9716_v44 = vcombine.high %v699_v39, %v703_v40  ;;  %v9715_v52 = vcombine.low %v699_v39, %v703_v40 }
 0x1d2   : > { %4377 = vmatpush1.bf16.msra.mxu0 %v9649_v47  ;;  %4592 = vmatpush1.bf16.msra.mxu1 %v9651_v48  ;;  %v10789_v47 = vld [vmem:[%s10940_s20 + $0x1c] ss:$36 sps:$4 sm:$0xff]  }
 0x1d3   : > { %4378 = vmatprep.subr.bf16.mxu0 %v9658_v49  ;;  %4593 = vmatprep.subr.bf16.mxu1 %v9660_v50  ;;  %v707_v48 = vld [vmem:[%s14484_s1 + $0xcd8] sm:$0xff]  ;;  %v874_v50 = vlaneseq }
 0x1d4   : > { %v711_v49 = vld [vmem:[%s14484_s1 + $0xcf8] sm:$0xff] }
 0x1d5   : > { %v9724_v54 = vcombine.high %v707_v48, %v711_v49  ;;  %v12376_v59 = vshrl.u32 %v874_v50, 7  ;;  %v9723_v61 = vcombine.low %v707_v48, %v711_v49  ;;  %v746_v50 = vld [vmem:[%s14484_s1 + $0xe10] sm:$0xff] }
 0x1d6   : > { %4379 = vmatpush1.bf16.msra.mxu0 %v9657_v55  ;;  %4594 = vmatpush1.bf16.msra.mxu1 %v9659_v56  ;;  %v714_v55 = vld [vmem:[%s14484_s1 + $0xd10] sm:$0xff] }
 0x1d7   : > { %4380 = vmatprep.subr.bf16.mxu0 %v9666_v57  ;;  %4595 = vmatprep.subr.bf16.mxu1 %v9668_v58  ;;  %v718_v56 = vld [vmem:[%s14484_s1 + $0xd30] sm:$0xff]  ;;  %v715_v57 = vld [vmem:[%s14484_s1 + $0xd18] sm:$0xff] }
 0x1d8   : > { %v719_v58 = vld [vmem:[%s14484_s1 + $0xd38] sm:$0xff]  ;;  %v9730_v62 = vcombine.high %v714_v55, %v718_v56  ;;  %v9729_v5 = vcombine.low %v714_v55, %v718_v56 }
 0x1d9   : > { %v747_v56 = vld [vmem:[%s14484_s1 + $0xe18] sm:$0xff] }
 0x1da   : > { %4381 = vmatpush1.bf16.msra.mxu0 %v9665_v63  ;;  %4596 = vmatpush1.bf16.msra.mxu1 %v9667_v0  ;;  %v9732_v63 = vcombine.high %v715_v57, %v719_v58  ;;  %v722_v0 = vld [vmem:[%s14484_s1 + $0xd50] sm:$0xff] }
 0x1db   : > { %4382 = vmatprep.subr.bf16.mxu0 %v9674_v1  ;;  %4597 = vmatprep.subr.bf16.mxu1 %v9676_v2  ;;  %v726_v1 = vld [vmem:[%s14484_s1 + $0xd70] sm:$0xff]  ;;  %v876_v2 = vsub.s32 0, %v12376_v59 }
 0x1dc   : > { %v9738_v11 = vcombine.high %v722_v0, %v726_v1  ;;  %v9737_v20 = vcombine.low %v722_v0, %v726_v1 }
 0x1de   : > { %4383 = vmatpush1.bf16.msra.mxu0 %v9673_v7  ;;  %4598 = vmatpush1.bf16.msra.mxu1 %v9675_v8  ;;  %v884_v7 = vsub.s32 2, %v12376_v59  ;;  %v880_v8 = vsub.s32 1, %v12376_v59 }
 0x1df   : > { %4384 = vmatprep.subr.bf16.mxu0 %v9682_v9  ;;  %4599 = vmatprep.subr.bf16.mxu1 %v9684_v10  ;;  %v9731_v9 = vcombine.low %v715_v57, %v719_v58  ;;  %v888_v10 = vsub.s32 3, %v12376_v59  ;;  %v751_v57 = vld [vmem:[%s14484_s1 + $0xe38] sm:$0xff] }
 0x1e0   : > { %v881_v19 = vrot.slane %v872_v6, %v880_v8 }
 0x1e1   : > { %v889_v21 = vrot.slane %v872_v6, %v888_v10 }
 0x1e2   : > { %4385 = vmatpush1.bf16.msra.mxu0 %v9681_v15  ;;  %4600 = vmatpush1.bf16.msra.mxu1 %v9683_v16  ;;  %v877_v15 = vrot.slane %v872_v6, %v876_v2  ;;  %v731_v16 = vld [vmem:[%s14484_s1 + $0xd98] sm:$0xff] }
 0x1e3   : > { %4386 = vmatprep.subr.bf16.mxu0 %v9690_v17  ;;  %4601 = vmatprep.subr.bf16.mxu1 %v9692_v18  ;;  %v735_v17 = vld [vmem:[%s14484_s1 + $0xdb8] sm:$0xff]  ;;  %v885_v18 = vrot.slane %v872_v6, %v884_v7  ;;  %v9764_v6 = vcombine.high %v747_v56, %v751_v57 }
 0x1e4   : > { %v9747_v39 = vcombine.low %v731_v16, %v735_v17 }
 0x1e6   : > { %4387 = vmatpush1.bf16.msra.mxu0 %v9689_v23  ;;  %4602 = vmatpush1.bf16.msra.mxu1 %v9691_v24  ;;  %v9746_v23 = vcombine.high %v730_v13, %v734_v14 }
 0x1e7   : > { %4399 = vmatprep.subr.bf16.mxu0 %v9698_v25  ;;  %4614 = vmatprep.subr.bf16.mxu1 %v9700_v26  ;;  %v9748_v25 = vcombine.high %v731_v16, %v735_v17  ;;  %v738_v26 = vld [vmem:[%s14484_s1 + $0xdd0] sm:$0xff]  ;;  %v9763_v16 = vcombine.low %v747_v56, %v751_v57 }
 0x1e8   : > { %v9753_v48 = vcombine.low %v738_v26, %v742_v27 }
 0x1e9   : > { %4389 = vmatmul.mubr.bf16.vlgmr.msra.gmra.mrb[4].mxu0 %v10788_v38  ;;  %4604 = vmatmul.mubr.bf16.vlgmr.msra.gmra.mrb[4].mxu1 %v10788_v38  ;;  %v9745_v38 = vcombine.low %v730_v13, %v734_v14  ;;  %v755_v13 = vld [vmem:[%s14484_s1 + $0xe58] sm:$0xff] }
 0x1ea   : > { %4400 = vmatpush1.bf16.msra.mxu0 %v9697_v31  ;;  %4615 = vmatpush1.bf16.msra.mxu1 %v9699_v33  ;;  %v739_v31 = vld [vmem:[%s14484_s1 + $0xdd8] sm:$0xff] }
 0x1eb   : > { %4401 = vmatprep.subr.bf16.mxu0 %v9706_v34  ;;  %4616 = vmatprep.subr.bf16.mxu1 %v9708_v35  ;;  %v743_v33 = vld [vmem:[%s14484_s1 + $0xdf8] sm:$0xff] }
 0x1ec   : > { %4431 = vmatprep.mubr.bf16.mxu0 %v10789_v47  ;;  %4646 = vmatprep.mubr.bf16.mxu1 %v10789_v47  ;;  %v9756_v49 = vcombine.high %v739_v31, %v743_v33  ;;  %v9755_v55 = vcombine.low %v739_v31, %v743_v33  ;;  %v759_v14 = vld [vmem:[%s14484_s1 + $0xe78] sm:$0xff] }
 0x1ee   : > { %4402 = vmatpush1.bf16.msra.mxu0 %v9705_v41  ;;  %4617 = vmatpush1.bf16.msra.mxu1 %v9707_v42 }
 0x1ef   : > { %4403 = vmatprep.subr.bf16.mxu0 %v9714_v43  ;;  %4618 = vmatprep.subr.bf16.mxu1 %v9716_v44  ;;  %v9754_v44 = vcombine.high %v738_v26, %v742_v27  ;;  %v770_v27 = vld [vmem:[%s14484_s1 + $0xed0] sm:$0xff] }
 0x1f2   : > { %4404 = vmatpush1.bf16.msra.mxu0 %v9713_v51  ;;  %4619 = vmatpush1.bf16.msra.mxu1 %v9715_v52  ;;  %v750_v51 = vld [vmem:[%s14484_s1 + $0xe30] sm:$0xff] }
 0x1f3   : > { %4405 = vmatprep.subr.bf16.mxu0 %v9722_v53  ;;  %4620 = vmatprep.subr.bf16.mxu1 %v9724_v54  ;;  %v9762_v3 = vcombine.high %v746_v50, %v750_v51 }
 0x1f6   : > { %4406 = vmatpush1.bf16.msra.mxu0 %v9721_v60  ;;  %4621 = vmatpush1.bf16.msra.mxu1 %v9723_v61 }
 0x1f7   : > { %4407 = vmatprep.subr.bf16.mxu0 %v9730_v62  ;;  %4622 = vmatprep.subr.bf16.mxu1 %v9732_v63 }
 0x1fa   : > { %4408 = vmatpush1.bf16.msra.mxu0 %v9729_v5  ;;  %4623 = vmatpush1.bf16.msra.mxu1 %v9731_v9  ;;  %v754_v9 = vld [vmem:[%s14484_s1 + $0xe50] sm:$0xff] }
 0x1fb   : > { %4409 = vmatprep.subr.bf16.mxu0 %v9738_v11  ;;  %4624 = vmatprep.subr.bf16.mxu1 %v9740_v12  ;;  %v758_v11 = vld [vmem:[%s14484_s1 + $0xe70] sm:$0xff] }
 0x1fc   : > { %v4046_v24 = vpop.f32.mrb[0].mxu0  ;;  %v4261_v29 = vpop.f32.mrb[0].mxu1  ;;  %v9770_v17 = vcombine.high %v754_v9, %v758_v11 }
 0x1fd   : > { %v10552_v28 = vadd.f32 %v4046_v24, %v877_v15  ;;  %v4048_v30 = vpop.f32.mrb[1].mxu0  ;;  %v10556_v34 = vadd.f32 %v4261_v29, %v885_v18  ;;  %v4263_v36 = vpop.f32.mrb[1].mxu1  ;;  %v9771_v24 = vcombine.low %v755_v13, %v759_v14  ;;  %v771_v29 = vld [vmem:[%s14484_s1 + $0xed8] sm:$0xff] }
 0x1fe   : > { %v10553_v35 = vadd.f32 %v4048_v30, %v881_v19  ;;  %v4050_v37 = vpop.f32.mrb[2].mxu0  ;;  %4410 = vmatpush1.bf16.msra.mxu0 %v9737_v20  ;;  %v10557_v40 = vadd.f32 %v4263_v36, %v889_v21  ;;  %v4265_v42 = vpop.f32.mrb[2].mxu1  ;;  %4625 = vmatpush1.bf16.msra.mxu1 %v9739_v22  ;;  %v766_v20 = vld [vmem:[%s14484_s1 + $0xeb0] sm:$0xff]  ;;  %v767_v22 = vld [vmem:[%s14484_s1 + $0xeb8] sm:$0xff] }
 0x1ff   : > { %v10554_v41 = vadd.f32 %v4050_v37, %v877_v15  ;;  %v4052_v43 = vpop.f32.mrb[3].mxu0  ;;  %4411 = vmatprep.subr.bf16.mxu0 %v9746_v23  ;;  %v10558_v45 = vadd.f32 %v4265_v42, %v885_v18  ;;  %v4267_v47 = vpop.f32.mrb[3].mxu1  ;;  %4626 = vmatprep.subr.bf16.mxu1 %v9748_v25  ;;  %v4700_v52 = vmax.f32 %v10552_v28, 0.0  ;;  %v4702_v58 = vmax.f32 %v10556_v34, 0.0  ;;  %v774_v28 = vld [vmem:[%s14484_s1 + $0xef0] sm:$0xff]  ;;  %v775_v30 = vld [vmem:[%s14484_s1 + $0xef8] sm:$0xff] }
 0x200   : > { %v10555_v46 = vadd.f32 %v4052_v43, %v881_v19  ;;  %v10559_v54 = vadd.f32 %v4267_v47, %v889_v21  ;;  %v4701_v60 = vmax.f32 %v10553_v35, 0.0  ;;  %v4703_v63 = vmax.f32 %v10557_v40, 0.0  ;;  %v762_v19 = vld [vmem:[%s14484_s1 + $0xe90] sm:$0xff]  ;;  %v763_v21 = vld [vmem:[%s14484_s1 + $0xe98] sm:$0xff] }
 0x201   : > { %v4708_v53 = vmax.f32 %v10554_v41, 0.0  ;;  %v4710_v61 = vmax.f32 %v10558_v45, 0.0  ;;  %v9761_v15 = vcombine.low %v746_v50, %v750_v51  ;;  %v9772_v18 = vcombine.high %v755_v13, %v759_v14  ;;  %v778_v36 = vld [vmem:[%s14484_s1 + $0xf10] sm:$0xff]  ;;  %v791_v47 = vld [vmem:[%s14484_s1 + $0xf78] sm:$0xff] }
 0x202   : > { %v4709_v62 = vmax.f32 %v10555_v46, 0.0  ;;  %4412 = vmatpush1.bf16.msra.mxu0 %v9745_v38  ;;  %v4711_v1 = vmax.f32 %v10559_v54, 0.0  ;;  %4627 = vmatpush1.bf16.msra.mxu1 %v9747_v39  ;;  %v9769_v23 = vcombine.low %v754_v9, %v758_v11  ;;  %v9778_v25 = vcombine.high %v762_v19, %v766_v20  ;;  %v782_v37 = vld [vmem:[%s14484_s1 + $0xf30] sm:$0xff]  ;;  %v779_v38 = vld [vmem:[%s14484_s1 + $0xf18] sm:$0xff] }
 0x203   : > { %v12441_v0 = vpack.c.bf16 %v4708_v53, %v4700_v52  ;;  %4413 = vmatprep.subr.bf16.mxu0 %v9754_v44  ;;  %v12443_v4 = vpack.c.bf16 %v4710_v61, %v4702_v58  ;;  %4628 = vmatprep.subr.bf16.mxu1 %v9756_v49  ;;  %v9780_v26 = vcombine.high %v763_v21, %v767_v22  ;;  %v783_v39 = vld [vmem:[%s14484_s1 + $0xf38] sm:$0xff]  ;;  %v786_v44 = vld [vmem:[%s14484_s1 + $0xf50] sm:$0xff] }
 0x204   : > { %v12445_v5 = vpack.c.bf16 %v4709_v62, %v4701_v60  ;;  %v12453_v12 = vpack.c.bf16 %v4711_v1, %v4703_v63  ;;  %v9777_v31 = vcombine.low %v762_v19, %v766_v20  ;;  %v9779_v33 = vcombine.low %v763_v21, %v767_v22  ;;  %v790_v45 = vld [vmem:[%s14484_s1 + $0xf70] sm:$0xff]  ;;  %v787_v46 = vld [vmem:[%s14484_s1 + $0xf58] sm:$0xff] }
 0x205   : > { %v9786_v34 = vcombine.high %v770_v27, %v774_v28  ;;  %v9788_v35 = vcombine.high %v771_v29, %v775_v30  ;;  %v9785_v40 = vcombine.low %v770_v27, %v774_v28  ;;  %v9787_v41 = vcombine.low %v771_v29, %v775_v30  ;;  %v794_v52 = vld [vmem:[%s14484_s1 + $0xf90] sm:$0xff]  ;;  %v795_v54 = vld [vmem:[%s14484_s1 + $0xf98] sm:$0xff] }
 0x206   : > { %4414 = vmatpush1.bf16.msra.mxu0 %v9753_v48  ;;  %4629 = vmatpush1.bf16.msra.mxu1 %v9755_v55  ;;  %v9794_v42 = vcombine.high %v778_v36, %v782_v37  ;;  %v9796_v43 = vcombine.high %v779_v38, %v783_v39  ;;  %v9793_v48 = vcombine.low %v778_v36, %v782_v37  ;;  %v798_v53 = vld [vmem:[%s14484_s1 + $0xfb0] sm:$0xff]  ;;  %v799_v55 = vld [vmem:[%s14484_s1 + $0xfb8] sm:$0xff] }
 0x207   : > { %4415 = vmatprep.subr.bf16.mxu0 %v9762_v3  ;;  %4630 = vmatprep.subr.bf16.mxu1 %v9764_v6  ;;  %v9795_v49 = vcombine.low %v779_v38, %v783_v39  ;;  %v9802_v50 = vcombine.high %v786_v44, %v790_v45  ;;  %v9804_v51 = vcombine.high %v787_v46, %v791_v47  ;;  %v802_v61 = vld [vmem:[%s14484_s1 + $0xfd0] sm:$0xff]  ;;  %v803_v63 = vld [vmem:[%s14484_s1 + $0xfd8] sm:$0xff] }
 0x208   : > { %v9801_v56 = vcombine.low %v786_v44, %v790_v45  ;;  %v9803_v57 = vcombine.low %v787_v46, %v791_v47  ;;  %v9810_v58 = vcombine.high %v794_v52, %v798_v53  ;;  %v9812_v60 = vcombine.high %v795_v54, %v799_v55  ;;  %v806_v62 = vld [vmem:[%s14484_s1 + $0xff0] sm:$0xff]  ;;  %v807_v1 = vld [vmem:[%s14484_s1 + $0xff8] sm:$0xff] }
 0x209   : > { %v9809_v3 = vcombine.low %v794_v52, %v798_v53  ;;  %v9811_v6 = vcombine.low %v795_v54, %v799_v55  ;;  %v9818_v9 = vcombine.high %v802_v61, %v806_v62  ;;  %v9820_v11 = vcombine.high %v803_v63, %v807_v1  ;;  %v810_v13 = vld [vmem:[%s14484_s1 + $0x1010] sm:$0xff] }
 0x20a   : > { %4416 = vmatpush1.bf16.msra.mxu0 %v9761_v15  ;;  %4631 = vmatpush1.bf16.msra.mxu1 %v9763_v16  ;;  %v814_v14 = vld [vmem:[%s14484_s1 + $0x1030] sm:$0xff]  ;;  %v811_v15 = vld [vmem:[%s14484_s1 + $0x1018] sm:$0xff] }
 0x20b   : > { %4417 = vmatprep.subr.bf16.mxu0 %v9770_v17  ;;  %4632 = vmatprep.subr.bf16.mxu1 %v9772_v18  ;;  %v815_v16 = vld [vmem:[%s14484_s1 + $0x1038] sm:$0xff]  ;;  %v9817_v17 = vcombine.low %v802_v61, %v806_v62  ;;  %v9819_v18 = vcombine.low %v803_v63, %v807_v1  ;;  %v9826_v19 = vcombine.high %v810_v13, %v814_v14  ;;  %v818_v21 = vld [vmem:[%s14484_s1 + $0x1050] sm:$0xff] }
 0x20c   : > { %v9828_v20 = vcombine.high %v811_v15, %v815_v16  ;;  %v822_v22 = vld [vmem:[%s14484_s1 + $0x1070] sm:$0xff] }
 0x20d   : > { %v9834_v27 = vcombine.high %v818_v21, %v822_v22  ;;  %v826_v29 = vld [vmem:[%s14484_s1 + $0x1090] sm:$0xff] }
 0x20e   : > { %4418 = vmatpush1.bf16.msra.mxu0 %v9769_v23  ;;  %4633 = vmatpush1.bf16.msra.mxu1 %v9771_v24  ;;  %v819_v23 = vld [vmem:[%s14484_s1 + $0x1058] sm:$0xff]  ;;  %v830_v30 = vld [vmem:[%s14484_s1 + $0x10b0] sm:$0xff] }
 0x20f   : > { %4419 = vmatprep.subr.bf16.mxu0 %v9778_v25  ;;  %4634 = vmatprep.subr.bf16.mxu1 %v9780_v26  ;;  %v823_v24 = vld [vmem:[%s14484_s1 + $0x1078] sm:$0xff]  ;;  %v9825_v25 = vcombine.low %v810_v13, %v814_v14  ;;  %v9827_v26 = vcombine.low %v811_v15, %v815_v16  ;;  %v9842_v37 = vcombine.high %v826_v29, %v830_v30  ;;  %v834_v39 = vld [vmem:[%s14484_s1 + $0x10d0] sm:$0xff] }
 0x210   : > { %v9836_v28 = vcombine.high %v819_v23, %v823_v24  ;;  %v9835_v36 = vcombine.low %v819_v23, %v823_v24  ;;  %v842_v47 = vld [vmem:[%s14484_s1 + $0x1110] sm:$0xff]  ;;  %v4724_v23 = vld [vmem:[%s14486_s3] sm:$0xff] }
 0x211   : > { %v850_v54 = vld [vmem:[%s14484_s1 + $0x1150] sm:$0xff]  ;;  %v4728_v24 = vld [vmem:[%s14486_s3 + $0x20] sm:$0xff] }
 0x212   : > { %4420 = vmatpush1.bf16.msra.mxu0 %v9777_v31  ;;  %4635 = vmatpush1.bf16.msra.mxu1 %v9779_v33  ;;  %v10790_v31 = vld [vmem:[%s10940_s20 + $0x18] ss:$36 sps:$4 sm:$0xff]   ;;  %v854_v55 = vld [vmem:[%s14484_s1 + $0x1170] sm:$0xff] }
 0x213   : > { %4421 = vmatprep.subr.bf16.mxu0 %v9786_v34  ;;  %4636 = vmatprep.subr.bf16.mxu1 %v9788_v35  ;;  %v827_v33 = vld [vmem:[%s14484_s1 + $0x1098] sm:$0xff]  ;;  %v9833_v35 = vcombine.low %v818_v21, %v822_v22  ;;  %v9866_v61 = vcombine.high %v850_v54, %v854_v55  ;;  %v858_v63 = vld [vmem:[%s14484_s1 + $0x1190] sm:$0xff] }
 0x214   : > { %v831_v34 = vld [vmem:[%s14484_s1 + $0x10b8] sm:$0xff]  ;;  %v862_v1 = vld [vmem:[%s14484_s1 + $0x11b0] sm:$0xff] }
 0x215   : > { %v9844_v38 = vcombine.high %v827_v33, %v831_v34  ;;  %v9843_v44 = vcombine.low %v827_v33, %v831_v34  ;;  %v9874_v13 = vcombine.high %v858_v63, %v862_v1  ;;  %v866_v15 = vld [vmem:[%s14484_s1 + $0x11d0] sm:$0xff]  ;;  %v4736_v33 = vld [vmem:[%s14486_s3 + $0x60] sm:$0xff]  ;;  %v9885_v34 = vcombine.low %v4724_v23, %v4728_v24 }
 0x216   : > { %4422 = vmatpush1.bf16.msra.mxu0 %v9785_v40  ;;  %4637 = vmatpush1.bf16.msra.mxu1 %v9787_v41  ;;  %v838_v40 = vld [vmem:[%s14484_s1 + $0x10f0] sm:$0xff]  ;;  %v835_v41 = vld [vmem:[%s14484_s1 + $0x10d8] sm:$0xff] }
 0x217   : > { %4423 = vmatprep.subr.bf16.mxu0 %v9794_v42  ;;  %4638 = vmatprep.subr.bf16.mxu1 %v9796_v43  ;;  %v839_v42 = vld [vmem:[%s14484_s1 + $0x10f8] sm:$0xff]  ;;  %v9841_v43 = vcombine.low %v826_v29, %v830_v30  ;;  %v9850_v45 = vcombine.high %v834_v39, %v838_v40  ;;  %v870_v16 = vld [vmem:[%s14484_s1 + $0x11f0] sm:$0xff]  ;;  %v9886_v29 = vcombine.high %v4724_v23, %v4728_v24 }
 0x218   : > { %v9852_v46 = vcombine.high %v835_v41, %v839_v42  ;;  %v9882_v21 = vcombine.high %v866_v15, %v870_v16 }
 0x21a   : > { %4424 = vmatpush1.bf16.msra.mxu0 %v9793_v48  ;;  %4639 = vmatpush1.bf16.msra.mxu1 %v9795_v49  ;;  %v846_v48 = vld [vmem:[%s14484_s1 + $0x1130] sm:$0xff]  ;;  %v847_v49 = vld [vmem:[%s14484_s1 + $0x1138] sm:$0xff] }
 0x21b   : > { %4425 = vmatprep.subr.bf16.mxu0 %v9802_v50  ;;  %4640 = vmatprep.subr.bf16.mxu1 %v9804_v51  ;;  %v9849_v50 = vcombine.low %v834_v39, %v838_v40  ;;  %v9851_v51 = vcombine.low %v835_v41, %v839_v42  ;;  %v9858_v52 = vcombine.high %v842_v47, %v846_v48  ;;  %v4740_v39 = vld [vmem:[%s14486_s3 + $0x80] sm:$0xff] }
 0x21c   : > { %v4744_v40 = vld [vmem:[%s14486_s3 + $0xa0] sm:$0xff] }
 0x21d   : > { %v10791_v41 = vld [vmem:[%s10940_s20 + $0x20] ss:$36 sps:$4 sm:$0xff]   ;;  %s9299_s20 = sshll.u32 %s14492_s29, 3 }
 0x21e   : > { %4426 = vmatpush1.bf16.msra.mxu0 %v9801_v56  ;;  %4641 = vmatpush1.bf16.msra.mxu1 %v9803_v57  ;;  %v851_v56 = vld [vmem:[%s14484_s1 + $0x1158] sm:$0xff]  ;;  %s283_s27 = scalar_lea.vmem %s14490_s7, %s9299_s20 }
 0x21f   : > { %4427 = vmatprep.subr.bf16.mxu0 %v9810_v58  ;;  %4642 = vmatprep.subr.bf16.mxu1 %v9812_v60  ;;  %v855_v57 = vld [vmem:[%s14484_s1 + $0x1178] sm:$0xff]  ;;  %v9857_v58 = vcombine.low %v842_v47, %v846_v48  ;;  %v9902_v47 = vcombine.high %v4740_v39, %v4744_v40 }
 0x220   : > { %v9868_v62 = vcombine.high %v851_v56, %v855_v57 }
 0x222   : > { %4428 = vmatpush1.bf16.msra.mxu0 %v9809_v3  ;;  %4643 = vmatpush1.bf16.msra.mxu1 %v9811_v6  ;;  %v859_v3 = vld [vmem:[%s14484_s1 + $0x1198] sm:$0xff] }
 0x223   : > { %4429 = vmatprep.subr.bf16.mxu0 %v9818_v9  ;;  %4644 = vmatprep.subr.bf16.mxu1 %v9820_v11  ;;  %v863_v6 = vld [vmem:[%s14484_s1 + $0x11b8] sm:$0xff]  ;;  %v9865_v9 = vcombine.low %v850_v54, %v854_v55  ;;  %v9867_v11 = vcombine.low %v851_v56, %v855_v57  ;;  %v4756_v56 = vld [vmem:[%s14486_s3 + $0x100] sm:$0xff] }
 0x224   : > { %v9876_v14 = vcombine.high %v859_v3, %v863_v6  ;;  %v4760_v57 = vld [vmem:[%s14486_s3 + $0x120] sm:$0xff] }
 0x226   : > { %4430 = vmatpush1.bf16.msra.mxu0 %v9817_v17  ;;  %4645 = vmatpush1.bf16.msra.mxu1 %v9819_v18  ;;  %v867_v17 = vld [vmem:[%s14484_s1 + $0x11d8] sm:$0xff] }
 0x227   : > { %4442 = vmatprep.subr.bf16.mxu0 %v9826_v19  ;;  %4657 = vmatprep.subr.bf16.mxu1 %v9828_v20  ;;  %v871_v18 = vld [vmem:[%s14484_s1 + $0x11f8] sm:$0xff]  ;;  %v9873_v19 = vcombine.low %v858_v63, %v862_v1  ;;  %v9875_v20 = vcombine.low %v859_v3, %v863_v6  ;;  %v9918_v63 = vcombine.high %v4756_v56, %v4760_v57  ;;  %v4764_v3 = vld [vmem:[%s14486_s3 + $0x140] sm:$0xff] }
 0x228   : > { %v9884_v22 = vcombine.high %v867_v17, %v871_v18  ;;  %v4768_v6 = vld [vmem:[%s14486_s3 + $0x160] sm:$0xff] }
 0x229   : > { %4432 = vmatmul.mubr.bf16.vlgmr.msra.gmra.mrb[4].mxu0 %v10790_v31  ;;  %4647 = vmatmul.mubr.bf16.vlgmr.msra.gmra.mrb[4].mxu1 %v10790_v31  ;;  %v4732_v31 = vld [vmem:[%s14486_s3 + $0x40] sm:$0xff] }
 0x22a   : > { %4443 = vmatpush1.bf16.msra.mxu0 %v9825_v25  ;;  %4658 = vmatpush1.bf16.msra.mxu1 %v9827_v26  ;;  %v4725_v25 = vld [vmem:[%s14486_s3 + $0x8] sm:$0xff] }
 0x22b   : > { %4444 = vmatprep.subr.bf16.mxu0 %v9834_v27  ;;  %4659 = vmatprep.subr.bf16.mxu1 %v9836_v28  ;;  %v4729_v26 = vld [vmem:[%s14486_s3 + $0x28] sm:$0xff]  ;;  %v9881_v27 = vcombine.low %v866_v15, %v870_v16  ;;  %v9883_v28 = vcombine.low %v867_v17, %v871_v18  ;;  %v9926_v15 = vcombine.high %v4764_v3, %v4768_v6  ;;  %v4772_v17 = vld [vmem:[%s14486_s3 + $0x180] sm:$0xff] }
 0x22c   : > { %4474 = vmatprep.mubr.bf16.mxu0 %v10801_v32  ;;  %4689 = vmatprep.mubr.bf16.mxu1 %v10801_v32  ;;  %v843_v32 = vld [vmem:[%s14484_s1 + $0x1118] sm:$0xff]  ;;  %v9888_v30 = vcombine.high %v4725_v25, %v4729_v26  ;;  %v4776_v18 = vld [vmem:[%s14486_s3 + $0x1a0] sm:$0xff] }
 0x22d   : > { %v9860_v53 = vcombine.high %v843_v32, %v847_v49  ;;  %v9859_v60 = vcombine.low %v843_v32, %v847_v49  ;;  %v4748_v32 = vld [vmem:[%s14486_s3 + $0xc0] sm:$0xff]  ;;  %v9934_v23 = vcombine.high %v4772_v17, %v4776_v18 }
 0x22e   : > { %4445 = vmatpush1.bf16.msra.mxu0 %v9833_v35  ;;  %4660 = vmatpush1.bf16.msra.mxu1 %v9835_v36  ;;  %v4733_v35 = vld [vmem:[%s14486_s3 + $0x48] sm:$0xff]  ;;  %v4752_v49 = vld [vmem:[%s14486_s3 + $0xe0] sm:$0xff] }
 0x22f   : > { %4446 = vmatprep.subr.bf16.mxu0 %v9842_v37  ;;  %4661 = vmatprep.subr.bf16.mxu1 %v9844_v38  ;;  %v4737_v36 = vld [vmem:[%s14486_s3 + $0x68] sm:$0xff]  ;;  %v9887_v37 = vcombine.low %v4725_v25, %v4729_v26  ;;  %v9894_v38 = vcombine.high %v4732_v31, %v4736_v33  ;;  %v9910_v54 = vcombine.high %v4748_v32, %v4752_v49  ;;  %v4780_v25 = vld [vmem:[%s14486_s3 + $0x1c0] sm:$0xff] }
 0x230   : > { %v9896_v42 = vcombine.high %v4733_v35, %v4737_v36  ;;  %v4784_v26 = vld [vmem:[%s14486_s3 + $0x1e0] sm:$0xff] }
 0x232   : > { %4447 = vmatpush1.bf16.msra.mxu0 %v9841_v43  ;;  %4662 = vmatpush1.bf16.msra.mxu1 %v9843_v44  ;;  %v4741_v43 = vld [vmem:[%s14486_s3 + $0x88] sm:$0xff] }
 0x233   : > { %4448 = vmatprep.subr.bf16.mxu0 %v9850_v45  ;;  %4663 = vmatprep.subr.bf16.mxu1 %v9852_v46  ;;  %v4745_v44 = vld [vmem:[%s14486_s3 + $0xa8] sm:$0xff]  ;;  %v9893_v45 = vcombine.low %v4732_v31, %v4736_v33  ;;  %v9895_v46 = vcombine.low %v4733_v35, %v4737_v36  ;;  %v9942_v31 = vcombine.high %v4780_v25, %v4784_v26  ;;  %v4792_v35 = vld [vmem:[%s14486_s3 + $0x220] sm:$0xff] }
 0x234   : > { %v9904_v48 = vcombine.high %v4741_v43, %v4745_v44  ;;  %v4789_v36 = vld [vmem:[%s14486_s3 + $0x208] sm:$0xff] }
 0x236   : > { %4449 = vmatpush1.bf16.msra.mxu0 %v9849_v50  ;;  %4664 = vmatpush1.bf16.msra.mxu1 %v9851_v51  ;;  %v4749_v50 = vld [vmem:[%s14486_s3 + $0xc8] sm:$0xff] }
 0x237   : > { %4450 = vmatprep.subr.bf16.mxu0 %v9858_v52  ;;  %4665 = vmatprep.subr.bf16.mxu1 %v9860_v53  ;;  %v4753_v51 = vld [vmem:[%s14486_s3 + $0xe8] sm:$0xff]  ;;  %v9901_v52 = vcombine.low %v4740_v39, %v4744_v40  ;;  %v9903_v53 = vcombine.low %v4741_v43, %v4745_v44  ;;  %v4800_v43 = vld [vmem:[%s14486_s3 + $0x260] sm:$0xff] }
 0x238   : > { %v9912_v55 = vcombine.high %v4749_v50, %v4753_v51  ;;  %v4797_v44 = vld [vmem:[%s14486_s3 + $0x248] sm:$0xff] }
 0x23a   : > { %4451 = vmatpush1.bf16.msra.mxu0 %v9857_v58  ;;  %4666 = vmatpush1.bf16.msra.mxu1 %v9859_v60  ;;  %v4757_v58 = vld [vmem:[%s14486_s3 + $0x108] sm:$0xff] }
 0x23b   : > { %4452 = vmatprep.subr.bf16.mxu0 %v9866_v61  ;;  %4667 = vmatprep.subr.bf16.mxu1 %v9868_v62  ;;  %v4761_v60 = vld [vmem:[%s14486_s3 + $0x128] sm:$0xff]  ;;  %v9909_v61 = vcombine.low %v4748_v32, %v4752_v49  ;;  %v9911_v62 = vcombine.low %v4749_v50, %v4753_v51  ;;  %v4804_v49 = vld [vmem:[%s14486_s3 + $0x280] sm:$0xff] }
 0x23c   : > { %v9920_v1 = vcombine.high %v4757_v58, %v4761_v60  ;;  %v4808_v50 = vld [vmem:[%s14486_s3 + $0x2a0] sm:$0xff]  ;;  %v4805_v51 = vld [vmem:[%s14486_s3 + $0x288] sm:$0xff] }
 0x23e   : > { %4453 = vmatpush1.bf16.msra.mxu0 %v9865_v9  ;;  %4668 = vmatpush1.bf16.msra.mxu1 %v9867_v11  ;;  %v4765_v9 = vld [vmem:[%s14486_s3 + $0x148] sm:$0xff] }
 0x23f   : > { %4454 = vmatprep.subr.bf16.mxu0 %v9874_v13  ;;  %4669 = vmatprep.subr.bf16.mxu1 %v9876_v14  ;;  %v4769_v11 = vld [vmem:[%s14486_s3 + $0x168] sm:$0xff]  ;;  %v9917_v13 = vcombine.low %v4756_v56, %v4760_v57  ;;  %v9919_v14 = vcombine.low %v4757_v58, %v4761_v60  ;;  %v4812_v57 = vld [vmem:[%s14486_s3 + $0x2c0] sm:$0xff] }
 0x240   : > { %v9928_v16 = vcombine.high %v4765_v9, %v4769_v11  ;;  %v4816_v58 = vld [vmem:[%s14486_s3 + $0x2e0] sm:$0xff]  ;;  %v4813_v60 = vld [vmem:[%s14486_s3 + $0x2c8] sm:$0xff] }
 0x242   : > { %4455 = vmatpush1.bf16.msra.mxu0 %v9873_v19  ;;  %4670 = vmatpush1.bf16.msra.mxu1 %v9875_v20  ;;  %v4773_v19 = vld [vmem:[%s14486_s3 + $0x188] sm:$0xff] }
 0x243   : > { %4456 = vmatprep.subr.bf16.mxu0 %v9882_v21  ;;  %4671 = vmatprep.subr.bf16.mxu1 %v9884_v22  ;;  %v4777_v20 = vld [vmem:[%s14486_s3 + $0x1a8] sm:$0xff]  ;;  %v9925_v21 = vcombine.low %v4764_v3, %v4768_v6  ;;  %v9927_v22 = vcombine.low %v4765_v9, %v4769_v11  ;;  %v4820_v6 = vld [vmem:[%s14486_s3 + $0x300] sm:$0xff] }
 0x244   : > { %v9936_v24 = vcombine.high %v4773_v19, %v4777_v20  ;;  %v4824_v9 = vld [vmem:[%s14486_s3 + $0x320] sm:$0xff]  ;;  %v4821_v11 = vld [vmem:[%s14486_s3 + $0x308] sm:$0xff] }
 0x246   : > { %4457 = vmatpush1.bf16.msra.mxu0 %v9881_v27  ;;  %4672 = vmatpush1.bf16.msra.mxu1 %v9883_v28  ;;  %v4781_v27 = vld [vmem:[%s14486_s3 + $0x1c8] sm:$0xff] }
 0x247   : > { %7838 = vmatprep.subr.bf16.mxu0 %v9886_v29  ;;  %8010 = vmatprep.subr.bf16.mxu1 %v9888_v30  ;;  %v4785_v28 = vld [vmem:[%s14486_s3 + $0x1e8] sm:$0xff]  ;;  %v9933_v29 = vcombine.low %v4772_v17, %v4776_v18  ;;  %v9935_v30 = vcombine.low %v4773_v19, %v4777_v20  ;;  %v4828_v18 = vld [vmem:[%s14486_s3 + $0x340] sm:$0xff] }
 0x248   : > { %v9944_v33 = vcombine.high %v4781_v27, %v4785_v28  ;;  %v9943_v39 = vcombine.low %v4781_v27, %v4785_v28  ;;  %v4832_v19 = vld [vmem:[%s14486_s3 + $0x360] sm:$0xff]  ;;  %v4829_v20 = vld [vmem:[%s14486_s3 + $0x348] sm:$0xff] }
 0x249   : > { %4475 = vmatmul.mubr.bf16.vlgmr.msra.gmra.mrb[4].mxu0 %v10791_v41  ;;  %4690 = vmatmul.mubr.bf16.vlgmr.msra.gmra.mrb[4].mxu1 %v10791_v41  ;;  %v4840_v27 = vld [vmem:[%s14486_s3 + $0x3a0] sm:$0xff]  ;;  %v4837_v28 = vld [vmem:[%s14486_s3 + $0x388] sm:$0xff] }
 0x24a   : > { %7839 = vmatpush1.bf16.msra.mxu0 %v9885_v34  ;;  %7870 = vmatprep.mubr.bf16.mxu0 %v12445_v5  ;;  %v4788_v34 = vld [vmem:[%s14486_s3 + $0x200] sm:$0xff] }
 0x24b   : > { %8011 = vmatpush1.bf16.msra.mxu1 %v9887_v37  ;;  %8042 = vmatprep.mubr.bf16.mxu1 %v12445_v5  ;;  %v4793_v37 = vld [vmem:[%s14486_s3 + $0x228] sm:$0xff]  ;;  %v9950_v40 = vcombine.high %v4788_v34, %v4792_v35 }
 0x24c   : > { %7840 = vmatprep.subr.bf16.mxu0 %v9894_v38  ;;  %8012 = vmatprep.subr.bf16.mxu1 %v9896_v42  ;;  %v9941_v38 = vcombine.low %v4780_v25, %v4784_v26  ;;  %v9952_v41 = vcombine.high %v4789_v36, %v4793_v37  ;;  %v4796_v42 = vld [vmem:[%s14486_s3 + $0x240] sm:$0xff] }
 0x24d   : > { %v4836_v26 = vld [vmem:[%s14486_s3 + $0x380] sm:$0xff] }
 0x24e   : > { %7841 = vmatpush1.bf16.msra.mxu0 %v9893_v45  ;;  %v4801_v45 = vld [vmem:[%s14486_s3 + $0x268] sm:$0xff] }
 0x24f   : > { %8013 = vmatpush1.bf16.msra.mxu1 %v9895_v46  ;;  %7842 = vmatprep.subr.bf16.mxu0 %v9902_v47  ;;  %v9949_v46 = vcombine.low %v4788_v34, %v4792_v35  ;;  %v9951_v47 = vcombine.low %v4789_v36, %v4793_v37  ;;  %v9960_v32 = vcombine.high %v4797_v44, %v4801_v45  ;;  %v4844_v35 = vld [vmem:[%s14486_s3 + $0x3c0] sm:$0xff]  ;;  %v4845_v37 = vld [vmem:[%s14486_s3 + $0x3c8] sm:$0xff] }
 0x250   : > { %8014 = vmatprep.subr.bf16.mxu1 %v9904_v48  ;;  %v9958_v48 = vcombine.high %v4796_v42, %v4800_v43  ;;  %v4848_v36 = vld [vmem:[%s14486_s3 + $0x3e0] sm:$0xff] }
 0x252   : > { %7843 = vmatpush1.bf16.msra.mxu0 %v9901_v52  ;;  %v4809_v52 = vld [vmem:[%s14486_s3 + $0x2a8] sm:$0xff] }
 0x253   : > { %8015 = vmatpush1.bf16.msra.mxu1 %v9903_v53  ;;  %7844 = vmatprep.subr.bf16.mxu0 %v9910_v54  ;;  %v9957_v53 = vcombine.low %v4796_v42, %v4800_v43  ;;  %v9959_v54 = vcombine.low %v4797_v44, %v4801_v45  ;;  %v9968_v56 = vcombine.high %v4805_v51, %v4809_v52  ;;  %v4852_v43 = vld [vmem:[%s14486_s3 + $0x400] sm:$0xff]  ;;  %v4853_v45 = vld [vmem:[%s14486_s3 + $0x408] sm:$0xff] }
 0x254   : > { %8016 = vmatprep.subr.bf16.mxu1 %v9912_v55  ;;  %v9966_v55 = vcombine.high %v4804_v49, %v4808_v50  ;;  %v4856_v44 = vld [vmem:[%s14486_s3 + $0x420] sm:$0xff] }
 0x256   : > { %7845 = vmatpush1.bf16.msra.mxu0 %v9909_v61  ;;  %v4817_v61 = vld [vmem:[%s14486_s3 + $0x2e8] sm:$0xff] }
 0x257   : > { %8017 = vmatpush1.bf16.msra.mxu1 %v9911_v62  ;;  %7846 = vmatprep.subr.bf16.mxu0 %v9918_v63  ;;  %v9965_v62 = vcombine.low %v4804_v49, %v4808_v50  ;;  %v9967_v63 = vcombine.low %v4805_v51, %v4809_v52  ;;  %v9976_v3 = vcombine.high %v4813_v60, %v4817_v61  ;;  %v4860_v50 = vld [vmem:[%s14486_s3 + $0x440] sm:$0xff] }
 0x258   : > { %8018 = vmatprep.subr.bf16.mxu1 %v9920_v1  ;;  %v9974_v1 = vcombine.high %v4812_v57, %v4816_v58  ;;  %v4864_v51 = vld [vmem:[%s14486_s3 + $0x460] sm:$0xff]  ;;  %v10013_v52 = vcombine.low %v4852_v43, %v4856_v44 }
 0x25a   : > { %7847 = vmatpush1.bf16.msra.mxu0 %v9917_v13  ;;  %v4825_v13 = vld [vmem:[%s14486_s3 + $0x328] sm:$0xff] }
 0x25b   : > { %8019 = vmatpush1.bf16.msra.mxu1 %v9919_v14  ;;  %7848 = vmatprep.subr.bf16.mxu0 %v9926_v15  ;;  %v9973_v14 = vcombine.low %v4812_v57, %v4816_v58  ;;  %v9975_v15 = vcombine.low %v4813_v60, %v4817_v61  ;;  %v9984_v17 = vcombine.high %v4821_v11, %v4825_v13  ;;  %v4868_v57 = vld [vmem:[%s14486_s3 + $0x480] sm:$0xff]  ;;  %v4869_v61 = vld [vmem:[%s14486_s3 + $0x488] sm:$0xff] }
 0x25c   : > { %8020 = vmatprep.subr.bf16.mxu1 %v9928_v16  ;;  %v9982_v16 = vcombine.high %v4820_v6, %v4824_v9  ;;  %v4872_v58 = vld [vmem:[%s14486_s3 + $0x4a0] sm:$0xff] }
 0x25e   : > { %7849 = vmatpush1.bf16.msra.mxu0 %v9925_v21  ;;  %v4833_v21 = vld [vmem:[%s14486_s3 + $0x368] sm:$0xff] }
 0x25f   : > { %8021 = vmatpush1.bf16.msra.mxu1 %v9927_v22  ;;  %7850 = vmatprep.subr.bf16.mxu0 %v9934_v23  ;;  %v9981_v22 = vcombine.low %v4820_v6, %v4824_v9  ;;  %v9983_v23 = vcombine.low %v4821_v11, %v4825_v13  ;;  %v9992_v25 = vcombine.high %v4829_v20, %v4833_v21  ;;  %v4876_v9 = vld [vmem:[%s14486_s3 + $0x4c0] sm:$0xff]  ;;  %v4877_v13 = vld [vmem:[%s14486_s3 + $0x4c8] sm:$0xff] }
 0x260   : > { %8022 = vmatprep.subr.bf16.mxu1 %v9936_v24  ;;  %v9990_v24 = vcombine.high %v4828_v18, %v4832_v19  ;;  %v4880_v11 = vld [vmem:[%s14486_s3 + $0x4e0] sm:$0xff] }
 0x262   : > { %7851 = vmatpush1.bf16.msra.mxu0 %v9933_v29  ;;  %v4841_v29 = vld [vmem:[%s14486_s3 + $0x3a8] sm:$0xff] }
 0x263   : > { %8023 = vmatpush1.bf16.msra.mxu1 %v9935_v30  ;;  %7852 = vmatprep.subr.bf16.mxu0 %v9942_v31  ;;  %v9989_v30 = vcombine.low %v4828_v18, %v4832_v19  ;;  %v9991_v31 = vcombine.low %v4829_v20, %v4833_v21  ;;  %v10000_v34 = vcombine.high %v4837_v28, %v4841_v29  ;;  %v4884_v19 = vld [vmem:[%s14486_s3 + $0x500] sm:$0xff]  ;;  %v4885_v21 = vld [vmem:[%s14486_s3 + $0x508] sm:$0xff] }
 0x264   : > { %8024 = vmatprep.subr.bf16.mxu1 %v9944_v33  ;;  %v9998_v33 = vcombine.high %v4836_v26, %v4840_v27  ;;  %v4888_v20 = vld [vmem:[%s14486_s3 + $0x520] sm:$0xff] }
 0x266   : > { %7853 = vmatpush1.bf16.msra.mxu0 %v9941_v38  ;;  %v4849_v38 = vld [vmem:[%s14486_s3 + $0x3e8] sm:$0xff] }
 0x267   : > { %8025 = vmatpush1.bf16.msra.mxu1 %v9943_v39  ;;  %7854 = vmatprep.subr.bf16.mxu0 %v9950_v40  ;;  %v9997_v39 = vcombine.low %v4836_v26, %v4840_v27  ;;  %v9999_v40 = vcombine.low %v4837_v28, %v4841_v29  ;;  %v10008_v42 = vcombine.high %v4845_v37, %v4849_v38  ;;  %v4892_v27 = vld [vmem:[%s14486_s3 + $0x540] sm:$0xff]  ;;  %v4893_v29 = vld [vmem:[%s14486_s3 + $0x548] sm:$0xff] }
 0x268   : > { %8026 = vmatprep.subr.bf16.mxu1 %v9952_v41  ;;  %v10006_v41 = vcombine.high %v4844_v35, %v4848_v36  ;;  %v4896_v28 = vld [vmem:[%s14486_s3 + $0x560] sm:$0xff] }
 0x26a   : > { %7855 = vmatpush1.bf16.msra.mxu0 %v9949_v46  ;;  %v4857_v46 = vld [vmem:[%s14486_s3 + $0x428] sm:$0xff] }
 0x26b   : > { %8027 = vmatpush1.bf16.msra.mxu1 %v9951_v47  ;;  %7856 = vmatprep.subr.bf16.mxu0 %v9958_v48  ;;  %v10005_v47 = vcombine.low %v4844_v35, %v4848_v36  ;;  %v10007_v48 = vcombine.low %v4845_v37, %v4849_v38  ;;  %v10016_v49 = vcombine.high %v4853_v45, %v4857_v46  ;;  %v4900_v36 = vld [vmem:[%s14486_s3 + $0x580] sm:$0xff]  ;;  %v4901_v38 = vld [vmem:[%s14486_s3 + $0x588] sm:$0xff] }
 0x26c   : > { %8028 = vmatprep.subr.bf16.mxu1 %v9960_v32  ;;  %v10014_v32 = vcombine.high %v4852_v43, %v4856_v44  ;;  %v4904_v37 = vld [vmem:[%s14486_s3 + $0x5a0] sm:$0xff] }
 0x26d   : > { %v4908_v44 = vld [vmem:[%s14486_s3 + $0x5c0] sm:$0xff] }
 0x26e   : > { %7857 = vmatpush1.bf16.msra.mxu0 %v9957_v53  ;;  %v4861_v53 = vld [vmem:[%s14486_s3 + $0x448] sm:$0xff] }
 0x26f   : > { %8029 = vmatpush1.bf16.msra.mxu1 %v9959_v54  ;;  %7858 = vmatprep.subr.bf16.mxu0 %v9966_v55  ;;  %v4865_v54 = vld [vmem:[%s14486_s3 + $0x468] sm:$0xff]  ;;  %v10015_v55 = vcombine.low %v4853_v45, %v4857_v46  ;;  %v4912_v45 = vld [vmem:[%s14486_s3 + $0x5e0] sm:$0xff] }
 0x270   : > { %8030 = vmatprep.subr.bf16.mxu1 %v9968_v56  ;;  %v10022_v56 = vcombine.high %v4860_v50, %v4864_v51  ;;  %v10024_v60 = vcombine.high %v4861_v53, %v4865_v54  ;;  %v4909_v46 = vld [vmem:[%s14486_s3 + $0x5c8] sm:$0xff] }
 0x272   : > { %7859 = vmatpush1.bf16.msra.mxu0 %v9965_v62  ;;  %v4873_v62 = vld [vmem:[%s14486_s3 + $0x4a8] sm:$0xff] }
 0x273   : > { %8031 = vmatpush1.bf16.msra.mxu1 %v9967_v63  ;;  %7860 = vmatprep.subr.bf16.mxu0 %v9974_v1  ;;  %v10021_v63 = vcombine.low %v4860_v50, %v4864_v51  ;;  %v10023_v1 = vcombine.low %v4861_v53, %v4865_v54  ;;  %v10032_v6 = vcombine.high %v4869_v61, %v4873_v62  ;;  %v4916_v51 = vld [vmem:[%s14486_s3 + $0x600] sm:$0xff]  ;;  %v4917_v53 = vld [vmem:[%s14486_s3 + $0x608] sm:$0xff] }
 0x274   : > { %8032 = vmatprep.subr.bf16.mxu1 %v9976_v3  ;;  %v10030_v3 = vcombine.high %v4868_v57, %v4872_v58  ;;  %v4921_v54 = vld [vmem:[%s14486_s3 + $0x628] sm:$0xff] }
 0x276   : > { %7861 = vmatpush1.bf16.msra.mxu0 %v9973_v14  ;;  %v4881_v14 = vld [vmem:[%s14486_s3 + $0x4e8] sm:$0xff] }
 0x277   : > { %8033 = vmatpush1.bf16.msra.mxu1 %v9975_v15  ;;  %7862 = vmatprep.subr.bf16.mxu0 %v9982_v16  ;;  %v10029_v15 = vcombine.low %v4868_v57, %v4872_v58  ;;  %v10031_v16 = vcombine.low %v4869_v61, %v4873_v62  ;;  %v10040_v18 = vcombine.high %v4877_v13, %v4881_v14  ;;  %v4928_v61 = vld [vmem:[%s14486_s3 + $0x660] sm:$0xff]  ;;  %v4925_v62 = vld [vmem:[%s14486_s3 + $0x648] sm:$0xff] }
 0x278   : > { %8034 = vmatprep.subr.bf16.mxu1 %v9984_v17  ;;  %v10038_v17 = vcombine.high %v4876_v9, %v4880_v11  ;;  %v10080_v58 = vcombine.high %v4917_v53, %v4921_v54 }
 0x27a   : > { %7863 = vmatpush1.bf16.msra.mxu0 %v9981_v22  ;;  %v4889_v22 = vld [vmem:[%s14486_s3 + $0x528] sm:$0xff] }
 0x27b   : > { %8035 = vmatpush1.bf16.msra.mxu1 %v9983_v23  ;;  %7864 = vmatprep.subr.bf16.mxu0 %v9990_v24  ;;  %v10037_v23 = vcombine.low %v4876_v9, %v4880_v11  ;;  %v10039_v24 = vcombine.low %v4877_v13, %v4881_v14  ;;  %v10048_v26 = vcombine.high %v4885_v21, %v4889_v22  ;;  %v4932_v11 = vld [vmem:[%s14486_s3 + $0x680] sm:$0xff]  ;;  %v4933_v14 = vld [vmem:[%s14486_s3 + $0x688] sm:$0xff] }
 0x27c   : > { %8036 = vmatprep.subr.bf16.mxu1 %v9992_v25  ;;  %v10046_v25 = vcombine.high %v4884_v19, %v4888_v20  ;;  %v4936_v13 = vld [vmem:[%s14486_s3 + $0x6a0] sm:$0xff] }
 0x27e   : > { %7865 = vmatpush1.bf16.msra.mxu0 %v9989_v30  ;;  %v4897_v30 = vld [vmem:[%s14486_s3 + $0x568] sm:$0xff] }
 0x27f   : > { %8037 = vmatpush1.bf16.msra.mxu1 %v9991_v31  ;;  %7866 = vmatprep.subr.bf16.mxu0 %v9998_v33  ;;  %v10045_v31 = vcombine.low %v4884_v19, %v4888_v20  ;;  %v10047_v33 = vcombine.low %v4885_v21, %v4889_v22  ;;  %v10056_v35 = vcombine.high %v4893_v29, %v4897_v30  ;;  %v4940_v20 = vld [vmem:[%s14486_s3 + $0x6c0] sm:$0xff]  ;;  %v4941_v22 = vld [vmem:[%s14486_s3 + $0x6c8] sm:$0xff] }
 0x280   : > { %8038 = vmatprep.subr.bf16.mxu1 %v10000_v34  ;;  %v10054_v34 = vcombine.high %v4892_v27, %v4896_v28  ;;  %v4944_v21 = vld [vmem:[%s14486_s3 + $0x6e0] sm:$0xff] }
 0x282   : > { %7867 = vmatpush1.bf16.msra.mxu0 %v9997_v39  ;;  %v4905_v39 = vld [vmem:[%s14486_s3 + $0x5a8] sm:$0xff] }
 0x283   : > { %8039 = vmatpush1.bf16.msra.mxu1 %v9999_v40  ;;  %7868 = vmatprep.subr.bf16.mxu0 %v10006_v41  ;;  %v10053_v40 = vcombine.low %v4892_v27, %v4896_v28  ;;  %v10055_v41 = vcombine.low %v4893_v29, %v4897_v30  ;;  %v10064_v43 = vcombine.high %v4901_v38, %v4905_v39  ;;  %v4948_v28 = vld [vmem:[%s14486_s3 + $0x700] sm:$0xff]  ;;  %v4949_v30 = vld [vmem:[%s14486_s3 + $0x708] sm:$0xff] }
 0x284   : > { %8040 = vmatprep.subr.bf16.mxu1 %v10008_v42  ;;  %v10062_v42 = vcombine.high %v4900_v36, %v4904_v37  ;;  %v4952_v29 = vld [vmem:[%s14486_s3 + $0x720] sm:$0xff] }
 0x286   : > { %7869 = vmatpush1.bf16.msra.mxu0 %v10005_v47  ;;  %v4913_v47 = vld [vmem:[%s14486_s3 + $0x5e8] sm:$0xff] }
 0x287   : > { %8041 = vmatpush1.bf16.msra.mxu1 %v10007_v48  ;;  %7881 = vmatprep.subr.bf16.mxu0 %v10014_v32  ;;  %v10061_v48 = vcombine.low %v4900_v36, %v4904_v37  ;;  %v10063_v32 = vcombine.low %v4901_v38, %v4905_v39  ;;  %v10072_v50 = vcombine.high %v4909_v46, %v4913_v47  ;;  %v4956_v37 = vld [vmem:[%s14486_s3 + $0x740] sm:$0xff]  ;;  %v4957_v39 = vld [vmem:[%s14486_s3 + $0x748] sm:$0xff] }
 0x288   : > { %8053 = vmatprep.subr.bf16.mxu1 %v10016_v49  ;;  %v10070_v49 = vcombine.high %v4908_v44, %v4912_v45  ;;  %v4960_v38 = vld [vmem:[%s14486_s3 + $0x760] sm:$0xff] }
 0x289   : > { %7871 = vmatmul.mubr.bf16.vlgmr.msra.gmra.mrb[8].mxu0 %v12441_v0 }
 0x28a   : > { %8043 = vmatmul.mubr.bf16.vlgmr.msra.gmra.mrb[8].mxu1 %v12441_v0  ;;  %7882 = vmatpush1.bf16.msra.mxu0 %v10013_v52  ;;  %v4920_v52 = vld [vmem:[%s14486_s3 + $0x620] sm:$0xff] }
 0x28b   : > { %7913 = vmatprep.mubr.bf16.mxu0 %v12453_v12  ;;  %8054 = vmatpush1.bf16.msra.mxu1 %v10015_v55  ;;  %v10069_v55 = vcombine.low %v4908_v44, %v4912_v45  ;;  %v10078_v57 = vcombine.high %v4916_v51, %v4920_v52  ;;  %v4964_v45 = vld [vmem:[%s14486_s3 + $0x780] sm:$0xff] }
 0x28c   : > { %8085 = vmatprep.mubr.bf16.mxu1 %v12453_v12  ;;  %7883 = vmatprep.subr.bf16.mxu0 %v10022_v56  ;;  %v10071_v56 = vcombine.low %v4909_v46, %v4913_v47  ;;  %v4968_v46 = vld [vmem:[%s14486_s3 + $0x7a0] sm:$0xff]  ;;  %v4965_v47 = vld [vmem:[%s14486_s3 + $0x788] sm:$0xff] }
 0x28d   : > { %8055 = vmatprep.subr.bf16.mxu1 %v10024_v60  ;;  %v4924_v60 = vld [vmem:[%s14486_s3 + $0x640] sm:$0xff] }
 0x28e   : > { %7884 = vmatpush1.bf16.msra.mxu0 %v10021_v63  ;;  %v4929_v63 = vld [vmem:[%s14486_s3 + $0x668] sm:$0xff] }
 0x28f   : > { %8056 = vmatpush1.bf16.msra.mxu1 %v10023_v1  ;;  %7885 = vmatprep.subr.bf16.mxu0 %v10030_v3  ;;  %v10077_v1 = vcombine.low %v4916_v51, %v4920_v52  ;;  %v10079_v3 = vcombine.low %v4917_v53, %v4921_v54  ;;  %v10088_v9 = vcombine.high %v4925_v62, %v4929_v63  ;;  %v4972_v52 = vld [vmem:[%s14486_s3 + $0x7c0] sm:$0xff]  ;;  %v4973_v54 = vld [vmem:[%s14486_s3 + $0x7c8] sm:$0xff] }
 0x290   : > { %8057 = vmatprep.subr.bf16.mxu1 %v10032_v6  ;;  %v10086_v6 = vcombine.high %v4924_v60, %v4928_v61  ;;  %v4976_v53 = vld [vmem:[%s14486_s3 + $0x7e0] sm:$0xff] }
 0x292   : > { %7886 = vmatpush1.bf16.msra.mxu0 %v10029_v15  ;;  %v4937_v15 = vld [vmem:[%s14486_s3 + $0x6a8] sm:$0xff] }
 0x293   : > { %8058 = vmatpush1.bf16.msra.mxu1 %v10031_v16  ;;  %7887 = vmatprep.subr.bf16.mxu0 %v10038_v17  ;;  %v10085_v16 = vcombine.low %v4924_v60, %v4928_v61  ;;  %v10087_v17 = vcombine.low %v4925_v62, %v4929_v63  ;;  %v10096_v19 = vcombine.high %v4933_v14, %v4937_v15  ;;  %v4980_v61 = vld [vmem:[%s14486_s3 + $0x800] sm:$0xff]  ;;  %v4981_v63 = vld [vmem:[%s14486_s3 + $0x808] sm:$0xff] }
 0x294   : > { %8059 = vmatprep.subr.bf16.mxu1 %v10040_v18  ;;  %v10094_v18 = vcombine.high %v4932_v11, %v4936_v13  ;;  %v4984_v62 = vld [vmem:[%s14486_s3 + $0x820] sm:$0xff] }
 0x296   : > { %7888 = vmatpush1.bf16.msra.mxu0 %v10037_v23  ;;  %v4945_v23 = vld [vmem:[%s14486_s3 + $0x6e8] sm:$0xff] }
 0x297   : > { %8060 = vmatpush1.bf16.msra.mxu1 %v10039_v24  ;;  %7889 = vmatprep.subr.bf16.mxu0 %v10046_v25  ;;  %v10093_v24 = vcombine.low %v4932_v11, %v4936_v13  ;;  %v10095_v25 = vcombine.low %v4933_v14, %v4937_v15  ;;  %v10104_v27 = vcombine.high %v4941_v22, %v4945_v23  ;;  %v4988_v13 = vld [vmem:[%s14486_s3 + $0x840] sm:$0xff]  ;;  %v4989_v15 = vld [vmem:[%s14486_s3 + $0x848] sm:$0xff] }
 0x298   : > { %8061 = vmatprep.subr.bf16.mxu1 %v10048_v26  ;;  %v10102_v26 = vcombine.high %v4940_v20, %v4944_v21  ;;  %v4992_v14 = vld [vmem:[%s14486_s3 + $0x860] sm:$0xff] }
 0x29a   : > { %7890 = vmatpush1.bf16.msra.mxu0 %v10045_v31  ;;  %v4953_v31 = vld [vmem:[%s14486_s3 + $0x728] sm:$0xff] }
 0x29b   : > { %8062 = vmatpush1.bf16.msra.mxu1 %v10047_v33  ;;  %7891 = vmatprep.subr.bf16.mxu0 %v10054_v34  ;;  %v10101_v33 = vcombine.low %v4940_v20, %v4944_v21  ;;  %v10103_v34 = vcombine.low %v4941_v22, %v4945_v23  ;;  %v10112_v36 = vcombine.high %v4949_v30, %v4953_v31  ;;  %v4996_v21 = vld [vmem:[%s14486_s3 + $0x880] sm:$0xff]  ;;  %v4997_v23 = vld [vmem:[%s14486_s3 + $0x888] sm:$0xff] }
 0x29c   : > { %8063 = vmatprep.subr.bf16.mxu1 %v10056_v35  ;;  %v10110_v35 = vcombine.high %v4948_v28, %v4952_v29  ;;  %v5000_v22 = vld [vmem:[%s14486_s3 + $0x8a0] sm:$0xff] }
 0x29e   : > { %7892 = vmatpush1.bf16.msra.mxu0 %v10053_v40  ;;  %v4961_v40 = vld [vmem:[%s14486_s3 + $0x768] sm:$0xff] }
 0x29f   : > { %8064 = vmatpush1.bf16.msra.mxu1 %v10055_v41  ;;  %7893 = vmatprep.subr.bf16.mxu0 %v10062_v42  ;;  %v10109_v41 = vcombine.low %v4948_v28, %v4952_v29  ;;  %v10111_v42 = vcombine.low %v4949_v30, %v4953_v31  ;;  %v10120_v44 = vcombine.high %v4957_v39, %v4961_v40  ;;  %v5004_v29 = vld [vmem:[%s14486_s3 + $0x8c0] sm:$0xff]  ;;  %v5005_v31 = vld [vmem:[%s14486_s3 + $0x8c8] sm:$0xff] }
 0x2a0   : > { %8065 = vmatprep.subr.bf16.mxu1 %v10064_v43  ;;  %v10118_v43 = vcombine.high %v4956_v37, %v4960_v38  ;;  %v5008_v30 = vld [vmem:[%s14486_s3 + $0x8e0] sm:$0xff] }
 0x2a2   : > { %7894 = vmatpush1.bf16.msra.mxu0 %v10061_v48  ;;  %v4969_v48 = vld [vmem:[%s14486_s3 + $0x7a8] sm:$0xff] }
 0x2a3   : > { %8066 = vmatpush1.bf16.msra.mxu1 %v10063_v32  ;;  %7895 = vmatprep.subr.bf16.mxu0 %v10070_v49  ;;  %v10117_v32 = vcombine.low %v4956_v37, %v4960_v38  ;;  %v10119_v49 = vcombine.low %v4957_v39, %v4961_v40  ;;  %v10128_v51 = vcombine.high %v4965_v47, %v4969_v48  ;;  %v5012_v38 = vld [vmem:[%s14486_s3 + $0x900] sm:$0xff]  ;;  %v5013_v40 = vld [vmem:[%s14486_s3 + $0x908] sm:$0xff] }
 0x2a4   : > { %8067 = vmatprep.subr.bf16.mxu1 %v10072_v50  ;;  %v10126_v50 = vcombine.high %v4964_v45, %v4968_v46  ;;  %v5016_v39 = vld [vmem:[%s14486_s3 + $0x920] sm:$0xff] }
 0x2a6   : > { %7896 = vmatpush1.bf16.msra.mxu0 %v10069_v55  ;;  %v4977_v55 = vld [vmem:[%s14486_s3 + $0x7e8] sm:$0xff] }
 0x2a7   : > { %8068 = vmatpush1.bf16.msra.mxu1 %v10071_v56  ;;  %7897 = vmatprep.subr.bf16.mxu0 %v10078_v57  ;;  %v10125_v56 = vcombine.low %v4964_v45, %v4968_v46  ;;  %v10127_v57 = vcombine.low %v4965_v47, %v4969_v48  ;;  %v10136_v60 = vcombine.high %v4973_v54, %v4977_v55  ;;  %v5020_v46 = vld [vmem:[%s14486_s3 + $0x940] sm:$0xff]  ;;  %v5021_v48 = vld [vmem:[%s14486_s3 + $0x948] sm:$0xff] }
 0x2a8   : > { %8069 = vmatprep.subr.bf16.mxu1 %v10080_v58  ;;  %v10134_v58 = vcombine.high %v4972_v52, %v4976_v53  ;;  %v5024_v47 = vld [vmem:[%s14486_s3 + $0x960] sm:$0xff] }
 0x2aa   : > { %7898 = vmatpush1.bf16.msra.mxu0 %v10077_v1  ;;  %v4985_v1 = vld [vmem:[%s14486_s3 + $0x828] sm:$0xff] }
 0x2ab   : > { %8070 = vmatpush1.bf16.msra.mxu1 %v10079_v3  ;;  %7899 = vmatprep.subr.bf16.mxu0 %v10086_v6  ;;  %v10133_v3 = vcombine.low %v4972_v52, %v4976_v53  ;;  %v10135_v6 = vcombine.low %v4973_v54, %v4977_v55  ;;  %v10144_v11 = vcombine.high %v4981_v63, %v4985_v1  ;;  %v5028_v53 = vld [vmem:[%s14486_s3 + $0x980] sm:$0xff]  ;;  %v5029_v55 = vld [vmem:[%s14486_s3 + $0x988] sm:$0xff] }
 0x2ac   : > { %8071 = vmatprep.subr.bf16.mxu1 %v10088_v9  ;;  %v10142_v9 = vcombine.high %v4980_v61, %v4984_v62  ;;  %v5032_v54 = vld [vmem:[%s14486_s3 + $0x9a0] sm:$0xff] }
 0x2ae   : > { %7900 = vmatpush1.bf16.msra.mxu0 %v10085_v16  ;;  %v4993_v16 = vld [vmem:[%s14486_s3 + $0x868] sm:$0xff] }
 0x2af   : > { %8072 = vmatpush1.bf16.msra.mxu1 %v10087_v17  ;;  %7901 = vmatprep.subr.bf16.mxu0 %v10094_v18  ;;  %v10141_v17 = vcombine.low %v4980_v61, %v4984_v62  ;;  %v10143_v18 = vcombine.low %v4981_v63, %v4985_v1  ;;  %v10152_v20 = vcombine.high %v4989_v15, %v4993_v16  ;;  %v5036_v62 = vld [vmem:[%s14486_s3 + $0x9c0] sm:$0xff]  ;;  %v5037_v1 = vld [vmem:[%s14486_s3 + $0x9c8] sm:$0xff] }
 0x2b0   : > { %8073 = vmatprep.subr.bf16.mxu1 %v10096_v19  ;;  %v10150_v19 = vcombine.high %v4988_v13, %v4992_v14  ;;  %v5040_v63 = vld [vmem:[%s14486_s3 + $0x9e0] sm:$0xff] }
 0x2b2   : > { %7902 = vmatpush1.bf16.msra.mxu0 %v10093_v24  ;;  %v5001_v24 = vld [vmem:[%s14486_s3 + $0x8a8] sm:$0xff] }
 0x2b3   : > { %8074 = vmatpush1.bf16.msra.mxu1 %v10095_v25  ;;  %7903 = vmatprep.subr.bf16.mxu0 %v10102_v26  ;;  %v10149_v25 = vcombine.low %v4988_v13, %v4992_v14  ;;  %v10151_v26 = vcombine.low %v4989_v15, %v4993_v16  ;;  %v10160_v28 = vcombine.high %v4997_v23, %v5001_v24  ;;  %v5044_v14 = vld [vmem:[%s14486_s3 + $0xa00] sm:$0xff]  ;;  %v5045_v16 = vld [vmem:[%s14486_s3 + $0xa08] sm:$0xff] }
 0x2b4   : > { %8075 = vmatprep.subr.bf16.mxu1 %v10104_v27  ;;  %v10158_v27 = vcombine.high %v4996_v21, %v5000_v22  ;;  %v5048_v15 = vld [vmem:[%s14486_s3 + $0xa20] sm:$0xff] }
 0x2b6   : > { %7904 = vmatpush1.bf16.msra.mxu0 %v10101_v33  ;;  %v5009_v33 = vld [vmem:[%s14486_s3 + $0x8e8] sm:$0xff] }
 0x2b7   : > { %8076 = vmatpush1.bf16.msra.mxu1 %v10103_v34  ;;  %7905 = vmatprep.subr.bf16.mxu0 %v10110_v35  ;;  %v10157_v34 = vcombine.low %v4996_v21, %v5000_v22  ;;  %v10159_v35 = vcombine.low %v4997_v23, %v5001_v24  ;;  %v10168_v37 = vcombine.high %v5005_v31, %v5009_v33  ;;  %v5052_v22 = vld [vmem:[%s14486_s3 + $0xa40] sm:$0xff]  ;;  %v5053_v24 = vld [vmem:[%s14486_s3 + $0xa48] sm:$0xff] }
 0x2b8   : > { %8077 = vmatprep.subr.bf16.mxu1 %v10112_v36  ;;  %v10166_v36 = vcombine.high %v5004_v29, %v5008_v30  ;;  %v5056_v23 = vld [vmem:[%s14486_s3 + $0xa60] sm:$0xff] }
 0x2ba   : > { %7906 = vmatpush1.bf16.msra.mxu0 %v10109_v41  ;;  %v5017_v41 = vld [vmem:[%s14486_s3 + $0x928] sm:$0xff] }
 0x2bb   : > { %8078 = vmatpush1.bf16.msra.mxu1 %v10111_v42  ;;  %7907 = vmatprep.subr.bf16.mxu0 %v10118_v43  ;;  %v10165_v42 = vcombine.low %v5004_v29, %v5008_v30  ;;  %v10167_v43 = vcombine.low %v5005_v31, %v5009_v33  ;;  %v10176_v45 = vcombine.high %v5013_v40, %v5017_v41  ;;  %v5060_v30 = vld [vmem:[%s14486_s3 + $0xa80] sm:$0xff]  ;;  %v5061_v33 = vld [vmem:[%s14486_s3 + $0xa88] sm:$0xff] }
 0x2bc   : > { %8079 = vmatprep.subr.bf16.mxu1 %v10120_v44  ;;  %v10174_v44 = vcombine.high %v5012_v38, %v5016_v39  ;;  %v5064_v31 = vld [vmem:[%s14486_s3 + $0xaa0] sm:$0xff] }
 0x2be   : > { %7908 = vmatpush1.bf16.msra.mxu0 %v10117_v32  ;;  %v5025_v32 = vld [vmem:[%s14486_s3 + $0x968] sm:$0xff] }
 0x2bf   : > { %8080 = vmatpush1.bf16.msra.mxu1 %v10119_v49  ;;  %7909 = vmatprep.subr.bf16.mxu0 %v10126_v50  ;;  %v10173_v49 = vcombine.low %v5012_v38, %v5016_v39  ;;  %v10175_v50 = vcombine.low %v5013_v40, %v5017_v41  ;;  %v10184_v52 = vcombine.high %v5021_v48, %v5025_v32  ;;  %v5068_v39 = vld [vmem:[%s14486_s3 + $0xac0] sm:$0xff]  ;;  %v5069_v41 = vld [vmem:[%s14486_s3 + $0xac8] sm:$0xff] }
 0x2c0   : > { %8081 = vmatprep.subr.bf16.mxu1 %v10128_v51  ;;  %v10182_v51 = vcombine.high %v5020_v46, %v5024_v47  ;;  %v5072_v40 = vld [vmem:[%s14486_s3 + $0xae0] sm:$0xff] }
 0x2c2   : > { %7910 = vmatpush1.bf16.msra.mxu0 %v10125_v56  ;;  %v5033_v56 = vld [vmem:[%s14486_s3 + $0x9a8] sm:$0xff] }
 0x2c3   : > { %8082 = vmatpush1.bf16.msra.mxu1 %v10127_v57  ;;  %7911 = vmatprep.subr.bf16.mxu0 %v10134_v58  ;;  %v10181_v57 = vcombine.low %v5020_v46, %v5024_v47  ;;  %v10183_v58 = vcombine.low %v5021_v48, %v5025_v32  ;;  %v10192_v61 = vcombine.high %v5029_v55, %v5033_v56  ;;  %v5076_v47 = vld [vmem:[%s14486_s3 + $0xb00] sm:$0xff]  ;;  %v5077_v32 = vld [vmem:[%s14486_s3 + $0xb08] sm:$0xff] }
 0x2c4   : > { %8083 = vmatprep.subr.bf16.mxu1 %v10136_v60  ;;  %v10190_v60 = vcombine.high %v5028_v53, %v5032_v54  ;;  %v5080_v48 = vld [vmem:[%s14486_s3 + $0xb20] sm:$0xff] }
 0x2c6   : > { %7912 = vmatpush1.bf16.msra.mxu0 %v10133_v3  ;;  %v5041_v3 = vld [vmem:[%s14486_s3 + $0x9e8] sm:$0xff] }
 0x2c7   : > { %8084 = vmatpush1.bf16.msra.mxu1 %v10135_v6  ;;  %7924 = vmatprep.subr.bf16.mxu0 %v10142_v9  ;;  %v10189_v6 = vcombine.low %v5028_v53, %v5032_v54  ;;  %v10191_v9 = vcombine.low %v5029_v55, %v5033_v56  ;;  %v10200_v13 = vcombine.high %v5037_v1, %v5041_v3  ;;  %v5084_v54 = vld [vmem:[%s14486_s3 + $0xb40] sm:$0xff]  ;;  %v5085_v56 = vld [vmem:[%s14486_s3 + $0xb48] sm:$0xff] }
 0x2c8   : > { %8096 = vmatprep.subr.bf16.mxu1 %v10144_v11  ;;  %v10198_v11 = vcombine.high %v5036_v62, %v5040_v63  ;;  %v5088_v55 = vld [vmem:[%s14486_s3 + $0xb60] sm:$0xff] }
 0x2c9   : > { %7914 = vmatmul.mubr.bf16.vlgmr.msra.gmra.mrb[8].mxu0 %v12443_v4 }
 0x2ca   : > { %8086 = vmatmul.mubr.bf16.vlgmr.msra.gmra.mrb[8].mxu1 %v12443_v4  ;;  %7925 = vmatpush1.bf16.msra.mxu0 %v10141_v17  ;;  %v5049_v17 = vld [vmem:[%s14486_s3 + $0xa28] sm:$0xff] }
 0x2cb   : > { %8097 = vmatpush1.bf16.msra.mxu1 %v10143_v18  ;;  %7926 = vmatprep.subr.bf16.mxu0 %v10150_v19  ;;  %v10197_v18 = vcombine.low %v5036_v62, %v5040_v63  ;;  %v10199_v19 = vcombine.low %v5037_v1, %v5041_v3  ;;  %v10208_v21 = vcombine.high %v5045_v16, %v5049_v17  ;;  %v5092_v63 = vld [vmem:[%s14486_s3 + $0xb80] sm:$0xff]  ;;  %v5093_v3 = vld [vmem:[%s14486_s3 + $0xb88] sm:$0xff] }
 0x2cc   : > { %8098 = vmatprep.subr.bf16.mxu1 %v10152_v20  ;;  %v10206_v20 = vcombine.high %v5044_v14, %v5048_v15  ;;  %v5096_v1 = vld [vmem:[%s14486_s3 + $0xba0] sm:$0xff] }
 0x2ce   : > { %7927 = vmatpush1.bf16.msra.mxu0 %v10149_v25  ;;  %v5057_v25 = vld [vmem:[%s14486_s3 + $0xa68] sm:$0xff] }
 0x2cf   : > { %8099 = vmatpush1.bf16.msra.mxu1 %v10151_v26  ;;  %7928 = vmatprep.subr.bf16.mxu0 %v10158_v27  ;;  %v10205_v26 = vcombine.low %v5044_v14, %v5048_v15  ;;  %v10207_v27 = vcombine.low %v5045_v16, %v5049_v17  ;;  %v10216_v29 = vcombine.high %v5053_v24, %v5057_v25  ;;  %v5100_v15 = vld [vmem:[%s14486_s3 + $0xbc0] sm:$0xff]  ;;  %v5101_v17 = vld [vmem:[%s14486_s3 + $0xbc8] sm:$0xff] }
 0x2d0   : > { %8100 = vmatprep.subr.bf16.mxu1 %v10160_v28  ;;  %v10214_v28 = vcombine.high %v5052_v22, %v5056_v23  ;;  %v5104_v16 = vld [vmem:[%s14486_s3 + $0xbe0] sm:$0xff] }
 0x2d2   : > { %7929 = vmatpush1.bf16.msra.mxu0 %v10157_v34  ;;  %v5065_v34 = vld [vmem:[%s14486_s3 + $0xaa8] sm:$0xff] }
 0x2d3   : > { %8101 = vmatpush1.bf16.msra.mxu1 %v10159_v35  ;;  %7930 = vmatprep.subr.bf16.mxu0 %v10166_v36  ;;  %v10213_v35 = vcombine.low %v5052_v22, %v5056_v23  ;;  %v10215_v36 = vcombine.low %v5053_v24, %v5057_v25  ;;  %v10224_v38 = vcombine.high %v5061_v33, %v5065_v34  ;;  %v13220_v23 = vld [vmem:[%s14486_s3 + $0xc00] sm:$0xff]  ;;  %v13230_v25 = vld [vmem:[%s14486_s3 + $0xc08] sm:$0xff] }
 0x2d4   : > { %8102 = vmatprep.subr.bf16.mxu1 %v10168_v37  ;;  %v10222_v37 = vcombine.high %v5060_v30, %v5064_v31  ;;  %v13225_v24 = vld [vmem:[%s14486_s3 + $0xc20] sm:$0xff] }
 0x2d6   : > { %7931 = vmatpush1.bf16.msra.mxu0 %v10165_v42  ;;  %v5073_v42 = vld [vmem:[%s14486_s3 + $0xae8] sm:$0xff] }
 0x2d7   : > { %8103 = vmatpush1.bf16.msra.mxu1 %v10167_v43  ;;  %7932 = vmatprep.subr.bf16.mxu0 %v10174_v44  ;;  %v10221_v43 = vcombine.low %v5060_v30, %v5064_v31  ;;  %v10223_v44 = vcombine.low %v5061_v33, %v5065_v34  ;;  %v10232_v46 = vcombine.high %v5069_v41, %v5073_v42  ;;  %v892_v31 = vsub.s32 4, %v12376_v59 }
 0x2d8   : > { %8104 = vmatprep.subr.bf16.mxu1 %v10176_v45  ;;  %v10230_v45 = vcombine.high %v5068_v39, %v5072_v40  ;;  %v900_v33 = vsub.s32 6, %v12376_v59  ;;  %v896_v34 = vsub.s32 5, %v12376_v59 }
 0x2da   : > { %7933 = vmatpush1.bf16.msra.mxu0 %v10173_v49  ;;  %v5081_v49 = vld [vmem:[%s14486_s3 + $0xb28] sm:$0xff] }
 0x2db   : > { %8105 = vmatpush1.bf16.msra.mxu1 %v10175_v50  ;;  %7934 = vmatprep.subr.bf16.mxu0 %v10182_v51  ;;  %v10229_v50 = vcombine.low %v5068_v39, %v5072_v40  ;;  %v10231_v51 = vcombine.low %v5069_v41, %v5073_v42  ;;  %v10240_v53 = vcombine.high %v5077_v32, %v5081_v49 }
 0x2dc   : > { %8106 = vmatprep.subr.bf16.mxu1 %v10184_v52  ;;  %v10238_v52 = vcombine.high %v5076_v47, %v5080_v48 }
 0x2de   : > { %7935 = vmatpush1.bf16.msra.mxu0 %v10181_v57  ;;  %v5089_v57 = vld [vmem:[%s14486_s3 + $0xb68] sm:$0xff] }
 0x2df   : > { %8107 = vmatpush1.bf16.msra.mxu1 %v10183_v58  ;;  %7936 = vmatprep.subr.bf16.mxu0 %v10190_v60  ;;  %v10237_v58 = vcombine.low %v5076_v47, %v5080_v48  ;;  %v10239_v60 = vcombine.low %v5077_v32, %v5081_v49  ;;  %v10248_v62 = vcombine.high %v5085_v56, %v5089_v57 }
 0x2e0   : > { %8108 = vmatprep.subr.bf16.mxu1 %v10192_v61  ;;  %v10246_v61 = vcombine.high %v5084_v54, %v5088_v55 }
 0x2e2   : > { %7937 = vmatpush1.bf16.msra.mxu0 %v10189_v6  ;;  %v5097_v6 = vld [vmem:[%s14486_s3 + $0xba8] sm:$0xff] }
 0x2e3   : > { %8109 = vmatpush1.bf16.msra.mxu1 %v10191_v9  ;;  %7938 = vmatprep.subr.bf16.mxu0 %v10198_v11  ;;  %v10245_v9 = vcombine.low %v5084_v54, %v5088_v55  ;;  %v10247_v11 = vcombine.low %v5085_v56, %v5089_v57  ;;  %v10256_v14 = vcombine.high %v5093_v3, %v5097_v6 }
 0x2e4   : > { %8110 = vmatprep.subr.bf16.mxu1 %v10200_v13  ;;  %v10254_v13 = vcombine.high %v5092_v63, %v5096_v1 }
 0x2e6   : > { %7939 = vmatpush1.bf16.msra.mxu0 %v10197_v18  ;;  %v5105_v18 = vld [vmem:[%s14486_s3 + $0xbe8] sm:$0xff] }
 0x2e7   : > { %8111 = vmatpush1.bf16.msra.mxu1 %v10199_v19  ;;  %7940 = vmatprep.subr.bf16.mxu0 %v10206_v20  ;;  %v10253_v19 = vcombine.low %v5092_v63, %v5096_v1  ;;  %v10255_v20 = vcombine.low %v5093_v3, %v5097_v6  ;;  %v10264_v22 = vcombine.high %v5101_v17, %v5105_v18  ;;  %v5116_v63 = vld [vmem:[%s14486_s3 + $0xc40] sm:$0xff] }
 0x2e8   : > { %8112 = vmatprep.subr.bf16.mxu1 %v10208_v21  ;;  %v10262_v21 = vcombine.high %v5100_v15, %v5104_v16 }
 0x2ea   : > { %7941 = vmatpush1.bf16.msra.mxu0 %v10205_v26  ;;  %v13235_v26 = vld [vmem:[%s14486_s3 + $0xc28] sm:$0xff] }
 0x2eb   : > { %8113 = vmatpush1.bf16.msra.mxu1 %v10207_v27  ;;  %7942 = vmatprep.subr.bf16.mxu0 %v10214_v28  ;;  %v10261_v27 = vcombine.low %v5100_v15, %v5104_v16  ;;  %v10263_v28 = vcombine.low %v5101_v17, %v5105_v18  ;;  %v10272_v30 = vcombine.high %v13230_v25, %v13235_v26 }
 0x2ec   : > { %8114 = vmatprep.subr.bf16.mxu1 %v10216_v29  ;;  %v10270_v29 = vcombine.high %v13220_v23, %v13225_v24  ;;  %v10269_v16 = vcombine.low %v13220_v23, %v13225_v24  ;;  %v10271_v17 = vcombine.low %v13230_v25, %v13235_v26  ;;  %v5125_v23 = vld [vmem:[%s14486_s3 + $0xc88] sm:$0xff] }
 0x2ed   : > { %v5129_v24 = vld [vmem:[%s14486_s3 + $0xca8] sm:$0xff] }
 0x2ee   : > { %7943 = vmatpush1.bf16.msra.mxu0 %v10213_v35  ;;  %v904_v35 = vsub.s32 7, %v12376_v59 }
 0x2ef   : > { %8115 = vmatpush1.bf16.msra.mxu1 %v10215_v36  ;;  %7944 = vmatprep.subr.bf16.mxu0 %v10222_v37  ;;  %v10792_v36 = vld [vmem:[%s14485_s2] sm:$0xff] }
 0x2f0   : > { %8116 = vmatprep.subr.bf16.mxu1 %v10224_v38  ;;  %v893_v37 = vrot.slane %v10792_v36, %v892_v31  ;;  %v901_v38 = vrot.slane %v10792_v36, %v900_v33  ;;  %v897_v39 = vrot.slane %v10792_v36, %v896_v34  ;;  %v905_v40 = vrot.slane %v10792_v36, %v904_v35  ;;  %v5133_v36 = vld [vmem:[%s14486_s3 + $0xcc8] sm:$0xff] }
 0x2f2   : > { %7945 = vmatpush1.bf16.msra.mxu0 %v10221_v43 }
 0x2f3   : > { %8117 = vmatpush1.bf16.msra.mxu1 %v10223_v44  ;;  %7946 = vmatprep.subr.bf16.mxu0 %v10230_v45 }
 0x2f4   : > { %8118 = vmatprep.subr.bf16.mxu1 %v10232_v46 }
 0x2f6   : > { %7947 = vmatpush1.bf16.msra.mxu0 %v10229_v50 }
 0x2f7   : > { %8119 = vmatpush1.bf16.msra.mxu1 %v10231_v51  ;;  %7948 = vmatprep.subr.bf16.mxu0 %v10238_v52 }
 0x2f8   : > { %8120 = vmatprep.subr.bf16.mxu1 %v10240_v53 }
 0x2fa   : > { %7949 = vmatpush1.bf16.msra.mxu0 %v10237_v58 }
 0x2fb   : > { %8121 = vmatpush1.bf16.msra.mxu1 %v10239_v60  ;;  %7950 = vmatprep.subr.bf16.mxu0 %v10246_v61 }
 0x2fc   : > { %8122 = vmatprep.subr.bf16.mxu1 %v10248_v62 }
 0x2fe   : > { %7951 = vmatpush1.bf16.msra.mxu0 %v10245_v9  ;;  %v5120_v9 = vld [vmem:[%s14486_s3 + $0xc60] sm:$0xff] }
 0x2ff   : > { %8123 = vmatpush1.bf16.msra.mxu1 %v10247_v11  ;;  %7952 = vmatprep.subr.bf16.mxu0 %v10254_v13  ;;  %v5117_v11 = vld [vmem:[%s14486_s3 + $0xc48] sm:$0xff]  ;;  %v10277_v25 = vcombine.low %v5116_v63, %v5120_v9 }
 0x300   : > { %8124 = vmatprep.subr.bf16.mxu1 %v10256_v14  ;;  %v5121_v13 = vld [vmem:[%s14486_s3 + $0xc68] sm:$0xff] }
 0x301   : > { %v10279_v26 = vcombine.low %v5117_v11, %v5121_v13 }
 0x302   : > { %7953 = vmatpush1.bf16.msra.mxu0 %v10253_v19  ;;  %v5124_v19 = vld [vmem:[%s14486_s3 + $0xc80] sm:$0xff] }
 0x303   : > { %8125 = vmatpush1.bf16.msra.mxu1 %v10255_v20  ;;  %7954 = vmatprep.subr.bf16.mxu0 %v10262_v21  ;;  %v10278_v20 = vcombine.high %v5116_v63, %v5120_v9  ;;  %v10280_v21 = vcombine.high %v5117_v11, %v5121_v13  ;;  %v5164_v9 = vld [vmem:[%s14486_s3 + $0xdc0] sm:$0xff]  ;;  %v5165_v13 = vld [vmem:[%s14486_s3 + $0xdc8] sm:$0xff] }
 0x304   : > { %8126 = vmatprep.subr.bf16.mxu1 %v10264_v22  ;;  %v5128_v22 = vld [vmem:[%s14486_s3 + $0xca0] sm:$0xff] }
 0x305   : > { %v5168_v11 = vld [vmem:[%s14486_s3 + $0xde0] sm:$0xff] }
 0x306   : > { %7955 = vmatpush1.bf16.msra.mxu0 %v10261_v27  ;;  %v10286_v27 = vcombine.high %v5124_v19, %v5128_v22 }
 0x307   : > { %8127 = vmatpush1.bf16.msra.mxu1 %v10263_v28  ;;  %7967 = vmatprep.subr.bf16.mxu0 %v10270_v29  ;;  %v10288_v28 = vcombine.high %v5125_v23, %v5129_v24  ;;  %v5132_v29 = vld [vmem:[%s14486_s3 + $0xcc0] sm:$0xff] }
 0x308   : > { %8139 = vmatprep.subr.bf16.mxu1 %v10272_v30  ;;  %v5136_v30 = vld [vmem:[%s14486_s3 + $0xce0] sm:$0xff] }
 0x31c   : > { %v4476_v41 = vpop.f32.mrb[4].mxu0  ;;  %v4691_v43 = vpop.f32.mrb[4].mxu1 }
 0x31d   : > { %v10560_v42 = vadd.f32 %v4476_v41, %v893_v37  ;;  %v4478_v44 = vpop.f32.mrb[5].mxu0  ;;  %v10564_v45 = vadd.f32 %v4691_v43, %v901_v38  ;;  %v4693_v47 = vpop.f32.mrb[5].mxu1  ;;  %v5144_v43 = vld [vmem:[%s14486_s3 + $0xd20] sm:$0xff] }
 0x31e   : > { %v10561_v46 = vadd.f32 %v4478_v44, %v897_v39  ;;  %v4480_v48 = vpop.f32.mrb[6].mxu0  ;;  %v10565_v32 = vadd.f32 %v4693_v47, %v905_v40  ;;  %v4695_v50 = vpop.f32.mrb[6].mxu1  ;;  %v5141_v44 = vld [vmem:[%s14486_s3 + $0xd08] sm:$0xff] }
 0x31f   : > { %v10562_v49 = vadd.f32 %v4480_v48, %v893_v37  ;;  %v4482_v51 = vpop.f32.mrb[7].mxu0  ;;  %v10566_v52 = vadd.f32 %v4695_v50, %v901_v38  ;;  %v4697_v54 = vpop.f32.mrb[7].mxu1  ;;  %v4704_v55 = vmax.f32 %v10560_v42, 0.0  ;;  %v4706_v58 = vmax.f32 %v10564_v45, 0.0  ;;  %v5137_v37 = vld [vmem:[%s14486_s3 + $0xce8] sm:$0xff]  ;;  %v5140_v42 = vld [vmem:[%s14486_s3 + $0xd00] sm:$0xff] }
 0x320   : > { %v10563_v53 = vadd.f32 %v4482_v51, %v897_v39  ;;  %v10567_v57 = vadd.f32 %v4697_v54, %v905_v40  ;;  %v4705_v60 = vmax.f32 %v10561_v46, 0.0  ;;  %v4707_v1 = vmax.f32 %v10565_v32, 0.0  ;;  %v5145_v45 = vld [vmem:[%s14486_s3 + $0xd28] sm:$0xff]  ;;  %v5152_v50 = vld [vmem:[%s14486_s3 + $0xd60] sm:$0xff] }
 0x321   : > { %v4712_v56 = vmax.f32 %v10562_v49, 0.0  ;;  %v4714_v61 = vmax.f32 %v10566_v52, 0.0  ;;  %v10285_v38 = vcombine.low %v5124_v19, %v5128_v22  ;;  %v10287_v39 = vcombine.low %v5125_v23, %v5129_v24  ;;  %v5148_v49 = vld [vmem:[%s14486_s3 + $0xd40] sm:$0xff]  ;;  %v5149_v51 = vld [vmem:[%s14486_s3 + $0xd48] sm:$0xff] }
 0x322   : > { %v4713_v62 = vmax.f32 %v10563_v53, 0.0  ;;  %v4715_v6 = vmax.f32 %v10567_v57, 0.0  ;;  %v10294_v40 = vcombine.high %v5132_v29, %v5136_v30  ;;  %v10296_v41 = vcombine.high %v5133_v36, %v5137_v37  ;;  %v5153_v52 = vld [vmem:[%s14486_s3 + $0xd68] sm:$0xff]  ;;  %v5156_v57 = vld [vmem:[%s14486_s3 + $0xd80] sm:$0xff] }
 0x323   : > { %v13259_v3 = vpack.c.bf16 %v4712_v56, %v4704_v55  ;;  %v13270_v14 = vpack.c.bf16 %v4714_v61, %v4706_v58  ;;  %v10293_v46 = vcombine.low %v5132_v29, %v5136_v30  ;;  %v10295_v47 = vcombine.low %v5133_v36, %v5137_v37  ;;  %v5160_v58 = vld [vmem:[%s14486_s3 + $0xda0] sm:$0xff]  ;;  %v5161_v61 = vld [vmem:[%s14486_s3 + $0xda8] sm:$0xff] }
 0x324   : > { %v13272_v15 = vpack.c.bf16 %v4713_v62, %v4705_v60  ;;  %v13278_v18 = vpack.c.bf16 %v4715_v6, %v4707_v1  ;;  %v10302_v48 = vcombine.high %v5140_v42, %v5144_v43  ;;  %v10304_v32 = vcombine.high %v5141_v44, %v5145_v45  ;;  %v5157_v60 = vld [vmem:[%s14486_s3 + $0xd88] sm:$0xff]  ;;  %v5172_v22 = vld [vmem:[%s14486_s3 + $0xe00] sm:$0xff] }
 0x325   : > { %v10301_v53 = vcombine.low %v5140_v42, %v5144_v43  ;;  %v10303_v54 = vcombine.low %v5141_v44, %v5145_v45  ;;  %v10310_v55 = vcombine.high %v5148_v49, %v5152_v50  ;;  %v10312_v56 = vcombine.high %v5149_v51, %v5153_v52  ;;  %v5176_v23 = vld [vmem:[%s14486_s3 + $0xe20] sm:$0xff]  ;;  %v5173_v24 = vld [vmem:[%s14486_s3 + $0xe08] sm:$0xff] }
 0x326   : > { %7956 = vmatprep.mubr.bf16.mxu0 %v13272_v15  ;;  %8128 = vmatprep.mubr.bf16.mxu1 %v13272_v15  ;;  %v10309_v62 = vcombine.low %v5148_v49, %v5152_v50  ;;  %v10311_v63 = vcombine.low %v5149_v51, %v5153_v52  ;;  %v10318_v1 = vcombine.high %v5156_v57, %v5160_v58  ;;  %v5180_v30 = vld [vmem:[%s14486_s3 + $0xe40] sm:$0xff]  ;;  %v5181_v37 = vld [vmem:[%s14486_s3 + $0xe48] sm:$0xff] }
 0x327   : > { %7957 = vmatmul.mubr.bf16.vlgmr.msra.gmra.mrb[8].mxu0 %v13259_v3  ;;  %8129 = vmatmul.mubr.bf16.vlgmr.msra.gmra.mrb[8].mxu1 %v13259_v3  ;;  %v10320_v6 = vcombine.high %v5157_v60, %v5161_v61  ;;  %v10319_v19 = vcombine.low %v5157_v60, %v5161_v61  ;;  %v5184_v36 = vld [vmem:[%s14486_s3 + $0xe60] sm:$0xff]  ;;  %v5189_v45 = vld [vmem:[%s14486_s3 + $0xe88] sm:$0xff] }
 0x328   : > { %7968 = vmatpush1.bf16.msra.mxu0 %v10269_v16  ;;  %8140 = vmatpush1.bf16.msra.mxu1 %v10271_v17  ;;  %v5169_v16 = vld [vmem:[%s14486_s3 + $0xde8] sm:$0xff]  ;;  %v10317_v17 = vcombine.low %v5156_v57, %v5160_v58  ;;  %v5188_v43 = vld [vmem:[%s14486_s3 + $0xe80] sm:$0xff] }
 0x329   : > { %7999 = vmatprep.mubr.bf16.mxu0 %v13278_v18  ;;  %8171 = vmatprep.mubr.bf16.mxu1 %v13278_v18  ;;  %v5192_v44 = vld [vmem:[%s14486_s3 + $0xea0] sm:$0xff]  ;;  %v5197_v52 = vld [vmem:[%s14486_s3 + $0xec8] sm:$0xff] }
 0x32a   : > { %7969 = vmatprep.subr.bf16.mxu0 %v10278_v20  ;;  %8141 = vmatprep.subr.bf16.mxu1 %v10280_v21  ;;  %v10326_v20 = vcombine.high %v5164_v9, %v5168_v11  ;;  %v10328_v21 = vcombine.high %v5165_v13, %v5169_v16  ;;  %v5196_v50 = vld [vmem:[%s14486_s3 + $0xec0] sm:$0xff]  ;;  %v5205_v61 = vld [vmem:[%s14486_s3 + $0xf08] sm:$0xff] }
 0x32b   : > { %v5200_v51 = vld [vmem:[%s14486_s3 + $0xee0] sm:$0xff] }
 0x32c   : > { %7970 = vmatpush1.bf16.msra.mxu0 %v10277_v25  ;;  %8142 = vmatpush1.bf16.msra.mxu1 %v10279_v26  ;;  %v5177_v25 = vld [vmem:[%s14486_s3 + $0xe28] sm:$0xff]  ;;  %v10325_v26 = vcombine.low %v5164_v9, %v5168_v11  ;;  %v5204_v58 = vld [vmem:[%s14486_s3 + $0xf00] sm:$0xff] }
 0x32d   : > { %7971 = vmatprep.subr.bf16.mxu0 %v10286_v27  ;;  %8143 = vmatprep.subr.bf16.mxu1 %v10288_v28  ;;  %v10327_v27 = vcombine.low %v5165_v13, %v5169_v16  ;;  %v10334_v28 = vcombine.high %v5172_v22, %v5176_v23  ;;  %v10336_v29 = vcombine.high %v5173_v24, %v5177_v25  ;;  %v5208_v60 = vld [vmem:[%s14486_s3 + $0xf20] sm:$0xff]  ;;  %v5213_v16 = vld [vmem:[%s14486_s3 + $0xf48] sm:$0xff] }
 0x32e   : > { %v5212_v11 = vld [vmem:[%s14486_s3 + $0xf40] sm:$0xff] }
 0x32f   : > { %v5216_v13 = vld [vmem:[%s14486_s3 + $0xf60] sm:$0xff] }
 0x330   : > { %7972 = vmatpush1.bf16.msra.mxu0 %v10285_v38  ;;  %8144 = vmatpush1.bf16.msra.mxu1 %v10287_v39  ;;  %v5185_v38 = vld [vmem:[%s14486_s3 + $0xe68] sm:$0xff]  ;;  %v10333_v39 = vcombine.low %v5172_v22, %v5176_v23  ;;  %v5220_v23 = vld [vmem:[%s14486_s3 + $0xf80] sm:$0xff] }
 0x331   : > { %7973 = vmatprep.subr.bf16.mxu0 %v10294_v40  ;;  %8145 = vmatprep.subr.bf16.mxu1 %v10296_v41  ;;  %v10335_v40 = vcombine.low %v5173_v24, %v5177_v25  ;;  %v10342_v41 = vcombine.high %v5180_v30, %v5184_v36  ;;  %v10344_v42 = vcombine.high %v5181_v37, %v5185_v38  ;;  %v5224_v24 = vld [vmem:[%s14486_s3 + $0xfa0] sm:$0xff]  ;;  %v5221_v25 = vld [vmem:[%s14486_s3 + $0xf88] sm:$0xff] }
 0x334   : > { %7974 = vmatpush1.bf16.msra.mxu0 %v10293_v46  ;;  %8146 = vmatpush1.bf16.msra.mxu1 %v10295_v47  ;;  %v5193_v46 = vld [vmem:[%s14486_s3 + $0xea8] sm:$0xff]  ;;  %v10341_v47 = vcombine.low %v5180_v30, %v5184_v36  ;;  %v5228_v36 = vld [vmem:[%s14486_s3 + $0xfc0] sm:$0xff] }
 0x335   : > { %7975 = vmatprep.subr.bf16.mxu0 %v10302_v48  ;;  %8147 = vmatprep.subr.bf16.mxu1 %v10304_v32  ;;  %v10343_v48 = vcombine.low %v5181_v37, %v5185_v38  ;;  %v10350_v32 = vcombine.high %v5188_v43, %v5192_v44  ;;  %v10352_v49 = vcombine.high %v5189_v45, %v5193_v46  ;;  %v5232_v37 = vld [vmem:[%s14486_s3 + $0xfe0] sm:$0xff]  ;;  %v5229_v38 = vld [vmem:[%s14486_s3 + $0xfc8] sm:$0xff] }
 0x338   : > { %7976 = vmatpush1.bf16.msra.mxu0 %v10301_v53  ;;  %8148 = vmatpush1.bf16.msra.mxu1 %v10303_v54  ;;  %v5201_v53 = vld [vmem:[%s14486_s3 + $0xee8] sm:$0xff]  ;;  %v10349_v54 = vcombine.low %v5188_v43, %v5192_v44  ;;  %v4726_v44 = vld [vmem:[%s14486_s3 + $0x10] sm:$0xff] }
 0x339   : > { %7977 = vmatprep.subr.bf16.mxu0 %v10310_v55  ;;  %8149 = vmatprep.subr.bf16.mxu1 %v10312_v56  ;;  %v10351_v55 = vcombine.low %v5189_v45, %v5193_v46  ;;  %v10358_v56 = vcombine.high %v5196_v50, %v5200_v51  ;;  %v10360_v57 = vcombine.high %v5197_v52, %v5201_v53  ;;  %v4730_v45 = vld [vmem:[%s14486_s3 + $0x30] sm:$0xff]  ;;  %v4727_v46 = vld [vmem:[%s14486_s3 + $0x18] sm:$0xff] }
 0x33c   : > { %7978 = vmatpush1.bf16.msra.mxu0 %v10309_v62  ;;  %8150 = vmatpush1.bf16.msra.mxu1 %v10311_v63  ;;  %v5209_v62 = vld [vmem:[%s14486_s3 + $0xf28] sm:$0xff]  ;;  %v10357_v63 = vcombine.low %v5196_v50, %v5200_v51  ;;  %v4734_v51 = vld [vmem:[%s14486_s3 + $0x50] sm:$0xff] }
 0x33d   : > { %7979 = vmatprep.subr.bf16.mxu0 %v10318_v1  ;;  %8151 = vmatprep.subr.bf16.mxu1 %v10320_v6  ;;  %v10359_v1 = vcombine.low %v5197_v52, %v5201_v53  ;;  %v10366_v6 = vcombine.high %v5204_v58, %v5208_v60  ;;  %v10368_v9 = vcombine.high %v5205_v61, %v5209_v62  ;;  %v4738_v52 = vld [vmem:[%s14486_s3 + $0x70] sm:$0xff]  ;;  %v4735_v53 = vld [vmem:[%s14486_s3 + $0x58] sm:$0xff] }
 0x340   : > { %7980 = vmatpush1.bf16.msra.mxu0 %v10317_v17  ;;  %8152 = vmatpush1.bf16.msra.mxu1 %v10319_v19  ;;  %v5217_v17 = vld [vmem:[%s14486_s3 + $0xf68] sm:$0xff]  ;;  %v10365_v19 = vcombine.low %v5204_v58, %v5208_v60  ;;  %v4742_v60 = vld [vmem:[%s14486_s3 + $0x90] sm:$0xff] }
 0x341   : > { %7981 = vmatprep.subr.bf16.mxu0 %v10326_v20  ;;  %8153 = vmatprep.subr.bf16.mxu1 %v10328_v21  ;;  %v10367_v20 = vcombine.low %v5205_v61, %v5209_v62  ;;  %v10374_v21 = vcombine.high %v5212_v11, %v5216_v13  ;;  %v10376_v22 = vcombine.high %v5213_v16, %v5217_v17  ;;  %v4746_v61 = vld [vmem:[%s14486_s3 + $0xb0] sm:$0xff]  ;;  %v4743_v62 = vld [vmem:[%s14486_s3 + $0x98] sm:$0xff] }
 0x344   : > { %7982 = vmatpush1.bf16.msra.mxu0 %v10325_v26  ;;  %8154 = vmatpush1.bf16.msra.mxu1 %v10327_v27  ;;  %v5225_v26 = vld [vmem:[%s14486_s3 + $0xfa8] sm:$0xff]  ;;  %v10373_v27 = vcombine.low %v5212_v11, %v5216_v13  ;;  %v4750_v13 = vld [vmem:[%s14486_s3 + $0xd0] sm:$0xff] }
 0x345   : > { %7983 = vmatprep.subr.bf16.mxu0 %v10334_v28  ;;  %8155 = vmatprep.subr.bf16.mxu1 %v10336_v29  ;;  %v10375_v28 = vcombine.low %v5213_v16, %v5217_v17  ;;  %v10382_v29 = vcombine.high %v5220_v23, %v5224_v24  ;;  %v10384_v30 = vcombine.high %v5221_v25, %v5225_v26  ;;  %v4754_v16 = vld [vmem:[%s14486_s3 + $0xf0] sm:$0xff]  ;;  %v4751_v17 = vld [vmem:[%s14486_s3 + $0xd8] sm:$0xff] }
 0x348   : > { %7984 = vmatpush1.bf16.msra.mxu0 %v10333_v39  ;;  %8156 = vmatpush1.bf16.msra.mxu1 %v10335_v40  ;;  %v5233_v39 = vld [vmem:[%s14486_s3 + $0xfe8] sm:$0xff]  ;;  %v10381_v40 = vcombine.low %v5220_v23, %v5224_v24  ;;  %v4758_v23 = vld [vmem:[%s14486_s3 + $0x110] sm:$0xff] }
 0x349   : > { %7985 = vmatprep.subr.bf16.mxu0 %v10342_v41  ;;  %8157 = vmatprep.subr.bf16.mxu1 %v10344_v42  ;;  %v10383_v41 = vcombine.low %v5221_v25, %v5225_v26  ;;  %v10390_v42 = vcombine.high %v5228_v36, %v5232_v37  ;;  %v10392_v43 = vcombine.high %v5229_v38, %v5233_v39  ;;  %v4762_v24 = vld [vmem:[%s14486_s3 + $0x130] sm:$0xff]  ;;  %v4759_v25 = vld [vmem:[%s14486_s3 + $0x118] sm:$0xff] }
 0x34a   : > { %v4763_v26 = vld [vmem:[%s14486_s3 + $0x138] sm:$0xff] }
 0x34c   : > { %7986 = vmatpush1.bf16.msra.mxu0 %v10341_v47  ;;  %8158 = vmatpush1.bf16.msra.mxu1 %v10343_v48  ;;  %v4731_v47 = vld [vmem:[%s14486_s3 + $0x38] sm:$0xff]  ;;  %v10389_v48 = vcombine.low %v5228_v36, %v5232_v37  ;;  %v4766_v36 = vld [vmem:[%s14486_s3 + $0x150] sm:$0xff] }
 0x34d   : > { %7987 = vmatprep.subr.bf16.mxu0 %v10350_v32  ;;  %8159 = vmatprep.subr.bf16.mxu1 %v10352_v49  ;;  %v10391_v32 = vcombine.low %v5229_v38, %v5233_v39  ;;  %v9890_v49 = vcombine.high %v4726_v44, %v4730_v45  ;;  %v9892_v50 = vcombine.high %v4727_v46, %v4731_v47  ;;  %v4770_v37 = vld [vmem:[%s14486_s3 + $0x170] sm:$0xff]  ;;  %v4767_v38 = vld [vmem:[%s14486_s3 + $0x158] sm:$0xff] }
 0x34e   : > { %v4771_v39 = vld [vmem:[%s14486_s3 + $0x178] sm:$0xff] }
 0x350   : > { %7988 = vmatpush1.bf16.msra.mxu0 %v10349_v54  ;;  %8160 = vmatpush1.bf16.msra.mxu1 %v10351_v55  ;;  %v4739_v54 = vld [vmem:[%s14486_s3 + $0x78] sm:$0xff]  ;;  %v9889_v55 = vcombine.low %v4726_v44, %v4730_v45  ;;  %v4774_v44 = vld [vmem:[%s14486_s3 + $0x190] sm:$0xff] }
 0x351   : > { %7989 = vmatprep.subr.bf16.mxu0 %v10358_v56  ;;  %8161 = vmatprep.subr.bf16.mxu1 %v10360_v57  ;;  %v9891_v56 = vcombine.low %v4727_v46, %v4731_v47  ;;  %v9898_v57 = vcombine.high %v4734_v51, %v4738_v52  ;;  %v9900_v58 = vcombine.high %v4735_v53, %v4739_v54  ;;  %v4778_v45 = vld [vmem:[%s14486_s3 + $0x1b0] sm:$0xff]  ;;  %v4775_v46 = vld [vmem:[%s14486_s3 + $0x198] sm:$0xff] }
 0x352   : > { %v4779_v47 = vld [vmem:[%s14486_s3 + $0x1b8] sm:$0xff] }
 0x354   : > { %7990 = vmatpush1.bf16.msra.mxu0 %v10357_v63  ;;  %8162 = vmatpush1.bf16.msra.mxu1 %v10359_v1  ;;  %v4747_v63 = vld [vmem:[%s14486_s3 + $0xb8] sm:$0xff]  ;;  %v9897_v1 = vcombine.low %v4734_v51, %v4738_v52  ;;  %v4782_v51 = vld [vmem:[%s14486_s3 + $0x1d0] sm:$0xff] }
 0x355   : > { %7991 = vmatprep.subr.bf16.mxu0 %v10366_v6  ;;  %8163 = vmatprep.subr.bf16.mxu1 %v10368_v9  ;;  %v9899_v6 = vcombine.low %v4735_v53, %v4739_v54  ;;  %v9906_v9 = vcombine.high %v4742_v60, %v4746_v61  ;;  %v9908_v11 = vcombine.high %v4743_v62, %v4747_v63  ;;  %v4786_v52 = vld [vmem:[%s14486_s3 + $0x1f0] sm:$0xff]  ;;  %v4783_v53 = vld [vmem:[%s14486_s3 + $0x1d8] sm:$0xff] }
 0x356   : > { %v4787_v54 = vld [vmem:[%s14486_s3 + $0x1f8] sm:$0xff] }
 0x358   : > { %7992 = vmatpush1.bf16.msra.mxu0 %v10365_v19  ;;  %8164 = vmatpush1.bf16.msra.mxu1 %v10367_v20  ;;  %v9905_v19 = vcombine.low %v4742_v60, %v4746_v61  ;;  %v9907_v20 = vcombine.low %v4743_v62, %v4747_v63  ;;  %v4790_v60 = vld [vmem:[%s14486_s3 + $0x210] sm:$0xff]  ;;  %v4791_v62 = vld [vmem:[%s14486_s3 + $0x218] sm:$0xff] }
 0x359   : > { %7993 = vmatprep.subr.bf16.mxu0 %v10374_v21  ;;  %8165 = vmatprep.subr.bf16.mxu1 %v10376_v22  ;;  %v9914_v21 = vcombine.high %v4750_v13, %v4754_v16  ;;  %v4794_v61 = vld [vmem:[%s14486_s3 + $0x230] sm:$0xff]  ;;  %v4795_v63 = vld [vmem:[%s14486_s3 + $0x238] sm:$0xff] }
 0x35c   : > { %7994 = vmatpush1.bf16.msra.mxu0 %v10373_v27  ;;  %8166 = vmatpush1.bf16.msra.mxu1 %v10375_v28  ;;  %v9913_v27 = vcombine.low %v4750_v13, %v4754_v16  ;;  %v4798_v13 = vld [vmem:[%s14486_s3 + $0x250] sm:$0xff] }
 0x35d   : > { %7995 = vmatprep.subr.bf16.mxu0 %v10382_v29  ;;  %8167 = vmatprep.subr.bf16.mxu1 %v10384_v30  ;;  %v9922_v29 = vcombine.high %v4758_v23, %v4762_v24  ;;  %v9924_v30 = vcombine.high %v4759_v25, %v4763_v26  ;;  %v4802_v16 = vld [vmem:[%s14486_s3 + $0x270] sm:$0xff] }
 0x360   : > { %7996 = vmatpush1.bf16.msra.mxu0 %v10381_v40  ;;  %8168 = vmatpush1.bf16.msra.mxu1 %v10383_v41  ;;  %v9921_v40 = vcombine.low %v4758_v23, %v4762_v24  ;;  %v9923_v41 = vcombine.low %v4759_v25, %v4763_v26  ;;  %v4806_v23 = vld [vmem:[%s14486_s3 + $0x290] sm:$0xff]  ;;  %v4807_v25 = vld [vmem:[%s14486_s3 + $0x298] sm:$0xff] }
 0x361   : > { %7997 = vmatprep.subr.bf16.mxu0 %v10390_v42  ;;  %8169 = vmatprep.subr.bf16.mxu1 %v10392_v43  ;;  %v9930_v42 = vcombine.high %v4766_v36, %v4770_v37  ;;  %v9932_v43 = vcombine.high %v4767_v38, %v4771_v39  ;;  %v4810_v24 = vld [vmem:[%s14486_s3 + $0x2b0] sm:$0xff]  ;;  %v4811_v26 = vld [vmem:[%s14486_s3 + $0x2b8] sm:$0xff] }
 0x364   : > { %7998 = vmatpush1.bf16.msra.mxu0 %v10389_v48  ;;  %8170 = vmatpush1.bf16.msra.mxu1 %v10391_v32  ;;  %v9929_v48 = vcombine.low %v4766_v36, %v4770_v37  ;;  %v9931_v32 = vcombine.low %v4767_v38, %v4771_v39  ;;  %v4814_v36 = vld [vmem:[%s14486_s3 + $0x2d0] sm:$0xff]  ;;  %v4815_v38 = vld [vmem:[%s14486_s3 + $0x2d8] sm:$0xff] }
 0x365   : > { %8182 = vmatprep.subr.bf16.mxu0 %v9890_v49  ;;  %8354 = vmatprep.subr.bf16.mxu1 %v9892_v50  ;;  %v9938_v49 = vcombine.high %v4774_v44, %v4778_v45  ;;  %v9940_v50 = vcombine.high %v4775_v46, %v4779_v47  ;;  %v4818_v37 = vld [vmem:[%s14486_s3 + $0x2f0] sm:$0xff]  ;;  %v4819_v39 = vld [vmem:[%s14486_s3 + $0x2f8] sm:$0xff] }
 0x367   : > { %8000 = vmatmul.mubr.bf16.vlgmr.msra.gmra.mrb[8].mxu0 %v13270_v14  ;;  %8172 = vmatmul.mubr.bf16.vlgmr.msra.gmra.mrb[8].mxu1 %v13270_v14 }
 0x368   : > { %8183 = vmatpush1.bf16.msra.mxu0 %v9889_v55  ;;  %8214 = vmatprep.mubr.bf16.mxu0 %v12445_v5  ;;  %v9937_v55 = vcombine.low %v4774_v44, %v4778_v45  ;;  %v4822_v44 = vld [vmem:[%s14486_s3 + $0x310] sm:$0xff] }
 0x369   : > { %8355 = vmatpush1.bf16.msra.mxu1 %v9891_v56  ;;  %8386 = vmatprep.mubr.bf16.mxu1 %v12445_v5  ;;  %v4755_v5 = vld [vmem:[%s14486_s3 + $0xf8] sm:$0xff]  ;;  %v9939_v56 = vcombine.low %v4775_v46, %v4779_v47  ;;  %v4826_v45 = vld [vmem:[%s14486_s3 + $0x330] sm:$0xff] }
 0x36a   : > { %8184 = vmatprep.subr.bf16.mxu0 %v9898_v57  ;;  %8356 = vmatprep.subr.bf16.mxu1 %v9900_v58  ;;  %v9916_v22 = vcombine.high %v4751_v17, %v4755_v5  ;;  %v9915_v28 = vcombine.low %v4751_v17, %v4755_v5  ;;  %v9946_v57 = vcombine.high %v4782_v51, %v4786_v52  ;;  %v4799_v17 = vld [vmem:[%s14486_s3 + $0x258] sm:$0xff] }
 0x36b   : > { %v9948_v58 = vcombine.high %v4783_v53, %v4787_v54  ;;  %v4803_v5 = vld [vmem:[%s14486_s3 + $0x278] sm:$0xff] }
 0x36c   : > { %8185 = vmatpush1.bf16.msra.mxu0 %v9897_v1  ;;  %v9945_v1 = vcombine.low %v4782_v51, %v4786_v52  ;;  %v4823_v46 = vld [vmem:[%s14486_s3 + $0x318] sm:$0xff]  ;;  %v4830_v51 = vld [vmem:[%s14486_s3 + $0x350] sm:$0xff] }
 0x36d   : > { %8357 = vmatpush1.bf16.msra.mxu1 %v9899_v6  ;;  %8186 = vmatprep.subr.bf16.mxu0 %v9906_v9  ;;  %v9947_v6 = vcombine.low %v4783_v53, %v4787_v54  ;;  %v9954_v9 = vcombine.high %v4790_v60, %v4794_v61  ;;  %v4827_v47 = vld [vmem:[%s14486_s3 + $0x338] sm:$0xff]  ;;  %v4834_v52 = vld [vmem:[%s14486_s3 + $0x370] sm:$0xff] }
 0x36e   : > { %8358 = vmatprep.subr.bf16.mxu1 %v9908_v11  ;;  %v9956_v11 = vcombine.high %v4791_v62, %v4795_v63  ;;  %v4831_v53 = vld [vmem:[%s14486_s3 + $0x358] sm:$0xff] }
 0x36f   : > { %v4835_v54 = vld [vmem:[%s14486_s3 + $0x378] sm:$0xff] }
 0x370   : > { %8187 = vmatpush1.bf16.msra.mxu0 %v9905_v19  ;;  %v9953_v19 = vcombine.low %v4790_v60, %v4794_v61  ;;  %v4838_v60 = vld [vmem:[%s14486_s3 + $0x390] sm:$0xff] }
 0x371   : > { %8359 = vmatpush1.bf16.msra.mxu1 %v9907_v20  ;;  %8188 = vmatprep.subr.bf16.mxu0 %v9914_v21  ;;  %v9955_v20 = vcombine.low %v4791_v62, %v4795_v63  ;;  %v9962_v21 = vcombine.high %v4798_v13, %v4802_v16  ;;  %v4842_v61 = vld [vmem:[%s14486_s3 + $0x3b0] sm:$0xff]  ;;  %v4839_v62 = vld [vmem:[%s14486_s3 + $0x398] sm:$0xff] }
 0x372   : > { %8360 = vmatprep.subr.bf16.mxu1 %v9916_v22  ;;  %v9964_v22 = vcombine.high %v4799_v17, %v4803_v5  ;;  %v4843_v63 = vld [vmem:[%s14486_s3 + $0x3b8] sm:$0xff] }
 0x374   : > { %8189 = vmatpush1.bf16.msra.mxu0 %v9913_v27  ;;  %v9961_v27 = vcombine.low %v4798_v13, %v4802_v16  ;;  %v4846_v13 = vld [vmem:[%s14486_s3 + $0x3d0] sm:$0xff] }
 0x375   : > { %8361 = vmatpush1.bf16.msra.mxu1 %v9915_v28  ;;  %8190 = vmatprep.subr.bf16.mxu0 %v9922_v29  ;;  %v9963_v28 = vcombine.low %v4799_v17, %v4803_v5  ;;  %v9970_v29 = vcombine.high %v4806_v23, %v4810_v24  ;;  %v4850_v16 = vld [vmem:[%s14486_s3 + $0x3f0] sm:$0xff]  ;;  %v4847_v17 = vld [vmem:[%s14486_s3 + $0x3d8] sm:$0xff] }
 0x376   : > { %8362 = vmatprep.subr.bf16.mxu1 %v9924_v30  ;;  %v9972_v30 = vcombine.high %v4807_v25, %v4811_v26  ;;  %v4851_v5 = vld [vmem:[%s14486_s3 + $0x3f8] sm:$0xff] }
 0x378   : > { %8191 = vmatpush1.bf16.msra.mxu0 %v9921_v40  ;;  %v9969_v40 = vcombine.low %v4806_v23, %v4810_v24  ;;  %v4854_v23 = vld [vmem:[%s14486_s3 + $0x410] sm:$0xff] }
 0x379   : > { %8363 = vmatpush1.bf16.msra.mxu1 %v9923_v41  ;;  %8192 = vmatprep.subr.bf16.mxu0 %v9930_v42  ;;  %v9971_v41 = vcombine.low %v4807_v25, %v4811_v26  ;;  %v9978_v42 = vcombine.high %v4814_v36, %v4818_v37  ;;  %v4858_v24 = vld [vmem:[%s14486_s3 + $0x430] sm:$0xff]  ;;  %v4855_v25 = vld [vmem:[%s14486_s3 + $0x418] sm:$0xff] }
 0x37a   : > { %8364 = vmatprep.subr.bf16.mxu1 %v9932_v43  ;;  %v9980_v43 = vcombine.high %v4815_v38, %v4819_v39  ;;  %v4859_v26 = vld [vmem:[%s14486_s3 + $0x438] sm:$0xff] }
 0x37c   : > { %8193 = vmatpush1.bf16.msra.mxu0 %v9929_v48  ;;  %v9977_v48 = vcombine.low %v4814_v36, %v4818_v37  ;;  %v4862_v36 = vld [vmem:[%s14486_s3 + $0x450] sm:$0xff] }
 0x37d   : > { %8365 = vmatpush1.bf16.msra.mxu1 %v9931_v32  ;;  %8194 = vmatprep.subr.bf16.mxu0 %v9938_v49  ;;  %v9979_v32 = vcombine.low %v4815_v38, %v4819_v39  ;;  %v9986_v49 = vcombine.high %v4822_v44, %v4826_v45  ;;  %v4866_v37 = vld [vmem:[%s14486_s3 + $0x470] sm:$0xff]  ;;  %v10017_v38 = vcombine.low %v4854_v23, %v4858_v24  ;;  %v4863_v39 = vld [vmem:[%s14486_s3 + $0x458] sm:$0xff] }
 0x37e   : > { %8366 = vmatprep.subr.bf16.mxu1 %v9940_v50  ;;  %v9988_v50 = vcombine.high %v4823_v46, %v4827_v47 }
 0x380   : > { %8195 = vmatpush1.bf16.msra.mxu0 %v9937_v55  ;;  %v9985_v55 = vcombine.low %v4822_v44, %v4826_v45  ;;  %v4874_v44 = vld [vmem:[%s14486_s3 + $0x4b0] sm:$0xff] }
 0x381   : > { %8367 = vmatpush1.bf16.msra.mxu1 %v9939_v56  ;;  %8196 = vmatprep.subr.bf16.mxu0 %v9946_v57  ;;  %v9987_v56 = vcombine.low %v4823_v46, %v4827_v47  ;;  %v9994_v57 = vcombine.high %v4830_v51, %v4834_v52  ;;  %v4871_v46 = vld [vmem:[%s14486_s3 + $0x498] sm:$0xff] }
 0x382   : > { %8368 = vmatprep.subr.bf16.mxu1 %v9948_v58  ;;  %v9996_v58 = vcombine.high %v4831_v53, %v4835_v54  ;;  %v4875_v47 = vld [vmem:[%s14486_s3 + $0x4b8] sm:$0xff] }
 0x384   : > { %8197 = vmatpush1.bf16.msra.mxu0 %v9945_v1  ;;  %v9993_v1 = vcombine.low %v4830_v51, %v4834_v52  ;;  %v4878_v51 = vld [vmem:[%s14486_s3 + $0x4d0] sm:$0xff] }
 0x385   : > { %8369 = vmatpush1.bf16.msra.mxu1 %v9947_v6  ;;  %8198 = vmatprep.subr.bf16.mxu0 %v9954_v9  ;;  %v9995_v6 = vcombine.low %v4831_v53, %v4835_v54  ;;  %v10002_v9 = vcombine.high %v4838_v60, %v4842_v61  ;;  %v4882_v52 = vld [vmem:[%s14486_s3 + $0x4f0] sm:$0xff]  ;;  %v4883_v53 = vld [vmem:[%s14486_s3 + $0x4f8] sm:$0xff]  ;;  %v10035_v54 = vcombine.low %v4871_v46, %v4875_v47 }
 0x386   : > { %8370 = vmatprep.subr.bf16.mxu1 %v9956_v11  ;;  %v10004_v11 = vcombine.high %v4839_v62, %v4843_v63 }
 0x388   : > { %8199 = vmatpush1.bf16.msra.mxu0 %v9953_v19  ;;  %v10001_v19 = vcombine.low %v4838_v60, %v4842_v61  ;;  %v4887_v60 = vld [vmem:[%s14486_s3 + $0x518] sm:$0xff] }
 0x389   : > { %8371 = vmatpush1.bf16.msra.mxu1 %v9955_v20  ;;  %8200 = vmatprep.subr.bf16.mxu0 %v9962_v21  ;;  %v10003_v20 = vcombine.low %v4839_v62, %v4843_v63  ;;  %v10010_v21 = vcombine.high %v4846_v13, %v4850_v16  ;;  %v4891_v61 = vld [vmem:[%s14486_s3 + $0x538] sm:$0xff]  ;;  %v10041_v62 = vcombine.low %v4878_v51, %v4882_v52 }
 0x38a   : > { %8372 = vmatprep.subr.bf16.mxu1 %v9964_v22  ;;  %v10012_v22 = vcombine.high %v4847_v17, %v4851_v5 }
 0x38c   : > { %8201 = vmatpush1.bf16.msra.mxu0 %v9961_v27  ;;  %v10009_v27 = vcombine.low %v4846_v13, %v4850_v16  ;;  %v4895_v13 = vld [vmem:[%s14486_s3 + $0x558] sm:$0xff] }
 0x38d   : > { %8373 = vmatpush1.bf16.msra.mxu1 %v9963_v28  ;;  %8202 = vmatprep.subr.bf16.mxu0 %v9970_v29  ;;  %v10011_v28 = vcombine.low %v4847_v17, %v4851_v5  ;;  %v10018_v29 = vcombine.high %v4854_v23, %v4858_v24  ;;  %v4899_v16 = vld [vmem:[%s14486_s3 + $0x578] sm:$0xff]  ;;  %v10051_v5 = vcombine.low %v4887_v60, %v4891_v61 }
 0x38e   : > { %8374 = vmatprep.subr.bf16.mxu1 %v9972_v30  ;;  %v10020_v30 = vcombine.high %v4855_v25, %v4859_v26  ;;  %v4903_v23 = vld [vmem:[%s14486_s3 + $0x598] sm:$0xff] }
 0x38f   : > { %v4907_v24 = vld [vmem:[%s14486_s3 + $0x5b8] sm:$0xff] }
 0x390   : > { %8203 = vmatpush1.bf16.msra.mxu0 %v9969_v40  ;;  %v4867_v40 = vld [vmem:[%s14486_s3 + $0x478] sm:$0xff] }
 0x391   : > { %8375 = vmatpush1.bf16.msra.mxu1 %v9971_v41  ;;  %8204 = vmatprep.subr.bf16.mxu0 %v9978_v42  ;;  %v10019_v41 = vcombine.low %v4855_v25, %v4859_v26  ;;  %v10026_v42 = vcombine.high %v4862_v36, %v4866_v37  ;;  %v10028_v45 = vcombine.high %v4863_v39, %v4867_v40 }
 0x392   : > { %8376 = vmatprep.subr.bf16.mxu1 %v9980_v43  ;;  %v4870_v43 = vld [vmem:[%s14486_s3 + $0x490] sm:$0xff]  ;;  %v10059_v26 = vcombine.low %v4895_v13, %v4899_v16 }
 0x394   : > { %8205 = vmatpush1.bf16.msra.mxu0 %v9977_v48  ;;  %v10025_v48 = vcombine.low %v4862_v36, %v4866_v37  ;;  %v4911_v36 = vld [vmem:[%s14486_s3 + $0x5d8] sm:$0xff] }
 0x395   : > { %8377 = vmatpush1.bf16.msra.mxu1 %v9979_v32  ;;  %8206 = vmatprep.subr.bf16.mxu0 %v9986_v49  ;;  %v10027_v32 = vcombine.low %v4863_v39, %v4867_v40  ;;  %v10034_v49 = vcombine.high %v4870_v43, %v4874_v44  ;;  %v4915_v37 = vld [vmem:[%s14486_s3 + $0x5f8] sm:$0xff]  ;;  %v10067_v39 = vcombine.low %v4903_v23, %v4907_v24 }
 0x396   : > { %8378 = vmatprep.subr.bf16.mxu1 %v9988_v50  ;;  %v10036_v50 = vcombine.high %v4871_v46, %v4875_v47  ;;  %v10075_v47 = vcombine.low %v4911_v36, %v4915_v37 }
 0x398   : > { %8207 = vmatpush1.bf16.msra.mxu0 %v9985_v55  ;;  %v10042_v55 = vcombine.high %v4878_v51, %v4882_v52  ;;  %v4927_v51 = vld [vmem:[%s14486_s3 + $0x658] sm:$0xff] }
 0x399   : > { %8379 = vmatpush1.bf16.msra.mxu1 %v9987_v56  ;;  %8208 = vmatprep.subr.bf16.mxu0 %v9994_v57  ;;  %v4886_v57 = vld [vmem:[%s14486_s3 + $0x510] sm:$0xff]  ;;  %v4931_v52 = vld [vmem:[%s14486_s3 + $0x678] sm:$0xff] }
 0x39a   : > { %8380 = vmatprep.subr.bf16.mxu1 %v9996_v58  ;;  %v4890_v58 = vld [vmem:[%s14486_s3 + $0x530] sm:$0xff] }
 0x39b   : > { %v10049_v17 = vcombine.low %v4886_v57, %v4890_v58 }
 0x39c   : > { %8209 = vmatpush1.bf16.msra.mxu0 %v9993_v1  ;;  %v10050_v1 = vcombine.high %v4886_v57, %v4890_v58  ;;  %v4935_v57 = vld [vmem:[%s14486_s3 + $0x698] sm:$0xff] }
 0x39d   : > { %8381 = vmatpush1.bf16.msra.mxu1 %v9995_v6  ;;  %8210 = vmatprep.subr.bf16.mxu0 %v10002_v9  ;;  %v10052_v6 = vcombine.high %v4887_v60, %v4891_v61  ;;  %v4894_v9 = vld [vmem:[%s14486_s3 + $0x550] sm:$0xff]  ;;  %v4939_v58 = vld [vmem:[%s14486_s3 + $0x6b8] sm:$0xff]  ;;  %v10091_v61 = vcombine.low %v4927_v51, %v4931_v52 }
 0x39e   : > { %8382 = vmatprep.subr.bf16.mxu1 %v10004_v11  ;;  %v4898_v11 = vld [vmem:[%s14486_s3 + $0x570] sm:$0xff] }
 0x39f   : > { %v10057_v25 = vcombine.low %v4894_v9, %v4898_v11 }
 0x3a0   : > { %8211 = vmatpush1.bf16.msra.mxu0 %v10001_v19  ;;  %v10058_v19 = vcombine.high %v4894_v9, %v4898_v11  ;;  %v4943_v9 = vld [vmem:[%s14486_s3 + $0x6d8] sm:$0xff] }
 0x3a1   : > { %8383 = vmatpush1.bf16.msra.mxu1 %v10003_v20  ;;  %8212 = vmatprep.subr.bf16.mxu0 %v10010_v21  ;;  %v10060_v20 = vcombine.high %v4895_v13, %v4899_v16  ;;  %v4902_v21 = vld [vmem:[%s14486_s3 + $0x590] sm:$0xff]  ;;  %v4947_v11 = vld [vmem:[%s14486_s3 + $0x6f8] sm:$0xff]  ;;  %v10099_v16 = vcombine.low %v4935_v57, %v4939_v58 }
 0x3a2   : > { %8384 = vmatprep.subr.bf16.mxu1 %v10012_v22  ;;  %v4906_v22 = vld [vmem:[%s14486_s3 + $0x5b0] sm:$0xff] }
 0x3a4   : > { %8213 = vmatpush1.bf16.msra.mxu0 %v10009_v27  ;;  %v10066_v27 = vcombine.high %v4902_v21, %v4906_v22 }
 0x3a5   : > { %8385 = vmatpush1.bf16.msra.mxu1 %v10011_v28  ;;  %8225 = vmatprep.subr.bf16.mxu0 %v10018_v29  ;;  %v10068_v28 = vcombine.high %v4903_v23, %v4907_v24  ;;  %v4910_v29 = vld [vmem:[%s14486_s3 + $0x5d0] sm:$0xff]  ;;  %v10107_v24 = vcombine.low %v4943_v9, %v4947_v11 }
 0x3a6   : > { %8397 = vmatprep.subr.bf16.mxu1 %v10020_v30  ;;  %v4914_v30 = vld [vmem:[%s14486_s3 + $0x5f0] sm:$0xff] }
 0x3a7   : > { %8215 = vmatmul.mubr.bf16.vlgmr.msra.gmra.mrb[12].mxu0 %v12441_v0  ;;  %v10074_v40 = vcombine.high %v4910_v29, %v4914_v30  ;;  %v10073_v46 = vcombine.low %v4910_v29, %v4914_v30  ;;  %v4959_v29 = vld [vmem:[%s14486_s3 + $0x758] sm:$0xff] }
 0x3a8   : > { %8387 = vmatmul.mubr.bf16.vlgmr.msra.gmra.mrb[12].mxu1 %v12441_v0  ;;  %8226 = vmatpush1.bf16.msra.mxu0 %v10017_v38  ;;  %v4879_v0 = vld [vmem:[%s14486_s3 + $0x4d8] sm:$0xff]  ;;  %v10065_v38 = vcombine.low %v4902_v21, %v4906_v22 }
 0x3a9   : > { %8257 = vmatprep.mubr.bf16.mxu0 %v12453_v12  ;;  %8398 = vmatpush1.bf16.msra.mxu1 %v10019_v41  ;;  %v10044_v56 = vcombine.high %v4879_v0, %v4883_v53  ;;  %v10043_v63 = vcombine.low %v4879_v0, %v4883_v53  ;;  %v10076_v41 = vcombine.high %v4911_v36, %v4915_v37  ;;  %v4951_v21 = vld [vmem:[%s14486_s3 + $0x718] sm:$0xff] }
 0x3aa   : > { %8429 = vmatprep.mubr.bf16.mxu1 %v12453_v12  ;;  %8227 = vmatprep.subr.bf16.mxu0 %v10026_v42  ;;  %v10033_v12 = vcombine.low %v4870_v43, %v4874_v44  ;;  %v4918_v42 = vld [vmem:[%s14486_s3 + $0x610] sm:$0xff]  ;;  %v4919_v44 = vld [vmem:[%s14486_s3 + $0x618] sm:$0xff] }
 0x3ab   : > { %8399 = vmatprep.subr.bf16.mxu1 %v10028_v45  ;;  %v4922_v43 = vld [vmem:[%s14486_s3 + $0x630] sm:$0xff]  ;;  %v4923_v45 = vld [vmem:[%s14486_s3 + $0x638] sm:$0xff] }
 0x3ac   : > { %8228 = vmatpush1.bf16.msra.mxu0 %v10025_v48  ;;  %v10082_v48 = vcombine.high %v4918_v42, %v4922_v43  ;;  %v10081_v0 = vcombine.low %v4918_v42, %v4922_v43  ;;  %v10083_v53 = vcombine.low %v4919_v44, %v4923_v45  ;;  %v4955_v22 = vld [vmem:[%s14486_s3 + $0x738] sm:$0xff] }
 0x3ad   : > { %8400 = vmatpush1.bf16.msra.mxu1 %v10027_v32  ;;  %8229 = vmatprep.subr.bf16.mxu0 %v10034_v49  ;;  %v10084_v32 = vcombine.high %v4919_v44, %v4923_v45  ;;  %v4926_v49 = vld [vmem:[%s14486_s3 + $0x650] sm:$0xff]  ;;  %v4963_v30 = vld [vmem:[%s14486_s3 + $0x778] sm:$0xff]  ;;  %v10115_v37 = vcombine.low %v4951_v21, %v4955_v22 }
 0x3ae   : > { %8401 = vmatprep.subr.bf16.mxu1 %v10036_v50  ;;  %v4930_v50 = vld [vmem:[%s14486_s3 + $0x670] sm:$0xff]  ;;  %v4967_v42 = vld [vmem:[%s14486_s3 + $0x798] sm:$0xff]  ;;  %v10123_v45 = vcombine.low %v4959_v29, %v4963_v30 }
 0x3af   : > { %v10089_v60 = vcombine.low %v4926_v49, %v4930_v50  ;;  %v4971_v43 = vld [vmem:[%s14486_s3 + $0x7b8] sm:$0xff] }
 0x3b0   : > { %8230 = vmatpush1.bf16.msra.mxu0 %v10033_v12  ;;  %v10090_v12 = vcombine.high %v4926_v49, %v4930_v50  ;;  %v4975_v49 = vld [vmem:[%s14486_s3 + $0x7d8] sm:$0xff] }
 0x3b1   : > { %8402 = vmatpush1.bf16.msra.mxu1 %v10035_v54  ;;  %8231 = vmatprep.subr.bf16.mxu0 %v10042_v55  ;;  %v10092_v54 = vcombine.high %v4927_v51, %v4931_v52  ;;  %v4934_v55 = vld [vmem:[%s14486_s3 + $0x690] sm:$0xff]  ;;  %v4979_v50 = vld [vmem:[%s14486_s3 + $0x7f8] sm:$0xff]  ;;  %v10131_v52 = vcombine.low %v4967_v42, %v4971_v43 }
 0x3b2   : > { %8403 = vmatprep.subr.bf16.mxu1 %v10044_v56  ;;  %v4938_v56 = vld [vmem:[%s14486_s3 + $0x6b0] sm:$0xff] }
 0x3b3   : > { %v10097_v13 = vcombine.low %v4934_v55, %v4938_v56 }
 0x3b4   : > { %8232 = vmatpush1.bf16.msra.mxu0 %v10041_v62  ;;  %v10098_v62 = vcombine.high %v4934_v55, %v4938_v56  ;;  %v4983_v55 = vld [vmem:[%s14486_s3 + $0x818] sm:$0xff] }
 0x3b5   : > { %8404 = vmatpush1.bf16.msra.mxu1 %v10043_v63  ;;  %8233 = vmatprep.subr.bf16.mxu0 %v10050_v1  ;;  %v10100_v63 = vcombine.high %v4935_v57, %v4939_v58  ;;  %v4942_v1 = vld [vmem:[%s14486_s3 + $0x6d0] sm:$0xff]  ;;  %v4987_v56 = vld [vmem:[%s14486_s3 + $0x838] sm:$0xff]  ;;  %v10139_v58 = vcombine.low %v4975_v49, %v4979_v50 }
 0x3b6   : > { %8405 = vmatprep.subr.bf16.mxu1 %v10052_v6  ;;  %v4946_v6 = vld [vmem:[%s14486_s3 + $0x6f0] sm:$0xff] }
 0x3b7   : > { %v10105_v23 = vcombine.low %v4942_v1, %v4946_v6 }
 0x3b8   : > { %8234 = vmatpush1.bf16.msra.mxu0 %v10049_v17  ;;  %v10106_v17 = vcombine.high %v4942_v1, %v4946_v6  ;;  %v4991_v6 = vld [vmem:[%s14486_s3 + $0x858] sm:$0xff] }
 0x3b9   : > { %8406 = vmatpush1.bf16.msra.mxu1 %v10051_v5  ;;  %8235 = vmatprep.subr.bf16.mxu0 %v10058_v19  ;;  %v10108_v5 = vcombine.high %v4943_v9, %v4947_v11  ;;  %v4950_v19 = vld [vmem:[%s14486_s3 + $0x710] sm:$0xff]  ;;  %v4995_v9 = vld [vmem:[%s14486_s3 + $0x878] sm:$0xff]  ;;  %v10147_v11 = vcombine.low %v4983_v55, %v4987_v56 }
 0x3ba   : > { %8407 = vmatprep.subr.bf16.mxu1 %v10060_v20  ;;  %v4954_v20 = vld [vmem:[%s14486_s3 + $0x730] sm:$0xff] }
 0x3bb   : > { %v10113_v36 = vcombine.low %v4950_v19, %v4954_v20 }
 0x3bc   : > { %8236 = vmatpush1.bf16.msra.mxu0 %v10057_v25  ;;  %v10114_v25 = vcombine.high %v4950_v19, %v4954_v20  ;;  %v4999_v19 = vld [vmem:[%s14486_s3 + $0x898] sm:$0xff] }
 0x3bd   : > { %8408 = vmatpush1.bf16.msra.mxu1 %v10059_v26  ;;  %8237 = vmatprep.subr.bf16.mxu0 %v10066_v27  ;;  %v10116_v26 = vcombine.high %v4951_v21, %v4955_v22  ;;  %v4958_v27 = vld [vmem:[%s14486_s3 + $0x750] sm:$0xff]  ;;  %v5003_v20 = vld [vmem:[%s14486_s3 + $0x8b8] sm:$0xff]  ;;  %v10155_v22 = vcombine.low %v4991_v6, %v4995_v9 }
 0x3be   : > { %8409 = vmatprep.subr.bf16.mxu1 %v10068_v28  ;;  %v4962_v28 = vld [vmem:[%s14486_s3 + $0x770] sm:$0xff] }
 0x3bf   : > { %v10121_v44 = vcombine.low %v4958_v27, %v4962_v28 }
 0x3c0   : > { %8238 = vmatpush1.bf16.msra.mxu0 %v10065_v38  ;;  %v10122_v38 = vcombine.high %v4958_v27, %v4962_v28  ;;  %v5011_v27 = vld [vmem:[%s14486_s3 + $0x8f8] sm:$0xff]  ;;  %v10163_v28 = vcombine.low %v4999_v19, %v5003_v20 }
 0x3c1   : > { %8410 = vmatpush1.bf16.msra.mxu1 %v10067_v39  ;;  %8239 = vmatprep.subr.bf16.mxu0 %v10074_v40  ;;  %v10124_v39 = vcombine.high %v4959_v29, %v4963_v30  ;;  %v4966_v40 = vld [vmem:[%s14486_s3 + $0x790] sm:$0xff] }
 0x3c2   : > { %8411 = vmatprep.subr.bf16.mxu1 %v10076_v41  ;;  %v4970_v41 = vld [vmem:[%s14486_s3 + $0x7b0] sm:$0xff] }
 0x3c3   : > { %v10129_v51 = vcombine.low %v4966_v40, %v4970_v41 }
 0x3c4   : > { %8240 = vmatpush1.bf16.msra.mxu0 %v10073_v46  ;;  %v10130_v46 = vcombine.high %v4966_v40, %v4970_v41 }
 0x3c5   : > { %8412 = vmatpush1.bf16.msra.mxu1 %v10075_v47  ;;  %8241 = vmatprep.subr.bf16.mxu0 %v10082_v48  ;;  %v10132_v47 = vcombine.high %v4967_v42, %v4971_v43  ;;  %v4974_v48 = vld [vmem:[%s14486_s3 + $0x7d0] sm:$0xff] }
 0x3c6   : > { %8413 = vmatprep.subr.bf16.mxu1 %v10084_v32  ;;  %v4978_v32 = vld [vmem:[%s14486_s3 + $0x7f0] sm:$0xff] }
 0x3c7   : > { %v10137_v57 = vcombine.low %v4974_v48, %v4978_v32 }
 0x3c8   : > { %8242 = vmatpush1.bf16.msra.mxu0 %v10081_v0  ;;  %v10138_v0 = vcombine.high %v4974_v48, %v4978_v32 }
 0x3c9   : > { %8414 = vmatpush1.bf16.msra.mxu1 %v10083_v53  ;;  %8243 = vmatprep.subr.bf16.mxu0 %v10090_v12  ;;  %v10140_v53 = vcombine.high %v4975_v49, %v4979_v50  ;;  %v4982_v12 = vld [vmem:[%s14486_s3 + $0x810] sm:$0xff] }
 0x3ca   : > { %8415 = vmatprep.subr.bf16.mxu1 %v10092_v54  ;;  %v4986_v54 = vld [vmem:[%s14486_s3 + $0x830] sm:$0xff] }
 0x3cb   : > { %v10145_v1 = vcombine.low %v4982_v12, %v4986_v54 }
 0x3cc   : > { %8244 = vmatpush1.bf16.msra.mxu0 %v10089_v60  ;;  %v10146_v60 = vcombine.high %v4982_v12, %v4986_v54 }
 0x3cd   : > { %8416 = vmatpush1.bf16.msra.mxu1 %v10091_v61  ;;  %8245 = vmatprep.subr.bf16.mxu0 %v10098_v62  ;;  %v10148_v61 = vcombine.high %v4983_v55, %v4987_v56  ;;  %v4990_v62 = vld [vmem:[%s14486_s3 + $0x850] sm:$0xff] }
 0x3ce   : > { %8417 = vmatprep.subr.bf16.mxu1 %v10100_v63  ;;  %v4994_v63 = vld [vmem:[%s14486_s3 + $0x870] sm:$0xff] }
 0x3cf   : > { %v10153_v21 = vcombine.low %v4990_v62, %v4994_v63 }
 0x3d0   : > { %8246 = vmatpush1.bf16.msra.mxu0 %v10097_v13  ;;  %v10154_v13 = vcombine.high %v4990_v62, %v4994_v63 }
 0x3d1   : > { %8418 = vmatpush1.bf16.msra.mxu1 %v10099_v16  ;;  %8247 = vmatprep.subr.bf16.mxu0 %v10106_v17  ;;  %v4998_v16 = vld [vmem:[%s14486_s3 + $0x890] sm:$0xff] }
 0x3d2   : > { %8419 = vmatprep.subr.bf16.mxu1 %v10108_v5  ;;  %v5002_v17 = vld [vmem:[%s14486_s3 + $0x8b0] sm:$0xff]  ;;  %v10156_v5 = vcombine.high %v4991_v6, %v4995_v9 }
 0x3d3   : > { %v5046_v9 = vld [vmem:[%s14486_s3 + $0xa10] sm:$0xff] }
 0x3d4   : > { %8248 = vmatpush1.bf16.msra.mxu0 %v10105_v23  ;;  %v10162_v23 = vcombine.high %v4998_v16, %v5002_v17 }
 0x3d5   : > { %8420 = vmatpush1.bf16.msra.mxu1 %v10107_v24  ;;  %8249 = vmatprep.subr.bf16.mxu0 %v10114_v25  ;;  %v10164_v24 = vcombine.high %v4999_v19, %v5003_v20  ;;  %v5006_v25 = vld [vmem:[%s14486_s3 + $0x8d0] sm:$0xff] }
 0x3d6   : > { %8421 = vmatprep.subr.bf16.mxu1 %v10116_v26  ;;  %v5010_v26 = vld [vmem:[%s14486_s3 + $0x8f0] sm:$0xff] }
 0x3d7   : > { %v10170_v29 = vcombine.high %v5006_v25, %v5010_v26  ;;  %v10169_v40 = vcombine.low %v5006_v25, %v5010_v26 }
 0x3d8   : > { %8250 = vmatpush1.bf16.msra.mxu0 %v10113_v36  ;;  %v5014_v36 = vld [vmem:[%s14486_s3 + $0x910] sm:$0xff] }
 0x3d9   : > { %8422 = vmatpush1.bf16.msra.mxu1 %v10115_v37  ;;  %8251 = vmatprep.subr.bf16.mxu0 %v10122_v38  ;;  %v5018_v37 = vld [vmem:[%s14486_s3 + $0x930] sm:$0xff]  ;;  %v5015_v38 = vld [vmem:[%s14486_s3 + $0x918] sm:$0xff] }
 0x3da   : > { %8423 = vmatprep.subr.bf16.mxu1 %v10124_v39  ;;  %v5019_v39 = vld [vmem:[%s14486_s3 + $0x938] sm:$0xff]  ;;  %v10178_v42 = vcombine.high %v5014_v36, %v5018_v37  ;;  %v10177_v48 = vcombine.low %v5014_v36, %v5018_v37 }
 0x3db   : > { %v10180_v43 = vcombine.high %v5015_v38, %v5019_v39  ;;  %v10179_v32 = vcombine.low %v5015_v38, %v5019_v39 }
 0x3dc   : > { %8252 = vmatpush1.bf16.msra.mxu0 %v10121_v44  ;;  %v5022_v44 = vld [vmem:[%s14486_s3 + $0x950] sm:$0xff] }
 0x3dd   : > { %8424 = vmatpush1.bf16.msra.mxu1 %v10123_v45  ;;  %8253 = vmatprep.subr.bf16.mxu0 %v10130_v46  ;;  %v5026_v45 = vld [vmem:[%s14486_s3 + $0x970] sm:$0xff]  ;;  %v5023_v46 = vld [vmem:[%s14486_s3 + $0x958] sm:$0xff] }
 0x3de   : > { %8425 = vmatprep.subr.bf16.mxu1 %v10132_v47  ;;  %v5027_v47 = vld [vmem:[%s14486_s3 + $0x978] sm:$0xff]  ;;  %v10186_v49 = vcombine.high %v5022_v44, %v5026_v45  ;;  %v10185_v12 = vcombine.low %v5022_v44, %v5026_v45 }
 0x3df   : > { %v10188_v50 = vcombine.high %v5023_v46, %v5027_v47  ;;  %v10187_v54 = vcombine.low %v5023_v46, %v5027_v47 }
 0x3e0   : > { %8254 = vmatpush1.bf16.msra.mxu0 %v10129_v51  ;;  %v5030_v51 = vld [vmem:[%s14486_s3 + $0x990] sm:$0xff] }
 0x3e1   : > { %8426 = vmatpush1.bf16.msra.mxu1 %v10131_v52  ;;  %8255 = vmatprep.subr.bf16.mxu0 %v10138_v0  ;;  %v5034_v52 = vld [vmem:[%s14486_s3 + $0x9b0] sm:$0xff]  ;;  %v5031_v0 = vld [vmem:[%s14486_s3 + $0x998] sm:$0xff] }
 0x3e2   : > { %8427 = vmatprep.subr.bf16.mxu1 %v10140_v53  ;;  %v5035_v53 = vld [vmem:[%s14486_s3 + $0x9b8] sm:$0xff]  ;;  %v10194_v55 = vcombine.high %v5030_v51, %v5034_v52  ;;  %v10193_v62 = vcombine.low %v5030_v51, %v5034_v52 }
 0x3e3   : > { %v10196_v56 = vcombine.high %v5031_v0, %v5035_v53  ;;  %v10195_v63 = vcombine.low %v5031_v0, %v5035_v53 }
 0x3e4   : > { %8256 = vmatpush1.bf16.msra.mxu0 %v10137_v57  ;;  %v5038_v57 = vld [vmem:[%s14486_s3 + $0x9d0] sm:$0xff] }
 0x3e5   : > { %8428 = vmatpush1.bf16.msra.mxu1 %v10139_v58  ;;  %8268 = vmatprep.subr.bf16.mxu0 %v10146_v60  ;;  %v5042_v58 = vld [vmem:[%s14486_s3 + $0x9f0] sm:$0xff]  ;;  %v5039_v60 = vld [vmem:[%s14486_s3 + $0x9d8] sm:$0xff] }
 0x3e6   : > { %8440 = vmatprep.subr.bf16.mxu1 %v10148_v61  ;;  %v5043_v61 = vld [vmem:[%s14486_s3 + $0x9f8] sm:$0xff] }
 0x3e7   : > { %8258 = vmatmul.mubr.bf16.vlgmr.msra.gmra.mrb[12].mxu0 %v12443_v4  ;;  %v10204_v6 = vcombine.high %v5039_v60, %v5043_v61 }
 0x3e8   : > { %8430 = vmatmul.mubr.bf16.vlgmr.msra.gmra.mrb[12].mxu1 %v12443_v4  ;;  %8269 = vmatpush1.bf16.msra.mxu0 %v10145_v1  ;;  %v5007_v4 = vld [vmem:[%s14486_s3 + $0x8d8] sm:$0xff]  ;;  %v10202_v1 = vcombine.high %v5038_v57, %v5042_v58 }
 0x3e9   : > { %8300 = vmatprep.mubr.bf16.mxu0 %v13272_v15  ;;  %8441 = vmatpush1.bf16.msra.mxu1 %v10147_v11  ;;  %v10172_v30 = vcombine.high %v5007_v4, %v5011_v27  ;;  %v10171_v41 = vcombine.low %v5007_v4, %v5011_v27  ;;  %v5050_v11 = vld [vmem:[%s14486_s3 + $0xa30] sm:$0xff] }
 0x3ea   : > { %8472 = vmatprep.mubr.bf16.mxu1 %v13272_v15  ;;  %8270 = vmatprep.subr.bf16.mxu0 %v10154_v13  ;;  %v10161_v15 = vcombine.low %v4998_v16, %v5002_v17  ;;  %v5047_v13 = vld [vmem:[%s14486_s3 + $0xa18] sm:$0xff]  ;;  %v10201_v17 = vcombine.low %v5038_v57, %v5042_v58  ;;  %v10210_v19 = vcombine.high %v5046_v9, %v5050_v11 }
 0x3eb   : > { %8442 = vmatprep.subr.bf16.mxu1 %v10156_v5  ;;  %v5051_v16 = vld [vmem:[%s14486_s3 + $0xa38] sm:$0xff]  ;;  %v10203_v5 = vcombine.low %v5039_v60, %v5043_v61  ;;  %v10209_v25 = vcombine.low %v5046_v9, %v5050_v11 }
 0x3ec   : > { %8271 = vmatpush1.bf16.msra.mxu0 %v10153_v21  ;;  %v10212_v20 = vcombine.high %v5047_v13, %v5051_v16  ;;  %v5054_v21 = vld [vmem:[%s14486_s3 + $0xa50] sm:$0xff]  ;;  %v10211_v26 = vcombine.low %v5047_v13, %v5051_v16 }
 0x3ed   : > { %8443 = vmatpush1.bf16.msra.mxu1 %v10155_v22  ;;  %8272 = vmatprep.subr.bf16.mxu0 %v10162_v23  ;;  %v5058_v22 = vld [vmem:[%s14486_s3 + $0xa70] sm:$0xff]  ;;  %v5055_v23 = vld [vmem:[%s14486_s3 + $0xa58] sm:$0xff] }
 0x3ee   : > { %8444 = vmatprep.subr.bf16.mxu1 %v10164_v24  ;;  %v5059_v24 = vld [vmem:[%s14486_s3 + $0xa78] sm:$0xff]  ;;  %v10218_v4 = vcombine.high %v5054_v21, %v5058_v22  ;;  %v10217_v36 = vcombine.low %v5054_v21, %v5058_v22 }
 0x3ef   : > { %v10220_v27 = vcombine.high %v5055_v23, %v5059_v24  ;;  %v10219_v37 = vcombine.low %v5055_v23, %v5059_v24 }
 0x3f0   : > { %8273 = vmatpush1.bf16.msra.mxu0 %v10161_v15  ;;  %v5062_v15 = vld [vmem:[%s14486_s3 + $0xa90] sm:$0xff] }
 0x3f1   : > { %8445 = vmatpush1.bf16.msra.mxu1 %v10163_v28  ;;  %8274 = vmatprep.subr.bf16.mxu0 %v10170_v29  ;;  %v5066_v28 = vld [vmem:[%s14486_s3 + $0xab0] sm:$0xff]  ;;  %v5063_v29 = vld [vmem:[%s14486_s3 + $0xa98] sm:$0xff] }
 0x3f2   : > { %8446 = vmatprep.subr.bf16.mxu1 %v10172_v30  ;;  %v5067_v30 = vld [vmem:[%s14486_s3 + $0xab8] sm:$0xff]  ;;  %v10226_v38 = vcombine.high %v5062_v15, %v5066_v28  ;;  %v10225_v44 = vcombine.low %v5062_v15, %v5066_v28 }
 0x3f3   : > { %v10228_v39 = vcombine.high %v5063_v29, %v5067_v30  ;;  %v10227_v45 = vcombine.low %v5063_v29, %v5067_v30 }
 0x3f4   : > { %8275 = vmatpush1.bf16.msra.mxu0 %v10169_v40  ;;  %v5070_v40 = vld [vmem:[%s14486_s3 + $0xad0] sm:$0xff] }
 0x3f5   : > { %8447 = vmatpush1.bf16.msra.mxu1 %v10171_v41  ;;  %8276 = vmatprep.subr.bf16.mxu0 %v10178_v42  ;;  %v5074_v41 = vld [vmem:[%s14486_s3 + $0xaf0] sm:$0xff]  ;;  %v5071_v42 = vld [vmem:[%s14486_s3 + $0xad8] sm:$0xff] }
 0x3f6   : > { %8448 = vmatprep.subr.bf16.mxu1 %v10180_v43  ;;  %v5075_v43 = vld [vmem:[%s14486_s3 + $0xaf8] sm:$0xff]  ;;  %v10234_v46 = vcombine.high %v5070_v40, %v5074_v41  ;;  %v10233_v51 = vcombine.low %v5070_v40, %v5074_v41 }
 0x3f7   : > { %v10236_v47 = vcombine.high %v5071_v42, %v5075_v43  ;;  %v10235_v52 = vcombine.low %v5071_v42, %v5075_v43  ;;  %v5123_v40 = vld [vmem:[%s14486_s3 + $0xc78] sm:$0xff]  ;;  %v5126_v43 = vld [vmem:[%s14486_s3 + $0xc90] sm:$0xff] }
 0x3f8   : > { %8277 = vmatpush1.bf16.msra.mxu0 %v10177_v48  ;;  %v5078_v48 = vld [vmem:[%s14486_s3 + $0xb10] sm:$0xff] }
 0x3f9   : > { %8449 = vmatpush1.bf16.msra.mxu1 %v10179_v32  ;;  %8278 = vmatprep.subr.bf16.mxu0 %v10186_v49  ;;  %v5082_v32 = vld [vmem:[%s14486_s3 + $0xb30] sm:$0xff]  ;;  %v5079_v49 = vld [vmem:[%s14486_s3 + $0xb18] sm:$0xff] }
 0x3fa   : > { %8450 = vmatprep.subr.bf16.mxu1 %v10188_v50  ;;  %v5083_v50 = vld [vmem:[%s14486_s3 + $0xb38] sm:$0xff]  ;;  %v10242_v0 = vcombine.high %v5078_v48, %v5082_v32  ;;  %v10241_v57 = vcombine.low %v5078_v48, %v5082_v32 }
 0x3fb   : > { %v10244_v53 = vcombine.high %v5079_v49, %v5083_v50  ;;  %v10243_v58 = vcombine.low %v5079_v49, %v5083_v50 }
 0x3fc   : > { %8279 = vmatpush1.bf16.msra.mxu0 %v10185_v12  ;;  %v5086_v12 = vld [vmem:[%s14486_s3 + $0xb50] sm:$0xff] }
 0x3fd   : > { %8451 = vmatpush1.bf16.msra.mxu1 %v10187_v54  ;;  %8280 = vmatprep.subr.bf16.mxu0 %v10194_v55  ;;  %v5090_v54 = vld [vmem:[%s14486_s3 + $0xb70] sm:$0xff]  ;;  %v5087_v55 = vld [vmem:[%s14486_s3 + $0xb58] sm:$0xff] }
 0x3fe   : > { %8452 = vmatprep.subr.bf16.mxu1 %v10196_v56  ;;  %v5091_v56 = vld [vmem:[%s14486_s3 + $0xb78] sm:$0xff]  ;;  %v10250_v60 = vcombine.high %v5086_v12, %v5090_v54  ;;  %v10249_v9 = vcombine.low %v5086_v12, %v5090_v54 }
 0x3ff   : > { %v10252_v61 = vcombine.high %v5087_v55, %v5091_v56  ;;  %v10251_v11 = vcombine.low %v5087_v55, %v5091_v56  ;;  %v5142_v55 = vld [vmem:[%s14486_s3 + $0xd10] sm:$0xff] }
 0x400   : > { %8281 = vmatpush1.bf16.msra.mxu0 %v10193_v62  ;;  %v5094_v62 = vld [vmem:[%s14486_s3 + $0xb90] sm:$0xff] }
 0x401   : > { %8453 = vmatpush1.bf16.msra.mxu1 %v10195_v63  ;;  %8282 = vmatprep.subr.bf16.mxu0 %v10202_v1  ;;  %v5098_v63 = vld [vmem:[%s14486_s3 + $0xbb0] sm:$0xff]  ;;  %v5095_v1 = vld [vmem:[%s14486_s3 + $0xb98] sm:$0xff] }
 0x402   : > { %8454 = vmatprep.subr.bf16.mxu1 %v10204_v6  ;;  %v5099_v6 = vld [vmem:[%s14486_s3 + $0xbb8] sm:$0xff]  ;;  %v10258_v13 = vcombine.high %v5094_v62, %v5098_v63  ;;  %v10257_v21 = vcombine.low %v5094_v62, %v5098_v63  ;;  %v5146_v56 = vld [vmem:[%s14486_s3 + $0xd30] sm:$0xff] }
 0x403   : > { %v10260_v16 = vcombine.high %v5095_v1, %v5099_v6  ;;  %v10259_v22 = vcombine.low %v5095_v1, %v5099_v6  ;;  %v10306_v62 = vcombine.high %v5142_v55, %v5146_v56  ;;  %v5150_v1 = vld [vmem:[%s14486_s3 + $0xd50] sm:$0xff] }
 0x404   : > { %8283 = vmatpush1.bf16.msra.mxu0 %v10201_v17  ;;  %v5102_v17 = vld [vmem:[%s14486_s3 + $0xbd0] sm:$0xff] }
 0x405   : > { %8455 = vmatpush1.bf16.msra.mxu1 %v10203_v5  ;;  %8284 = vmatprep.subr.bf16.mxu0 %v10210_v19  ;;  %v5106_v5 = vld [vmem:[%s14486_s3 + $0xbf0] sm:$0xff]  ;;  %v5103_v19 = vld [vmem:[%s14486_s3 + $0xbd8] sm:$0xff] }
 0x406   : > { %8456 = vmatprep.subr.bf16.mxu1 %v10212_v20  ;;  %v5107_v20 = vld [vmem:[%s14486_s3 + $0xbf8] sm:$0xff]  ;;  %v10266_v23 = vcombine.high %v5102_v17, %v5106_v5  ;;  %v10265_v15 = vcombine.low %v5102_v17, %v5106_v5  ;;  %v5154_v6 = vld [vmem:[%s14486_s3 + $0xd70] sm:$0xff] }
 0x407   : > { %v10268_v24 = vcombine.high %v5103_v19, %v5107_v20  ;;  %v10267_v28 = vcombine.low %v5103_v19, %v5107_v20  ;;  %v10314_v5 = vcombine.high %v5150_v1, %v5154_v6  ;;  %v5158_v20 = vld [vmem:[%s14486_s3 + $0xd90] sm:$0xff] }
 0x408   : > { %8285 = vmatpush1.bf16.msra.mxu0 %v10209_v25  ;;  %v5110_v25 = vld [vmem:[%s14486_s3 + $0xc10] sm:$0xff] }
 0x409   : > { %8457 = vmatpush1.bf16.msra.mxu1 %v10211_v26  ;;  %8286 = vmatprep.subr.bf16.mxu0 %v10218_v4  ;;  %v5114_v26 = vld [vmem:[%s14486_s3 + $0xc30] sm:$0xff]  ;;  %v5111_v4 = vld [vmem:[%s14486_s3 + $0xc18] sm:$0xff] }
 0x40a   : > { %8458 = vmatprep.subr.bf16.mxu1 %v10220_v27  ;;  %v5115_v27 = vld [vmem:[%s14486_s3 + $0xc38] sm:$0xff]  ;;  %v10274_v29 = vcombine.high %v5110_v25, %v5114_v26 }
 0x40b   : > { %v10276_v30 = vcombine.high %v5111_v4, %v5115_v27  ;;  %v10275_v41 = vcombine.low %v5111_v4, %v5115_v27  ;;  %v10313_v4 = vcombine.low %v5150_v1, %v5154_v6 }
 0x40c   : > { %8287 = vmatpush1.bf16.msra.mxu0 %v10217_v36  ;;  %v5118_v36 = vld [vmem:[%s14486_s3 + $0xc50] sm:$0xff] }
 0x40d   : > { %8459 = vmatpush1.bf16.msra.mxu1 %v10219_v37  ;;  %8288 = vmatprep.subr.bf16.mxu0 %v10226_v38  ;;  %v5122_v37 = vld [vmem:[%s14486_s3 + $0xc70] sm:$0xff]  ;;  %v10273_v38 = vcombine.low %v5110_v25, %v5114_v26  ;;  %v5163_v25 = vld [vmem:[%s14486_s3 + $0xdb8] sm:$0xff] }
 0x40e   : > { %8460 = vmatprep.subr.bf16.mxu1 %v10228_v39  ;;  %v5119_v39 = vld [vmem:[%s14486_s3 + $0xc58] sm:$0xff]  ;;  %v10282_v42 = vcombine.high %v5118_v36, %v5122_v37  ;;  %v10281_v48 = vcombine.low %v5118_v36, %v5122_v37 }
 0x40f   : > { %v10283_v32 = vcombine.low %v5119_v39, %v5123_v40 }
 0x410   : > { %8289 = vmatpush1.bf16.msra.mxu0 %v10225_v44  ;;  %v5130_v44 = vld [vmem:[%s14486_s3 + $0xcb0] sm:$0xff] }
 0x411   : > { %8461 = vmatpush1.bf16.msra.mxu1 %v10227_v45  ;;  %8290 = vmatprep.subr.bf16.mxu0 %v10234_v46  ;;  %v10284_v45 = vcombine.high %v5119_v39, %v5123_v40  ;;  %v5127_v46 = vld [vmem:[%s14486_s3 + $0xc98] sm:$0xff]  ;;  %v10290_v49 = vcombine.high %v5126_v43, %v5130_v44 }
 0x412   : > { %8462 = vmatprep.subr.bf16.mxu1 %v10236_v47  ;;  %v5131_v47 = vld [vmem:[%s14486_s3 + $0xcb8] sm:$0xff] }
 0x413   : > { %v10292_v50 = vcombine.high %v5127_v46, %v5131_v47  ;;  %v5167_v40 = vld [vmem:[%s14486_s3 + $0xdd8] sm:$0xff] }
 0x414   : > { %8291 = vmatpush1.bf16.msra.mxu0 %v10233_v51  ;;  %v5134_v51 = vld [vmem:[%s14486_s3 + $0xcd0] sm:$0xff] }
 0x415   : > { %8463 = vmatpush1.bf16.msra.mxu1 %v10235_v52  ;;  %8292 = vmatprep.subr.bf16.mxu0 %v10242_v0  ;;  %v5138_v52 = vld [vmem:[%s14486_s3 + $0xcf0] sm:$0xff]  ;;  %v5139_v0 = vld [vmem:[%s14486_s3 + $0xcf8] sm:$0xff] }
 0x416   : > { %8464 = vmatprep.subr.bf16.mxu1 %v10244_v53  ;;  %v10291_v53 = vcombine.low %v5127_v46, %v5131_v47  ;;  %v10298_v12 = vcombine.high %v5134_v51, %v5138_v52 }
 0x418   : > { %8293 = vmatpush1.bf16.msra.mxu0 %v10241_v57  ;;  %v5143_v57 = vld [vmem:[%s14486_s3 + $0xd18] sm:$0xff] }
 0x419   : > { %8465 = vmatpush1.bf16.msra.mxu1 %v10243_v58  ;;  %8294 = vmatprep.subr.bf16.mxu0 %v10250_v60  ;;  %v5147_v58 = vld [vmem:[%s14486_s3 + $0xd38] sm:$0xff]  ;;  %v10297_v60 = vcombine.low %v5134_v51, %v5138_v52 }
 0x41a   : > { %8466 = vmatprep.subr.bf16.mxu1 %v10252_v61  ;;  %v10308_v63 = vcombine.high %v5143_v57, %v5147_v58  ;;  %v10307_v17 = vcombine.low %v5143_v57, %v5147_v58  ;;  %v5175_v58 = vld [vmem:[%s14486_s3 + $0xe18] sm:$0xff] }
 0x41c   : > { %8295 = vmatpush1.bf16.msra.mxu0 %v10249_v9  ;;  %v5151_v9 = vld [vmem:[%s14486_s3 + $0xd58] sm:$0xff] }
 0x41d   : > { %8467 = vmatpush1.bf16.msra.mxu1 %v10251_v11  ;;  %8296 = vmatprep.subr.bf16.mxu0 %v10258_v13  ;;  %v5155_v11 = vld [vmem:[%s14486_s3 + $0xd78] sm:$0xff]  ;;  %v10305_v13 = vcombine.low %v5142_v55, %v5146_v56 }
 0x41e   : > { %8468 = vmatprep.subr.bf16.mxu1 %v10260_v16  ;;  %v14121_v16 = vld [vmem:[%s14487_s4] sm:$0xff]  ;;  %v10316_v19 = vcombine.high %v5151_v9, %v5155_v11 }
 0x41f   : > { %v5245_v26 = vrot.slane %v14121_v16, %v880_v8 }
 0x420   : > { %8297 = vmatpush1.bf16.msra.mxu0 %v10257_v21  ;;  %v5162_v21 = vld [vmem:[%s14486_s3 + $0xdb0] sm:$0xff] }
 0x421   : > { %8469 = vmatpush1.bf16.msra.mxu1 %v10259_v22  ;;  %8298 = vmatprep.subr.bf16.mxu0 %v10266_v23  ;;  %v5241_v22 = vrot.slane %v14121_v16, %v876_v2  ;;  %v5249_v23 = vrot.slane %v14121_v16, %v884_v7  ;;  %v5253_v2 = vrot.slane %v14121_v16, %v888_v10 }
 0x422   : > { %8470 = vmatprep.subr.bf16.mxu1 %v10268_v24  ;;  %v5159_v24 = vld [vmem:[%s14486_s3 + $0xd98] sm:$0xff]  ;;  %v10315_v7 = vcombine.low %v5151_v9, %v5155_v11  ;;  %v10322_v27 = vcombine.high %v5158_v20, %v5162_v21  ;;  %v10321_v39 = vcombine.low %v5158_v20, %v5162_v21  ;;  %v5186_v20 = vld [vmem:[%s14486_s3 + $0xe70] sm:$0xff] }
 0x423   : > { %v10324_v8 = vcombine.high %v5159_v24, %v5163_v25  ;;  %v10323_v46 = vcombine.low %v5159_v24, %v5163_v25  ;;  %v5183_v21 = vld [vmem:[%s14486_s3 + $0xe58] sm:$0xff] }
 0x424   : > { %8299 = vmatpush1.bf16.msra.mxu0 %v10265_v15  ;;  %v5166_v15 = vld [vmem:[%s14486_s3 + $0xdd0] sm:$0xff] }
 0x425   : > { %8471 = vmatpush1.bf16.msra.mxu1 %v10267_v28  ;;  %8311 = vmatprep.subr.bf16.mxu0 %v10274_v29  ;;  %v5170_v28 = vld [vmem:[%s14486_s3 + $0xdf0] sm:$0xff] }
 0x426   : > { %8483 = vmatprep.subr.bf16.mxu1 %v10276_v30  ;;  %v10329_v47 = vcombine.low %v5166_v15, %v5170_v28  ;;  %v10330_v51 = vcombine.high %v5166_v15, %v5170_v28 }
 0x427   : > { %8301 = vmatmul.mubr.bf16.vlgmr.msra.gmra.mrb[12].mxu0 %v13259_v3 }
 0x428   : > { %8473 = vmatmul.mubr.bf16.vlgmr.msra.gmra.mrb[12].mxu1 %v13259_v3  ;;  %8312 = vmatpush1.bf16.msra.mxu0 %v10273_v38  ;;  %v5135_v3 = vld [vmem:[%s14486_s3 + $0xcd8] sm:$0xff] }
 0x429   : > { %8343 = vmatprep.mubr.bf16.mxu0 %v13278_v18  ;;  %8484 = vmatpush1.bf16.msra.mxu1 %v10275_v41  ;;  %v10300_v54 = vcombine.high %v5135_v3, %v5139_v0  ;;  %v10299_v61 = vcombine.low %v5135_v3, %v5139_v0  ;;  %v5171_v41 = vld [vmem:[%s14486_s3 + $0xdf8] sm:$0xff] }
 0x42a   : > { %8515 = vmatprep.mubr.bf16.mxu1 %v13278_v18  ;;  %8313 = vmatprep.subr.bf16.mxu0 %v10282_v42  ;;  %v10289_v18 = vcombine.low %v5126_v43, %v5130_v44  ;;  %v10331_v0 = vcombine.low %v5167_v40, %v5171_v41 }
 0x42b   : > { %8485 = vmatprep.subr.bf16.mxu1 %v10284_v45 }
 0x42c   : > { %8314 = vmatpush1.bf16.msra.mxu0 %v10281_v48 }
 0x42d   : > { %8486 = vmatpush1.bf16.msra.mxu1 %v10283_v32  ;;  %8315 = vmatprep.subr.bf16.mxu0 %v10290_v49 }
 0x42e   : > { %8487 = vmatprep.subr.bf16.mxu1 %v10292_v50 }
 0x430   : > { %8316 = vmatpush1.bf16.msra.mxu0 %v10289_v18  ;;  %v10332_v18 = vcombine.high %v5167_v40, %v5171_v41 }
 0x431   : > { %8488 = vmatpush1.bf16.msra.mxu1 %v10291_v53  ;;  %8317 = vmatprep.subr.bf16.mxu0 %v10298_v12  ;;  %v5174_v53 = vld [vmem:[%s14486_s3 + $0xe10] sm:$0xff] }
 0x432   : > { %8489 = vmatprep.subr.bf16.mxu1 %v10300_v54  ;;  %v5178_v12 = vld [vmem:[%s14486_s3 + $0xe30] sm:$0xff] }
 0x433   : > { %v10338_v11 = vcombine.high %v5174_v53, %v5178_v12 }
 0x434   : > { %8318 = vmatpush1.bf16.msra.mxu0 %v10297_v60  ;;  %v5179_v60 = vld [vmem:[%s14486_s3 + $0xe38] sm:$0xff] }
 0x435   : > { %8490 = vmatpush1.bf16.msra.mxu1 %v10299_v61  ;;  %8319 = vmatprep.subr.bf16.mxu0 %v10306_v62  ;;  %v10339_v24 = vcombine.low %v5175_v58, %v5179_v60 }
 0x436   : > { %8491 = vmatprep.subr.bf16.mxu1 %v10308_v63 }
 0x438   : > { %8320 = vmatpush1.bf16.msra.mxu0 %v10305_v13 }
 0x439   : > { %8492 = vmatpush1.bf16.msra.mxu1 %v10307_v17  ;;  %8321 = vmatprep.subr.bf16.mxu0 %v10314_v5  ;;  %v10340_v5 = vcombine.high %v5175_v58, %v5179_v60 }
 0x43a   : > { %v8001_v29 = vpop.f32.mrb[8].mxu0  ;;  %v8173_v30 = vpop.f32.mrb[8].mxu1  ;;  %8493 = vmatprep.subr.bf16.mxu1 %v10316_v19  ;;  %v5182_v19 = vld [vmem:[%s14486_s3 + $0xe50] sm:$0xff] }
 0x43b   : > { %v10568_v36 = vadd.f32 %v8001_v29, %v5241_v22  ;;  %v10572_v37 = vadd.f32 %v8173_v30, %v5249_v23  ;;  %v8003_v10 = vpop.f32.mrb[9].mxu0  ;;  %v8175_v38 = vpop.f32.mrb[9].mxu1  ;;  %v10346_v25 = vcombine.high %v5182_v19, %v5186_v20  ;;  %v10345_v15 = vcombine.low %v5182_v19, %v5186_v20 }
 0x43c   : > { %v10569_v42 = vadd.f32 %v8003_v10, %v5245_v26  ;;  %v10573_v43 = vadd.f32 %v8175_v38, %v5253_v2  ;;  %v8005_v44 = vpop.f32.mrb[10].mxu0  ;;  %v8177_v45 = vpop.f32.mrb[10].mxu1  ;;  %8322 = vmatpush1.bf16.msra.mxu0 %v10313_v4  ;;  %v5194_v4 = vld [vmem:[%s14486_s3 + $0xeb0] sm:$0xff]  ;;  %v5203_v10 = vld [vmem:[%s14486_s3 + $0xef8] sm:$0xff] }
 0x43d   : > { %v10570_v48 = vadd.f32 %v8005_v44, %v5241_v22  ;;  %v10574_v32 = vadd.f32 %v8177_v45, %v5249_v23  ;;  %8494 = vmatpush1.bf16.msra.mxu1 %v10315_v7  ;;  %v8007_v49 = vpop.f32.mrb[11].mxu0  ;;  %v8179_v50 = vpop.f32.mrb[11].mxu1  ;;  %8323 = vmatprep.subr.bf16.mxu0 %v10322_v27  ;;  %v8526_v54 = vmax.f32 %v10568_v36, 0.0  ;;  %v8528_v55 = vmax.f32 %v10572_v37, 0.0  ;;  %v5187_v22 = vld [vmem:[%s14486_s3 + $0xe78] sm:$0xff]  ;;  %v5202_v36 = vld [vmem:[%s14486_s3 + $0xef0] sm:$0xff] }
 0x43e   : > { %v10571_v52 = vadd.f32 %v8007_v49, %v5245_v26  ;;  %v10575_v3 = vadd.f32 %v8179_v50, %v5253_v2  ;;  %8495 = vmatprep.subr.bf16.mxu1 %v10324_v8  ;;  %v8527_v61 = vmax.f32 %v10569_v42, 0.0  ;;  %v8529_v62 = vmax.f32 %v10573_v43, 0.0  ;;  %v5190_v2 = vld [vmem:[%s14486_s3 + $0xe90] sm:$0xff]  ;;  %v5191_v7 = vld [vmem:[%s14486_s3 + $0xe98] sm:$0xff] }
 0x43f   : > { %v8534_v56 = vmax.f32 %v10570_v48, 0.0  ;;  %v8536_v57 = vmax.f32 %v10574_v32, 0.0  ;;  %v10337_v23 = vcombine.low %v5174_v53, %v5178_v12  ;;  %v10348_v26 = vcombine.high %v5183_v21, %v5187_v22  ;;  %v5195_v27 = vld [vmem:[%s14486_s3 + $0xeb8] sm:$0xff]  ;;  %v5198_v8 = vld [vmem:[%s14486_s3 + $0xed0] sm:$0xff] }
 0x440   : > { %v8535_v63 = vmax.f32 %v10571_v52, 0.0  ;;  %v8537_v1 = vmax.f32 %v10575_v3, 0.0  ;;  %8324 = vmatpush1.bf16.msra.mxu0 %v10321_v39  ;;  %v10347_v28 = vcombine.low %v5183_v21, %v5187_v22  ;;  %v10354_v29 = vcombine.high %v5190_v2, %v5194_v4  ;;  %v5199_v37 = vld [vmem:[%s14486_s3 + $0xed8] sm:$0xff]  ;;  %v5206_v42 = vld [vmem:[%s14486_s3 + $0xf10] sm:$0xff] }
 0x441   : > { %v14171_v6 = vpack.c.bf16 %v8534_v56, %v8526_v54  ;;  %v14173_v9 = vpack.c.bf16 %v8536_v57, %v8528_v55  ;;  %8496 = vmatpush1.bf16.msra.mxu1 %v10323_v46  ;;  %8325 = vmatprep.subr.bf16.mxu0 %v10330_v51  ;;  %v10356_v30 = vcombine.high %v5191_v7, %v5195_v27  ;;  %v5210_v43 = vld [vmem:[%s14486_s3 + $0xf30] sm:$0xff]  ;;  %v5207_v44 = vld [vmem:[%s14486_s3 + $0xf18] sm:$0xff] }
 0x442   : > { %v14175_v13 = vpack.c.bf16 %v8535_v63, %v8527_v61  ;;  %v14177_v17 = vpack.c.bf16 %v8537_v1, %v8529_v62  ;;  %8497 = vmatprep.subr.bf16.mxu1 %v10332_v18  ;;  %v10353_v38 = vcombine.low %v5190_v2, %v5194_v4  ;;  %v10355_v39 = vcombine.low %v5191_v7, %v5195_v27  ;;  %v5211_v45 = vld [vmem:[%s14486_s3 + $0xf38] sm:$0xff]  ;;  %v5214_v49 = vld [vmem:[%s14486_s3 + $0xf50] sm:$0xff]  ;;  %v10722_v2 = vld [vmem:[%s14488_s5 + $0x80] sm:$0xff]  }
 0x443   : > { %v10362_v40 = vcombine.high %v5198_v8, %v5202_v36  ;;  %v10364_v41 = vcombine.high %v5199_v37, %v5203_v10  ;;  %v10361_v46 = vcombine.low %v5198_v8, %v5202_v36  ;;  %v10370_v48 = vcombine.high %v5206_v42, %v5210_v43  ;;  %v5218_v50 = vld [vmem:[%s14486_s3 + $0xf70] sm:$0xff]  ;;  %v5215_v51 = vld [vmem:[%s14486_s3 + $0xf58] sm:$0xff]  ;;  %v10723_v4 = vld [vmem:[%s14488_s5 + $0x48] sm:$0xff]  }
 0x444   : > { %8326 = vmatpush1.bf16.msra.mxu0 %v10329_v47  ;;  %v10363_v47 = vcombine.low %v5199_v37, %v5203_v10  ;;  %v10372_v32 = vcombine.high %v5207_v44, %v5211_v45  ;;  %v5219_v52 = vld [vmem:[%s14486_s3 + $0xf78] sm:$0xff]  ;;  %v10369_v3 = vcombine.low %v5206_v42, %v5210_v43  ;;  %v10378_v18 = vcombine.high %v5214_v49, %v5218_v50  ;;  %v5222_v12 = vld [vmem:[%s14486_s3 + $0xf90] sm:$0xff]  ;;  %v10724_v7 = vld [vmem:[%s14488_s5 + $0xc8] sm:$0xff]  }
 0x445   : > { %8498 = vmatpush1.bf16.msra.mxu1 %v10331_v0  ;;  %8327 = vmatprep.subr.bf16.mxu0 %v10338_v11  ;;  %v10371_v0 = vcombine.low %v5207_v44, %v5211_v45  ;;  %v10380_v53 = vcombine.high %v5215_v51, %v5219_v52  ;;  %v5226_v54 = vld [vmem:[%s14486_s3 + $0xfb0] sm:$0xff]  ;;  %v5223_v55 = vld [vmem:[%s14486_s3 + $0xf98] sm:$0xff]  ;;  %v10377_v57 = vcombine.low %v5214_v49, %v5218_v50  ;;  %v10725_v27 = vld [vmem:[%s14488_s5 + $0x8] sm:$0xff]  }
 0x446   : > { %8499 = vmatprep.subr.bf16.mxu1 %v10340_v5  ;;  %v5227_v56 = vld [vmem:[%s14486_s3 + $0xfb8] sm:$0xff]  ;;  %v10379_v58 = vcombine.low %v5215_v51, %v5219_v52  ;;  %v10386_v60 = vcombine.high %v5222_v12, %v5226_v54  ;;  %v5230_v62 = vld [vmem:[%s14486_s3 + $0xfd0] sm:$0xff]  ;;  %v10385_v5 = vcombine.low %v5222_v12, %v5226_v54  ;;  %v10735_v37 = vld [vmem:[%s14488_s5 + $0x60] sm:$0xff]  }
 0x447   : > { %v10388_v61 = vcombine.high %v5223_v55, %v5227_v56  ;;  %v5234_v63 = vld [vmem:[%s14486_s3 + $0xff0] sm:$0xff]  ;;  %v5231_v1 = vld [vmem:[%s14486_s3 + $0xfd8] sm:$0xff]  ;;  %v10387_v19 = vcombine.low %v5223_v55, %v5227_v56  ;;  %v10736_v10 = vld [vmem:[%s14488_s5 + $0xe0] sm:$0xff]  }
 0x448   : > { %8328 = vmatpush1.bf16.msra.mxu0 %v10337_v23  ;;  %v5235_v11 = vld [vmem:[%s14486_s3 + $0xff8] sm:$0xff]  ;;  %v10394_v20 = vcombine.high %v5230_v62, %v5234_v63  ;;  %v10393_v22 = vcombine.low %v5230_v62, %v5234_v63  ;;  %v10741_v42 = vld [vmem:[%s14488_s5 + $0x28] sm:$0xff]   ;;  %v10743_v44 = vld [vmem:[%s14488_s5 + $0x70] sm:$0xff]  }
 0x449   : > { %8500 = vmatpush1.bf16.msra.mxu1 %v10339_v24  ;;  %8329 = vmatprep.subr.bf16.mxu0 %v10346_v25  ;;  %v10396_v21 = vcombine.high %v5231_v1, %v5235_v11  ;;  %v10395_v23 = vcombine.low %v5231_v1, %v5235_v11  ;;  %v10719_v24 = vld [vmem:[%s14488_s5 + $0x40] sm:$0xff]   ;;  %v10733_v8 = vld [vmem:[%s14488_s5 + $0x18] sm:$0xff]   ;;  %v10742_v43 = vld [vmem:[%s14488_s5 + $0xa8] sm:$0xff]  }
 0x44a   : > { %8501 = vmatprep.subr.bf16.mxu1 %v10348_v26  ;;  %v10720_v25 = vld [vmem:[%s14488_s5 + $0xc0] sm:$0xff]   ;;  %v10734_v36 = vld [vmem:[%s14488_s5 + $0x98] sm:$0xff]   ;;  %v10744_v45 = vld [vmem:[%s14488_s5 + $0xf0] sm:$0xff]  }
 0x44b   : > { %v10721_v26 = vld [vmem:[%s14488_s5] sm:$0xff]   ;;  %v10749_v49 = vld [vmem:[%s14488_s5 + $0x38] sm:$0xff]   ;;  %v10757_v12 = vld [vmem:[%s14488_s5 + $0x108] sm:$0xff]  }
 0x44c   : > { %8330 = vmatpush1.bf16.msra.mxu0 %v10345_v15  ;;  %v10726_v15 = vld [vmem:[%s14488_s5 + $0x88] sm:$0xff]   ;;  %v10750_v50 = vld [vmem:[%s14488_s5 + $0xb8] sm:$0xff]   ;;  %v10751_v51 = vld [vmem:[%s14488_s5 + $0x140] sm:$0xff]  }
 0x44d   : > { %8502 = vmatpush1.bf16.msra.mxu1 %v10347_v28  ;;  %8331 = vmatprep.subr.bf16.mxu0 %v10354_v29  ;;  %v10727_v28 = vld [vmem:[%s14488_s5 + $0x50] sm:$0xff]   ;;  %v10752_v52 = vld [vmem:[%s14488_s5 + $0x1c0] sm:$0xff]   ;;  %v10758_v54 = vld [vmem:[%s14488_s5 + $0x188] sm:$0xff]  }
 0x44e   : > { %8503 = vmatprep.subr.bf16.mxu1 %v10356_v30  ;;  %v10730_v29 = vld [vmem:[%s14488_s5 + $0x90] sm:$0xff]   ;;  %v10732_v30 = vld [vmem:[%s14488_s5 + $0xd8] sm:$0xff]   ;;  %v10767_v62 = vld [vmem:[%s14488_s5 + $0x160] sm:$0xff]  }
 0x44f   : > { %v10759_v55 = vld [vmem:[%s14488_s5 + $0x150] sm:$0xff]   ;;  %v10768_v63 = vld [vmem:[%s14488_s5 + $0x1e0] sm:$0xff]  }
 0x450   : > { %8332 = vmatpush1.bf16.msra.mxu0 %v10353_v38  ;;  %v10737_v38 = vld [vmem:[%s14488_s5 + $0x20] sm:$0xff]   ;;  %v10762_v56 = vld [vmem:[%s14488_s5 + $0x190] sm:$0xff]  }
 0x451   : > { %8504 = vmatpush1.bf16.msra.mxu1 %v10355_v39  ;;  %8333 = vmatprep.subr.bf16.mxu0 %v10362_v40  ;;  %v10738_v39 = vld [vmem:[%s14488_s5 + $0xa0] sm:$0xff]   ;;  %v10739_v40 = vld [vmem:[%s14488_s5 + $0x68] sm:$0xff]  }
 0x452   : > { %8505 = vmatprep.subr.bf16.mxu1 %v10364_v41  ;;  %v10740_v41 = vld [vmem:[%s14488_s5 + $0xe8] sm:$0xff]   ;;  %v10769_v1 = vld [vmem:[%s14488_s5 + $0x120] sm:$0xff]  }
 0x453   : > { %v10770_v11 = vld [vmem:[%s14488_s5 + $0x1a0] sm:$0xff]  }
 0x454   : > { %8334 = vmatpush1.bf16.msra.mxu0 %v10361_v46  ;;  %v10745_v46 = vld [vmem:[%s14488_s5 + $0x30] sm:$0xff]  }
 0x455   : > { %8506 = vmatpush1.bf16.msra.mxu1 %v10363_v47  ;;  %8335 = vmatprep.subr.bf16.mxu0 %v10370_v48  ;;  %v10746_v47 = vld [vmem:[%s14488_s5 + $0xb0] sm:$0xff]   ;;  %v10747_v48 = vld [vmem:[%s14488_s5 + $0x78] sm:$0xff]  }
 0x456   : > { %8507 = vmatprep.subr.bf16.mxu1 %v10372_v32  ;;  %v10748_v32 = vld [vmem:[%s14488_s5 + $0xf8] sm:$0xff]  }
 0x458   : > { %8336 = vmatpush1.bf16.msra.mxu0 %v10369_v3  ;;  %v10753_v3 = vld [vmem:[%s14488_s5 + $0x100] sm:$0xff]  }
 0x459   : > { %8508 = vmatpush1.bf16.msra.mxu1 %v10371_v0  ;;  %8337 = vmatprep.subr.bf16.mxu0 %v10378_v18  ;;  %v10754_v0 = vld [vmem:[%s14488_s5 + $0x180] sm:$0xff]   ;;  %v10755_v18 = vld [vmem:[%s14488_s5 + $0x148] sm:$0xff]  }
 0x45a   : > { %8509 = vmatprep.subr.bf16.mxu1 %v10380_v53  ;;  %v10756_v53 = vld [vmem:[%s14488_s5 + $0x1c8] sm:$0xff]  }
 0x45c   : > { %8338 = vmatpush1.bf16.msra.mxu0 %v10377_v57  ;;  %v10763_v57 = vld [vmem:[%s14488_s5 + $0x158] sm:$0xff]  }
 0x45d   : > { %8510 = vmatpush1.bf16.msra.mxu1 %v10379_v58  ;;  %8339 = vmatprep.subr.bf16.mxu0 %v10386_v60  ;;  %v10764_v58 = vld [vmem:[%s14488_s5 + $0x1d8] sm:$0xff]  }
 0x45e   : > { %8511 = vmatprep.subr.bf16.mxu1 %v10388_v61  ;;  %v10765_v60 = vld [vmem:[%s14488_s5 + $0x118] sm:$0xff]  }
 0x45f   : > { %v10766_v61 = vld [vmem:[%s14488_s5 + $0x198] sm:$0xff]  }
 0x460   : > { %8340 = vmatpush1.bf16.msra.mxu0 %v10385_v5  ;;  %v10771_v5 = vld [vmem:[%s14488_s5 + $0x168] sm:$0xff]  }
 0x461   : > { %8512 = vmatpush1.bf16.msra.mxu1 %v10387_v19  ;;  %8341 = vmatprep.subr.bf16.mxu0 %v10394_v20  ;;  %v10772_v19 = vld [vmem:[%s14488_s5 + $0x1e8] sm:$0xff]  }
 0x462   : > { %8513 = vmatprep.subr.bf16.mxu1 %v10396_v21  ;;  %v10773_v20 = vld [vmem:[%s14488_s5 + $0x128] sm:$0xff]  }
 0x463   : > { %v10774_v21 = vld [vmem:[%s14488_s5 + $0x1a8] sm:$0xff]  }
 0x464   : > { %8342 = vmatpush1.bf16.msra.mxu0 %v10393_v22  ;;  %v10775_v22 = vld [vmem:[%s14488_s5 + $0x170] sm:$0xff]  }
 0x465   : > { %8514 = vmatpush1.bf16.msra.mxu1 %v10395_v23  ;;  %10464 = vmatprep.subr.bf16.mxu0 %v10719_v24  ;;  %v10776_v23 = vld [vmem:[%s14488_s5 + $0x1f0] sm:$0xff]  }
 0x466   : > { %10486 = vmatprep.subr.bf16.mxu1 %v10720_v25  ;;  %v10777_v24 = vld [vmem:[%s14488_s5 + $0x130] sm:$0xff]  }
 0x467   : > { %8344 = vmatmul.mubr.bf16.vlgmr.msra.gmra.mrb[12].mxu0 %v13270_v14  ;;  %v10778_v25 = vld [vmem:[%s14488_s5 + $0x1b0] sm:$0xff]  }
 0x468   : > { %8516 = vmatmul.mubr.bf16.vlgmr.msra.gmra.mrb[12].mxu1 %v13270_v14  ;;  %10465 = vmatpush3.bf16.msra.mxu0 %v10721_v26  ;;  %v10728_v14 = vld [vmem:[%s14488_s5 + $0xd0] sm:$0xff]   ;;  %v10779_v26 = vld [vmem:[%s14488_s5 + $0x178] sm:$0xff]  }
 0x469   : > { %9101 = vmatprep.mubr.bf16.mxu0 %v14175_v13  ;;  %10487 = vmatpush3.bf16.msra.mxu1 %v10722_v2  ;;  %v10729_v13 = vld [vmem:[%s14488_s5 + $0x10] sm:$0xff]   ;;  %v10780_v2 = vld [vmem:[%s14488_s5 + $0x1f8] sm:$0xff]  }
 0x46a   : > { %9142 = vmatprep.mubr.bf16.mxu1 %v14177_v17  ;;  %10466 = vmatprep.subr.bf16.mxu0 %v10723_v4  ;;  %v10731_v17 = vld [vmem:[%s14488_s5 + $0x58] sm:$0xff]  }
 0x46b   : > { %10488 = vmatprep.subr.bf16.mxu1 %v10724_v7  ;;  %v10781_v4 = vld [vmem:[%s14488_s5 + $0x138] sm:$0xff]  }
 0x46c   : > { %10467 = vmatpush3.bf16.msra.mxu0 %v10725_v27  ;;  %v10782_v7 = vld [vmem:[%s14488_s5 + $0x1b8] sm:$0xff]   ;;  %v5257_v27 = vrot.slane %v14121_v16, %v892_v31 }
 0x46d   : > { %10489 = vmatpush3.bf16.msra.mxu1 %v10726_v15  ;;  %10468 = vmatprep.subr.bf16.mxu0 %v10727_v28  ;;  %v5265_v15 = vrot.slane %v14121_v16, %v900_v33  ;;  %v5261_v28 = vrot.slane %v14121_v16, %v896_v34 }
 0x46e   : > { %10490 = vmatprep.subr.bf16.mxu1 %v10728_v14  ;;  %v5269_v14 = vrot.slane %v14121_v16, %v904_v35 }
 0x470   : > { %10469 = vmatpush3.bf16.msra.mxu0 %v10729_v13 }
 0x471   : > { %10491 = vmatpush3.bf16.msra.mxu1 %v10730_v29  ;;  %10470 = vmatprep.subr.bf16.mxu0 %v10731_v17 }
 0x472   : > { %10492 = vmatprep.subr.bf16.mxu1 %v10732_v30 }
 0x474   : > { %10471 = vmatpush3.bf16.msra.mxu0 %v10733_v8 }
 0x475   : > { %10493 = vmatpush3.bf16.msra.mxu1 %v10734_v36  ;;  %10472 = vmatprep.subr.bf16.mxu0 %v10735_v37 }
 0x476   : > { %10494 = vmatprep.subr.bf16.mxu1 %v10736_v10 }
 0x478   : > { %10473 = vmatpush3.bf16.msra.mxu0 %v10737_v38 }
 0x479   : > { %10495 = vmatpush3.bf16.msra.mxu1 %v10738_v39  ;;  %10474 = vmatprep.subr.bf16.mxu0 %v10739_v40 }
 0x47a   : > { %10496 = vmatprep.subr.bf16.mxu1 %v10740_v41 }
 0x47c   : > { %10475 = vmatpush3.bf16.msra.mxu0 %v10741_v42 }
 0x47d   : > { %10497 = vmatpush3.bf16.msra.mxu1 %v10742_v43  ;;  %10476 = vmatprep.subr.bf16.mxu0 %v10743_v44 }
 0x47e   : > { %10498 = vmatprep.subr.bf16.mxu1 %v10744_v45 }
 0x480   : > { %10477 = vmatpush3.bf16.msra.mxu0 %v10745_v46 }
 0x481   : > { %10499 = vmatpush3.bf16.msra.mxu1 %v10746_v47  ;;  %10478 = vmatprep.subr.bf16.mxu0 %v10747_v48 }
 0x482   : > { %10500 = vmatprep.subr.bf16.mxu1 %v10748_v32 }
 0x484   : > { %10479 = vmatpush3.bf16.msra.mxu0 %v10749_v49 }
 0x485   : > { %10501 = vmatpush3.bf16.msra.mxu1 %v10750_v50  ;;  %10508 = vmatprep.subr.bf16.mxu0 %v10751_v51 }
 0x486   : > { %10530 = vmatprep.subr.bf16.mxu1 %v10752_v52 }
 0x487   : > { %9102 = vmatmul.mubr.bf16.vlgmr.msra.gmra.mrb[16].mxu0 %v14171_v6  ;;  %v10760_v6 = vld [vmem:[%s14488_s5 + $0x1d0] sm:$0xff]  }
 0x488   : > { %9143 = vmatmul.mubr.bf16.vlgmr.msra.gmra.mrb[16].mxu1 %v14173_v9  ;;  %10509 = vmatpush3.bf16.msra.mxu0 %v10753_v3  ;;  %v10761_v9 = vld [vmem:[%s14488_s5 + $0x110] sm:$0xff]   ;;  %v10397_v3 = vld [vmem:[%s14489_s6] ss:$0 sm:$0xff] }
 0x489   : > { %10531 = vmatpush3.bf16.msra.mxu1 %v10754_v0  ;;  %10510 = vmatprep.subr.bf16.mxu0 %v10755_v18 }
 0x48a   : > { %10532 = vmatprep.subr.bf16.mxu1 %v10756_v53 }
 0x48c   : > { %10511 = vmatpush3.bf16.msra.mxu0 %v10757_v12 }
 0x48d   : > { %10533 = vmatpush3.bf16.msra.mxu1 %v10758_v54  ;;  %10512 = vmatprep.subr.bf16.mxu0 %v10759_v55 }
 0x48e   : > { %10534 = vmatprep.subr.bf16.mxu1 %v10760_v6 }
 0x490   : > { %10513 = vmatpush3.bf16.msra.mxu0 %v10761_v9 }
 0x491   : > { %10535 = vmatpush3.bf16.msra.mxu1 %v10762_v56  ;;  %10514 = vmatprep.subr.bf16.mxu0 %v10763_v57 }
 0x492   : > { %10536 = vmatprep.subr.bf16.mxu1 %v10764_v58 }
 0x494   : > { %10515 = vmatpush3.bf16.msra.mxu0 %v10765_v60 }
 0x495   : > { %10537 = vmatpush3.bf16.msra.mxu1 %v10766_v61  ;;  %10516 = vmatprep.subr.bf16.mxu0 %v10767_v62 }
 0x496   : > { %10538 = vmatprep.subr.bf16.mxu1 %v10768_v63 }
 0x498   : > { %10517 = vmatpush3.bf16.msra.mxu0 %v10769_v1 }
 0x499   : > { %10539 = vmatpush3.bf16.msra.mxu1 %v10770_v11  ;;  %10518 = vmatprep.subr.bf16.mxu0 %v10771_v5 }
 0x49a   : > { %10540 = vmatprep.subr.bf16.mxu1 %v10772_v19 }
 0x49c   : > { %10519 = vmatpush3.bf16.msra.mxu0 %v10773_v20 }
 0x49d   : > { %10541 = vmatpush3.bf16.msra.mxu1 %v10774_v21  ;;  %10520 = vmatprep.subr.bf16.mxu0 %v10775_v22 }
 0x49e   : > { %10542 = vmatprep.subr.bf16.mxu1 %v10776_v23 }
 0x4a0   : > { %10521 = vmatpush3.bf16.msra.mxu0 %v10777_v24 }
 0x4a1   : > { %10543 = vmatpush3.bf16.msra.mxu1 %v10778_v25  ;;  %10522 = vmatprep.subr.bf16.mxu0 %v10779_v26 }
 0x4a2   : > { %10544 = vmatprep.subr.bf16.mxu1 %v10780_v2 }
 0x4a4   : > { %10523 = vmatpush3.bf16.msra.mxu0 %v10781_v4 }
 0x4a5   : > { %10545 = vmatpush3.bf16.msra.mxu1 %v10782_v7 }
 0x53a   : > { %v8345_v13 = vpop.f32.mrb[12].mxu0 }
 0x53b   : > { %v10576_v29 = vadd.f32 %v8345_v13, %v5257_v27  ;;  %v8517_v17 = vpop.f32.mrb[12].mxu1  ;;  %v8347_v30 = vpop.f32.mrb[13].mxu0 }
 0x53c   : > { %v10580_v8 = vadd.f32 %v8517_v17, %v5265_v15  ;;  %v10577_v36 = vadd.f32 %v8347_v30, %v5261_v28  ;;  %v8519_v37 = vpop.f32.mrb[13].mxu1  ;;  %v8349_v31 = vpop.f32.mrb[14].mxu0 }
 0x53d   : > { %v10581_v10 = vadd.f32 %v8519_v37, %v5269_v14  ;;  %v10578_v38 = vadd.f32 %v8349_v31, %v5257_v27  ;;  %v8521_v39 = vpop.f32.mrb[14].mxu1  ;;  %v8351_v33 = vpop.f32.mrb[15].mxu0  ;;  %v8530_v34 = vmax.f32 %v10576_v29, 0.0 }
 0x53e   : > { %v10582_v40 = vadd.f32 %v8521_v39, %v5265_v15  ;;  %v10579_v41 = vadd.f32 %v8351_v33, %v5261_v28  ;;  %v8523_v42 = vpop.f32.mrb[15].mxu1  ;;  %v8532_v44 = vmax.f32 %v10580_v8, 0.0  ;;  %v8531_v35 = vmax.f32 %v10577_v36, 0.0 }
 0x53f   : > { %v8538_v43 = vmax.f32 %v10578_v38, 0.0  ;;  %v10583_v59 = vadd.f32 %v8523_v42, %v5269_v14  ;;  %v8533_v46 = vmax.f32 %v10581_v10, 0.0 }
 0x540   : > { %v8540_v16 = vmax.f32 %v10582_v40, 0.0  ;;  %v8539_v45 = vmax.f32 %v10579_v41, 0.0 }
 0x541   : > { %v8546_v47 = vpack.c.bf16 %v8538_v43, %v8530_v34  ;;  %v8541_v48 = vmax.f32 %v10583_v59, 0.0 }
 0x542   : > { %v8548_v32 = vpack.c.bf16 %v8540_v16, %v8532_v44  ;;  %v8547_v49 = vpack.c.bf16 %v8539_v45, %v8531_v35 }
 0x543   : > { %v8549_v50 = vpack.c.bf16 %v8541_v48, %v8533_v46 }
 0x544   : > { %9183 = vmatprep.mubr.bf16.mxu0 %v8547_v49 }
 0x545   : > { %9224 = vmatprep.mubr.bf16.mxu1 %v8549_v50  ;;  %9184 = vmatmul.mubr.bf16.vlgmr.msra.gmra.mrb[20].mxu0 %v8546_v47 }
 0x546   : > { %9225 = vmatmul.mubr.bf16.vlgmr.msra.gmra.mrb[20].mxu1 %v8548_v32 }
 0x55a   : > { %v10480_v51 = vpop.f32.mrb[16].mxu0 }
 0x55b   : > { %v10502_v52 = vpop.f32.mrb[16].mxu1  ;;  %v10481_v0 = vpop.f32.mrb[17].mxu0 }
 0x55c   : > { %v10482_v18 = vadd.f32 %v10481_v0, %v10480_v51  ;;  %v10503_v53 = vpop.f32.mrb[17].mxu1  ;;  %v10483_v12 = vpop.f32.mrb[18].mxu0 }
 0x55d   : > { %v10504_v54 = vadd.f32 %v10503_v53, %v10502_v52  ;;  %v10505_v55 = vpop.f32.mrb[18].mxu1  ;;  %v10484_v6 = vpop.f32.mrb[19].mxu0 }
 0x55e   : > { %v9104_v9 = vadd.f32 %v10482_v18, %v10397_v3  ;;  %v10485_v56 = vadd.f32 %v10484_v6, %v10483_v12  ;;  %v10506_v57 = vpop.f32.mrb[19].mxu1 }
 0x55f   : > { %v10507_v58 = vadd.f32 %v10506_v57, %v10505_v55 }
 0x560   : > { %v9145_v60 = vadd.f32 %v10504_v54, %v9104_v9  ;;  %v9107_v61 = vadd.f32 %v10485_v56, %v10397_v3 }
 0x562   : > { %v9148_v62 = vadd.f32 %v10507_v58, %v9107_v61 }
 0x618   : > { %v10524_v63 = vpop.f32.mrb[20].mxu0 }
 0x619   : > { %v10546_v1 = vpop.f32.mrb[20].mxu1  ;;  %v10525_v11 = vpop.f32.mrb[21].mxu0 }
 0x61a   : > { %v10526_v5 = vadd.f32 %v10525_v11, %v10524_v63  ;;  %v10547_v19 = vpop.f32.mrb[21].mxu1  ;;  %v10527_v20 = vpop.f32.mrb[22].mxu0 }
 0x61b   : > { %v10548_v21 = vadd.f32 %v10547_v19, %v10546_v1  ;;  %v10549_v22 = vpop.f32.mrb[22].mxu1  ;;  %v10528_v23 = vpop.f32.mrb[23].mxu0 }
 0x61c   : > { %v9186_v24 = vadd.f32 %v10526_v5, %v9145_v60  ;;  %v10529_v25 = vadd.f32 %v10528_v23, %v10527_v20  ;;  %v10550_v26 = vpop.f32.mrb[23].mxu1 }
 0x61d   : > { %v10551_v2 = vadd.f32 %v10550_v26, %v10549_v22 }
 0x61e   : > { %v9227_v4 = vadd.f32 %v10548_v21, %v9186_v24  ;;  %v9189_v7 = vadd.f32 %v10529_v25, %v9148_v62 }
 0x620   : > { %9233 = vst [vmem:[%s283_s27] sm:$0xff] %v9227_v4  ;;  %v9230_v27 = vadd.f32 %v10551_v2, %v9189_v7 }
 0x622   : > { %9234 = vst [vmem:[%s283_s27 + $0x8] sm:$0xff] %v9230_v27 }
 0x623 PF: > { %s17_s24 = sadd.s32 1, %s10799_s24  }
 0x624   : > { %p14_p4 = scmp.ge.s32.totalorder %s17_s24, 4  }
 0x626   :  { %16 = sbr.rel (!%p14_p4) target bundleno = 1 (0x1), region = 78 }

</bundles_post_ra>
